<compile_context>
chip_gen: v6e
topology: v6e:2x2x1
jax: 0.10.0
libtpu: 0.0.40
codegen_flags: <defaults>
</compile_context>

<pallas_src>
import math

import jax
import jax.numpy as jnp
from jax.experimental import pallas as pl
from jax.experimental.pallas import tpu as pltpu


def _hardswish(x):
    # x * relu6(x + 3) / 6  (matches torch.nn.Hardswish)
    return x * jnp.clip(x + 3.0, 0.0, 6.0) * (1.0 / 6.0)


def _resblock_kernel(xpad_ref, w1_ref, wdw_ref, w2_ref, out_ref):
    # xpad_ref: (1, H+2, W+2, Cin)  zero-padded NHWC input (halo for the dwconv)
    # w1_ref  : (Cin, Ch)           conv1 1x1 weights (matmul layout)
    # wdw_ref : (3, 3, Ch)          depthwise 3x3 weights, channel-last
    # w2_ref  : (Ch, Cout)          conv2 1x1 weights (matmul layout)
    # out_ref : (1, H, W, Cout)     NHWC output (residual already added)
    Hp, Wp, Cin = xpad_ref.shape[1], xpad_ref.shape[2], xpad_ref.shape[3]
    H, W, Cout = out_ref.shape[1], out_ref.shape[2], out_ref.shape[3]
    Ch = w1_ref.shape[1]

    xpad = xpad_ref[0].astype(jnp.float32)                        # (H+2, W+2, Cin)

    # --- conv1 (1x1, Cin -> Ch) on the MXU + Hardswish, over the padded image.
    # The padded border stays exactly zero (no bias, Hardswish(0)=0), which is
    # bit-equivalent to the reference "conv1 then zero-pad" ordering.
    f1 = jnp.dot(xpad.reshape(Hp * Wp, Cin), w1_ref[...],
                 preferred_element_type=jnp.float32)
    f1 = _hardswish(f1).reshape(Hp, Wp, Ch)                       # (H+2, W+2, Ch)

    # --- depthwise 3x3 conv (pad=1): 9 shifted windows x lane-aligned weights.
    wdw = wdw_ref[...].astype(jnp.float32)                        # (3, 3, Ch), loaded once
    acc = f1[0:H, 0:W, :] * wdw[0, 0, :]
    for i in range(3):
        for j in range(3):
            if i == 0 and j == 0:
                continue
            acc = acc + f1[i:i + H, j:j + W, :] * wdw[i, j, :]
    acc = _hardswish(acc)                                         # activation after dwconv

    # --- conv2 (1x1, Ch -> Cout) on the MXU (Identity act) + residual add ----
    y = jnp.dot(acc.reshape(H * W, Ch), w2_ref[...],
                preferred_element_type=jnp.float32).reshape(H, W, Cout)
    identity = xpad[1:1 + H, 1:1 + W, :]                          # unpadded input
    out_ref[0] = (identity + y).astype(out_ref.dtype)


@jax.jit
def resblock_forward(x_nchw, w1, wdw, w2):
    """ResBlock.forward.  x_nchw: (B, Cin, H, W); returns (B, Cout, H, W)."""
    B, Cin, H, W = x_nchw.shape
    Ch = w1.shape[1]
    Cout = w2.shape[1]
    assert Cout == Cin, "residual add requires out_features == in_features"

    x = jnp.transpose(x_nchw, (0, 2, 3, 1))                       # NCHW -> NHWC (once)
    xpad = jnp.pad(x, ((0, 0), (1, 1), (1, 1), (0, 0)))           # halo for the dwconv

    out = pl.pallas_call(
        _resblock_kernel,
        out_shape=jax.ShapeDtypeStruct((B, H, W, Cout), x.dtype),
        grid=(B,),
        in_specs=[
            pl.BlockSpec((1, H + 2, W + 2, Cin), lambda b: (b, 0, 0, 0)),
            pl.BlockSpec((Cin, Ch), lambda b: (0, 0)),             # resident weights
            pl.BlockSpec((3, 3, Ch), lambda b: (0, 0, 0)),
            pl.BlockSpec((Ch, Cout), lambda b: (0, 0)),
        ],
        out_specs=pl.BlockSpec((1, H, W, Cout), lambda b: (b, 0, 0, 0)),
        compiler_params=pltpu.CompilerParams(
            dimension_semantics=("parallel",)),                   # megacore batch split
    )(xpad, w1, wdw, w2)
    return jnp.transpose(out, (0, 3, 1, 2))                       # NHWC -> NCHW (once)


def init_resblock_params(key, in_features, hidden_features=None, out_features=None):
    """Synthetic init matching ResBlock._init_weights: N(0, sqrt(2/(kh*kw*out//groups)))."""
    hidden_features = hidden_features or in_features
    out_features = out_features or in_features
    k1, k2, k3 = jax.random.split(key, 3)
    # conv1: 1x1, out=hidden, groups=1 -> fan_out = hidden
    w1 = jax.random.normal(k1, (in_features, hidden_features), jnp.float32) \
        * math.sqrt(2.0 / hidden_features)
    # dwconv: 3x3, out=hidden, groups=hidden -> fan_out = 9; stored channel-last (3,3,Ch)
    wdw = jax.random.normal(k2, (3, 3, hidden_features), jnp.float32) \
        * math.sqrt(2.0 / 9.0)
    # conv2: 1x1, out=out_features, groups=1 -> fan_out = out_features
    w2 = jax.random.normal(k3, (hidden_features, out_features), jnp.float32) \
        * math.sqrt(2.0 / out_features)
    return w1, wdw, w2


def _resblock_ref(x_nchw, w1, wdw, w2):
    """Pure-JAX reference (same math, high-precision matmuls) for validation."""
    B, Cin, H, W = x_nchw.shape
    x = jnp.transpose(x_nchw, (0, 2, 3, 1)).astype(jnp.float32)
    hp = jax.lax.Precision.HIGHEST
    f1 = jnp.einsum('bhwc,cd->bhwd', x, w1, precision=hp)
    f1 = _hardswish(f1)
    f1p = jnp.pad(f1, ((0, 0), (1, 1), (1, 1), (0, 0)))
    acc = jnp.zeros_like(f1)
    for i in range(3):
        for j in range(3):
            acc = acc + f1p[:, i:i + H, j:j + W, :] * wdw[i, j, :]
    acc = _hardswish(acc)
    y = jnp.einsum('bhwd,de->bhwe', acc, w2, precision=hp)
    out = x + y
    return jnp.transpose(out, (0, 3, 1, 2))


if __name__ == "__main__":
    key = jax.random.PRNGKey(0)
    k_x, k_p = jax.random.split(key)

    B, in_features, H, W = 2, 4, 16, 16
    hidden_features = 32
    out_features = in_features                                    # residual constraint

    x = jax.random.normal(k_x, (B, in_features, H, W), jnp.float32)
    w1, wdw, w2 = init_resblock_params(k_p, in_features, hidden_features, out_features)

    out = resblock_forward(x, w1, wdw, w2)
    out = jax.block_until_ready(out)

    assert out.shape == (B, out_features, H, W)
    assert bool(jnp.all(jnp.isfinite(out)))

    ref = _resblock_ref(x, w1, wdw, w2)
    max_err = float(jnp.max(jnp.abs(out - ref)))
    assert bool(jnp.allclose(out, ref, rtol=2e-2, atol=2e-2)), max_err

    print("KERNEL_OK")
</pallas_src>

<mosaic_0001>
module attributes {stable_mosaic.version = 11 : i64} {
  func.func @_resblock_kernel(%arg0: i32, %arg1: memref<1x18x18x4xf32, #tpu.memory_space<vmem>>, %arg2: memref<4x32xf32, #tpu.memory_space<vmem>>, %arg3: memref<3x3x32xf32, #tpu.memory_space<vmem>>, %arg4: memref<32x4xf32, #tpu.memory_space<vmem>>, %arg5: memref<1x16x16x4xf32, #tpu.memory_space<vmem>>) attributes {dimension_semantics = [#tpu.dimension_semantics<parallel>], iteration_bounds = array<i64: 2>, scalar_prefetch = 0 : i64, scratch_operands = 0 : i64, tpu.core_type = #tpu.core_type<tc>, window_params = [{transform_indices = @transform_0, window_bounds = array<i64: 1, 18, 18, 4>}, {pipeline_mode = #tpu.pipeline_mode<synchronous>, transform_indices = @transform_1, window_bounds = array<i64: 4, 32>}, {pipeline_mode = #tpu.pipeline_mode<synchronous>, transform_indices = @transform_2, window_bounds = array<i64: 3, 3, 32>}, {pipeline_mode = #tpu.pipeline_mode<synchronous>, transform_indices = @transform_3, window_bounds = array<i64: 32, 4>}, {transform_indices = @transform_4, window_bounds = array<i64: 1, 16, 16, 4>}]} {
    %c0 = arith.constant 0 : index
    %c0_0 = arith.constant 0 : index
    %c0_1 = arith.constant 0 : index
    %c0_2 = arith.constant 0 : index
    %0 = vector.load %arg1[%c0, %c0_0, %c0_1, %c0_2] : memref<1x18x18x4xf32, #tpu.memory_space<vmem>>, vector<1x18x18x4xf32>
    %1 = vector.shape_cast %0 : vector<1x18x18x4xf32> to vector<18x18x4xf32>
    %2 = vector.shape_cast %1 : vector<18x18x4xf32> to vector<324x4xf32>
    %c0_3 = arith.constant 0 : index
    %c0_4 = arith.constant 0 : index
    %3 = vector.load %arg2[%c0_3, %c0_4] : memref<4x32xf32, #tpu.memory_space<vmem>>, vector<4x32xf32>
    %cst = arith.constant dense<0.000000e+00> : vector<324x32xf32>
    %4 = tpu.matmul %2, %3, %cst {dimension_numbers = #tpu.dot_dimension_numbers<[1], [0], [0], [1], [0, 0, 1, 1], [], []>} : vector<324x4xf32>, vector<4x32xf32>, vector<324x32xf32> -> vector<324x32xf32>
    %cst_5 = arith.constant 3.000000e+00 : f32
    %5 = vector.broadcast %cst_5 : f32 to vector<324x32xf32>
    %6 = arith.addf %4, %5 : vector<324x32xf32>
    %cst_6 = arith.constant 0.000000e+00 : f32
    %cst_7 = arith.constant 6.000000e+00 : f32
    %7 = vector.broadcast %cst_6 : f32 to vector<324x32xf32>
    %8 = arith.maximumf %7, %6 : vector<324x32xf32>
    %9 = vector.broadcast %cst_7 : f32 to vector<324x32xf32>
    %10 = arith.minimumf %9, %8 : vector<324x32xf32>
    %11 = arith.mulf %4, %10 : vector<324x32xf32>
    %cst_8 = arith.constant 0.166666672 : f32
    %12 = vector.broadcast %cst_8 : f32 to vector<324x32xf32>
    %13 = arith.mulf %11, %12 : vector<324x32xf32>
    %14 = vector.shape_cast %13 : vector<324x32xf32> to vector<18x18x32xf32>
    %c0_9 = arith.constant 0 : index
    %c0_10 = arith.constant 0 : index
    %c0_11 = arith.constant 0 : index
    %15 = vector.load %arg3[%c0_9, %c0_10, %c0_11] : memref<3x3x32xf32, #tpu.memory_space<vmem>>, vector<3x3x32xf32>
    %16 = vector.extract_strided_slice %14 {offsets = [0, 0, 0], sizes = [16, 16, 32], strides = [1, 1, 1]} : vector<18x18x32xf32> to vector<16x16x32xf32>
    %17 = vector.extract_strided_slice %15 {offsets = [0, 0, 0], sizes = [1, 1, 32], strides = [1, 1, 1]} : vector<3x3x32xf32> to vector<1x1x32xf32>
    %18 = vector.shape_cast %17 : vector<1x1x32xf32> to vector<32xf32>
    %19 = vector.shape_cast %18 : vector<32xf32> to vector<1x1x32xf32>
    %20 = vector.broadcast %19 : vector<1x1x32xf32> to vector<16x16x32xf32>
    %21 = arith.mulf %16, %20 : vector<16x16x32xf32>
    %22 = vector.extract_strided_slice %14 {offsets = [0, 1, 0], sizes = [16, 16, 32], strides = [1, 1, 1]} : vector<18x18x32xf32> to vector<16x16x32xf32>
    %23 = vector.extract_strided_slice %15 {offsets = [0, 1, 0], sizes = [1, 1, 32], strides = [1, 1, 1]} : vector<3x3x32xf32> to vector<1x1x32xf32>
    %24 = vector.shape_cast %23 : vector<1x1x32xf32> to vector<32xf32>
    %25 = vector.shape_cast %24 : vector<32xf32> to vector<1x1x32xf32>
    %26 = vector.broadcast %25 : vector<1x1x32xf32> to vector<16x16x32xf32>
    %27 = arith.mulf %22, %26 : vector<16x16x32xf32>
    %28 = arith.addf %21, %27 : vector<16x16x32xf32>
    %29 = vector.extract_strided_slice %14 {offsets = [0, 2, 0], sizes = [16, 16, 32], strides = [1, 1, 1]} : vector<18x18x32xf32> to vector<16x16x32xf32>
    %30 = vector.extract_strided_slice %15 {offsets = [0, 2, 0], sizes = [1, 1, 32], strides = [1, 1, 1]} : vector<3x3x32xf32> to vector<1x1x32xf32>
    %31 = vector.shape_cast %30 : vector<1x1x32xf32> to vector<32xf32>
    %32 = vector.shape_cast %31 : vector<32xf32> to vector<1x1x32xf32>
    %33 = vector.broadcast %32 : vector<1x1x32xf32> to vector<16x16x32xf32>
    %34 = arith.mulf %29, %33 : vector<16x16x32xf32>
    %35 = arith.addf %28, %34 : vector<16x16x32xf32>
    %36 = vector.extract_strided_slice %14 {offsets = [1, 0, 0], sizes = [16, 16, 32], strides = [1, 1, 1]} : vector<18x18x32xf32> to vector<16x16x32xf32>
    %37 = vector.extract_strided_slice %15 {offsets = [1, 0, 0], sizes = [1, 1, 32], strides = [1, 1, 1]} : vector<3x3x32xf32> to vector<1x1x32xf32>
    %38 = vector.shape_cast %37 : vector<1x1x32xf32> to vector<32xf32>
    %39 = vector.shape_cast %38 : vector<32xf32> to vector<1x1x32xf32>
    %40 = vector.broadcast %39 : vector<1x1x32xf32> to vector<16x16x32xf32>
    %41 = arith.mulf %36, %40 : vector<16x16x32xf32>
    %42 = arith.addf %35, %41 : vector<16x16x32xf32>
    %43 = vector.extract_strided_slice %14 {offsets = [1, 1, 0], sizes = [16, 16, 32], strides = [1, 1, 1]} : vector<18x18x32xf32> to vector<16x16x32xf32>
    %44 = vector.extract_strided_slice %15 {offsets = [1, 1, 0], sizes = [1, 1, 32], strides = [1, 1, 1]} : vector<3x3x32xf32> to vector<1x1x32xf32>
    %45 = vector.shape_cast %44 : vector<1x1x32xf32> to vector<32xf32>
    %46 = vector.shape_cast %45 : vector<32xf32> to vector<1x1x32xf32>
    %47 = vector.broadcast %46 : vector<1x1x32xf32> to vector<16x16x32xf32>
    %48 = arith.mulf %43, %47 : vector<16x16x32xf32>
    %49 = arith.addf %42, %48 : vector<16x16x32xf32>
    %50 = vector.extract_strided_slice %14 {offsets = [1, 2, 0], sizes = [16, 16, 32], strides = [1, 1, 1]} : vector<18x18x32xf32> to vector<16x16x32xf32>
    %51 = vector.extract_strided_slice %15 {offsets = [1, 2, 0], sizes = [1, 1, 32], strides = [1, 1, 1]} : vector<3x3x32xf32> to vector<1x1x32xf32>
    %52 = vector.shape_cast %51 : vector<1x1x32xf32> to vector<32xf32>
    %53 = vector.shape_cast %52 : vector<32xf32> to vector<1x1x32xf32>
    %54 = vector.broadcast %53 : vector<1x1x32xf32> to vector<16x16x32xf32>
    %55 = arith.mulf %50, %54 : vector<16x16x32xf32>
    %56 = arith.addf %49, %55 : vector<16x16x32xf32>
    %57 = vector.extract_strided_slice %14 {offsets = [2, 0, 0], sizes = [16, 16, 32], strides = [1, 1, 1]} : vector<18x18x32xf32> to vector<16x16x32xf32>
    %58 = vector.extract_strided_slice %15 {offsets = [2, 0, 0], sizes = [1, 1, 32], strides = [1, 1, 1]} : vector<3x3x32xf32> to vector<1x1x32xf32>
    %59 = vector.shape_cast %58 : vector<1x1x32xf32> to vector<32xf32>
    %60 = vector.shape_cast %59 : vector<32xf32> to vector<1x1x32xf32>
    %61 = vector.broadcast %60 : vector<1x1x32xf32> to vector<16x16x32xf32>
    %62 = arith.mulf %57, %61 : vector<16x16x32xf32>
    %63 = arith.addf %56, %62 : vector<16x16x32xf32>
    %64 = vector.extract_strided_slice %14 {offsets = [2, 1, 0], sizes = [16, 16, 32], strides = [1, 1, 1]} : vector<18x18x32xf32> to vector<16x16x32xf32>
    %65 = vector.extract_strided_slice %15 {offsets = [2, 1, 0], sizes = [1, 1, 32], strides = [1, 1, 1]} : vector<3x3x32xf32> to vector<1x1x32xf32>
    %66 = vector.shape_cast %65 : vector<1x1x32xf32> to vector<32xf32>
    %67 = vector.shape_cast %66 : vector<32xf32> to vector<1x1x32xf32>
    %68 = vector.broadcast %67 : vector<1x1x32xf32> to vector<16x16x32xf32>
    %69 = arith.mulf %64, %68 : vector<16x16x32xf32>
    %70 = arith.addf %63, %69 : vector<16x16x32xf32>
    %71 = vector.extract_strided_slice %14 {offsets = [2, 2, 0], sizes = [16, 16, 32], strides = [1, 1, 1]} : vector<18x18x32xf32> to vector<16x16x32xf32>
    %72 = vector.extract_strided_slice %15 {offsets = [2, 2, 0], sizes = [1, 1, 32], strides = [1, 1, 1]} : vector<3x3x32xf32> to vector<1x1x32xf32>
    %73 = vector.shape_cast %72 : vector<1x1x32xf32> to vector<32xf32>
    %74 = vector.shape_cast %73 : vector<32xf32> to vector<1x1x32xf32>
    %75 = vector.broadcast %74 : vector<1x1x32xf32> to vector<16x16x32xf32>
    %76 = arith.mulf %71, %75 : vector<16x16x32xf32>
    %77 = arith.addf %70, %76 : vector<16x16x32xf32>
    %cst_12 = arith.constant 3.000000e+00 : f32
    %78 = vector.broadcast %cst_12 : f32 to vector<16x16x32xf32>
    %79 = arith.addf %77, %78 : vector<16x16x32xf32>
    %cst_13 = arith.constant 0.000000e+00 : f32
    %cst_14 = arith.constant 6.000000e+00 : f32
    %80 = vector.broadcast %cst_13 : f32 to vector<16x16x32xf32>
    %81 = arith.maximumf %80, %79 : vector<16x16x32xf32>
    %82 = vector.broadcast %cst_14 : f32 to vector<16x16x32xf32>
    %83 = arith.minimumf %82, %81 : vector<16x16x32xf32>
    %84 = arith.mulf %77, %83 : vector<16x16x32xf32>
    %cst_15 = arith.constant 0.166666672 : f32
    %85 = vector.broadcast %cst_15 : f32 to vector<16x16x32xf32>
    %86 = arith.mulf %84, %85 : vector<16x16x32xf32>
    %87 = vector.shape_cast %86 : vector<16x16x32xf32> to vector<256x32xf32>
    %c0_16 = arith.constant 0 : index
    %c0_17 = arith.constant 0 : index
    %88 = vector.load %arg4[%c0_16, %c0_17] : memref<32x4xf32, #tpu.memory_space<vmem>>, vector<32x4xf32>
    %cst_18 = arith.constant dense<0.000000e+00> : vector<256x4xf32>
    %89 = tpu.matmul %87, %88, %cst_18 {dimension_numbers = #tpu.dot_dimension_numbers<[1], [0], [0], [1], [0, 0, 1, 1], [], []>} : vector<256x32xf32>, vector<32x4xf32>, vector<256x4xf32> -> vector<256x4xf32>
    %90 = vector.shape_cast %89 : vector<256x4xf32> to vector<16x16x4xf32>
    %91 = vector.extract_strided_slice %1 {offsets = [1, 1, 0], sizes = [16, 16, 4], strides = [1, 1, 1]} : vector<18x18x4xf32> to vector<16x16x4xf32>
    %92 = arith.addf %91, %90 : vector<16x16x4xf32>
    %c0_19 = arith.constant 0 : index
    %c0_20 = arith.constant 0 : index
    %c0_21 = arith.constant 0 : index
    %c0_22 = arith.constant 0 : index
    %93 = vector.load %arg5[%c0_19, %c0_20, %c0_21, %c0_22] : memref<1x16x16x4xf32, #tpu.memory_space<vmem>>, vector<1x16x16x4xf32>
    %94 = vector.shape_cast %93 : vector<1x16x16x4xf32> to vector<16x16x4xf32>
    %95 = vector.shape_cast %92 : vector<16x16x4xf32> to vector<1x16x16x4xf32>
    tpu.vector_store %arg5[%c0_19, %c0_20, %c0_21, %c0_22], %95 {strides = array<i32>} : memref<1x16x16x4xf32, #tpu.memory_space<vmem>>, vector<1x16x16x4xf32>,
    return
  }
  func.func @transform_0(%arg0: i32) -> (i32, i32, i32, i32) {
    %c0_i32 = arith.constant 0 : i32
    %c0_i32_0 = arith.constant 0 : i32
    %c0_i32_1 = arith.constant 0 : i32
    %c0_i32_2 = arith.constant 0 : i32
    return %arg0, %c0_i32, %c0_i32_0, %c0_i32_1 : i32, i32, i32, i32
  }
  func.func @transform_1(%arg0: i32) -> (i32, i32) {
    %c0_i32 = arith.constant 0 : i32
    %c0_i32_0 = arith.constant 0 : i32
    %c0_i32_1 = arith.constant 0 : i32
    return %c0_i32, %c0_i32_0 : i32, i32
  }
  func.func @transform_2(%arg0: i32) -> (i32, i32, i32) {
    %c0_i32 = arith.constant 0 : i32
    %c0_i32_0 = arith.constant 0 : i32
    %c0_i32_1 = arith.constant 0 : i32
    %c0_i32_2 = arith.constant 0 : i32
    return %c0_i32, %c0_i32_0, %c0_i32_1 : i32, i32, i32
  }
  func.func @transform_3(%arg0: i32) -> (i32, i32) {
    %c0_i32 = arith.constant 0 : i32
    %c0_i32_0 = arith.constant 0 : i32
    %c0_i32_1 = arith.constant 0 : i32
    return %c0_i32, %c0_i32_0 : i32, i32
  }
  func.func @transform_4(%arg0: i32) -> (i32, i32, i32, i32) {
    %c0_i32 = arith.constant 0 : i32
    %c0_i32_0 = arith.constant 0 : i32
    %c0_i32_1 = arith.constant 0 : i32
    %c0_i32_2 = arith.constant 0 : i32
    return %arg0, %c0_i32, %c0_i32_0, %c0_i32_1 : i32, i32, i32, i32
  }
}

</mosaic_0001>

<bundles_post_ra>
// kernel: resblock_forward.1
= control target key start
LH: loop header
LB: loop body
LE: loop exit
PB: predicated region body
PF: predicated region fallthrough
CT: control target
= control target key end

     0   :  { %s10143_s15 = smov 0   ;;  %s15662_s0 = inlined_call_operand.vmem [shape: f32[2,18,18,4], index: 0, kind: input, shape index: {}]   ;;  %s15663_s1 = inlined_call_operand.vmem [shape: f32[4,32], index: 1, kind: input, shape index: {}]   ;;  %s15664_s2 = inlined_call_operand.vmem [shape: f32[3,3,32], index: 2, kind: input, shape index: {}]   ;;  %s15665_s3 = inlined_call_operand.vmem [shape: f32[32,4], index: 3, kind: input, shape index: {}]   ;;  %s15666_s4 = inlined_call_operand.vmem [shape: f32[2,16,16,4], index: 4, kind: output, shape index: {}]  }
   0x1 LB: > { %s9599_s16 = sadd.s32 4294967295, %s10113_s15   ;;  %p9603_p0 = scmp.ge.s32.totalorder %s10113_s15, 1  ;;  %s10113_s15 = sphi %s10143_s15, %s14_s15  }
   0x2   : > { %p162_p1 = scmp.lt.s32.totalorder %s10113_s15, 3 }
   0x4   : > { %p163_p2 = pnand %p9603_p0, %p162_p1 }
   0x6   : > { %166 = sbr.rel (%p163_p2) target bundleno = 1613 (0x64d), region = 36 }
   0xb   : > { %v1044_v0 = vld [vmem:[%s15663_s1] sm:$0xf]  ;;  %vm1816_vm0 = vcmask 1043456   ;;  %p188_p3 = scmp.lt.s32.totalorder %s9599_s16, 1  ;;  %v310_v1 = vlaneseq  ;;  %v10115_v2 = vmov 0.0   ;;  %vm10116_vm1 = vmmov 0  }
   0xc   : > { %9812 = vmatprep.subr.mxu0 %v10115_v2  ;;  %9814 = vmatprep.mubr.msk.f32.mxu0 %vm10116_vm1, %v10115_v2  ;;  %v10117_v3 = vmov 1983009808   ;;  %vm1733_vm2 = vcmask 31744   ;;  %vm3365_vm3 = vcmask 1040384   ;;  %vm3366_vm4 = vcmask 1042434  }
   0xd   : > { %9813 = vmatpush3.msk.msra.mxu0 %vm1816_vm0, %v1044_v0  ;;  %s17633_s16 = smov (!%p188_p3, %s9599_s16), 1  ;;  %v308_v4 = vunpack.c.l.s4 %v10117_v3  ;;  %v10159_v5 = vshrl.u32 %v310_v1, 7  ;;  %9993 = vmatprep.subr.mxu1 %v10115_v2  ;;  %vm3367_vm5 = vmor %vm3365_vm3, %vm3366_vm4  ;;  %vm3368_vm6 = vcmask 1044484   ;;  %vm3370_vm8 = vcmask 1046534  }
   0xe   : > { %9994 = vmatpush3.msk.msra.mxu1 %vm1816_vm0, %v1044_v0  ;;  %9901 = vmatprep.mubr.msk.f32.mxu1 %vm10116_vm1, %v10115_v2  ;;  %s9995_s19 = smul.u32 432, %s17633_s16  ;;  %vm3369_vm7 = vmor %vm3367_vm5, %vm3368_vm6  ;;  %vm9028_vm10 = vcmask 261120   ;;  %s9733_s11 = sshll.u32 %s17633_s16, 8  ;;  %vm9497_vm11 = vcmask 24576   ;;  %vm9494_vm12 = vcmask 31745  }
   0xf   : > { %v309_v6 = vunpack.c.0.s8 %v308_v4  ;;  %vm10597_vm9 = vmor %vm3369_vm7, %vm3370_vm8  ;;  %s15459_s14 = scalar_lea.vmem %s15666_s4, %s9733_s11 }
  0x10   : > { %s10168_s22 = scalar_lea.vmem %s15662_s0, %s9995_s19 }
  0x11   : > { %v10171_v7 = vsub.s32 %v309_v6, %v10159_v5  ;;  %v198_v8 = vld [vmem:[%s10168_s22] sm:$0xff]  ;;  %v199_v9 = vld [vmem:[%s10168_s22 + $0x8] sm:$0xff]  ;;  %v201_v14 = vld [vmem:[%s10168_s22 + $0x18] sm:$0xff] }
  0x12   : > { %v306_v10 = vcombine.high %v198_v8, %v198_v8  ;;  %v323_v12 = vcombine.high %v199_v9, %v199_v9  ;;  %v202_v15 = vld [vmem:[%s10168_s22 + $0x20] sm:$0xff]  ;;  %v347_v16 = vcombine.high %v201_v14, %v201_v14  ;;  %v9607_v22 = vld.sshfl [vmem:[%s10168_s22 + $0x10] sm:$0x3 pattern:$0x76325410]  ;;  %v205_v45 = vld [vmem:[%s10168_s22 + $0x38] sm:$0xff] }
  0x13   : > { %16378 = vst [vmem:[#allocation2_spill] sm:$0xff] %v10171_v7  ;;  %v313_v11 = vrot.slane %v198_v8, %v10171_v7  ;;  %v330_v13 = vrot.slane %v199_v9, %v10171_v7  ;;  %v354_v17 = vrot.slane %v201_v14, %v10171_v7  ;;  %v364_v25 = vcombine.high %v202_v15, %v202_v15  ;;  %v204_v31 = vld [vmem:[%s10168_s22 + $0x30] sm:$0xff]  ;;  %v10091_v40 = vld.sshfl [vmem:[%s10168_s22 + $0x28] sm:$0x3 pattern:$0x76325410] }
  0x14   : > { %v320_v18 = vrot.slane %v306_v10, %v10171_v7  ;;  %v337_v20 = vrot.slane %v323_v12, %v10171_v7  ;;  %v361_v23 = vrot.slane %v347_v16, %v10171_v7  ;;  %v371_v26 = vrot.slane %v202_v15, %v10171_v7  ;;  %v10092_v58 = vld.sshfl [vmem:[%s10168_s22 + $0x40] sm:$0x3 pattern:$0x76325410]  ;;  %v207_v59 = vld [vmem:[%s10168_s22 + $0x48] sm:$0xff]  ;;  %v208_v63 = vld [vmem:[%s10168_s22 + $0x50] sm:$0xff] }
  0x15   : > { %v321_v19 = vcombine.high %v313_v11, %v313_v11  ;;  %v338_v21 = vcombine.high %v330_v13, %v330_v13  ;;  %v362_v24 = vcombine.high %v354_v17, %v354_v17  ;;  %v1079_v35 = vcombine.low %v9607_v22, %v354_v17  ;;  %v210_v4 = vld [vmem:[%s10168_s22 + $0x60] sm:$0xff]  ;;  %v211_v15 = vld [vmem:[%s10168_s22 + $0x68] sm:$0xff] }
  0x16   : > { %v322_v27 = vcombine.high %v320_v18, %v320_v18  ;;  %v339_v29 = vcombine.high %v337_v20, %v337_v20  ;;  %v363_v37 = vcombine.high %v361_v23, %v361_v23  ;;  %v378_v38 = vrot.slane %v364_v25, %v10171_v7 }
  0x17   : > { %v1045_v28 = vcombine.low %v313_v11, %v321_v19  ;;  %v1062_v30 = vcombine.low %v330_v13, %v338_v21  ;;  %v1080_v36 = vcombine.low %v362_v24, %v361_v23  ;;  %v379_v39 = vcombine.high %v371_v26, %v371_v26 }
  0x18   : > { %v1046_v32 = vcombine.low %v320_v18, %v322_v27  ;;  %v1063_v34 = vcombine.low %v337_v20, %v339_v29  ;;  %v395_v44 = vrot.slane %v204_v31, %v10171_v7  ;;  %v388_v46 = vcombine.high %v204_v31, %v204_v31  ;;  %v10093_v27 = vld.sshfl [vmem:[%s10168_s22 + $0x58] sm:$0x3 pattern:$0x76325410] }
  0x19   : > { %v1053_v33 = vrot.slane %v1045_v28, %v10171_v7  ;;  %v1070_v42 = vrot.slane %v1062_v30, %v10171_v7  ;;  %v380_v48 = vcombine.high %v378_v38, %v378_v38  ;;  %v1087_v50 = vrot.slane %v1079_v35, %v10171_v7  ;;  %v213_v30 = vld [vmem:[%s10168_s22 + $0x78] sm:$0xff] }
  0x1a   : > { %v1060_v41 = vrot.slane %v1046_v32, %v10171_v7  ;;  %v1077_v43 = vrot.slane %v1063_v34, %v10171_v7  ;;  %v403_v49 = vcombine.high %v395_v44, %v395_v44  ;;  %v402_v51 = vrot.slane %v388_v46, %v10171_v7 }
  0x1b   : > { %v412_v52 = vrot.slane %v205_v45, %v10171_v7  ;;  %v405_v53 = vcombine.high %v205_v45, %v205_v45  ;;  %v1094_v55 = vrot.slane %v1080_v36, %v10171_v7  ;;  %v1096_v56 = vcombine.low %v363_v37, %v371_v26 }
  0x1c   : > { %v1061_v47 = vcombine.low %v1053_v33, %v1060_v41  ;;  %v1078_v54 = vcombine.low %v1070_v42, %v1077_v43  ;;  %v1097_v57 = vcombine.low %v379_v39, %v378_v38  ;;  %v1113_v60 = vcombine.low %v380_v48, %v10091_v40  ;;  %v214_v39 = vld [vmem:[%s10168_s22 + $0x80] sm:$0xff] }
  0x1d   : > { %v1114_v61 = vcombine.low %v395_v44, %v403_v49  ;;  %v419_v62 = vrot.slane %v405_v53, %v10171_v7  ;;  %v404_v0 = vcombine.high %v402_v51, %v402_v51  ;;  %v420_v1 = vcombine.high %v412_v52, %v412_v52 }
  0x1e   : > { %9815 = vmatmul.mubr.msk.f32.vlgmr.msra.gmra.mxu0 %vm1733_vm2, %v1061_v47  ;;  %v436_v3 = vrot.slane %v207_v59, %v10171_v7  ;;  %v1095_v6 = vcombine.low %v1087_v50, %v1094_v55  ;;  %v1104_v8 = vrot.slane %v1096_v56, %v10171_v7  ;;  %v1111_v9 = vrot.slane %v1097_v57, %v10171_v7  ;;  %v10094_v47 = vld.sshfl [vmem:[%s10168_s22 + $0x70] sm:$0x3 pattern:$0x76325410] }
  0x1f   : > { %9817 = vmatprep.mubr.msk.f32.mxu0 %vm10116_vm1, %v10115_v2  ;;  %v429_v10 = vcombine.high %v207_v59, %v207_v59  ;;  %v446_v11 = vcombine.high %v208_v63, %v208_v63  ;;  %v1121_v12 = vrot.slane %v1113_v60, %v10171_v7  ;;  %v421_v13 = vcombine.high %v419_v62, %v419_v62  ;;  %v216_v55 = vld [vmem:[%s10168_s22 + $0x90] sm:$0xff] }
  0x20   : > { %v470_v14 = vcombine.high %v210_v4, %v210_v4  ;;  %v1128_v16 = vrot.slane %v1114_v61, %v10171_v7  ;;  %v1130_v17 = vcombine.low %v402_v51, %v404_v0  ;;  %v1131_v18 = vcombine.low %v412_v52, %v420_v1 }
  0x21   : > { %v1148_v19 = vcombine.low %v10092_v58, %v436_v3  ;;  %v1112_v20 = vcombine.low %v1104_v8, %v1111_v9  ;;  %v443_v21 = vrot.slane %v429_v10, %v10171_v7  ;;  %v444_v22 = vcombine.high %v436_v3, %v436_v3  ;;  %v10095_v3 = vld.sshfl [vmem:[%s10168_s22 + $0x88] sm:$0x3 pattern:$0x76325410] }
  0x22   : > { %9818 = vmatmul.mubr.msk.f32.gmra.mxu0 %vm1733_vm2, %v1078_v54  ;;  %v460_v23 = vrot.slane %v446_v11, %v10171_v7  ;;  %v487_v24 = vcombine.high %v211_v15, %v211_v15  ;;  %v1147_v25 = vcombine.low %v419_v62, %v421_v13  ;;  %v453_v26 = vrot.slane %v208_v63, %v10171_v7 }
  0x23   : > { %9820 = vmatprep.mubr.msk.f32.mxu0 %vm10116_vm1, %v10115_v2  ;;  %v477_v28 = vrot.slane %v210_v4, %v10171_v7  ;;  %v484_v29 = vrot.slane %v470_v14, %v10171_v7  ;;  %v1129_v31 = vcombine.low %v1121_v12, %v1128_v16  ;;  %v1138_v32 = vrot.slane %v1130_v17, %v10171_v7 }
  0x24   : > { %v1145_v33 = vrot.slane %v1131_v18, %v10171_v7  ;;  %v1162_v34 = vrot.slane %v1148_v19, %v10171_v7  ;;  %v445_v35 = vcombine.high %v443_v21, %v443_v21  ;;  %v461_v36 = vcombine.high %v453_v26, %v453_v26 }
  0x25   : > { %v494_v37 = vrot.slane %v211_v15, %v10171_v7  ;;  %v501_v38 = vrot.slane %v487_v24, %v10171_v7  ;;  %v462_v40 = vcombine.high %v460_v23, %v460_v23  ;;  %v511_v41 = vcombine.high %v213_v30, %v213_v30 }
  0x26   : > { %9821 = vmatmul.mubr.msk.f32.gmra.mxu0 %vm1733_vm2, %v1095_v6  ;;  %v518_v42 = vrot.slane %v213_v30, %v10171_v7  ;;  %v1155_v43 = vrot.slane %v1147_v25, %v10171_v7  ;;  %v1164_v44 = vcombine.low %v444_v22, %v443_v21  ;;  %v485_v45 = vcombine.high %v477_v28, %v477_v28  ;;  %v217_v6 = vld [vmem:[%s10168_s22 + $0x98] sm:$0xff] }
  0x27   : > { %9823 = vmatprep.mubr.msk.f32.mxu0 %vm10116_vm1, %v10115_v2  ;;  %v486_v46 = vcombine.high %v484_v29, %v484_v29  ;;  %v1146_v48 = vcombine.low %v1138_v32, %v1145_v33  ;;  %v528_v49 = vcombine.high %v214_v39, %v214_v39  ;;  %v535_v50 = vrot.slane %v214_v39, %v10171_v7 }
  0x28   : > { %v1165_v51 = vcombine.low %v445_v35, %v453_v26  ;;  %v1181_v52 = vcombine.low %v461_v36, %v460_v23  ;;  %v502_v53 = vcombine.high %v494_v37, %v494_v37  ;;  %v503_v54 = vcombine.high %v501_v38, %v501_v38  ;;  %v10096_v35 = vld.sshfl [vmem:[%s10168_s22 + $0x130] sm:$0x3 pattern:$0x76325410]  ;;  %v237_v36 = vld [vmem:[%s10168_s22 + $0x138] sm:$0xff] }
  0x29   : > { %v1182_v56 = vcombine.low %v462_v40, %v10093_v27  ;;  %v525_v57 = vrot.slane %v511_v41, %v10171_v7  ;;  %v526_v58 = vcombine.high %v518_v42, %v518_v42  ;;  %v1163_v59 = vcombine.low %v1155_v43, %v1162_v34  ;;  %v10276_v41 = vld.sshfl [vmem:[%s10168_s22 + $0xa0] sm:$0x3 pattern:$0x76325410] }
  0x2a   : > { %9824 = vmatmul.mubr.msk.f32.gmra.mxu0 %vm1733_vm2, %v1112_v20  ;;  %v1172_v60 = vrot.slane %v1164_v44, %v10171_v7  ;;  %v1198_v61 = vcombine.low %v477_v28, %v485_v45  ;;  %v1199_v62 = vcombine.low %v484_v29, %v486_v46  ;;  %v542_v0 = vrot.slane %v528_v49, %v10171_v7  ;;  %v219_v29 = vld [vmem:[%s10168_s22 + $0xa8] sm:$0xff] }
  0x2b   : > { %9826 = vmatprep.mubr.msk.f32.mxu0 %vm10116_vm1, %v10115_v2  ;;  %v527_v63 = vcombine.high %v525_v57, %v525_v57  ;;  %v543_v1 = vcombine.high %v535_v50, %v535_v50  ;;  %v559_v4 = vrot.slane %v216_v55, %v10171_v7  ;;  %v1179_v8 = vrot.slane %v1165_v51, %v10171_v7 }
  0x2c   : > { %v1215_v9 = vcombine.low %v494_v37, %v502_v53  ;;  %v1216_v10 = vcombine.low %v501_v38, %v503_v54  ;;  %v552_v11 = vcombine.high %v216_v55, %v216_v55  ;;  %v1189_v12 = vrot.slane %v1181_v52, %v10171_v7 }
  0x2d   : > { %v1196_v13 = vrot.slane %v1182_v56, %v10171_v7  ;;  %v1232_v14 = vcombine.low %v10094_v47, %v518_v42  ;;  %v1233_v15 = vcombine.low %v526_v58, %v525_v57  ;;  %v1206_v16 = vrot.slane %v1198_v61, %v10171_v7  ;;  %v238_v56 = vld [vmem:[%s10168_s22 + $0x140] sm:$0xff] }
  0x2e   : > { %9827 = vmatmul.mubr.msk.f32.gmra.mxu0 %vm1733_vm2, %v1129_v31  ;;  %v544_v17 = vcombine.high %v542_v0, %v542_v0  ;;  %v576_v18 = vrot.slane %v217_v6, %v10171_v7  ;;  %v1213_v19 = vrot.slane %v1199_v62, %v10171_v7  ;;  %v1249_v20 = vcombine.low %v527_v63, %v535_v50  ;;  %v220_v31 = vld [vmem:[%s10168_s22 + $0xb0] sm:$0xff]  ;;  %v10098_v62 = vld.sshfl [vmem:[%s10168_s22 + $0xb8] sm:$0x3 pattern:$0x76325410] }
  0x2f   : > { %9829 = vmatprep.mubr.msk.f32.mxu0 %vm10116_vm1, %v10115_v2  ;;  %v1250_v21 = vcombine.low %v543_v1, %v542_v0  ;;  %v567_v22 = vcombine.high %v559_v4, %v559_v4  ;;  %v1180_v23 = vcombine.low %v1172_v60, %v1179_v8  ;;  %v1223_v24 = vrot.slane %v1215_v9, %v10171_v7  ;;  %v222_v8 = vld [vmem:[%s10168_s22 + $0xc0] sm:$0xff] }
  0x30   : > { %v1230_v25 = vrot.slane %v1216_v10, %v10171_v7  ;;  %v566_v26 = vrot.slane %v552_v11, %v10171_v7  ;;  %v1240_v27 = vrot.slane %v1232_v14, %v10171_v7  ;;  %v1247_v28 = vrot.slane %v1233_v15, %v10171_v7 }
  0x31   : > { %v569_v30 = vcombine.high %v217_v6, %v217_v6  ;;  %v1197_v32 = vcombine.low %v1189_v12, %v1196_v13  ;;  %v10267_v33 = vcombine.low %v544_v17, %v10095_v3  ;;  %v584_v34 = vcombine.high %v576_v18, %v576_v18 }
  0x32   : > { %9830 = vmatmul.mubr.msk.f32.gmra.mxu0 %vm1733_vm2, %v1146_v48  ;;  %v1214_v37 = vcombine.low %v1206_v16, %v1213_v19  ;;  %v1257_v38 = vrot.slane %v1249_v20, %v10171_v7  ;;  %v1264_v39 = vrot.slane %v1250_v21, %v10171_v7  ;;  %v10273_v40 = vcombine.low %v559_v4, %v567_v22  ;;  %v10099_v21 = vld.sshfl [vmem:[%s10168_s22 + $0x148] sm:$0x3 pattern:$0x76325410]  ;;  %v240_v22 = vld [vmem:[%s10168_s22 + $0x150] sm:$0xff] }
  0x33   : > { %9832 = vmatprep.mubr.msk.f32.mxu0 %vm10116_vm1, %v10115_v2  ;;  %v1231_v42 = vcombine.low %v1223_v24, %v1230_v25  ;;  %v568_v43 = vcombine.high %v566_v26, %v566_v26  ;;  %v593_v44 = vcombine.high %v219_v29, %v219_v29  ;;  %v610_v45 = vcombine.high %v220_v31, %v220_v31 }
  0x34   : > { %v10281_v46 = vcombine.low %v1240_v27, %v1247_v28  ;;  %v583_v47 = vrot.slane %v569_v30, %v10171_v7  ;;  %v839_v48 = vcombine.high %v237_v36, %v237_v36  ;;  %v1274_v49 = vrot.slane %v10267_v33, %v10171_v7  ;;  %v243_v33 = vld [vmem:[%s10168_s22 + $0x168] sm:$0xff] }
  0x35   : > { %v10286_v50 = vcombine.low %v576_v18, %v584_v34  ;;  %v600_v51 = vrot.slane %v219_v29, %v10171_v7  ;;  %v10289_v52 = vcombine.low %v1257_v38, %v1264_v39  ;;  %v1281_v53 = vrot.slane %v10273_v40, %v10171_v7  ;;  %v223_v38 = vld [vmem:[%s10168_s22 + $0xc8] sm:$0xff]  ;;  %v225_v40 = vld [vmem:[%s10168_s22 + $0xd8] sm:$0xff] }
  0x36   : > { %9833 = vmatmul.mubr.msk.f32.gmra.mxu0 %vm1733_vm2, %v1163_v59  ;;  %v846_v54 = vrot.slane %v237_v36, %v10171_v7  ;;  %v853_v55 = vrot.slane %v839_v48, %v10171_v7  ;;  %v10297_v57 = vcombine.low %v566_v26, %v568_v43  ;;  %v607_v58 = vrot.slane %v593_v44, %v10171_v7  ;;  %v241_v48 = vld [vmem:[%s10168_s22 + $0x158] sm:$0xff] }
  0x37   : > { %9835 = vmatprep.mubr.msk.f32.mxu0 %vm10116_vm1, %v10115_v2  ;;  %v617_v59 = vrot.slane %v220_v31, %v10171_v7  ;;  %v624_v60 = vrot.slane %v610_v45, %v10171_v7  ;;  %v585_v61 = vcombine.high %v583_v47, %v583_v47  ;;  %v1298_v3 = vrot.slane %v10286_v50, %v10171_v7 }
  0x38   : > { %v854_v63 = vcombine.high %v846_v54, %v846_v54  ;;  %v1538_v0 = vcombine.low %v10096_v35, %v846_v54  ;;  %v855_v1 = vcombine.high %v853_v55, %v853_v55  ;;  %v1301_v4 = vcombine.low %v10276_v41, %v600_v51 }
  0x39   : > { %v608_v6 = vcombine.high %v600_v51, %v600_v51  ;;  %v856_v9 = vcombine.high %v238_v56, %v238_v56  ;;  %v625_v10 = vcombine.high %v617_v59, %v617_v59  ;;  %v863_v13 = vrot.slane %v238_v56, %v10171_v7 }
  0x3a   : > { %9836 = vmatmul.mubr.msk.f32.gmra.mxu0 %vm1733_vm2, %v1180_v23  ;;  %v1539_v11 = vcombine.low %v854_v63, %v853_v55  ;;  %v1546_v12 = vrot.slane %v1538_v0, %v10171_v7  ;;  %v609_v14 = vcombine.high %v607_v58, %v607_v58  ;;  %v626_v15 = vcombine.high %v624_v60, %v624_v60  ;;  %v10100_v0 = vld.sshfl [vmem:[%s10168_s22 + $0x160] sm:$0x3 pattern:$0x76325410] }
  0x3b   : > { %9838 = vmatprep.mubr.msk.f32.mxu0 %vm10116_vm1, %v10115_v2  ;;  %v870_v16 = vrot.slane %v856_v9, %v10171_v7  ;;  %v634_v18 = vcombine.high %v222_v8, %v222_v8  ;;  %v871_v19 = vcombine.high %v863_v13, %v863_v13  ;;  %v1555_v20 = vcombine.low %v855_v1, %v863_v13  ;;  %v10380_v13 = vld.sshfl [vmem:[%s10168_s22 + $0xd0] sm:$0x3 pattern:$0x76325410] }
  0x3c   : > { %v1553_v17 = vrot.slane %v1539_v11, %v10171_v7  ;;  %v1291_v23 = vrot.slane %v10297_v57, %v10171_v7  ;;  %v1300_v24 = vcombine.low %v583_v47, %v585_v61  ;;  %v641_v25 = vrot.slane %v222_v8, %v10171_v7 }
  0x3d   : > { %v872_v26 = vcombine.high %v870_v16, %v870_v16  ;;  %v1317_v27 = vcombine.low %v608_v6, %v607_v58  ;;  %v1556_v29 = vcombine.low %v871_v19, %v870_v16  ;;  %v1563_v30 = vrot.slane %v1555_v20, %v10171_v7  ;;  %v226_v16 = vld [vmem:[%s10168_s22 + $0xe0] sm:$0xff] }
  0x3e   : > { %9839 = vmatmul.mubr.msk.f32.gmra.mxu0 %vm1733_vm2, %v1197_v32  ;;  %v1554_v28 = vcombine.low %v1546_v12, %v1553_v17  ;;  %v1318_v31 = vcombine.low %v609_v14, %v617_v59  ;;  %v1334_v32 = vcombine.low %v625_v10, %v624_v60  ;;  %v887_v34 = vrot.slane %v240_v22, %v10171_v7 }
  0x3f   : > { %9841 = vmatprep.mubr.msk.f32.mxu0 %vm10116_vm1, %v10115_v2  ;;  %v1335_v35 = vcombine.low %v626_v15, %v10098_v62  ;;  %v648_v36 = vrot.slane %v634_v18, %v10171_v7  ;;  %v1315_v39 = vrot.slane %v1301_v4, %v10171_v7  ;;  %v649_v41 = vcombine.high %v641_v25, %v641_v25 }
  0x40   : > { %9902 = vmatmul.mubr.msk.f32.vlgmr.msra.gmra.mxu1 %vm1733_vm2, %v1554_v28  ;;  %v1572_v43 = vcombine.low %v872_v26, %v10099_v21  ;;  %v1308_v44 = vrot.slane %v1300_v24, %v10171_v7  ;;  %v1325_v45 = vrot.slane %v1317_v27, %v10171_v7  ;;  %v880_v51 = vcombine.high %v240_v22, %v240_v22  ;;  %v244_v28 = vld [vmem:[%s10168_s22 + $0x170] sm:$0xff] }
  0x41   : > { %9904 = vmatprep.mubr.msk.f32.mxu1 %vm10116_vm1, %v10115_v2  ;;  %v1332_v54 = vrot.slane %v1318_v31, %v10171_v7  ;;  %v651_v55 = vcombine.high %v223_v38, %v223_v38  ;;  %v1342_v58 = vrot.slane %v1334_v32, %v10171_v7  ;;  %v1349_v59 = vrot.slane %v1335_v35, %v10171_v7 }
  0x42   : > { %9842 = vmatmul.mubr.msk.f32.gmra.mxu0 %vm1733_vm2, %v1214_v37  ;;  %v1570_v37 = vrot.slane %v1556_v29, %v10171_v7  ;;  %v1580_v57 = vrot.slane %v1572_v43, %v10171_v7  ;;  %v650_v60 = vcombine.high %v648_v36, %v648_v36  ;;  %v10345_v61 = vcombine.low %v641_v25, %v649_v41 }
  0x43   : > { %9844 = vmatprep.mubr.msk.f32.mxu0 %vm10116_vm1, %v10115_v2  ;;  %v894_v62 = vrot.slane %v880_v51, %v10171_v7  ;;  %v904_v63 = vrot.slane %v241_v48, %v10171_v7  ;;  %v1282_v1 = vcombine.low %v1274_v49, %v1281_v53  ;;  %v1299_v4 = vcombine.low %v1291_v23, %v1298_v3 }
  0x44   : > { %v1571_v47 = vcombine.low %v1563_v30, %v1570_v37  ;;  %v1316_v6 = vcombine.low %v1308_v44, %v1315_v39  ;;  %v658_v8 = vrot.slane %v223_v38, %v10171_v7  ;;  %v665_v9 = vrot.slane %v651_v55, %v10171_v7 }
  0x45   : > { %v896_v11 = vcombine.high %v894_v62, %v894_v62  ;;  %v912_v12 = vcombine.high %v904_v63, %v904_v63  ;;  %v10370_v49 = vcombine.low %v1325_v45, %v1332_v54  ;;  %v10372_v50 = vcombine.low %v1342_v58, %v1349_v59  ;;  %v10102_v54 = vld.sshfl [vmem:[%s10168_s22 + $0x178] sm:$0x3 pattern:$0x76325410] }
  0x46   : > { %9845 = vmatmul.mubr.msk.f32.gmra.mxu0 %vm1733_vm2, %v1231_v42  ;;  %v895_v42 = vcombine.high %v887_v34, %v887_v34  ;;  %9905 = vmatmul.mubr.msk.f32.gmra.mxu1 %vm1733_vm2, %v1571_v47  ;;  %v897_v53 = vcombine.high %v241_v48, %v241_v48  ;;  %v10374_v3 = vcombine.low %v648_v36, %v650_v60 }
  0x47   : > { %9847 = vmatprep.mubr.msk.f32.mxu0 %vm10116_vm1, %v10115_v2  ;;  %9907 = vmatprep.mubr.msk.f32.mxu1 %vm10116_vm1, %v10115_v2  ;;  %v1589_v14 = vcombine.low %v894_v62, %v896_v11  ;;  %v1590_v15 = vcombine.low %v904_v63, %v912_v12  ;;  %v666_v17 = vcombine.high %v658_v8, %v658_v8 }
  0x48   : > { %v1573_v56 = vcombine.low %v887_v34, %v895_v42  ;;  %v675_v18 = vcombine.high %v225_v40, %v225_v40  ;;  %v911_v19 = vrot.slane %v897_v53, %v10171_v7  ;;  %v928_v20 = vrot.slane %v243_v33, %v10171_v7 }
  0x49   : > { %v667_v21 = vcombine.high %v665_v9, %v665_v9  ;;  %v682_v22 = vrot.slane %v225_v40, %v10171_v7  ;;  %v1597_v23 = vrot.slane %v1589_v14, %v10171_v7  ;;  %v1604_v24 = vrot.slane %v1590_v15, %v10171_v7  ;;  %v246_v40 = vld [vmem:[%s10168_s22 + $0x180] sm:$0xff] }
  0x4a   : > { %9848 = vmatmul.mubr.msk.f32.gmra.mxu0 %vm1733_vm2, %v10281_v46  ;;  %v1587_v46 = vrot.slane %v1573_v56, %v10171_v7  ;;  %v692_v25 = vcombine.high %v226_v16, %v226_v16  ;;  %v913_v26 = vcombine.high %v911_v19, %v911_v19  ;;  %v1607_v27 = vcombine.low %v10100_v0, %v928_v20 }
  0x4b   : > { %9850 = vmatprep.mubr.msk.f32.mxu0 %vm10116_vm1, %v10115_v2  ;;  %v1605_v29 = vcombine.low %v1597_v23, %v1604_v24  ;;  %v699_v30 = vrot.slane %v226_v16, %v10171_v7  ;;  %v921_v31 = vcombine.high %v243_v33, %v243_v33  ;;  %v936_v32 = vcombine.high %v928_v20, %v928_v20  ;;  %v229_v33 = vld [vmem:[%s10168_s22 + $0xf8] sm:$0xff]  ;;  %v247_v23 = vld [vmem:[%s10168_s22 + $0x188] sm:$0xff] }
  0x4c   : > { %v1588_v10 = vcombine.low %v1580_v57, %v1587_v46  ;;  %v10395_v34 = vcombine.low %v658_v8, %v666_v17  ;;  %v689_v35 = vrot.slane %v675_v18, %v10171_v7  ;;  %v1606_v36 = vcombine.low %v911_v19, %v913_v26  ;;  %v228_v46 = vld [vmem:[%s10168_s22 + $0xf0] sm:$0xff] }
  0x4d   : > { %v1621_v37 = vrot.slane %v1607_v27, %v10171_v7  ;;  %v690_v38 = vcombine.high %v682_v22, %v682_v22  ;;  %v935_v39 = vrot.slane %v921_v31, %v10171_v7  ;;  %v945_v41 = vrot.slane %v244_v28, %v10171_v7 }
  0x4e   : > { %9851 = vmatmul.mubr.msk.f32.gmra.mxu0 %vm1733_vm2, %v10289_v52  ;;  %v1359_v52 = vrot.slane %v10345_v61, %v10171_v7  ;;  %9908 = vmatmul.mubr.msk.f32.gmra.mxu1 %vm1733_vm2, %v1588_v10  ;;  %v1369_v42 = vcombine.low %v665_v9, %v667_v21  ;;  %v691_v43 = vcombine.high %v689_v35, %v689_v35  ;;  %v10103_v9 = vld.sshfl [vmem:[%s10168_s22 + $0xe8] sm:$0x3 pattern:$0x76325410] }
  0x4f   : > { %9853 = vmatprep.mubr.msk.f32.mxu0 %vm10116_vm1, %v10115_v2  ;;  %9910 = vmatprep.mubr.msk.f32.mxu1 %vm10116_vm1, %v10115_v2  ;;  %v1614_v44 = vrot.slane %v1606_v36, %v10171_v7  ;;  %v706_v45 = vrot.slane %v692_v25, %v10171_v7  ;;  %v707_v47 = vcombine.high %v699_v30, %v699_v30 }
  0x50   : > { %v937_v48 = vcombine.high %v935_v39, %v935_v39  ;;  %v1623_v51 = vcombine.low %v936_v32, %v935_v39  ;;  %v1385_v55 = vcombine.low %v10380_v13, %v682_v22  ;;  %v938_v57 = vcombine.high %v244_v28, %v244_v28  ;;  %v10463_v39 = vld.sshfl [vmem:[%s10168_s22 + $0x100] sm:$0x3 pattern:$0x76325410] }
  0x51   : > { %v1622_v56 = vcombine.low %v1614_v44, %v1621_v37  ;;  %v953_v58 = vcombine.high %v945_v41, %v945_v41  ;;  %v1366_v59 = vrot.slane %v10374_v3, %v10171_v7  ;;  %v1386_v60 = vcombine.low %v690_v38, %v689_v35 }
  0x52   : > { %9854 = vmatmul.mubr.msk.f32.gmra.mxu0 %vm1733_vm2, %v1282_v1  ;;  %9911 = vmatmul.mubr.msk.f32.gmra.mxu1 %vm1733_vm2, %v1605_v29  ;;  %v1624_v62 = vcombine.low %v937_v48, %v945_v41  ;;  %v1631_v63 = vrot.slane %v1623_v51, %v10171_v7  ;;  %v1376_v0 = vrot.slane %v10395_v34, %v10171_v7  ;;  %v231_v41 = vld [vmem:[%s10168_s22 + $0x108] sm:$0xff]  ;;  %v10105_v51 = vld.sshfl [vmem:[%s10168_s22 + $0x190] sm:$0x3 pattern:$0x76325410] }
  0x53   : > { %9856 = vmatprep.mubr.msk.f32.mxu0 %vm10116_vm1, %v10115_v2  ;;  %9913 = vmatprep.mubr.msk.f32.mxu1 %vm10116_vm1, %v10115_v2  ;;  %v952_v1 = vrot.slane %v938_v57, %v10171_v7  ;;  %v1403_v8 = vcombine.low %v707_v47, %v706_v45  ;;  %v1393_v11 = vrot.slane %v1385_v55, %v10171_v7 }
  0x54   : > { %v1638_v10 = vrot.slane %v1624_v62, %v10171_v7  ;;  %v723_v12 = vrot.slane %v228_v46, %v10171_v7  ;;  %v1400_v13 = vrot.slane %v1386_v60, %v10171_v7  ;;  %v708_v14 = vcombine.high %v706_v45, %v706_v45 }
  0x55   : > { %v954_v53 = vcombine.high %v952_v1, %v952_v1  ;;  %v1640_v3 = vcombine.low %v953_v58, %v952_v1  ;;  %v716_v16 = vcombine.high %v228_v46, %v228_v46  ;;  %v962_v19 = vcombine.high %v246_v40, %v246_v40  ;;  %v249_v58 = vld [vmem:[%s10168_s22 + $0x198] sm:$0xff] }
  0x56   : > { %9857 = vmatmul.mubr.msk.f32.gmra.mxu0 %vm1733_vm2, %v1299_v4  ;;  %9914 = vmatmul.mubr.msk.f32.gmra.mxu1 %vm1733_vm2, %v1622_v56  ;;  %v1383_v4 = vrot.slane %v1369_v42, %v10171_v7  ;;  %v1639_v15 = vcombine.low %v1631_v63, %v1638_v10  ;;  %v1417_v21 = vrot.slane %v1403_v8, %v10171_v7  ;;  %v232_v8 = vld [vmem:[%s10168_s22 + $0x110] sm:$0xff] }
  0x57   : > { %9859 = vmatprep.mubr.msk.f32.mxu0 %vm10116_vm1, %v10115_v2  ;;  %9916 = vmatprep.mubr.msk.f32.mxu1 %vm10116_vm1, %v10115_v2  ;;  %v1641_v17 = vcombine.low %v954_v53, %v10102_v54  ;;  %v1648_v18 = vrot.slane %v1640_v3, %v10171_v7  ;;  %v969_v22 = vrot.slane %v246_v40, %v10171_v7 }
  0x58   : > { %v1367_v24 = vcombine.low %v1359_v52, %v1366_v59  ;;  %v731_v25 = vcombine.high %v723_v12, %v723_v12  ;;  %v976_v27 = vrot.slane %v962_v19, %v10171_v7  ;;  %v1384_v28 = vcombine.low %v1376_v0, %v1383_v4 }
  0x59   : > { %v1655_v26 = vrot.slane %v1641_v17, %v10171_v7  ;;  %v730_v29 = vrot.slane %v716_v16, %v10171_v7  ;;  %v977_v31 = vcombine.high %v969_v22, %v969_v22  ;;  %v10455_v61 = vcombine.low %v708_v14, %v10103_v9 }
  0x5a   : > { %9860 = vmatmul.mubr.msk.f32.gmra.mxu0 %vm1733_vm2, %v1316_v6  ;;  %v1402_v6 = vcombine.low %v691_v43, %v699_v30  ;;  %9917 = vmatmul.mubr.msk.f32.gmra.mxu1 %vm1733_vm2, %v1639_v15  ;;  %v733_v30 = vcombine.high %v229_v33, %v229_v33  ;;  %v978_v32 = vcombine.high %v976_v27, %v976_v27 }
  0x5b   : > { %9862 = vmatprep.mubr.msk.f32.mxu0 %vm10116_vm1, %v10115_v2  ;;  %9919 = vmatprep.mubr.msk.f32.mxu1 %vm10116_vm1, %v10115_v2  ;;  %v1656_v52 = vcombine.low %v1648_v18, %v1655_v26  ;;  %v979_v34 = vcombine.high %v247_v23, %v247_v23  ;;  %v1401_v35 = vcombine.low %v1393_v11, %v1400_v13 }
  0x5c   : > { %v1410_v20 = vrot.slane %v1402_v6, %v10171_v7  ;;  %v1657_v37 = vcombine.low %v969_v22, %v977_v31  ;;  %v10459_v38 = vcombine.low %v723_v12, %v731_v25  ;;  %v1658_v42 = vcombine.low %v976_v27, %v978_v32  ;;  %v250_v12 = vld [vmem:[%s10168_s22 + $0x1a0] sm:$0xff]  ;;  %v10106_v32 = vld.sshfl [vmem:[%s10168_s22 + $0x118] sm:$0x3 pattern:$0x76325410] }
  0x5d   : > { %v986_v43 = vrot.slane %v247_v23, %v10171_v7  ;;  %v993_v44 = vrot.slane %v979_v34, %v10171_v7  ;;  %v732_v45 = vcombine.high %v730_v29, %v730_v29  ;;  %v747_v47 = vrot.slane %v733_v30, %v10171_v7 }
  0x5e   : > { %9863 = vmatmul.mubr.msk.f32.gmra.mxu0 %vm1733_vm2, %v10370_v49  ;;  %v740_v49 = vrot.slane %v229_v33, %v10171_v7  ;;  %v10457_v36 = vcombine.low %v1410_v20, %v1417_v21  ;;  %9920 = vmatmul.mubr.msk.f32.gmra.mxu1 %vm1733_vm2, %v1656_v52  ;;  %v1665_v48 = vrot.slane %v1657_v37, %v10171_v7  ;;  %v234_v20 = vld [vmem:[%s10168_s22 + $0x120] sm:$0xff] }
  0x5f   : > { %9865 = vmatprep.mubr.msk.f32.mxu0 %vm10116_vm1, %v10115_v2  ;;  %9922 = vmatprep.mubr.msk.f32.mxu1 %vm10116_vm1, %v10115_v2  ;;  %v1427_v54 = vrot.slane %v10455_v61, %v10171_v7  ;;  %v1672_v55 = vrot.slane %v1658_v42, %v10171_v7  ;;  %v994_v56 = vcombine.high %v986_v43, %v986_v43  ;;  %v235_v42 = vld [vmem:[%s10168_s22 + $0x128] sm:$0xff] }
  0x60   : > { %v995_v57 = vcombine.high %v993_v44, %v993_v44  ;;  %v764_v60 = vrot.slane %v231_v41, %v10171_v7  ;;  %v757_v46 = vcombine.high %v231_v41, %v231_v41  ;;  %v1434_v1 = vrot.slane %v10459_v38, %v10171_v7 }
  0x61   : > { %v1673_v62 = vcombine.low %v1665_v48, %v1672_v55  ;;  %v1674_v63 = vcombine.low %v986_v43, %v994_v56  ;;  %v1436_v4 = vcombine.low %v730_v29, %v732_v45  ;;  %v749_v6 = vcombine.high %v747_v47, %v747_v47  ;;  %v9608_v43 = vld.sshfl [vmem:[%s10168_s22 + $0x1a8] sm:$0x3 pattern:$0x76325410] }
  0x62   : > { %9866 = vmatmul.mubr.msk.f32.gmra.mxu0 %vm1733_vm2, %v10372_v50  ;;  %v748_v50 = vcombine.high %v740_v49, %v740_v49  ;;  %v1675_v0 = vcombine.low %v993_v44, %v995_v57  ;;  %v1003_v9 = vcombine.high %v249_v58, %v249_v58  ;;  %v1010_v11 = vrot.slane %v249_v58, %v10171_v7 }
  0x63   : > { %9868 = vmatprep.mubr.msk.f32.mxu0 %vm10116_vm1, %v10115_v2  ;;  %9923 = vmatmul.mubr.msk.f32.gmra.mxu1 %vm1733_vm2, %v1673_v62  ;;  %v1682_v10 = vrot.slane %v1674_v63, %v10171_v7  ;;  %v1454_v53 = vcombine.low %v10463_v39, %v764_v60  ;;  %v771_v3 = vrot.slane %v757_v46, %v10171_v7 }
  0x64   : > { %v1437_v59 = vcombine.low %v740_v49, %v748_v50  ;;  %v1689_v40 = vrot.slane %v1675_v0, %v10171_v7  ;;  %9925 = vmatprep.mubr.msk.f32.mxu1 %vm10116_vm1, %v10115_v2  ;;  %v1017_v13 = vrot.slane %v1003_v9, %v10171_v7  ;;  %v774_v15 = vcombine.high %v232_v8, %v232_v8 }
  0x65   : > { %v1018_v16 = vcombine.high %v1010_v11, %v1010_v11  ;;  %v1691_v17 = vcombine.low %v10105_v51, %v1010_v11  ;;  %v1444_v18 = vrot.slane %v1436_v4, %v10171_v7  ;;  %v772_v19 = vcombine.high %v764_v60, %v764_v60 }
  0x66   : > { %9869 = vmatmul.mubr.msk.f32.gmra.mxu0 %vm1733_vm2, %v1367_v24  ;;  %v1451_v33 = vrot.slane %v1437_v59, %v10171_v7  ;;  %v1690_v14 = vcombine.low %v1682_v10, %v1689_v40  ;;  %v1019_v21 = vcombine.high %v1017_v13, %v1017_v13  ;;  %v1020_v49 = vcombine.high %v250_v12, %v250_v12 }
  0x67   : > { %9871 = vmatprep.mubr.msk.f32.mxu0 %vm10116_vm1, %v10115_v2  ;;  %v1453_v22 = vcombine.low %v747_v47, %v749_v6  ;;  %v1692_v23 = vcombine.low %v1018_v16, %v1017_v13  ;;  %v1699_v24 = vrot.slane %v1691_v17, %v10171_v7  ;;  %v773_v25 = vcombine.high %v771_v3, %v771_v3 }
  0x68   : > { %9926 = vmatmul.mubr.msk.f32.gmra.mxu1 %vm1733_vm2, %v1690_v14  ;;  %v781_v26 = vrot.slane %v232_v8, %v10171_v7  ;;  %v1027_v27 = vrot.slane %v250_v12, %v10171_v7  ;;  %v1435_v29 = vcombine.low %v1427_v54, %v1434_v1  ;;  %v788_v30 = vrot.slane %v774_v15, %v10171_v7 }
  0x69   : > { %9928 = vmatprep.mubr.msk.f32.mxu1 %vm10116_vm1, %v10115_v2  ;;  %v1706_v31 = vrot.slane %v1692_v23, %v10171_v7  ;;  %v798_v61 = vcombine.high %v234_v20, %v234_v20  ;;  %v1468_v52 = vrot.slane %v1454_v53, %v10171_v7  ;;  %v1452_v37 = vcombine.low %v1444_v18, %v1451_v33  ;;  %v3186_v23 = vld [vmem:[%s15664_s2] sm:$0x7] }
  0x6a   : > { %9872 = vmatmul.mubr.msk.f32.gmra.mxu0 %vm1733_vm2, %v1384_v28  ;;  %v1034_v28 = vrot.slane %v1020_v49, %v10171_v7  ;;  %v1035_v34 = vcombine.high %v1027_v27, %v1027_v27  ;;  %v1461_v38 = vrot.slane %v1453_v22, %v10171_v7  ;;  %v1470_v39 = vcombine.low %v772_v19, %v771_v3  ;;  %v8354_v49 = vld [vmem:[%s15665_s3 + $0x10] sm:$0xff]  ;;  %v8353_v22 = vld [vmem:[%s15665_s3 + $0x8] sm:$0xff] }
  0x6b   : > { %9874 = vmatprep.mubr.msk.f32.mxu0 %vm10116_vm1, %v10115_v2  ;;  %v1707_v41 = vcombine.low %v1699_v24, %v1706_v31  ;;  %v1471_v44 = vcombine.low %v773_v25, %v781_v26  ;;  %v789_v45 = vcombine.high %v781_v26, %v781_v26  ;;  %v790_v48 = vcombine.high %v788_v30, %v788_v30 }
  0x6c   : > { %v1036_v50 = vcombine.high %v1034_v28, %v1034_v28  ;;  %v1709_v47 = vcombine.low %v1035_v34, %v1034_v28  ;;  %v805_v51 = vrot.slane %v234_v20, %v10171_v7  ;;  %v812_v54 = vrot.slane %v798_v61, %v10171_v7  ;;  %v3188_v61 = vld [vmem:[%s15664_s2 + $0x8] sm:$0x7] }
  0x6d   : > { %9929 = vmatmul.mubr.msk.f32.gmra.mxu1 %vm1733_vm2, %v1707_v41  ;;  %v815_v56 = vcombine.high %v235_v42, %v235_v42  ;;  %v1469_v58 = vcombine.low %v1461_v38, %v1468_v52  ;;  %v1478_v59 = vrot.slane %v1470_v39, %v10171_v7  ;;  %v1485_v60 = vrot.slane %v1471_v44, %v10171_v7 }
  0x6e   : > { %9875 = vmatmul.mubr.msk.f32.gmra.mxu0 %vm1733_vm2, %v1401_v35  ;;  %v1708_v35 = vcombine.low %v1019_v21, %v1027_v27  ;;  %9931 = vmatprep.mubr.msk.f32.mxu1 %vm10116_vm1, %v10115_v2  ;;  %v1723_v55 = vrot.slane %v1709_v47, %v10171_v7  ;;  %v1725_v57 = vcombine.low %v1036_v50, %v9608_v43  ;;  %v8355_v21 = vld [vmem:[%s15665_s3 + $0x18] sm:$0xff]  ;;  %v3191_v25 = vsub.s32 0, %v10159_v5  ;;  %v3187_v27 = vld [vmem:[%s15664_s2 + $0x4] sm:$0x7] }
  0x6f   : > { %9877 = vmatprep.mubr.msk.f32.mxu0 %vm10116_vm1, %v10115_v2  ;;  %v1487_v62 = vcombine.low %v789_v45, %v788_v30  ;;  %v1488_v63 = vcombine.low %v790_v48, %v10106_v32  ;;  %v813_v0 = vcombine.high %v805_v51, %v805_v51  ;;  %v814_v1 = vcombine.high %v812_v54, %v812_v54 }
  0x70   : > { %v822_v4 = vrot.slane %v235_v42, %v10171_v7  ;;  %v829_v6 = vrot.slane %v815_v56, %v10171_v7  ;;  %v1732_v8 = vrot.slane %v1725_v57, %v10171_v7  ;;  %v1486_v9 = vcombine.low %v1478_v59, %v1485_v60  ;;  %9937 = vmatprep.subr.mxu1 %v8355_v21 }
  0x71   : > { %v1495_v10 = vrot.slane %v1487_v62, %v10171_v7  ;;  %v1502_v40 = vrot.slane %v1488_v63, %v10171_v7  ;;  %v1504_v11 = vcombine.low %v805_v51, %v813_v0  ;;  %v1505_v12 = vcombine.low %v812_v54, %v814_v1  ;;  %9938 = vmatpush3.msra.mxu1 %v8355_v21 }
  0x72   : > { %9878 = vmatmul.mubr.msk.f32.gmra.mxu0 %vm1733_vm2, %v10457_v36  ;;  %v1716_v36 = vrot.slane %v1708_v35, %v10171_v7  ;;  %v830_v33 = vcombine.high %v822_v4, %v822_v4  ;;  %v831_v53 = vcombine.high %v829_v6, %v829_v6  ;;  %9939 = vmatprep.subr.mxu1 %v8354_v49  ;;  %v4336_v32 = vsub.s32 2, %v10159_v5 }
  0x73   : > { %9880 = vmatprep.mubr.msk.f32.mxu0 %vm10116_vm1, %v10115_v2  ;;  %v1503_v3 = vcombine.low %v1495_v10, %v1502_v40  ;;  %v1512_v13 = vrot.slane %v1504_v11, %v10171_v7  ;;  %v1519_v14 = vrot.slane %v1505_v12, %v10171_v7  ;;  %9940 = vmatpush3.msra.mxu1 %v8354_v49 }
  0x74   : > { %v1724_v46 = vcombine.low %v1716_v36, %v1723_v55  ;;  %v1521_v15 = vcombine.low %v822_v4, %v830_v33  ;;  %v1522_v16 = vcombine.low %v829_v6, %v831_v53  ;;  %9941 = vmatprep.subr.mxu1 %v8353_v22  ;;  %v4619_v35 = vrot.slane %v3187_v27, %v3191_v25  ;;  %v8352_v4 = vld [vmem:[%s15665_s3] sm:$0xff] }
  0x75   : > { %v1520_v17 = vcombine.low %v1512_v13, %v1519_v14  ;;  %9942 = vmatpush3.msra.mxu1 %v8353_v22  ;;  %v4337_v43 = vrot.slane %v3186_v23, %v4336_v32  ;;  %v5885_v60 = vrot.slane %v3187_v27, %v4336_v32  ;;  %v7433_v22 = vrot.slane %v3188_v61, %v4336_v32 }
  0x76   : > { %9881 = vmatmul.mubr.msk.f32.gmra.mxu0 %vm1733_vm2, %v1435_v29  ;;  %9932 = vmatmul.mubr.msk.f32.gmra.mxu1 %vm1733_vm2, %v1724_v46  ;;  %v1529_v18 = vrot.slane %v1521_v15, %v10171_v7  ;;  %v1536_v19 = vrot.slane %v1522_v16, %v10171_v7  ;;  %v3192_v29 = vrot.slane %v3186_v23, %v3191_v25 }
  0x77   : > { %9883 = vmatprep.mubr.msk.f32.mxu0 %vm10116_vm1, %v10115_v2  ;;  %9934 = vmatprep.mubr.msk.f32.mxu1 %vm10116_vm1, %v10115_v2  ;;  %v4621_v47 = vcombine.high %v4619_v35, %v4619_v35  ;;  %v4339_v59 = vcombine.high %v4337_v43, %v4337_v43  ;;  %v10607_v63 = vrot.slane %v4337_v43, %v10171_v7 }
  0x78   : > { %v1537_v20 = vcombine.low %v1529_v18, %v1536_v19  ;;  %v10590_v45 = vrot.slane %v3192_v29, %v10171_v7  ;;  %v10610_v0 = vrot.slane %v4619_v35, %v10171_v7  ;;  %9943 = vmatprep.subr.mxu1 %v8352_v4  ;;  %v6167_v18 = vrot.slane %v3188_v61, %v3191_v25 }
  0x79   : > { %16385 = vst [vmem:[#allocation7_spill] sm:$0xff] %v10607_v63  ;;  %9944 = vmatpush3.msra.mxu1 %v8352_v4  ;;  %v10634_v53 = vrot.slane %v4339_v59, %v10171_v7  ;;  %v10640_v15 = vcombine.high %v10607_v63, %v10607_v63  ;;  %v10694_v59 = vrot.slane %v7433_v22, %v10171_v7 }
  0x7a   : > { %9884 = vmatmul.mubr.msk.f32.gmra.mxu0 %vm1733_vm2, %v1452_v37  ;;  %9935 = vmatmul.mubr.msk.f32.gmra.mxu1 %vm1733_vm2, %v1732_v8  ;;  %v3194_v37 = vcombine.high %v3192_v29, %v3192_v29  ;;  %16380 = vst [vmem:[#allocation4_spill] sm:$0xff] %v10590_v45  ;;  %v10604_v62 = vcombine.high %v10590_v45, %v10590_v45  ;;  %16386 = vst [vmem:[#allocation8_spill] sm:$0xff] %v10610_v0 }
  0x7b   : > { %9886 = vmatprep.mubr.msk.f32.mxu0 %vm10116_vm1, %v10115_v2  ;;  %v10622_v8 = vrot.slane %v4621_v47, %v10171_v7  ;;  %16392 = vst [vmem:[#allocation14_spill] sm:$0xff] %v10634_v53  ;;  %16394 = vst [vmem:[#allocation16_spill] sm:$0xff] %v10640_v15  ;;  %v10661_v29 = vcombine.high %v10634_v53, %v10634_v53  ;;  %v6169_v32 = vcombine.high %v6167_v18, %v6167_v18 }
  0x7c   : > { %v10595_v51 = vrot.slane %v3194_v37, %v10171_v7  ;;  %16384 = vst [vmem:[#allocation6_spill] sm:$0xff] %v10604_v62  ;;  %16409 = vst [vmem:[#allocation31_spill] sm:$0xff] %v10694_v59 }
  0x7d   : > { %16389 = vst [vmem:[#allocation11_spill] sm:$0xff] %v10622_v8  ;;  %16399 = vst [vmem:[#allocation21_spill] sm:$0xff] %v10661_v29  ;;  %v10679_v47 = vcombine.high %v10622_v8, %v10622_v8 }
  0x7e   : > { %9887 = vmatmul.mubr.msk.f32.gmra.mxu0 %vm1733_vm2, %v1469_v58  ;;  %16381 = vst [vmem:[#allocation5_spill] sm:$0xff] %v10595_v51  ;;  %v10644_v16 = vcombine.high %v10595_v51, %v10595_v51 }
  0x7f   : > { %9889 = vmatprep.mubr.msk.f32.mxu0 %vm10116_vm1, %v10115_v2  ;;  %16404 = vst [vmem:[#allocation26_spill] sm:$0xff] %v10679_v47 }
  0x80   : > { %16395 = vst [vmem:[#allocation17_spill] sm:$0xff] %v10644_v16 }
  0x82   : > { %9890 = vmatmul.mubr.msk.f32.gmra.mxu0 %vm1733_vm2, %v1486_v9 }
  0x83   : > { %9892 = vmatprep.mubr.msk.f32.mxu0 %vm10116_vm1, %v10115_v2 }
  0x86   : > { %9893 = vmatmul.mubr.msk.f32.gmra.mxu0 %vm1733_vm2, %v1503_v3  ;;  %v5887_v3 = vcombine.high %v5885_v60, %v5885_v60 }
  0x87   : > { %9895 = vmatprep.mubr.msk.f32.mxu0 %vm10116_vm1, %v10115_v2 }
  0x8a   : > { %9896 = vmatmul.mubr.msk.f32.gmra.mxu0 %vm1733_vm2, %v1520_v17 }
  0x8b   : > { %9898 = vmatprep.mubr.msk.f32.mxu0 %vm10116_vm1, %v10115_v2  ;;  %v3345_v2 = vsub.s32 1, %v10159_v5 }
  0x8d   : > { %v3346_v24 = vrot.slane %v3186_v23, %v3345_v2  ;;  %v4901_v31 = vrot.slane %v3187_v27, %v3345_v2  ;;  %v6449_v50 = vrot.slane %v3188_v61, %v3345_v2  ;;  %v10651_v27 = vrot.slane %v5887_v3, %v10171_v7 }
  0x8e   : > { %9899 = vmatmul.mubr.msk.f32.gmra.mxu0 %vm1733_vm2, %v1537_v20  ;;  %v10648_v20 = vrot.slane %v5885_v60, %v10171_v7 }
  0x8f   : > { %v3355_v26 = vrot.slane %v3346_v24, %v10171_v7  ;;  %v3348_v28 = vcombine.high %v3346_v24, %v3346_v24  ;;  %v4903_v41 = vcombine.high %v4901_v31, %v4901_v31  ;;  %v4910_v44 = vrot.slane %v4901_v31, %v10171_v7  ;;  %16397 = vst [vmem:[#allocation19_spill] sm:$0xff] %v10651_v27 }
  0x90   : > { %v6451_v36 = vcombine.high %v6449_v50, %v6449_v50  ;;  %v6458_v48 = vrot.slane %v6449_v50, %v10171_v7  ;;  %16396 = vst [vmem:[#allocation18_spill] sm:$0xff] %v10648_v20 }
  0x91   : > { %v3363_v30 = vcombine.high %v3355_v26, %v3355_v26  ;;  %v3362_v52 = vrot.slane %v3348_v28, %v10171_v7  ;;  %v10586_v34 = vrot.slane %v3355_v26, 7  ;;  %v4917_v57 = vrot.slane %v4903_v41, %v10171_v7 }
  0x92   : > { %v4918_v46 = vcombine.high %v4910_v44, %v4910_v44  ;;  %v10612_v1 = vrot.slane %v4910_v44, 7  ;;  %v6465_v9 = vrot.slane %v6451_v36, %v10171_v7  ;;  %v6466_v10 = vcombine.high %v6458_v48, %v6458_v48 }
  0x93   : > { %16379 = vst [vmem:[#allocation3_spill] sm:$0xff] %v10586_v34  ;;  %v3374_v38 = vrot.slane %v3363_v30, 7  ;;  %v3377_v39 = vrot.slane %v3362_v52, 7  ;;  %v3364_v42 = vcombine.high %v3362_v52, %v3362_v52  ;;  %v3373_v5 = vrot.slane %v10586_v34, 2 }
  0x94   : > { %16387 = vst [vmem:[#allocation9_spill] sm:$0xff] %v10612_v1  ;;  %v4919_v12 = vcombine.high %v4917_v57, %v4917_v57  ;;  %v4925_v33 = vrot.slane %v4917_v57, 7  ;;  %v4922_v14 = vrot.slane %v4918_v46, 7  ;;  %v4921_v17 = vrot.slane %v10612_v1, 2 }
  0x95   : > { %v3376_v55 = vrot.slane %v3374_v38, 2  ;;  %v3379_v56 = vrot.slane %v3377_v39, 2  ;;  %v3380_v58 = vrot.slane %v3364_v42, 7  ;;  %v10619_v6 = vsel %vm10597_vm9, %v3373_v5, %v3374_v38 }
  0x96   : > { %16388 = vst [vmem:[#allocation10_spill] sm:$0xff] %v10619_v6  ;;  %v6467_v21 = vcombine.high %v6465_v9, %v6465_v9  ;;  %v6470_v49 = vrot.slane %v6466_v10, 7  ;;  %v4927_v23 = vrot.slane %v4925_v33, 2  ;;  %v4928_v24 = vrot.slane %v4919_v12, 7 }
  0x97   : > { %v10627_v40 = vsel %vm10597_vm9, %v3376_v55, %v3377_v39  ;;  %v10631_v11 = vsel %vm10597_vm9, %v3379_v56, %v3380_v58  ;;  %v10636_v13 = vrot.slane %v3380_v58, 2  ;;  %v6473_v26 = vrot.slane %v6465_v9, 7 }
  0x98   : > { %16390 = vst [vmem:[#allocation12_spill] sm:$0xff] %v10627_v40  ;;  %16391 = vst [vmem:[#allocation13_spill] sm:$0xff] %v10631_v11  ;;  %v4924_v30 = vrot.slane %v4922_v14, 2  ;;  %v10665_v61 = vsel %vm10597_vm9, %v4921_v17, %v4922_v14  ;;  %v10669_v52 = vcombine.high %v10610_v0, %v10610_v0  ;;  %v6472_v50 = vrot.slane %v6470_v49, 2 }
  0x99   : > { %16393 = vst [vmem:[#allocation15_spill] sm:$0xff] %v10636_v13  ;;  %v10657_v25 = vsel %vm10597_vm9, %v10636_v13, %v10586_v34  ;;  %16400 = vst [vmem:[#allocation22_spill] sm:$0xff] %v10665_v61  ;;  %v6476_v37 = vrot.slane %v6467_v21, 7  ;;  %v7435_v38 = vcombine.high %v7433_v22, %v7433_v22  ;;  %v10671_v39 = vrot.slane %v6458_v48, 7 }
  0x9a   : > { %16398 = vst [vmem:[#allocation20_spill] sm:$0xff] %v10657_v25  ;;  %16401 = vst [vmem:[#allocation23_spill] sm:$0xff] %v10669_v52  ;;  %v10675_v43 = vsel %vm10597_vm9, %v4927_v23, %v4928_v24  ;;  %v6475_v44 = vrot.slane %v6473_v26, 2  ;;  %v10683_v36 = vsel %vm10597_vm9, %v4924_v30, %v4925_v33  ;;  %v10685_v55 = vrot.slane %v4928_v24, 2 }
  0x9b   : > { %16402 = vst [vmem:[#allocation24_spill] sm:$0xff] %v10671_v39  ;;  %16403 = vst [vmem:[#allocation25_spill] sm:$0xff] %v10675_v43  ;;  %v10688_v48 = vrot.slane %v6167_v18, %v10171_v7  ;;  %v10691_v58 = vrot.slane %v6169_v32, %v10171_v7  ;;  %v10698_v46 = vsel %vm10597_vm9, %v6472_v50, %v6473_v26  ;;  %v10700_v4 = vrot.slane %v6476_v37, 2 }
  0x9c   : > { %16405 = vst [vmem:[#allocation27_spill] sm:$0xff] %v10683_v36  ;;  %16406 = vst [vmem:[#allocation28_spill] sm:$0xff] %v10685_v55  ;;  %v10703_v9 = vrot.slane %v7435_v38, %v10171_v7  ;;  %v6469_v10 = vrot.slane %v10671_v39, 2  ;;  %v10708_v14 = vsel %vm10597_vm9, %v6475_v44, %v6476_v37  ;;  %v10714_v18 = vsel %vm10597_vm9, %v10685_v55, %v10612_v1 }
  0x9d   : > { %16407 = vst [vmem:[#allocation29_spill] sm:$0xff] %v10688_v48  ;;  %16408 = vst [vmem:[#allocation30_spill] sm:$0xff] %v10691_v58  ;;  %v10722_v21 = vcombine.high %v10651_v27, %v10651_v27  ;;  %v10726_v22 = vcombine.high %v10688_v48, %v10688_v48  ;;  %v10733_v30 = vcombine.high %v10691_v58, %v10691_v58 }
  0x9e   : > { %16410 = vst [vmem:[#allocation32_spill] sm:$0xff] %v10698_v46  ;;  %16411 = vst [vmem:[#allocation33_spill] sm:$0xff] %v10700_v4  ;;  %v10743_v32 = vsel %vm10597_vm9, %v10700_v4, %v10671_v39 }
  0x9f   : > { %16412 = vst [vmem:[#allocation34_spill] sm:$0xff] %v10703_v9  ;;  %16413 = vst [vmem:[#allocation35_spill] sm:$0xff] %v10708_v14 }
  0xa0   : > { %16414 = vst [vmem:[#allocation36_spill] sm:$0xff] %v10714_v18  ;;  %16416 = vst [vmem:[#allocation38_spill] sm:$0xff] %v10722_v21 }
  0xa1   : > { %16417 = vst [vmem:[#allocation39_spill] sm:$0xff] %v10726_v22  ;;  %16418 = vst [vmem:[#allocation40_spill] sm:$0xff] %v10733_v30 }
  0xa2   : > { %16420 = vst [vmem:[#allocation42_spill] sm:$0xff] %v10743_v32 }
  0xde   : > { %v1886_v19 = vpop.f32.mrf.mxu0 }
  0xdf   : > { %v2090_v2 = vadd.f32 3.0, %v1886_v19 }
  0xe0   : > { %v9816_v28 = vpop.f32.mrf.mxu0 }
  0xe1   : > { %v2131_v31 = vmax.f32 %v2090_v2, 0.0 }
  0xe2   : > { %v1891_v35 = vpop.f32.mrf.mxu0 }
  0xe3   : > { %v2172_v41 = vmin.f32 %v2131_v31, 6.0  ;;  %v2091_v42 = vadd.f32 3.0, %v1891_v35  ;;  %v10737_v31 = vsel %vm10597_vm9, %v6469_v10, %v6470_v49 }
  0xe4   : > { %v9819_v5 = vpop.f32.mrf.mxu0  ;;  %16419 = vst [vmem:[#allocation41_spill] sm:$0xff] %v10737_v31 }
  0xe5   : > { %v2213_v56 = vmul.f32 %v2172_v41, %v1886_v19  ;;  %v2132_v57 = vmax.f32 %v2091_v42, 0.0  ;;  %v10718_v19 = vcombine.high %v10648_v20, %v10648_v20  ;;  %v10753_v41 = vcombine.high %v10703_v9, %v10703_v9 }
  0xe6   : > { %v1896_v60 = vpop.f32.mrf.mxu0 }
  0xe7   : > { %v2254_v12 = vmul.f32 0.16666667, %v2213_v56  ;;  %v2173_v33 = vmin.f32 %v2132_v57, 6.0  ;;  %v2092_v3 = vadd.f32 3.0, %v1896_v60  ;;  %16415 = vst [vmem:[#allocation37_spill] sm:$0xff] %v10718_v19  ;;  %16422 = vst [vmem:[#allocation44_spill] sm:$0xff] %v10753_v41 }
  0xe8   : > { %v9822_v17 = vpop.f32.mrf.mxu0 }
  0xe9   : > { %v2336_v2 = vcombine.high %v2254_v12, %v2254_v12  ;;  %v2343_v23 = vrot.slane %v2254_v12, %v10171_v7  ;;  %v2214_v24 = vmul.f32 %v2173_v33, %v1891_v35  ;;  %v2133_v26 = vmax.f32 %v2092_v3, 0.0 }
  0xea   : > { %v10729_v28 = vpop.f32.mrf.mxu0  ;;  %v10747_v35 = vcombine.high %v10694_v59, %v10694_v59 }
  0xeb   : > { %v2350_v50 = vrot.slane %v2336_v2, %v10171_v7  ;;  %v2351_v37 = vcombine.high %v2343_v23, %v2343_v23  ;;  %v3390_v38 = vmul.f32 %v10586_v34, %v2343_v23  ;;  %v3215_v49 = vmul.f32 %v10590_v45, %v2343_v23 }
  0xec   : > { %16421 = vst [vmem:[#allocation43_spill] sm:$0xff] %v10747_v35  ;;  %v2255_v42 = vmul.f32 0.16666667, %v2214_v24  ;;  %v2174_v44 = vmin.f32 %v2133_v26, 6.0  ;;  %v10757_v5 = vadd.f32 3.0, %v10729_v28  ;;  %v9825_v56 = vpop.f32.mrf.mxu0 }
  0xed   : > { %v2352_v57 = vcombine.high %v2350_v50, %v2350_v50  ;;  %v3216_v10 = vmul.f32 %v10604_v62, %v2351_v37  ;;  %v3217_v12 = vmul.f32 %v10595_v51, %v2350_v50  ;;  %v3391_v33 = vmul.f32 %v10619_v6, %v2351_v37 }
  0xee   : > { %v3392_v3 = vmul.f32 %v10627_v40, %v2350_v50  ;;  %v9651_v17 = vrot.slane %v3390_v38, 9  ;;  %v4360_v2 = vmul.f32 %v10607_v63, %v2351_v37  ;;  %v4361_v23 = vmul.f32 %v10640_v15, %v2350_v50  ;;  %v10765_v24 = vpop.f32.mrf.mxu0 }
  0xef   : > { %v3393_v26 = vmul.f32 %v10631_v11, %v2352_v57  ;;  %v3680_v41 = vrot.slane %v3391_v33, 7  ;;  %v4362_v56 = vmul.f32 %v10634_v53, %v2352_v57  ;;  %v2353_v9 = vcombine.high %v2255_v42, %v2255_v42 }
  0xf0   : > { %v3683_v35 = vrot.slane %v3392_v3, 7  ;;  %v2360_v59 = vrot.slane %v2255_v42, %v10171_v7  ;;  %v3218_v32 = vmul.f32 %v10644_v16, %v2352_v57  ;;  %v2215_v14 = vmul.f32 %v2174_v44, %v1896_v60  ;;  %v9828_v46 = vpop.f32.mrf.mxu0 }
  0xf1   : > { %v3681_v37 = vsel %vm10597_vm9, %v9651_v17, %v3680_v41  ;;  %v3682_v38 = vrot.slane %v3680_v41, 2  ;;  %v3686_v50 = vrot.slane %v3393_v26, 7  ;;  %v2367_v31 = vrot.slane %v2353_v9, %v10171_v7 }
  0xf2   : > { %v3685_v39 = vrot.slane %v3683_v35, 2  ;;  %v4206_v30 = vadd.f32 %v3681_v37, %v3215_v49  ;;  %v2368_v33 = vcombine.high %v2360_v59, %v2360_v59  ;;  %v3219_v58 = vmul.f32 %v10590_v45, %v2360_v59  ;;  %v10775_v22 = vpop.f32.mrf.mxu0 }
  0xf3   : > { %v3684_v42 = vsel %vm10597_vm9, %v3682_v38, %v3683_v35  ;;  %v3688_v57 = vrot.slane %v3686_v50, 2  ;;  %v2369_v60 = vcombine.high %v2367_v31, %v2367_v31  ;;  %v3221_v46 = vmul.f32 %v10595_v51, %v2367_v31 }
  0xf4   : > { %v3687_v41 = vsel %vm10597_vm9, %v3685_v39, %v3686_v50  ;;  %v4207_v44 = vadd.f32 %v3684_v42, %v3216_v10  ;;  %v10782_v3 = vadd.f32 %v4360_v2, %v4206_v30  ;;  %v3220_v9 = vmul.f32 %v10604_v62, %v2368_v33  ;;  %v9831_v49 = vpop.f32.mrf.mxu0 }
  0xf5   : > { %v4208_v17 = vadd.f32 %v3687_v41, %v3217_v12  ;;  %v3394_v26 = vmul.f32 %v10657_v25, %v2360_v59  ;;  %v3395_v37 = vmul.f32 %v10619_v6, %v2368_v33  ;;  %v3396_v35 = vmul.f32 %v10627_v40, %v2367_v31 }
  0xf6   : > { %v10788_v38 = vadd.f32 %v4361_v23, %v4207_v44  ;;  %v3397_v51 = vmul.f32 %v10631_v11, %v2369_v60  ;;  %v4363_v48 = vmul.f32 %v10661_v29, %v2360_v59  ;;  %v4364_v39 = vmul.f32 %v10607_v63, %v2368_v33  ;;  %v10793_v30 = vpop.f32.mrf.mxu0 }
  0xf7   : > { %v10795_v10 = vadd.f32 %v4362_v56, %v4208_v17  ;;  %v3689_v2 = vrot.slane %v3394_v26, 7  ;;  %v3692_v12 = vrot.slane %v3395_v37, 7  ;;  %v3695_v50 = vrot.slane %v3396_v35, 7 }
  0xf8   : > { %v3698_v42 = vrot.slane %v3397_v51, 7  ;;  %v4365_v41 = vmul.f32 %v10640_v15, %v2367_v31  ;;  %v4366_v49 = vmul.f32 %v10634_v53, %v2369_v60  ;;  %v2256_v23 = vmul.f32 0.16666667, %v2215_v14  ;;  %v9834_v44 = vpop.f32.mrf.mxu0 }
  0xf9   : > { %v3690_v25 = vsel %vm10597_vm9, %v3688_v57, %v3689_v2  ;;  %v3691_v59 = vrot.slane %v3689_v2, 2  ;;  %v3694_v21 = vrot.slane %v3692_v12, 2  ;;  %v3697_v33 = vrot.slane %v3695_v50, 2 }
  0xfa   : > { %v4209_v19 = vadd.f32 %v3690_v25, %v3218_v32  ;;  %v2370_v18 = vcombine.high %v2256_v23, %v2256_v23  ;;  %v2377_v56 = vrot.slane %v2256_v23, %v10171_v7  ;;  %v3222_v17 = vmul.f32 %v10644_v16, %v2369_v60  ;;  %v10803_v26 = vpop.f32.mrf.mxu0 }
  0xfb   : > { %v3693_v51 = vsel %vm10597_vm9, %v3691_v59, %v3692_v12  ;;  %v3696_v14 = vsel %vm10597_vm9, %v3694_v21, %v3695_v50  ;;  %v3699_v31 = vsel %vm10597_vm9, %v3697_v33, %v3698_v42  ;;  %v3700_v57 = vrot.slane %v3698_v42, 2 }
  0xfc   : > { %v4210_v37 = vadd.f32 %v3693_v51, %v3219_v58  ;;  %v4211_v35 = vadd.f32 %v3696_v14, %v3220_v9  ;;  %v4212_v25 = vadd.f32 %v3699_v31, %v3221_v46  ;;  %v10811_v32 = vadd.f32 %v4363_v48, %v4209_v19  ;;  %v9837_v2 = vpop.f32.mrf.mxu0 }
  0xfd   : > { %v10814_v60 = vrot.slane %v2370_v18, %v10171_v7  ;;  %v2385_v23 = vcombine.high %v2377_v56, %v2377_v56  ;;  %v3398_v44 = vmul.f32 %v10636_v13, %v2377_v56  ;;  %v4367_v12 = vmul.f32 %v10661_v29, %v2377_v56 }
  0xfe   : > { %v10818_v59 = vadd.f32 %v4364_v39, %v4210_v37  ;;  %v10820_v21 = vadd.f32 %v4365_v41, %v4211_v35  ;;  %v10822_v50 = vadd.f32 %v4366_v49, %v4212_v25  ;;  %v2134_v58 = vmax.f32 %v10757_v5, 0.0  ;;  %v10825_v46 = vpop.f32.mrf.mxu0 }
  0xff   : > { %v10829_v48 = vcombine.high %v10814_v60, %v10814_v60  ;;  %v3223_v18 = vmul.f32 %v10590_v45, %v2385_v23  ;;  %v10834_v19 = vmul.f32 %v10604_v62, %v10814_v60  ;;  %v3399_v9 = vmul.f32 %v10586_v34, %v2385_v23 }
 0x100   : > { %v3400_v39 = vmul.f32 %v10619_v6, %v10814_v60  ;;  %v3701_v42 = vrot.slane %v3398_v44, 7  ;;  %v4368_v5 = vmul.f32 %v10607_v63, %v10814_v60  ;;  %v4642_v41 = vmul.f32 %v10610_v0, %v2385_v23  ;;  %v9840_v49 = vpop.f32.mrf.mxu0 }
 0x101   : > { %16423 = vst [vmem:[#allocation45_spill] sm:$0xff] %v10834_v19  ;;  %v10844_v33 = vmul.f32 %v10627_v40, %v10829_v48  ;;  %v9652_v56 = vrot.slane %v3399_v9, 9  ;;  %v4938_v51 = vmul.f32 %v10612_v1, %v2385_v23  ;;  %v4939_v14 = vmul.f32 %v10665_v61, %v10814_v60 }
 0x102   : > { %v3702_v31 = vsel %vm10597_vm9, %v3700_v57, %v3701_v42  ;;  %v3705_v37 = vrot.slane %v3400_v39, 7  ;;  %v4770_v35 = vadd.f32 %v4642_v41, %v10782_v3  ;;  %v2175_v25 = vmin.f32 %v2134_v58, 6.0  ;;  %v10852_v2 = vpop.f32.mrf.mxu0 }
 0x103   : > { %16424 = vst [vmem:[#allocation46_spill] sm:$0xff] %v10844_v33  ;;  %v15698_v44 = vrot.slane %v10844_v33, 7  ;;  %v4213_v49 = vadd.f32 %v3702_v31, %v3222_v17  ;;  %v9667_v63 = vrot.slane %v4938_v51, 9  ;;  %v5228_v40 = vrot.slane %v4939_v14, 7  ;;  %v10882_v14 = vpop.f32.mrf.mxu1 }
 0x104   : > { %v3706_v23 = vsel %vm10597_vm9, %v9652_v56, %v3705_v37  ;;  %v3707_v9 = vrot.slane %v3705_v37, 2  ;;  %v2216_v15 = vmul.f32 %v2175_v25, %v10729_v28  ;;  %v2094_v19 = vadd.f32 3.0, %v10765_v24  ;;  %v9843_v57 = vpop.f32.mrf.mxu0  ;;  %16427 = vst [vmem:[#allocation49_spill] sm:$0xff] %v10882_v14 }
 0x105   : > { %v4214_v39 = vadd.f32 %v3706_v23, %v3223_v18  ;;  %v10859_v42 = vadd.f32 %v4367_v12, %v4213_v49  ;;  %v5229_v3 = vsel %vm10597_vm9, %v9667_v63, %v5228_v40  ;;  %v10863_v58 = vrot.slane %v5228_v40, 2 }
 0x106   : > { %v10869_v17 = vsel %vm10597_vm9, %v3707_v9, %v15698_v44  ;;  %v10871_v41 = vadd.f32 %v5229_v3, %v4770_v35  ;;  %v2257_v28 = vmul.f32 0.16666667, %v2216_v15  ;;  %v2135_v56 = vmax.f32 %v2094_v19, 0.0  ;;  %v10873_v51 = vpop.f32.mrf.mxu0  ;;  %v9903_v9 = vpop.f32.mrf.mxu1 }
 0x107   : > { %16425 = vst [vmem:[#allocation47_spill] sm:$0xff] %v10869_v17  ;;  %v10875_v18 = vadd.f32 %v4368_v5, %v4214_v39  ;;  %v2095_v12 = vadd.f32 3.0, %v10775_v22  ;;  %v2096_v63 = vadd.f32 3.0, %v10793_v30  ;;  %v10880_v40 = vadd.f32 3.0, %v10803_v26 }
 0x108   : > { %v2387_v31 = vcombine.high %v2257_v28, %v2257_v28  ;;  %v10885_v37 = vrot.slane %v2257_v28, %v10171_v7  ;;  %v2176_v35 = vmin.f32 %v2135_v56, 6.0  ;;  %v10888_v15 = vadd.f32 3.0, %v10825_v46  ;;  %v9846_v19 = vpop.f32.mrf.mxu0 }
 0x109   : > { %16426 = vst [vmem:[#allocation48_spill] sm:$0xff] %v10875_v18  ;;  %v2136_v5 = vmax.f32 %v2095_v12, 0.0  ;;  %v2137_v25 = vmax.f32 %v2096_v63, 0.0  ;;  %v10892_v23 = vadd.f32 3.0, %v10852_v2 }
 0x10a   : > { %v10895_v57 = vrot.slane %v2387_v31, %v10171_v7  ;;  %v10899_v39 = vcombine.high %v10885_v37, %v10885_v37  ;;  %v10903_v3 = vmul.f32 %v10644_v16, %v10885_v37  ;;  %v10907_v28 = vmul.f32 %v10631_v11, %v10885_v37  ;;  %v10909_v56 = vpop.f32.mrf.mxu0 }
 0x10b   : > { %v10913_v12 = vmul.f32 %v10634_v53, %v10885_v37  ;;  %v10917_v63 = vmul.f32 %v10675_v43, %v10885_v37  ;;  %v2217_v31 = vmul.f32 %v2176_v35, %v10765_v24  ;;  %v2177_v19 = vmin.f32 %v2136_v5, 6.0 }
 0x10c   : > { %16428 = vst [vmem:[#allocation50_spill] sm:$0xff] %v10895_v57  ;;  %16429 = vst [vmem:[#allocation51_spill] sm:$0xff] %v10903_v3  ;;  %v10922_v9 = vcombine.high %v10895_v57, %v10895_v57  ;;  %v10926_v44 = vmul.f32 %v10604_v62, %v10895_v57  ;;  %v10930_v49 = vmul.f32 %v10619_v6, %v10895_v57  ;;  %v15707_v18 = vrot.slane %v10907_v28, 7 }
 0x10d   : > { %16430 = vst [vmem:[#allocation52_spill] sm:$0xff] %v10907_v28  ;;  %16431 = vst [vmem:[#allocation53_spill] sm:$0xff] %v10913_v12  ;;  %v9849_v12 = vpop.f32.mrf.mxu0  ;;  %v4647_v3 = vmul.f32 %v10669_v52, %v10895_v57  ;;  %v10937_v24 = vmul.f32 %v10665_v61, %v10895_v57  ;;  %v10942_v5 = vmul.f32 %v10648_v20, %v10895_v57  ;;  %v10953_v61 = vpop.f32.mrf.mxu1 }
 0x10e   : > { %16432 = vst [vmem:[#allocation54_spill] sm:$0xff] %v10922_v9  ;;  %16433 = vst [vmem:[#allocation55_spill] sm:$0xff] %v10926_v44  ;;  %v10946_v6 = vrot.slane %v15707_v18, 2  ;;  %v15713_v62 = vrot.slane %v10930_v49, 7  ;;  %v2258_v12 = vmul.f32 0.16666667, %v2217_v31  ;;  %v4648_v44 = vmul.f32 %v10622_v8, %v10922_v9 }
 0x10f   : > { %16434 = vst [vmem:[#allocation56_spill] sm:$0xff] %v10930_v49  ;;  %16435 = vst [vmem:[#allocation57_spill] sm:$0xff] %v10942_v5  ;;  %v10951_v17 = vpop.f32.mrf.mxu0  ;;  %v10956_v35 = vadd.f32 %v4647_v3, %v10820_v21  ;;  %v15714_v57 = vrot.slane %v10937_v24, 7  ;;  %v10961_v28 = vmul.f32 %v10683_v36, %v10922_v9  ;;  %v2218_v18 = vmul.f32 %v2177_v19, %v10775_v22  ;;  %v9906_v21 = vpop.f32.mrf.mxu1 }
 0x110   : > { %16436 = vst [vmem:[#allocation58_spill] sm:$0xff] %v10946_v6  ;;  %16437 = vst [vmem:[#allocation59_spill] sm:$0xff] %v10953_v61  ;;  %v10966_v31 = vrot.slane %v15713_v62, 2  ;;  %v2404_v6 = vcombine.high %v2258_v12, %v2258_v12  ;;  %v2411_v33 = vrot.slane %v2258_v12, %v10171_v7  ;;  %v4776_v61 = vadd.f32 %v4648_v44, %v10822_v50 }
 0x111   : > { %16438 = vst [vmem:[#allocation60_spill] sm:$0xff] %v10956_v35  ;;  %v9852_v14 = vpop.f32.mrf.mxu0  ;;  %v10972_v3 = vrot.slane %v15714_v57, 2  ;;  %v15721_v5 = vrot.slane %v10961_v28, 7  ;;  %v2259_v9 = vmul.f32 0.16666667, %v2218_v18  ;;  %v2178_v35 = vmin.f32 %v2137_v25, 6.0 }
 0x112   : > { %16439 = vst [vmem:[#allocation61_spill] sm:$0xff] %v10966_v31  ;;  %v10976_v22 = vrot.slane %v2404_v6, %v10171_v7  ;;  %v10978_v19 = vcombine.high %v2411_v33, %v2411_v33  ;;  %v10981_v62 = vmul.f32 %v10644_v16, %v2411_v33  ;;  %v10984_v50 = vmul.f32 %v10631_v11, %v2411_v33 }
 0x113   : > { %16440 = vst [vmem:[#allocation62_spill] sm:$0xff] %v10972_v3  ;;  %v10986_v44 = vpop.f32.mrf.mxu0  ;;  %v10989_v14 = vmul.f32 %v10634_v53, %v2411_v33  ;;  %v4649_v12 = vmul.f32 %v10679_v47, %v2411_v33  ;;  %v4945_v18 = vmul.f32 %v10675_v43, %v2411_v33  ;;  %v5245_v6 = vrot.slane %v15721_v5, 2 }
 0x114   : > { %16441 = vst [vmem:[#allocation63_spill] sm:$0xff] %v10981_v62  ;;  %16442 = vst [vmem:[#allocation64_spill] sm:$0xff] %v10984_v50  ;;  %v10997_v25 = vcombine.high %v10976_v22, %v10976_v22  ;;  %v11001_v21 = vmul.f32 %v10590_v45, %v10976_v22  ;;  %v11005_v57 = vmul.f32 %v10586_v34, %v10976_v22  ;;  %v15726_v53 = vrot.slane %v10984_v50, 7 }
 0x115   : > { %16443 = vst [vmem:[#allocation65_spill] sm:$0xff] %v10989_v14  ;;  %v9855_v11 = vpop.f32.mrf.mxu0  ;;  %v4777_v16 = vadd.f32 %v4649_v12, %v10859_v42  ;;  %v4946_v5 = vmul.f32 %v10685_v55, %v10978_v19  ;;  %v5246_v14 = vrot.slane %v4945_v18, 7  ;;  %v5914_v62 = vmul.f32 %v10651_v27, %v2411_v33 }
 0x116   : > { %16444 = vst [vmem:[#allocation66_spill] sm:$0xff] %v10997_v25  ;;  %16445 = vst [vmem:[#allocation67_spill] sm:$0xff] %v11001_v21  ;;  %v11014_v31 = vrot.slane %v15726_v53, 2  ;;  %v2421_v49 = vcombine.high %v2259_v9, %v2259_v9  ;;  %v11018_v43 = vrot.slane %v2259_v9, %v10171_v7  ;;  %v2219_v18 = vmul.f32 %v2178_v35, %v10793_v30 }
 0x117   : > { %16446 = vst [vmem:[#allocation68_spill] sm:$0xff] %v11005_v57  ;;  %v11020_v3 = vpop.f32.mrf.mxu0  ;;  %v5247_v11 = vsel %vm10597_vm9, %v5245_v6, %v5246_v14  ;;  %v5248_v42 = vrot.slane %v5246_v14, 2  ;;  %v5249_v12 = vrot.slane %v4946_v5, 7  ;;  %v16450_v9 = vmax.f32 %v10880_v40, 0.0 }
 0x118   : > { %16447 = vst [vmem:[#allocation69_spill] sm:$0xff] %v11014_v31  ;;  %16448 = vst [vmem:[#allocation70_spill] sm:$0xff] %v11018_v43  ;;  %v5760_v33 = vadd.f32 %v5247_v11, %v4776_v61  ;;  %v11026_v50 = vrot.slane %v2421_v49, %v10171_v7  ;;  %v11030_v21 = vcombine.high %v11018_v43, %v11018_v43  ;;  %v2260_v6 = vmul.f32 0.16666667, %v2219_v18 }
 0x119   : > { %v2179_v53 = vmin.f32 %v16450_v9, 6.0  ;;  %v9858_v57 = vpop.f32.mrf.mxu0  ;;  %v5250_v31 = vsel %vm10597_vm9, %v5248_v42, %v5249_v12  ;;  %v2139_v5 = vmax.f32 %v10888_v15, 0.0  ;;  %v2140_v30 = vmax.f32 %v10892_v23, 0.0 }
 0x11a   : > { %16449 = vst [vmem:[#allocation71_spill] sm:$0xff] %v11030_v21  ;;  %v11038_v61 = vadd.f32 %v5250_v31, %v4777_v16  ;;  %v11040_v49 = vadd.f32 %v5914_v62, %v5760_v33  ;;  %v11044_v35 = vcombine.high %v11026_v50, %v11026_v50  ;;  %v2438_v57 = vcombine.high %v2260_v6, %v2260_v6 }
 0x11b   : > { %v2220_v40 = vmul.f32 %v2179_v53, %v10803_v26  ;;  %v11047_v14 = vpop.f32.mrf.mxu0  ;;  %v11050_v11 = vrot.slane %v2260_v6, %v10171_v7  ;;  %v2180_v42 = vmin.f32 %v2139_v5, 6.0  ;;  %v2181_v15 = vmin.f32 %v2140_v30, 6.0 }
 0x11c   : > { %16451 = vst [vmem:[#allocation72_spill] sm:$0xff] %v11040_v49  ;;  %16452 = vst [vmem:[#allocation73_spill] sm:$0xff] %v11044_v35  ;;  %v2100_v16 = vadd.f32 3.0, %v10873_v51  ;;  %v2101_v62 = vadd.f32 3.0, %v10909_v56  ;;  %v2102_v23 = vadd.f32 3.0, %v10951_v17  ;;  %v11056_v18 = vrot.slane %v2438_v57, %v10171_v7 }
 0x11d   : > { %16453 = vst [vmem:[#allocation74_spill] sm:$0xff] %v11050_v11  ;;  %v2261_v12 = vmul.f32 0.16666667, %v2220_v40  ;;  %v9861_v31 = vpop.f32.mrf.mxu0  ;;  %v11060_v53 = vcombine.high %v11050_v11, %v11050_v11  ;;  %v2221_v26 = vmul.f32 %v2180_v42, %v10825_v46  ;;  %v2222_v33 = vmul.f32 %v2181_v15, %v10852_v2 }
 0x11e   : > { %16454 = vst [vmem:[#allocation75_spill] sm:$0xff] %v11056_v18  ;;  %v2141_v5 = vmax.f32 %v2100_v16, 0.0  ;;  %v2142_v30 = vmax.f32 %v2101_v62, 0.0  ;;  %v11071_v57 = vcombine.high %v11056_v18, %v11056_v18  ;;  %v11075_v31 = vmul.f32 %v10636_v13, %v11056_v18 }
 0x11f   : > { %16455 = vst [vmem:[#allocation76_spill] sm:$0xff] %v11060_v53  ;;  %v2455_v9 = vcombine.high %v2261_v12, %v2261_v12  ;;  %v11065_v6 = vrot.slane %v2261_v12, %v10171_v7  ;;  %v11067_v40 = vpop.f32.mrf.mxu0  ;;  %v11079_v46 = vmul.f32 %v10700_v4, %v11056_v18  ;;  %v2262_v2 = vmul.f32 0.16666667, %v2221_v26 }
 0x120   : > { %16457 = vst [vmem:[#allocation78_spill] sm:$0xff] %v11071_v57  ;;  %16458 = vst [vmem:[#allocation79_spill] sm:$0xff] %v11075_v31  ;;  %v2263_v12 = vmul.f32 0.16666667, %v2222_v33  ;;  %v2182_v16 = vmin.f32 %v2141_v5, 6.0  ;;  %v2143_v49 = vmax.f32 %v2102_v23, 0.0 }
 0x121   : > { %16456 = vst [vmem:[#allocation77_spill] sm:$0xff] %v11065_v6  ;;  %v11082_v42 = vrot.slane %v2455_v9, %v10171_v7  ;;  %v11086_v15 = vcombine.high %v11065_v6, %v11065_v6  ;;  %v9864_v62 = vpop.f32.mrf.mxu0  ;;  %v2472_v53 = vcombine.high %v2262_v2, %v2262_v2  ;;  %v11091_v11 = vrot.slane %v2262_v2, %v10171_v7 }
 0x122   : > { %v2489_v9 = vcombine.high %v2263_v12, %v2263_v12  ;;  %v11098_v4 = vrot.slane %v2263_v12, %v10171_v7  ;;  %v2223_v33 = vmul.f32 %v2182_v16, %v10873_v51  ;;  %v2183_v2 = vmin.f32 %v2142_v30, 6.0 }
 0x123   : > { %16459 = vst [vmem:[#allocation80_spill] sm:$0xff] %v11082_v42  ;;  %16460 = vst [vmem:[#allocation81_spill] sm:$0xff] %v11086_v15  ;;  %v11095_v26 = vcombine.high %v11082_v42, %v11082_v42  ;;  %v11101_v5 = vpop.f32.mrf.mxu0  ;;  %v11104_v62 = vrot.slane %v2472_v53, %v10171_v7  ;;  %v11108_v57 = vcombine.high %v11091_v11, %v11091_v11 }
 0x124   : > { %16461 = vst [vmem:[#allocation82_spill] sm:$0xff] %v11091_v11  ;;  %16463 = vst [vmem:[#allocation84_spill] sm:$0xff] %v11098_v4  ;;  %v11111_v31 = vrot.slane %v2489_v9, %v10171_v7  ;;  %v11115_v12 = vcombine.high %v11098_v4, %v11098_v4  ;;  %v11119_v51 = vmul.f32 %v10590_v45, %v11098_v4  ;;  %v2264_v23 = vmul.f32 0.16666667, %v2223_v33 }
 0x125   : > { %16462 = vst [vmem:[#allocation83_spill] sm:$0xff] %v11095_v26  ;;  %16464 = vst [vmem:[#allocation85_spill] sm:$0xff] %v11104_v62  ;;  %v11123_v53 = vmul.f32 %v10586_v34, %v11098_v4  ;;  %v9867_v16 = vpop.f32.mrf.mxu0  ;;  %v11127_v30 = vmul.f32 %v10612_v1, %v11098_v4  ;;  %v2224_v9 = vmul.f32 %v2183_v2, %v10909_v56  ;;  %v2104_v62 = vadd.f32 3.0, %v11020_v3 }
 0x126   : > { %16465 = vst [vmem:[#allocation86_spill] sm:$0xff] %v11108_v57  ;;  %16466 = vst [vmem:[#allocation87_spill] sm:$0xff] %v11111_v31  ;;  %v2184_v57 = vmin.f32 %v2143_v49, 6.0  ;;  %v2506_v4 = vcombine.high %v2264_v23, %v2264_v23  ;;  %v11141_v33 = vrot.slane %v2264_v23, %v10171_v7 }
 0x127   : > { %16467 = vst [vmem:[#allocation88_spill] sm:$0xff] %v11115_v12  ;;  %16468 = vst [vmem:[#allocation89_spill] sm:$0xff] %v11119_v51  ;;  %v11132_v12 = vcombine.high %v11111_v31, %v11111_v31  ;;  %v2103_v51 = vadd.f32 3.0, %v10986_v44  ;;  %v11137_v26 = vpop.f32.mrf.mxu0  ;;  %v2265_v56 = vmul.f32 0.16666667, %v2224_v9  ;;  %v2145_v31 = vmax.f32 %v2104_v62, 0.0 }
 0x128   : > { %16469 = vst [vmem:[#allocation90_spill] sm:$0xff] %v11123_v53  ;;  %16470 = vst [vmem:[#allocation91_spill] sm:$0xff] %v11127_v30  ;;  %v2225_v49 = vmul.f32 %v2184_v57, %v10951_v17  ;;  %v11146_v53 = vrot.slane %v2506_v4, %v10171_v7 }
 0x129   : > { %16471 = vst [vmem:[#allocation92_spill] sm:$0xff] %v11132_v12  ;;  %16472 = vst [vmem:[#allocation93_spill] sm:$0xff] %v11137_v26  ;;  %v2144_v2 = vmax.f32 %v2103_v51, 0.0  ;;  %v2105_v12 = vadd.f32 3.0, %v11047_v14  ;;  %v9870_v11 = vpop.f32.mrf.mxu0  ;;  %v11150_v26 = vcombine.high %v11141_v33, %v11141_v33  ;;  %v2523_v16 = vcombine.high %v2265_v56, %v2265_v56 }
 0x12a   : > { %16473 = vst [vmem:[#allocation94_spill] sm:$0xff] %v11141_v33  ;;  %16474 = vst [vmem:[#allocation95_spill] sm:$0xff] %v11146_v53  ;;  %v11153_v30 = vrot.slane %v2265_v56, %v10171_v7  ;;  %v2266_v23 = vmul.f32 0.16666667, %v2225_v49  ;;  %v2186_v42 = vmin.f32 %v2145_v31, 6.0  ;;  %v11157_v57 = vcombine.high %v11146_v53, %v11146_v53 }
 0x12b   : > { %16475 = vst [vmem:[#allocation96_spill] sm:$0xff] %v11150_v26  ;;  %v2185_v9 = vmin.f32 %v2144_v2, 6.0  ;;  %v2146_v17 = vmax.f32 %v2105_v12, 0.0  ;;  %v11160_v11 = vrot.slane %v2523_v16, %v10171_v7 }
 0x12c   : > { %16476 = vst [vmem:[#allocation97_spill] sm:$0xff] %v11153_v30  ;;  %16477 = vst [vmem:[#allocation98_spill] sm:$0xff] %v11157_v57  ;;  %v11164_v4 = vcombine.high %v11153_v30, %v11153_v30  ;;  %v11168_v62 = vmul.f32 %v10636_v13, %v11153_v30  ;;  %v11172_v51 = vmul.f32 %v10661_v29, %v11153_v30 }
 0x12d   : > { %16478 = vst [vmem:[#allocation99_spill] sm:$0xff] %v11160_v11  ;;  %v11176_v31 = vmul.f32 %v10685_v55, %v11153_v30  ;;  %v2540_v12 = vcombine.high %v2266_v23, %v2266_v23  ;;  %v11179_v16 = vrot.slane %v2266_v23, %v10171_v7  ;;  %v11183_v56 = vcombine.high %v11160_v11, %v11160_v11 }
 0x12e   : > { %16479 = vst [vmem:[#allocation100_spill] sm:$0xff] %v11164_v4  ;;  %16480 = vst [vmem:[#allocation101_spill] sm:$0xff] %v11168_v62  ;;  %v2226_v2 = vmul.f32 %v2185_v9, %v10986_v44  ;;  %v2227_v4 = vmul.f32 %v2186_v42, %v11020_v3  ;;  %v2187_v23 = vmin.f32 %v2146_v17, 6.0  ;;  %v4644_v44 = vmul.f32 %v10622_v8, %v10829_v48 }
 0x12f   : > { %16481 = vst [vmem:[#allocation102_spill] sm:$0xff] %v11172_v51  ;;  %16482 = vst [vmem:[#allocation103_spill] sm:$0xff] %v11176_v31  ;;  %v11190_v57 = vrot.slane %v2540_v12, %v10171_v7  ;;  %v11194_v30 = vcombine.high %v11179_v16, %v11179_v16  ;;  %v4645_v9 = vmul.f32 %v10679_v47, %v10885_v37 }
 0x130   : > { %16483 = vst [vmem:[#allocation104_spill] sm:$0xff] %v11179_v16  ;;  %16484 = vst [vmem:[#allocation105_spill] sm:$0xff] %v11183_v56  ;;  %v2267_v53 = vmul.f32 0.16666667, %v2226_v2  ;;  %v2268_v26 = vmul.f32 0.16666667, %v2227_v4  ;;  %v4643_v56 = vmul.f32 %v10669_v52, %v10814_v60  ;;  %v2228_v42 = vmul.f32 %v2187_v23, %v11047_v14  ;;  %v11218_v23 = vpop.f32.mrf.mxu0 }
 0x131   : > { %16485 = vst [vmem:[#allocation106_spill] sm:$0xff] %v11190_v57  ;;  %16486 = vst [vmem:[#allocation107_spill] sm:$0xff] %v11194_v30  ;;  %v11202_v3 = vcombine.high %v11190_v57, %v11190_v57  ;;  %v4940_v17 = vmul.f32 %v10683_v36, %v10829_v48  ;;  %v4772_v31 = vadd.f32 %v4644_v44, %v10795_v10 }
 0x132   : > { %v2557_v12 = vcombine.high %v2267_v53, %v2267_v53  ;;  %v11210_v4 = vrot.slane %v2267_v53, %v10171_v7  ;;  %v2574_v2 = vcombine.high %v2268_v26, %v2268_v26  ;;  %v11213_v49 = vrot.slane %v2268_v26, %v10171_v7  ;;  %16490 = vst [vmem:[#allocation111_spill] sm:$0xff] %v11218_v23 }
 0x133   : > { %16487 = vst [vmem:[#allocation108_spill] sm:$0xff] %v11202_v3  ;;  %v2269_v51 = vmul.f32 0.16666667, %v2228_v42  ;;  %v4771_v62 = vadd.f32 %v4643_v56, %v10788_v38  ;;  %v4773_v14 = vadd.f32 %v4645_v9, %v10811_v32  ;;  %v11220_v3 = vpop.f32.mrf.mxu1  ;;  %v16495_v38 = vld [vmem:[#allocation36_spill] sm:$0xff]  ;;  %v5231_v44 = vrot.slane %v4940_v17, 7 }
 0x134   : > { %16488 = vst [vmem:[#allocation109_spill] sm:$0xff] %v11210_v4  ;;  %16489 = vst [vmem:[#allocation110_spill] sm:$0xff] %v11213_v49  ;;  %v11223_v57 = vrot.slane %v2557_v12, %v10171_v7  ;;  %v11226_v53 = vrot.slane %v2574_v2, %v10171_v7  ;;  %v11230_v26 = vcombine.high %v11213_v49, %v11213_v49  ;;  %v16497_v42 = vrot.slane %v10917_v63, 7  ;;  %v9873_v12 = vpop.f32.mrf.mxu0 }
 0x135   : > { %16491 = vst [vmem:[#allocation112_spill] sm:$0xff] %v11220_v3  ;;  %v4942_v56 = vmul.f32 %v16495_v38, %v10899_v39  ;;  %v2591_v10 = vcombine.high %v2269_v51, %v2269_v51  ;;  %v11235_v32 = vrot.slane %v2269_v51, %v10171_v7  ;;  %v9909_v4 = vpop.f32.mrf.mxu1  ;;  %v5233_v12 = vrot.slane %v5231_v44, 2  ;;  %v16518_v3 = vld [vmem:[#allocation42_spill] sm:$0xff] }
 0x136   : > { %16492 = vst [vmem:[#allocation113_spill] sm:$0xff] %v11223_v57  ;;  %16493 = vst [vmem:[#allocation114_spill] sm:$0xff] %v11226_v53  ;;  %v5236_v9 = vrot.slane %v16497_v42, 2  ;;  %v11241_v2 = vcombine.high %v11223_v57, %v11223_v57  ;;  %v11249_v49 = vmul.f32 %v10586_v34, %v11223_v57  ;;  %v11253_v51 = vcombine.high %v11226_v53, %v11226_v53 }
 0x137   : > { %16494 = vst [vmem:[#allocation115_spill] sm:$0xff] %v11230_v26  ;;  %16496 = vst [vmem:[#allocation116_spill] sm:$0xff] %v11235_v32  ;;  %v11245_v26 = vmul.f32 %v10590_v45, %v11223_v57  ;;  %v11256_v17 = vrot.slane %v2591_v10, %v10171_v7  ;;  %v11260_v4 = vcombine.high %v11235_v32, %v11235_v32  ;;  %v5237_v57 = vrot.slane %v4942_v56, 7 }
 0x138   : > { %16498 = vst [vmem:[#allocation117_spill] sm:$0xff] %v11241_v2  ;;  %16500 = vst [vmem:[#allocation119_spill] sm:$0xff] %v11249_v49  ;;  %v5232_v42 = vsel %vm10597_vm9, %v10863_v58, %v5231_v44  ;;  %v16507_v58 = vrot.slane %v10917_v63, 7  ;;  %v16508_v2 = vld [vmem:[#allocation37_spill] sm:$0xff]  ;;  %v16509_v63 = vld [vmem:[#allocation38_spill] sm:$0xff]  ;;  %v6490_v23 = vmul.f32 %v16518_v3, %v11026_v50 }
 0x139   : > { %16499 = vst [vmem:[#allocation118_spill] sm:$0xff] %v11245_v26  ;;  %16501 = vst [vmem:[#allocation120_spill] sm:$0xff] %v11253_v51  ;;  %v11265_v26 = vpop.f32.mrf.mxu0  ;;  %v5755_v30 = vadd.f32 %v5232_v42, %v4771_v62  ;;  %v5908_v51 = vmul.f32 %v10648_v20, %v10814_v60  ;;  %v11272_v10 = vcombine.high %v11256_v17, %v11256_v17  ;;  %v5239_v42 = vrot.slane %v5237_v57, 2 }
 0x13a   : > { %16502 = vst [vmem:[#allocation121_spill] sm:$0xff] %v11256_v17  ;;  %16503 = vst [vmem:[#allocation122_spill] sm:$0xff] %v11260_v4  ;;  %v11276_v4 = vmul.f32 %v10636_v13, %v11256_v17  ;;  %v5235_v44 = vsel %vm10597_vm9, %v5233_v12, %v16507_v58  ;;  %v5909_v56 = vmul.f32 %v16508_v2, %v10829_v48  ;;  %v16513_v17 = vld [vmem:[#allocation40_spill] sm:$0xff] }
 0x13b   : > { %16504 = vst [vmem:[#allocation123_spill] sm:$0xff] %v11265_v26  ;;  %16505 = vst [vmem:[#allocation124_spill] sm:$0xff] %v11272_v10  ;;  %v9876_v62 = vpop.f32.mrf.mxu0  ;;  %v5238_v60 = vsel %vm10597_vm9, %v5236_v9, %v5237_v57  ;;  %v5756_v49 = vadd.f32 %v5235_v44, %v4772_v31  ;;  %v5910_v10 = vmul.f32 %v10651_v27, %v10885_v37  ;;  %v16511_v9 = vld [vmem:[#allocation39_spill] sm:$0xff]  ;;  %v16512_v44 = vld [vmem:[#allocation30_spill] sm:$0xff] }
 0x13c   : > { %16506 = vst [vmem:[#allocation125_spill] sm:$0xff] %v11276_v4  ;;  %v5757_v32 = vadd.f32 %v5238_v60, %v4773_v14  ;;  %v5911_v53 = vmul.f32 %v16509_v63, %v10899_v39  ;;  %v6036_v12 = vadd.f32 %v5908_v51, %v10871_v41  ;;  %v6037_v58 = vadd.f32 %v5909_v56, %v5755_v30  ;;  %v16510_v62 = vld [vmem:[#allocation29_spill] sm:$0xff]  ;;  %v16514_v60 = vld [vmem:[#allocation24_spill] sm:$0xff] }
 0x13d   : > { %v6038_v16 = vadd.f32 %v5910_v10, %v5756_v49  ;;  %v6190_v11 = vmul.f32 %v16510_v62, %v10976_v22  ;;  %v6191_v57 = vmul.f32 %v16511_v9, %v10997_v25  ;;  %v6192_v37 = vmul.f32 %v16512_v44, %v11018_v43  ;;  %v16515_v30 = vld [vmem:[#allocation41_spill] sm:$0xff]  ;;  %v16516_v51 = vld [vmem:[#allocation32_spill] sm:$0xff] }
 0x13e   : > { %v6039_v31 = vadd.f32 %v5911_v53, %v5757_v32  ;;  %v6193_v14 = vmul.f32 %v16513_v17, %v11030_v21  ;;  %v6486_v4 = vmul.f32 %v16514_v60, %v10976_v22  ;;  %v6487_v49 = vmul.f32 %v16515_v30, %v10997_v25  ;;  %v16517_v53 = vld [vmem:[#allocation35_spill] sm:$0xff] }
 0x13f   : > { %v6318_v33 = vadd.f32 %v6190_v11, %v6036_v12  ;;  %v6319_v41 = vadd.f32 %v6191_v57, %v6037_v58  ;;  %v6488_v10 = vmul.f32 %v16516_v51, %v11018_v43  ;;  %v6320_v56 = vadd.f32 %v6192_v37, %v6038_v16  ;;  %v16519_v11 = vld [vmem:[#allocation31_spill] sm:$0xff]  ;;  %v16521_v16 = vld [vmem:[#allocation34_spill] sm:$0xff] }
 0x140   : > { %v6321_v26 = vadd.f32 %v6193_v14, %v6039_v31  ;;  %v6489_v32 = vmul.f32 %v16517_v53, %v11030_v21  ;;  %v9683_v34 = vrot.slane %v6486_v4, 9  ;;  %v6776_v45 = vrot.slane %v6487_v49, 7  ;;  %v16520_v60 = vld [vmem:[#allocation43_spill] sm:$0xff]  ;;  %v16522_v4 = vld [vmem:[#allocation44_spill] sm:$0xff] }
 0x141   : > { %v6779_v15 = vrot.slane %v6488_v10, 7  ;;  %v7456_v12 = vmul.f32 %v16519_v11, %v10997_v25  ;;  %v6785_v57 = vrot.slane %v6490_v23, 7  ;;  %v7457_v6 = vmul.f32 %v16520_v60, %v11018_v43 }
 0x142   : > { %v6782_v58 = vrot.slane %v6489_v32, 7  ;;  %v7458_v31 = vmul.f32 %v16521_v16, %v11030_v21  ;;  %v6777_v37 = vsel %vm10597_vm9, %v9683_v34, %v6776_v45  ;;  %v6778_v14 = vrot.slane %v6776_v45, 2 }
 0x143   : > { %v6781_v27 = vrot.slane %v6779_v15, 2  ;;  %v7459_v49 = vmul.f32 %v16522_v4, %v11026_v50  ;;  %v11320_v3 = vrot.slane %v6785_v57, 2  ;;  %v7302_v20 = vadd.f32 %v6777_v37, %v6318_v33 }
 0x144   : > { %v6784_v10 = vrot.slane %v6782_v58, 2  ;;  %v2106_v23 = vadd.f32 3.0, %v11067_v40  ;;  %v6780_v32 = vsel %vm10597_vm9, %v6778_v14, %v6779_v15  ;;  %v4646_v34 = vmul.f32 %v10610_v0, %v10899_v39 }
 0x145   : > { %v6783_v38 = vsel %vm10597_vm9, %v6781_v27, %v6782_v58  ;;  %v16523_v45 = vrot.slane %v10937_v24, 7  ;;  %v7303_v33 = vadd.f32 %v6780_v32, %v6319_v41  ;;  %v7584_v47 = vadd.f32 %v7456_v12, %v7302_v20  ;;  %v16525_v58 = vld [vmem:[#allocation62_spill] sm:$0xff] }
 0x146   : > { %v6786_v1 = vsel %vm10597_vm9, %v6784_v10, %v6785_v57  ;;  %v7304_v37 = vadd.f32 %v6783_v38, %v6320_v56  ;;  %v2147_v8 = vmax.f32 %v2106_v23, 0.0  ;;  %v4774_v15 = vadd.f32 %v4646_v34, %v10818_v59  ;;  %v16527_v38 = vld [vmem:[#allocation54_spill] sm:$0xff] }
 0x147   : > { %v5241_v36 = vsel %vm10597_vm9, %v5239_v42, %v16523_v45  ;;  %v7305_v21 = vadd.f32 %v6786_v1, %v6321_v26  ;;  %v16524_v27 = vrot.slane %v10961_v28, 7  ;;  %v7585_v24 = vadd.f32 %v7457_v6, %v7303_v33  ;;  %v16526_v42 = vld [vmem:[#allocation60_spill] sm:$0xff]  ;;  %v16528_v6 = vld [vmem:[#allocation57_spill] sm:$0xff] }
 0x148   : > { %v7586_v43 = vadd.f32 %v7458_v31, %v7304_v37  ;;  %v7712_v52 = vadd.f32 3.0, %v7584_v47  ;;  %v2188_v57 = vmin.f32 %v2147_v8, 6.0  ;;  %v5758_v41 = vadd.f32 %v5241_v36, %v4774_v15 }
 0x149   : > { %v5244_v14 = vsel %vm10597_vm9, %v16525_v58, %v16524_v27  ;;  %v7587_v25 = vadd.f32 %v7459_v49, %v7305_v21  ;;  %v5913_v1 = vmul.f32 %v16508_v2, %v16527_v38  ;;  %v7713_v20 = vadd.f32 3.0, %v7585_v24 }
 0x14a   : > { %v5759_v45 = vadd.f32 %v5244_v14, %v16526_v42  ;;  %v7714_v26 = vadd.f32 3.0, %v7586_v43  ;;  %v7840_v59 = vmax.f32 %v7712_v52, 0.0  ;;  %v5915_v28 = vmul.f32 %v16509_v63, %v10978_v19 }
 0x14b   : > { %v7715_v56 = vadd.f32 3.0, %v7587_v25  ;;  %v2229_v12 = vmul.f32 %v2188_v57, %v11067_v40  ;;  %v6040_v31 = vadd.f32 %v16528_v6, %v5758_v41  ;;  %v7841_v23 = vmax.f32 %v7713_v20, 0.0  ;;  %v16529_v40 = vld [vmem:[#allocation74_spill] sm:$0xff]  ;;  %v16534_v6 = vld [vmem:[#allocation72_spill] sm:$0xff] }
 0x14c   : > { %v6041_v10 = vadd.f32 %v5913_v1, %v5759_v45  ;;  %v7842_v32 = vmax.f32 %v7714_v26, 0.0  ;;  %v7968_v21 = vmin.f32 %v7840_v59, 6.0  ;;  %v6043_v8 = vadd.f32 %v5915_v28, %v11038_v61  ;;  %v16531_v61 = vld [vmem:[#allocation76_spill] sm:$0xff] }
 0x14d   : > { %v7843_v36 = vmax.f32 %v7715_v56, 0.0  ;;  %v2270_v49 = vmul.f32 0.16666667, %v2229_v12  ;;  %v6194_v34 = vmul.f32 %v16510_v62, %v11026_v50  ;;  %v6195_v52 = vmul.f32 %v16511_v9, %v11044_v35 }
 0x14e   : > { %v7969_v33 = vmin.f32 %v7841_v23, 6.0  ;;  %v7970_v37 = vmin.f32 %v7842_v32, 6.0  ;;  %v8096_v15 = vmul.f32 %v7968_v21, %v7584_v47  ;;  %v6196_v27 = vmul.f32 %v16512_v44, %v16529_v40 }
 0x14f   : > { %v7971_v58 = vmin.f32 %v7843_v36, 6.0  ;;  %v2608_v14 = vcombine.high %v2270_v49, %v2270_v49  ;;  %v11356_v42 = vrot.slane %v2270_v49, %v10171_v7  ;;  %v6197_v45 = vmul.f32 %v16513_v17, %v16531_v61 }
 0x150   : > { %v8097_v57 = vmul.f32 %v7969_v33, %v7585_v24  ;;  %v8098_v41 = vmul.f32 %v7970_v37, %v7586_v43  ;;  %v8224_v1 = vmul.f32 0.16666667, %v8096_v15  ;;  %v6322_v20 = vadd.f32 %v6194_v34, %v6040_v31 }
 0x151   : > { %16530 = vst [vmem:[#allocation62_spill] sm:$0xff] %v11356_v42  ;;  %v8099_v26 = vmul.f32 %v7971_v58, %v7587_v25  ;;  %v11361_v59 = vrot.slane %v2608_v14, %v10171_v7  ;;  %v11365_v47 = vcombine.high %v11356_v42, %v11356_v42  ;;  %v6323_v28 = vadd.f32 %v6195_v52, %v6041_v10 }
 0x152   : > { %v8225_v56 = vmul.f32 0.16666667, %v8097_v57  ;;  %v8226_v12 = vmul.f32 0.16666667, %v8098_v41  ;;  %v6324_v23 = vadd.f32 %v6196_v27, %v16534_v6  ;;  %v6325_v32 = vadd.f32 %v6197_v45, %v6043_v8 }
 0x153   : > { %16532 = vst [vmem:[#allocation60_spill] sm:$0xff] %v11361_v59  ;;  %16533 = vst [vmem:[#allocation54_spill] sm:$0xff] %v11365_v47  ;;  %v8227_v21 = vmul.f32 0.16666667, %v8099_v26  ;;  %v11370_v43 = vcombine.high %v11361_v59, %v11361_v59  ;;  %v6491_v25 = vmul.f32 %v16515_v30, %v11044_v35  ;;  %v6492_v24 = vmul.f32 %v16516_v51, %v16529_v40  ;;  %v16540_v59 = vld [vmem:[#allocation46_spill] sm:$0xff] }
 0x154   : > { %v8484_v31 = vcombine.low %v8224_v1, %v8225_v56  ;;  %v6493_v10 = vmul.f32 %v16517_v53, %v16531_v61  ;;  %v7460_v36 = vmul.f32 %v16519_v11, %v11044_v35  ;;  %v7461_v8 = vmul.f32 %v16520_v60, %v16529_v40 }
 0x155   : > { %16535 = vst [vmem:[#allocation57_spill] sm:$0xff] %v11370_v43  ;;  %v8485_v49 = vcombine.low %v8226_v12, %v8227_v21  ;;  %v6788_v34 = vrot.slane %v6491_v25, 7  ;;  %v6791_v52 = vrot.slane %v6492_v24, 7  ;;  %v7462_v33 = vmul.f32 %v16521_v16, %v16531_v61  ;;  %v16536_v12 = vld [vmem:[#allocation49_spill] sm:$0xff] }
 0x156   : > { %v8492_v37 = vrot.slane %v8484_v31, %v10171_v7  ;;  %v6794_v15 = vrot.slane %v6493_v10, 7  ;;  %v7463_v27 = vmul.f32 %v16522_v4, %v11056_v18  ;;  %v2107_v58 = vadd.f32 3.0, %v11101_v5  ;;  %v16537_v31 = vld [vmem:[#allocation5_spill] sm:$0xff] }
 0x157   : > { %v8499_v14 = vrot.slane %v8485_v49, %v10171_v7  ;;  %v6789_v45 = vsel %vm10597_vm9, %v11320_v3, %v6788_v34  ;;  %v6790_v57 = vrot.slane %v6788_v34, 2  ;;  %v6793_v41 = vrot.slane %v6791_v52, 2 }
 0x158   : > { %v6796_v1 = vrot.slane %v6794_v15, 2  ;;  %v7306_v26 = vadd.f32 %v6789_v45, %v6322_v20  ;;  %v2148_v56 = vmax.f32 %v2107_v58, 0.0  ;;  %v2119_v6 = vadd.f32 3.0, %v16536_v12 }
 0x159   : > { %v8500_v21 = vcombine.low %v8492_v37, %v8499_v14  ;;  %v6792_v25 = vsel %vm10597_vm9, %v6790_v57, %v6791_v52  ;;  %v6795_v24 = vsel %vm10597_vm9, %v6793_v41, %v6794_v15  ;;  %v3225_v10 = vmul.f32 %v16537_v31, %v10829_v48  ;;  %v16539_v52 = vld [vmem:[#allocation20_spill] sm:$0xff] }
 0x15a   : > { %v16538_v49 = vrot.slane %v11079_v46, 7  ;;  %v7307_v34 = vadd.f32 %v6792_v25, %v6323_v28  ;;  %v7308_v20 = vadd.f32 %v6795_v24, %v6324_v23  ;;  %v7588_v58 = vadd.f32 %v7460_v36, %v7306_v26 }
 0x15b   : > { %9945 = vmatprep.mubr.msk.f32.mxu1 %vm9028_vm10, %v8500_v21  ;;  %v2189_v14 = vmin.f32 %v2148_v56, 6.0  ;;  %v2160_v45 = vmax.f32 %v2119_v6, 0.0  ;;  %v11406_v57 = vmul.f32 %v16539_v52, %v10899_v39  ;;  %v16541_v46 = vrot.slane %v16540_v59, 7  ;;  %v16542_v56 = vld [vmem:[#allocation52_spill] sm:$0xff] }
 0x15c   : > { %v6798_v3 = vsel %vm10597_vm9, %v6796_v1, %v16538_v49  ;;  %v7589_v15 = vadd.f32 %v7461_v8, %v7307_v34  ;;  %v7590_v41 = vadd.f32 %v7462_v33, %v7308_v20  ;;  %v7716_v43 = vadd.f32 3.0, %v7588_v58  ;;  %v11416_v8 = vpop.f32.mrf.mxu1  ;;  %v11418_v33 = vpop.f32.mrf.mxu0  ;;  %v16547_v34 = vld [vmem:[#allocation45_spill] sm:$0xff]  ;;  %v16548_v20 = vld [vmem:[#allocation47_spill] sm:$0xff] }
 0x15d   : > { %v7309_v37 = vadd.f32 %v6798_v3, %v6325_v32  ;;  %v3710_v47 = vrot.slane %v16541_v46, 2  ;;  %v2230_v28 = vmul.f32 %v2189_v14, %v11101_v5  ;;  %v2201_v23 = vmin.f32 %v2160_v45, 6.0  ;;  %16544 = vst [vmem:[#allocation72_spill] sm:$0xff] %v11416_v8  ;;  %16545 = vst [vmem:[#allocation49_spill] sm:$0xff] %v11418_v33  ;;  %v16546_v5 = vld [vmem:[#allocation58_spill] sm:$0xff] }
 0x15e   : > { %v15827_v36 = vrot.slane %v11406_v57, 7  ;;  %v7717_v1 = vadd.f32 3.0, %v7589_v15  ;;  %v7718_v32 = vadd.f32 3.0, %v7590_v41  ;;  %v7844_v26 = vmax.f32 %v7716_v43, 0.0  ;;  %v9879_v14 = vpop.f32.mrf.mxu0 }
 0x15f   : > { %v7591_v42 = vadd.f32 %v7463_v27, %v7309_v37  ;;  %v16543_v6 = vrot.slane %v16542_v56, 7  ;;  %v2271_v25 = vmul.f32 0.16666667, %v2230_v28  ;;  %v2242_v27 = vmul.f32 %v2201_v23, %v16536_v12  ;;  %v9912_v37 = vpop.f32.mrf.mxu1  ;;  %v16565_v14 = vld [vmem:[#allocation11_spill] sm:$0xff] }
 0x160   : > { %v3715_v24 = vsel %vm10597_vm9, %v16546_v5, %v15827_v36  ;;  %v7845_v43 = vmax.f32 %v7717_v1, 0.0  ;;  %v7846_v49 = vmax.f32 %v7718_v32, 0.0  ;;  %v7972_v3 = vmin.f32 %v7844_v26, 6.0 }
 0x161   : > { %v3712_v21 = vsel %vm10597_vm9, %v3710_v47, %v16543_v6  ;;  %v7719_v59 = vadd.f32 3.0, %v7591_v42  ;;  %v4215_v47 = vadd.f32 %v16548_v20, %v16547_v34  ;;  %v2625_v46 = vcombine.high %v2271_v25, %v2271_v25 }
 0x162   : > { %v11429_v28 = vrot.slane %v2271_v25, %v10171_v7  ;;  %v2283_v12 = vmul.f32 0.16666667, %v2242_v27  ;;  %v7973_v23 = vmin.f32 %v7845_v43, 6.0  ;;  %v7974_v56 = vmin.f32 %v7846_v49, 6.0 }
 0x163   : > { %v7847_v45 = vmax.f32 %v7719_v59, 0.0  ;;  %v8100_v6 = vmul.f32 %v7972_v3, %v7588_v58  ;;  %v4216_v33 = vadd.f32 %v3712_v21, %v3225_v10  ;;  %v11432_v1 = vrot.slane %v2625_v46, %v10171_v7  ;;  %v16554_v10 = vld [vmem:[#allocation51_spill] sm:$0xff]  ;;  %v16555_v21 = vld [vmem:[#allocation16_spill] sm:$0xff] }
 0x164   : > { %16549 = vst [vmem:[#allocation46_spill] sm:$0xff] %v11429_v28  ;;  %v11436_v32 = vcombine.high %v11429_v28, %v11429_v28  ;;  %v2829_v26 = vcombine.high %v2283_v12, %v2283_v12  ;;  %v8101_v5 = vmul.f32 %v7973_v23, %v7589_v15  ;;  %v8102_v59 = vmul.f32 %v7974_v56, %v7590_v41  ;;  %v16561_v56 = vld [vmem:[#allocation53_spill] sm:$0xff] }
 0x165   : > { %v7975_v8 = vmin.f32 %v7847_v45, 6.0  ;;  %16550 = vst [vmem:[#allocation52_spill] sm:$0xff] %v11432_v1  ;;  %v8228_v34 = vmul.f32 0.16666667, %v8100_v6  ;;  %v11439_v25 = vrot.slane %v2283_v12, %v10171_v7  ;;  %v4217_v58 = vadd.f32 %v3715_v24, %v16554_v10  ;;  %v16563_v10 = vld [vmem:[#allocation23_spill] sm:$0xff] }
 0x166   : > { %16551 = vst [vmem:[#allocation58_spill] sm:$0xff] %v11436_v32  ;;  %v11442_v43 = vrot.slane %v2829_v26, %v10171_v7  ;;  %v4369_v49 = vmul.f32 %v16555_v21, %v10829_v48  ;;  %v8229_v3 = vmul.f32 0.16666667, %v8101_v5  ;;  %v8230_v20 = vmul.f32 0.16666667, %v8102_v59  ;;  %v16573_v32 = vld [vmem:[#allocation36_spill] sm:$0xff] }
 0x167   : > { %16552 = vst [vmem:[#allocation45_spill] sm:$0xff] %v11439_v25  ;;  %v8103_v27 = vmul.f32 %v7975_v8, %v7591_v42  ;;  %v11449_v37 = vcombine.high %v11439_v25, %v11439_v25  ;;  %v11453_v15 = vmul.f32 %v10636_v13, %v11439_v25  ;;  %v11461_v8 = vmul.f32 %v10661_v29, %v11439_v25 }
 0x168   : > { %16553 = vst [vmem:[#allocation47_spill] sm:$0xff] %v11442_v43  ;;  %v11457_v42 = vcombine.high %v11442_v43, %v11442_v43  ;;  %v11465_v48 = vmul.f32 %v10685_v55, %v11439_v25  ;;  %v8501_v24 = vcombine.low %v8228_v34, %v8229_v3  ;;  %v4371_v45 = vmul.f32 %v10661_v29, %v10899_v39  ;;  %v16564_v3 = vld [vmem:[#allocation70_spill] sm:$0xff] }
 0x169   : > { %16556 = vst [vmem:[#allocation51_spill] sm:$0xff] %v11449_v37  ;;  %16557 = vst [vmem:[#allocation126_spill] sm:$0xff] %v11453_v15  ;;  %v8231_v41 = vmul.f32 0.16666667, %v8103_v27  ;;  %v4497_v46 = vadd.f32 %v4369_v49, %v4215_v47  ;;  %v4498_v6 = vadd.f32 %v16561_v56, %v4216_v33  ;;  %v4650_v26 = vmul.f32 %v10610_v0, %v10976_v22  ;;  %v16562_v27 = vld [vmem:[#allocation66_spill] sm:$0xff]  ;;  %v16566_v47 = vld [vmem:[#allocation71_spill] sm:$0xff] }
 0x16a   : > { %16558 = vst [vmem:[#allocation127_spill] sm:$0xff] %v11457_v42  ;;  %16559 = vst [vmem:[#allocation128_spill] sm:$0xff] %v11461_v8  ;;  %v8509_v5 = vrot.slane %v8501_v24, %v10171_v7  ;;  %v4499_v59 = vadd.f32 %v4371_v45, %v4217_v58  ;;  %v4651_v34 = vmul.f32 %v16563_v10, %v16562_v27  ;;  %v16567_v49 = vld [vmem:[#allocation26_spill] sm:$0xff]  ;;  %v16569_v33 = vld [vmem:[#allocation9_spill] sm:$0xff] }
 0x16b   : > { %16560 = vst [vmem:[#allocation129_spill] sm:$0xff] %v11465_v48  ;;  %v8502_v12 = vcombine.low %v8230_v20, %v8231_v41  ;;  %v4652_v36 = vmul.f32 %v16565_v14, %v16564_v3  ;;  %v4653_v20 = vmul.f32 %v16567_v49, %v16566_v47  ;;  %v16568_v41 = vld [vmem:[#allocation48_spill] sm:$0xff]  ;;  %v4947_v56 = vmul.f32 %v16569_v33, %v10976_v22  ;;  %v16570_v58 = vld [vmem:[#allocation22_spill] sm:$0xff]  ;;  %v16571_v45 = vld [vmem:[#allocation27_spill] sm:$0xff] }
 0x16c   : > { %v4778_v23 = vadd.f32 %v4650_v26, %v16568_v41  ;;  %v4779_v15 = vadd.f32 %v4651_v34, %v4497_v46  ;;  %v4948_v24 = vmul.f32 %v16570_v58, %v16562_v27  ;;  %v4949_v42 = vmul.f32 %v16571_v45, %v16564_v3  ;;  %v16578_v34 = vld [vmem:[#allocation77_spill] sm:$0xff] }
 0x16d   : > { %v8516_v8 = vrot.slane %v8502_v12, %v10171_v7  ;;  %v4780_v48 = vadd.f32 %v4652_v36, %v4498_v6  ;;  %v4781_v37 = vadd.f32 %v4653_v20, %v4499_v59  ;;  %v16572_v12 = vld [vmem:[#allocation25_spill] sm:$0xff]  ;;  %v11493_v28 = vmul.f32 %v16573_v32, %v11026_v50  ;;  %v16575_v36 = vld [vmem:[#allocation18_spill] sm:$0xff] }
 0x16e   : > { %v4950_v25 = vmul.f32 %v16572_v12, %v16566_v47  ;;  %v9668_v26 = vrot.slane %v4947_v56, 9  ;;  %v5253_v41 = vrot.slane %v4948_v24, 7  ;;  %v5256_v22 = vrot.slane %v4949_v42, 7 }
 0x16f   : > { %v8517_v43 = vcombine.low %v8509_v5, %v8516_v8  ;;  %16574 = vst [vmem:[#allocation53_spill] sm:$0xff] %v11493_v28  ;;  %v5916_v46 = vmul.f32 %v16575_v36, %v16562_v27  ;;  %v5917_v8 = vmul.f32 %v16508_v2, %v16564_v3  ;;  %v16576_v5 = vld [vmem:[#allocation19_spill] sm:$0xff]  ;;  %v5919_v42 = vmul.f32 %v16509_v63, %v11026_v50  ;;  %v16580_v27 = vld [vmem:[#allocation80_spill] sm:$0xff] }
 0x170   : > { %v5259_v6 = vrot.slane %v4950_v25, 7  ;;  %v5918_v59 = vmul.f32 %v16576_v5, %v16566_v47  ;;  %v5254_v20 = vsel %vm10597_vm9, %v9668_v26, %v5253_v41  ;;  %v5255_v56 = vrot.slane %v5253_v41, 2  ;;  %v16579_v26 = vld [vmem:[#allocation81_spill] sm:$0xff] }
 0x171   : > { %9946 = vmatmul.mubr.msk.f32.vlgmr.msra.gmra.mxu1 %vm9028_vm10, %v8517_v43  ;;  %v5258_v24 = vrot.slane %v5256_v22, 2  ;;  %v5762_v32 = vadd.f32 %v5254_v20, %v4778_v23  ;;  %v16577_v43 = vld [vmem:[#allocation78_spill] sm:$0xff]  ;;  %v6199_v52 = vmul.f32 %v16511_v9, %v16578_v34  ;;  %v6200_v41 = vmul.f32 %v16512_v44, %v16579_v26 }
 0x172   : > { %v5261_v1 = vrot.slane %v5259_v6, 2  ;;  %v6198_v25 = vmul.f32 %v16510_v62, %v16577_v43  ;;  %v5257_v3 = vsel %vm10597_vm9, %v5255_v56, %v5256_v22  ;;  %v6201_v63 = vmul.f32 %v16513_v17, %v16580_v27  ;;  %v16582_v22 = vld [vmem:[#allocation24_spill] sm:$0xff] }
 0x173   : > { %v5260_v47 = vsel %vm10597_vm9, %v5258_v24, %v5259_v6  ;;  %v16581_v23 = vrot.slane %v11493_v28, 7  ;;  %v5763_v62 = vadd.f32 %v5257_v3, %v4779_v15  ;;  %v6044_v9 = vadd.f32 %v5916_v46, %v5762_v32  ;;  %v16583_v15 = vld [vmem:[#allocation83_spill] sm:$0xff] }
 0x174   : > { %v5764_v5 = vadd.f32 %v5260_v47, %v4780_v48  ;;  %v6495_v56 = vmul.f32 %v16582_v22, %v16577_v43  ;;  %v6496_v6 = vmul.f32 %v16515_v30, %v16578_v34  ;;  %v6497_v24 = vmul.f32 %v16516_v51, %v16579_v26  ;;  %v16584_v48 = vld [vmem:[#allocation42_spill] sm:$0xff] }
 0x175   : > { %v5263_v20 = vsel %vm10597_vm9, %v5261_v1, %v16581_v23  ;;  %v6045_v44 = vadd.f32 %v5917_v8, %v5763_v62  ;;  %v6326_v36 = vadd.f32 %v6198_v25, %v6044_v9  ;;  %v6498_v28 = vmul.f32 %v16517_v53, %v16580_v27 }
 0x176   : > { %v5765_v2 = vadd.f32 %v5263_v20, %v4781_v37  ;;  %v6046_v17 = vadd.f32 %v5918_v59, %v5764_v5  ;;  %v11533_v32 = vmul.f32 %v16584_v48, %v16583_v15  ;;  %v9684_v37 = vrot.slane %v6495_v56, 9 }
 0x177   : > { %v6801_v3 = vrot.slane %v6496_v6, 7  ;;  %v6327_v47 = vadd.f32 %v6199_v52, %v6045_v44  ;;  %v6804_v23 = vrot.slane %v6497_v24, 7  ;;  %v6807_v20 = vrot.slane %v6498_v28, 7  ;;  %v16585_v24 = vld [vmem:[#allocation93_spill] sm:$0xff] }
 0x178   : > { %v6047_v1 = vadd.f32 %v5919_v42, %v5765_v2  ;;  %v6328_v46 = vadd.f32 %v6200_v41, %v6046_v17  ;;  %v15851_v9 = vrot.slane %v11533_v32, 7  ;;  %v7464_v42 = vmul.f32 %v16519_v11, %v16578_v34 }
 0x179   : > { %v6802_v62 = vsel %vm10597_vm9, %v9684_v37, %v6801_v3  ;;  %v6803_v8 = vrot.slane %v6801_v3, 2  ;;  %v6806_v5 = vrot.slane %v6804_v23, 2  ;;  %v6809_v59 = vrot.slane %v6807_v20, 2  ;;  %v16586_v37 = vld [vmem:[#allocation59_spill] sm:$0xff] }
 0x17a   : > { %v6329_v22 = vadd.f32 %v6201_v63, %v6047_v1  ;;  %v7310_v2 = vadd.f32 %v6802_v62, %v6326_v36  ;;  %v7465_v17 = vmul.f32 %v16520_v60, %v16579_v26  ;;  %v7466_v63 = vmul.f32 %v16521_v16, %v16580_v27 }
 0x17b   : > { %v6805_v25 = vsel %vm10597_vm9, %v6803_v8, %v6804_v23  ;;  %v7467_v44 = vmul.f32 %v16522_v4, %v16583_v15  ;;  %v6808_v52 = vsel %vm10597_vm9, %v6806_v5, %v6807_v20  ;;  %v6811_v28 = vsel %vm10597_vm9, %v6809_v59, %v15851_v9  ;;  %v16587_v8 = vld [vmem:[#allocation85_spill] sm:$0xff]  ;;  %v16589_v20 = vld [vmem:[#allocation4_spill] sm:$0xff] }
 0x17c   : > { %v7311_v36 = vadd.f32 %v6805_v25, %v6327_v47  ;;  %v7592_v41 = vadd.f32 %v7464_v42, %v7310_v2  ;;  %v7312_v56 = vadd.f32 %v6808_v52, %v6328_v46  ;;  %v7313_v6 = vadd.f32 %v6811_v28, %v6329_v22  ;;  %v16590_v25 = vld [vmem:[#allocation12_spill] sm:$0xff] }
 0x17d   : > { %v2108_v1 = vadd.f32 3.0, %v16585_v24  ;;  %v2120_v3 = vadd.f32 3.0, %v16586_v37  ;;  %v11558_v48 = vcombine.high %v16587_v8, %v16587_v8  ;;  %v11562_v5 = vmul.f32 %v16589_v20, %v10899_v39 }
 0x17e   : > { %v7593_v23 = vadd.f32 %v7465_v17, %v7311_v36  ;;  %v7720_v62 = vadd.f32 3.0, %v7592_v41  ;;  %v7594_v27 = vadd.f32 %v7466_v63, %v7312_v56  ;;  %v7595_v59 = vadd.f32 %v7467_v44, %v7313_v6 }
 0x17f   : > { %16588 = vst [vmem:[#allocation48_spill] sm:$0xff] %v11558_v48  ;;  %v2149_v47 = vmax.f32 %v2108_v1, 0.0  ;;  %v2161_v2 = vmax.f32 %v2120_v3, 0.0  ;;  %v3229_v42 = vmul.f32 %v16537_v31, %v16527_v38  ;;  %v3405_v17 = vmul.f32 %v16590_v25, %v16527_v38  ;;  %v16592_v25 = vld [vmem:[#allocation56_spill] sm:$0xff] }
 0x180   : > { %v7721_v46 = vadd.f32 3.0, %v7593_v23  ;;  %v7848_v22 = vmax.f32 %v7720_v62, 0.0  ;;  %v7722_v52 = vadd.f32 3.0, %v7594_v27  ;;  %v7723_v28 = vadd.f32 3.0, %v7595_v59 }
 0x181   : > { %v2190_v36 = vmin.f32 %v2149_v47, 6.0  ;;  %v2202_v9 = vmin.f32 %v2161_v2, 6.0  ;;  %v3407_v39 = vmul.f32 %v10636_v13, %v10978_v19  ;;  %v16591_v63 = vrot.slane %v11406_v57, 7 }
 0x182   : > { %v7849_v26 = vmax.f32 %v7721_v46, 0.0  ;;  %v7976_v34 = vmin.f32 %v7848_v22, 6.0  ;;  %v7850_v56 = vmax.f32 %v7722_v52, 0.0  ;;  %v7851_v6 = vmax.f32 %v7723_v28, 0.0  ;;  %v11578_v46 = vpop.f32.mrf.mxu1  ;;  %v11580_v22 = vpop.f32.mrf.mxu0 }
 0x183   : > { %v3716_v44 = vrot.slane %v16591_v63, 2  ;;  %v2231_v1 = vmul.f32 %v2190_v36, %v16585_v24  ;;  %v2243_v3 = vmul.f32 %v2202_v9, %v16586_v37  ;;  %v16593_v31 = vrot.slane %v16592_v25, 7  ;;  %16594 = vst [vmem:[#allocation27_spill] sm:$0xff] %v11578_v46  ;;  %16595 = vst [vmem:[#allocation25_spill] sm:$0xff] %v11580_v22  ;;  %v16596_v36 = vld [vmem:[#allocation61_spill] sm:$0xff] }
 0x184   : > { %v7977_v62 = vmin.f32 %v7849_v26, 6.0  ;;  %v8104_v43 = vmul.f32 %v7976_v34, %v7592_v41  ;;  %v3720_v2 = vrot.slane %v3405_v17, 7  ;;  %v7978_v57 = vmin.f32 %v7850_v56, 6.0  ;;  %v9915_v9 = vpop.f32.mrf.mxu1  ;;  %v9882_v41 = vpop.f32.mrf.mxu0 }
 0x185   : > { %v3718_v47 = vsel %vm10597_vm9, %v3716_v44, %v16593_v31  ;;  %v7979_v63 = vmin.f32 %v7851_v6, 6.0  ;;  %v2272_v52 = vmul.f32 0.16666667, %v2231_v1  ;;  %v2284_v28 = vmul.f32 0.16666667, %v2243_v3  ;;  %v16614_v41 = vld [vmem:[#allocation7_spill] sm:$0xff] }
 0x186   : > { %v8105_v13 = vmul.f32 %v7977_v62, %v7593_v23  ;;  %v8232_v24 = vmul.f32 0.16666667, %v8104_v43  ;;  %v3721_v34 = vsel %vm10597_vm9, %v16596_v36, %v3720_v2  ;;  %v3722_v26 = vrot.slane %v3720_v2, 2  ;;  %v16599_v23 = vld [vmem:[#allocation64_spill] sm:$0xff] }
 0x187   : > { %v8106_v37 = vmul.f32 %v7978_v57, %v7594_v27  ;;  %v8107_v31 = vmul.f32 %v7979_v63, %v7595_v59  ;;  %v2642_v25 = vcombine.high %v2272_v52, %v2272_v52  ;;  %v11586_v17 = vrot.slane %v2272_v52, %v10171_v7  ;;  %v16604_v57 = vld [vmem:[#allocation3_spill] sm:$0xff] }
 0x188   : > { %v8233_v44 = vmul.f32 0.16666667, %v8105_v13  ;;  %v2846_v56 = vcombine.high %v2284_v28, %v2284_v28  ;;  %v11589_v6 = vrot.slane %v2284_v28, %v10171_v7  ;;  %v16600_v43 = vrot.slane %v16599_v23, 7  ;;  %v16611_v23 = vld [vmem:[#allocation55_spill] sm:$0xff] }
 0x189   : > { %16597 = vst [vmem:[#allocation83_spill] sm:$0xff] %v11586_v17  ;;  %v8234_v3 = vmul.f32 0.16666667, %v8106_v37  ;;  %v8235_v62 = vmul.f32 0.16666667, %v8107_v31  ;;  %v11596_v2 = vrot.slane %v2642_v25, %v10171_v7  ;;  %v11600_v27 = vcombine.high %v11586_v17, %v11586_v17  ;;  %v16615_v37 = vld [vmem:[#allocation63_spill] sm:$0xff] }
 0x18a   : > { %16598 = vst [vmem:[#allocation93_spill] sm:$0xff] %v11589_v6  ;;  %v3724_v1 = vsel %vm10597_vm9, %v3722_v26, %v16600_v43  ;;  %v8518_v59 = vcombine.low %v8232_v24, %v8233_v44  ;;  %v11604_v13 = vmul.f32 %v16589_v20, %v11586_v17  ;;  %v11608_v63 = vmul.f32 %v16604_v57, %v11586_v17 }
 0x18b   : > { %16601 = vst [vmem:[#allocation59_spill] sm:$0xff] %v11596_v2  ;;  %16602 = vst [vmem:[#allocation56_spill] sm:$0xff] %v11600_v27  ;;  %v11612_v52 = vmul.f32 %v16569_v33, %v11586_v17  ;;  %v8519_v28 = vcombine.low %v8234_v3, %v8235_v62  ;;  %v11616_v36 = vcombine.high %v11596_v2, %v11596_v2  ;;  %v3726_v31 = vrot.slane %v3407_v39, 7  ;;  %v16612_v3 = vld [vmem:[#allocation69_spill] sm:$0xff]  ;;  %v16626_v2 = vld [vmem:[#allocation86_spill] sm:$0xff] }
 0x18c   : > { %16603 = vst [vmem:[#allocation61_spill] sm:$0xff] %v11604_v13  ;;  %16605 = vst [vmem:[#allocation64_spill] sm:$0xff] %v11608_v63  ;;  %v11619_v26 = vrot.slane %v2846_v56, %v10171_v7  ;;  %v11623_v24 = vcombine.high %v11589_v6, %v11589_v6  ;;  %v8526_v9 = vrot.slane %v8518_v59, %v10171_v7  ;;  %v16627_v27 = vld [vmem:[#allocation30_spill] sm:$0xff] }
 0x18d   : > { %16606 = vst [vmem:[#allocation130_spill] sm:$0xff] %v11612_v52  ;;  %16607 = vst [vmem:[#allocation131_spill] sm:$0xff] %v11616_v36  ;;  %v8533_v25 = vrot.slane %v8519_v28, %v10171_v7  ;;  %v4218_v56 = vadd.f32 %v3718_v47, %v11562_v5  ;;  %v4219_v43 = vadd.f32 %v3721_v34, %v16611_v23  ;;  %v16616_v23 = vld [vmem:[#allocation65_spill] sm:$0xff]  ;;  %v16625_v52 = vld [vmem:[#allocation39_spill] sm:$0xff] }
 0x18e   : > { %16608 = vst [vmem:[#allocation132_spill] sm:$0xff] %v11619_v26  ;;  %16609 = vst [vmem:[#allocation133_spill] sm:$0xff] %v11623_v24  ;;  %v11631_v44 = vcombine.high %v11619_v26, %v11619_v26  ;;  %v3727_v62 = vsel %vm10597_vm9, %v16612_v3, %v3726_v31  ;;  %v4220_v59 = vadd.f32 %v3724_v1, %v3229_v42  ;;  %v16613_v24 = vld [vmem:[#allocation50_spill] sm:$0xff]  ;;  %v16621_v26 = vld [vmem:[#allocation19_spill] sm:$0xff] }
 0x18f   : > { %v4372_v6 = vmul.f32 %v16614_v41, %v16613_v24  ;;  %v4373_v39 = vmul.f32 %v16555_v21, %v16527_v38  ;;  %v8534_v28 = vcombine.low %v8526_v9, %v8533_v25  ;;  %v4221_v13 = vadd.f32 %v3727_v62, %v16615_v37 }
 0x190   : > { %16610 = vst [vmem:[#allocation134_spill] sm:$0xff] %v11631_v44  ;;  %v4375_v44 = vmul.f32 %v10661_v29, %v10978_v19  ;;  %v4654_v5 = vmul.f32 %v10610_v0, %v11026_v50  ;;  %v4502_v31 = vadd.f32 %v16616_v23, %v4220_v59  ;;  %v4655_v42 = vmul.f32 %v16563_v10, %v11044_v35  ;;  %v16620_v23 = vld [vmem:[#allocation37_spill] sm:$0xff] }
 0x191   : > { %v4500_v47 = vadd.f32 %v4372_v6, %v4218_v56  ;;  %v4501_v34 = vadd.f32 %v4373_v39, %v4219_v43  ;;  %9948 = vmatprep.mubr.msk.f32.mxu1 %vm9028_vm10, %v8534_v28  ;;  %v4656_v38 = vmul.f32 %v16565_v14, %v16529_v40  ;;  %v4657_v24 = vmul.f32 %v16567_v49, %v16531_v61 }
 0x192   : > { %v4503_v1 = vadd.f32 %v4375_v44, %v4221_v13  ;;  %v4952_v19 = vmul.f32 %v16570_v58, %v11044_v35  ;;  %v4953_v37 = vmul.f32 %v16571_v45, %v16529_v40  ;;  %v4954_v25 = vmul.f32 %v16572_v12, %v16531_v61  ;;  %v16617_v44 = vld [vmem:[#allocation53_spill] sm:$0xff] }
 0x193   : > { %v4782_v9 = vadd.f32 %v4654_v5, %v4500_v47  ;;  %v4783_v6 = vadd.f32 %v4655_v42, %v4501_v34  ;;  %v4784_v56 = vadd.f32 %v4656_v38, %v4502_v31  ;;  %v4955_v13 = vmul.f32 %v10685_v55, %v11056_v18  ;;  %v16619_v5 = vld [vmem:[#allocation18_spill] sm:$0xff] }
 0x194   : > { %v4785_v43 = vadd.f32 %v4657_v24, %v4503_v1  ;;  %v16618_v3 = vrot.slane %v16617_v44, 7  ;;  %v5265_v59 = vrot.slane %v4952_v19, 7  ;;  %v5268_v39 = vrot.slane %v4953_v37, 7  ;;  %v16622_v1 = vld [vmem:[#allocation38_spill] sm:$0xff] }
 0x195   : > { %v5271_v28 = vrot.slane %v4954_v25, 7  ;;  %v5920_v47 = vmul.f32 %v16619_v5, %v11044_v35  ;;  %v5274_v34 = vrot.slane %v4955_v13, 7  ;;  %v5921_v42 = vmul.f32 %v16620_v23, %v16529_v40  ;;  %v16624_v13 = vld [vmem:[#allocation82_spill] sm:$0xff] }
 0x196   : > { %v5264_v62 = vrot.slane %v16618_v3, 2  ;;  %v5922_v31 = vmul.f32 %v16621_v26, %v16531_v61  ;;  %v5923_v38 = vmul.f32 %v16622_v1, %v11056_v18  ;;  %v5267_v44 = vrot.slane %v5265_v59, 2  ;;  %v16623_v3 = vld [vmem:[#allocation29_spill] sm:$0xff] }
 0x197   : > { %v5270_v19 = vrot.slane %v5268_v39, 2  ;;  %v5273_v37 = vrot.slane %v5271_v28, 2  ;;  %v6202_v63 = vmul.f32 %v16623_v3, %v16583_v15  ;;  %v6203_v36 = vmul.f32 %v16625_v52, %v16624_v13 }
 0x198   : > { %v5266_v24 = vsel %vm10597_vm9, %v5264_v62, %v5265_v59  ;;  %v6204_v17 = vmul.f32 %v16627_v27, %v16626_v2  ;;  %v5269_v22 = vsel %vm10597_vm9, %v5267_v44, %v5268_v39  ;;  %v6500_v35 = vmul.f32 %v16515_v30, %v16624_v13 }
 0x199   : > { %v5766_v25 = vadd.f32 %v5266_v24, %v4782_v9  ;;  %v5272_v46 = vsel %vm10597_vm9, %v5270_v19, %v5271_v28  ;;  %v5275_v62 = vsel %vm10597_vm9, %v5273_v37, %v5274_v34  ;;  %v16628_v9 = vld [vmem:[#allocation40_spill] sm:$0xff]  ;;  %v5767_v24 = vadd.f32 %v5269_v22, %v4783_v6  ;;  %v16629_v28 = vld [vmem:[#allocation33_spill] sm:$0xff] }
 0x19a   : > { %v6205_v59 = vmul.f32 %v16628_v9, %v16587_v8  ;;  %v5768_v18 = vadd.f32 %v5272_v46, %v4784_v56  ;;  %v5769_v61 = vadd.f32 %v5275_v62, %v4785_v43  ;;  %v6501_v20 = vmul.f32 %v16516_v51, %v16626_v2 }
 0x19b   : > { %v6048_v40 = vadd.f32 %v5920_v47, %v5766_v25  ;;  %v6502_v39 = vmul.f32 %v16517_v53, %v16587_v8  ;;  %v6503_v44 = vmul.f32 %v16629_v28, %v11558_v48  ;;  %v6049_v34 = vadd.f32 %v5921_v42, %v5767_v24 }
 0x19c   : > { %v6050_v19 = vadd.f32 %v5922_v31, %v5768_v18  ;;  %v6051_v37 = vadd.f32 %v5923_v38, %v5769_v61  ;;  %v16630_v46 = vrot.slane %v11533_v32, 7  ;;  %v6813_v6 = vrot.slane %v6500_v35, 7  ;;  %v16631_v38 = vld [vmem:[#allocation111_spill] sm:$0xff] }
 0x19d   : > { %v6330_v9 = vadd.f32 %v6202_v63, %v6048_v40  ;;  %v6816_v56 = vrot.slane %v6501_v20, 7  ;;  %v6819_v43 = vrot.slane %v6502_v39, 7  ;;  %v6331_v47 = vadd.f32 %v6203_v36, %v6049_v34  ;;  %v16633_v39 = vld [vmem:[#allocation123_spill] sm:$0xff]  ;;  %v16635_v34 = vld [vmem:[#allocation6_spill] sm:$0xff] }
 0x19e   : > { %v6812_v22 = vrot.slane %v16630_v46, 2  ;;  %v6332_v25 = vadd.f32 %v6204_v17, %v6050_v19  ;;  %v6333_v62 = vadd.f32 %v6205_v59, %v6051_v37  ;;  %v6822_v51 = vrot.slane %v6503_v44, 7  ;;  %v16632_v59 = vld [vmem:[#allocation112_spill] sm:$0xff] }
 0x19f   : > { %v6815_v30 = vrot.slane %v6813_v6, 2  ;;  %v6818_v27 = vrot.slane %v6816_v56, 2  ;;  %v6821_v28 = vrot.slane %v6819_v43, 2  ;;  %v7468_v18 = vmul.f32 %v16519_v11, %v16624_v13 }
 0x1a0   : > { %v6814_v53 = vsel %vm10597_vm9, %v6812_v22, %v6813_v6  ;;  %v7469_v40 = vmul.f32 %v16520_v60, %v16626_v2  ;;  %v7470_v35 = vmul.f32 %v16521_v16, %v16587_v8  ;;  %v2121_v24 = vadd.f32 3.0, %v16632_v59  ;;  %v16639_v8 = vld [vmem:[#allocation17_spill] sm:$0xff] }
 0x1a1   : > { %v7314_v42 = vadd.f32 %v6814_v53, %v6330_v9  ;;  %v6817_v61 = vsel %vm10597_vm9, %v6815_v30, %v6816_v56  ;;  %v6820_v32 = vsel %vm10597_vm9, %v6818_v27, %v6819_v43  ;;  %v6823_v20 = vsel %vm10597_vm9, %v6821_v28, %v6822_v51  ;;  %v16634_v30 = vld [vmem:[#allocation66_spill] sm:$0xff]  ;;  %v16637_v43 = vld [vmem:[#allocation5_spill] sm:$0xff] }
 0x1a2   : > { %v7471_v53 = vmul.f32 %v16522_v4, %v11558_v48  ;;  %v7315_v17 = vadd.f32 %v6817_v61, %v6331_v47  ;;  %v7316_v63 = vadd.f32 %v6820_v32, %v6332_v25  ;;  %v7317_v36 = vadd.f32 %v6823_v20, %v6333_v62  ;;  %v16636_v56 = vld [vmem:[#allocation70_spill] sm:$0xff]  ;;  %v16638_v48 = vld [vmem:[#allocation71_spill] sm:$0xff] }
 0x1a3   : > { %v7596_v31 = vadd.f32 %v7468_v18, %v7314_v42  ;;  %v2109_v9 = vadd.f32 3.0, %v16631_v38  ;;  %v2110_v44 = vadd.f32 3.0, %v16633_v39  ;;  %v11720_v19 = vmul.f32 %v16635_v34, %v16634_v30 }
 0x1a4   : > { %v7597_v27 = vadd.f32 %v7469_v40, %v7315_v17  ;;  %v7598_v37 = vadd.f32 %v7470_v35, %v7316_v63  ;;  %v7599_v51 = vadd.f32 %v7471_v53, %v7317_v36  ;;  %v2162_v22 = vmax.f32 %v2121_v24, 0.0 }
 0x1a5   : > { %v7724_v28 = vadd.f32 3.0, %v7596_v31  ;;  %v2150_v46 = vmax.f32 %v2109_v9, 0.0  ;;  %v2151_v6 = vmax.f32 %v2110_v44, 0.0  ;;  %v11724_v47 = vmul.f32 %v16637_v43, %v16636_v56  ;;  %v16640_v44 = vld [vmem:[#allocation10_spill] sm:$0xff] }
 0x1a6   : > { %v7725_v25 = vadd.f32 3.0, %v7597_v27  ;;  %v7726_v62 = vadd.f32 3.0, %v7598_v37  ;;  %v7727_v42 = vadd.f32 3.0, %v7599_v51  ;;  %v2203_v32 = vmin.f32 %v2162_v22, 6.0 }
 0x1a7   : > { %v7852_v18 = vmax.f32 %v7724_v28, 0.0  ;;  %v2191_v61 = vmin.f32 %v2150_v46, 6.0  ;;  %v2192_v20 = vmin.f32 %v2151_v6, 6.0  ;;  %v11728_v40 = vmul.f32 %v16639_v8, %v16638_v48 }
 0x1a8   : > { %v7853_v35 = vmax.f32 %v7725_v25, 0.0  ;;  %v7854_v53 = vmax.f32 %v7726_v62, 0.0  ;;  %v7855_v17 = vmax.f32 %v7727_v42, 0.0  ;;  %v2244_v9 = vmul.f32 %v2203_v32, %v16632_v59  ;;  %v16641_v25 = vld [vmem:[#allocation12_spill] sm:$0xff]  ;;  %v11737_v42 = vpop.f32.mrf.mxu1 }
 0x1a9   : > { %v7980_v63 = vmin.f32 %v7852_v18, 6.0  ;;  %v2232_v36 = vmul.f32 %v2191_v61, %v16631_v38  ;;  %v2233_v24 = vmul.f32 %v2192_v20, %v16633_v39  ;;  %v3409_v28 = vmul.f32 %v16640_v44, %v16634_v30  ;;  %16642 = vst [vmem:[#allocation55_spill] sm:$0xff] %v11737_v42  ;;  %v11739_v38 = vpop.f32.mrf.mxu0 }
 0x1aa   : > { %v7981_v46 = vmin.f32 %v7853_v35, 6.0  ;;  %v7982_v22 = vmin.f32 %v7854_v53, 6.0  ;;  %v7983_v6 = vmin.f32 %v7855_v17, 6.0  ;;  %v2285_v8 = vmul.f32 0.16666667, %v2244_v9  ;;  %16643 = vst [vmem:[#allocation69_spill] sm:$0xff] %v11739_v38  ;;  %v9918_v53 = vpop.f32.mrf.mxu1 }
 0x1ab   : > { %v8108_v2 = vmul.f32 %v7980_v63, %v7596_v31  ;;  %v2273_v13 = vmul.f32 0.16666667, %v2232_v36  ;;  %v2274_v43 = vmul.f32 0.16666667, %v2233_v24  ;;  %v3410_v62 = vmul.f32 %v16641_v25, %v16636_v56  ;;  %v9885_v17 = vpop.f32.mrf.mxu0 }
 0x1ac   : > { %v8109_v59 = vmul.f32 %v7981_v46, %v7597_v27  ;;  %v8110_v18 = vmul.f32 %v7982_v22, %v7598_v37  ;;  %v8111_v39 = vmul.f32 %v7983_v6, %v7599_v51  ;;  %v2863_v35 = vcombine.high %v2285_v8, %v2285_v8  ;;  %v16651_v46 = vld [vmem:[#allocation13_spill] sm:$0xff] }
 0x1ad   : > { %v8236_v61 = vmul.f32 0.16666667, %v8108_v2  ;;  %v2659_v32 = vcombine.high %v2273_v13, %v2273_v13  ;;  %v11742_v20 = vrot.slane %v2273_v13, %v10171_v7  ;;  %v11745_v31 = vrot.slane %v2285_v8, %v10171_v7 }
 0x1ae   : > { %v8237_v63 = vmul.f32 0.16666667, %v8109_v59  ;;  %v8238_v36 = vmul.f32 0.16666667, %v8110_v18  ;;  %v8239_v9 = vmul.f32 0.16666667, %v8111_v39  ;;  %v2676_v24 = vcombine.high %v2274_v43, %v2274_v43 }
 0x1af   : > { %16644 = vst [vmem:[#allocation50_spill] sm:$0xff] %v11742_v20  ;;  %16645 = vst [vmem:[#allocation63_spill] sm:$0xff] %v11745_v31  ;;  %v11748_v38 = vrot.slane %v2659_v32, %v10171_v7  ;;  %v11752_v2 = vcombine.high %v11742_v20, %v11742_v20  ;;  %v11755_v13 = vrot.slane %v2863_v35, %v10171_v7  ;;  %v16657_v35 = vld [vmem:[#allocation15_spill] sm:$0xff]  ;;  %v3730_v31 = vrot.slane %v3409_v28, 7 }
 0x1b0   : > { %v11758_v27 = vrot.slane %v2274_v43, %v10171_v7  ;;  %v8535_v8 = vcombine.low %v8236_v61, %v8237_v63  ;;  %v8536_v37 = vcombine.low %v8238_v36, %v8239_v9  ;;  %v11761_v51 = vrot.slane %v2676_v24, %v10171_v7  ;;  %v16661_v9 = vld [vmem:[#allocation20_spill] sm:$0xff] }
 0x1b1   : > { %16646 = vst [vmem:[#allocation65_spill] sm:$0xff] %v11748_v38  ;;  %16647 = vst [vmem:[#allocation53_spill] sm:$0xff] %v11752_v2  ;;  %v3411_v22 = vmul.f32 %v16651_v46, %v16638_v48  ;;  %v11767_v6 = vcombine.high %v11748_v38, %v11748_v38  ;;  %v11771_v59 = vcombine.high %v11755_v13, %v11755_v13 }
 0x1b2   : > { %16648 = vst [vmem:[#allocation37_spill] sm:$0xff] %v11755_v13  ;;  %16649 = vst [vmem:[#allocation111_spill] sm:$0xff] %v11758_v27  ;;  %v11775_v43 = vmul.f32 %v16604_v57, %v11755_v13  ;;  %v11779_v18 = vcombine.high %v11758_v27, %v11758_v27  ;;  %v8543_v39 = vrot.slane %v8535_v8, %v10171_v7  ;;  %v16677_v57 = vld [vmem:[#allocation40_spill] sm:$0xff] }
 0x1b3   : > { %16650 = vst [vmem:[#allocation112_spill] sm:$0xff] %v11761_v51  ;;  %16652 = vst [vmem:[#allocation123_spill] sm:$0xff] %v11767_v6  ;;  %v8550_v61 = vrot.slane %v8536_v37, %v10171_v7  ;;  %v11785_v32 = vcombine.high %v11761_v51, %v11761_v51  ;;  %v11789_v53 = vmul.f32 %v16657_v35, %v11758_v27  ;;  %v3736_v17 = vrot.slane %v3411_v22, 7  ;;  %v16664_v37 = vld [vmem:[#allocation67_spill] sm:$0xff]  ;;  %v16665_v51 = vld [vmem:[#allocation14_spill] sm:$0xff] }
 0x1b4   : > { %16653 = vst [vmem:[#allocation66_spill] sm:$0xff] %v11771_v59  ;;  %16654 = vst [vmem:[#allocation70_spill] sm:$0xff] %v11775_v43  ;;  %v11794_v63 = vmul.f32 %v10661_v29, %v11758_v27  ;;  %v11798_v36 = vmul.f32 %v10685_v55, %v11758_v27  ;;  %v11802_v24 = vmul.f32 %v16661_v9, %v11026_v50  ;;  %v16662_v27 = vld [vmem:[#allocation68_spill] sm:$0xff] }
 0x1b5   : > { %16655 = vst [vmem:[#allocation71_spill] sm:$0xff] %v11779_v18  ;;  %16656 = vst [vmem:[#allocation135_spill] sm:$0xff] %v11785_v32  ;;  %v8551_v8 = vcombine.low %v8543_v39, %v8550_v61  ;;  %v3733_v32 = vrot.slane %v3410_v62, 7  ;;  %v16663_v6 = vrot.slane %v16662_v27, 9  ;;  %v3732_v39 = vrot.slane %v3730_v31, 2  ;;  %v16676_v9 = vld [vmem:[#allocation92_spill] sm:$0xff] }
 0x1b6   : > { %16658 = vst [vmem:[#allocation136_spill] sm:$0xff] %v11789_v53  ;;  %16659 = vst [vmem:[#allocation137_spill] sm:$0xff] %v11794_v63  ;;  %v4376_v63 = vmul.f32 %v16614_v41, %v16634_v30  ;;  %v4377_v28 = vmul.f32 %v16555_v21, %v16636_v56  ;;  %v3738_v62 = vrot.slane %v3736_v17, 2  ;;  %v4378_v18 = vmul.f32 %v16665_v51, %v16638_v48  ;;  %v16667_v53 = vld [vmem:[#allocation77_spill] sm:$0xff] }
 0x1b7   : > { %16660 = vst [vmem:[#allocation138_spill] sm:$0xff] %v11798_v36  ;;  %9949 = vmatmul.mubr.msk.f32.gmra.mxu1 %vm9028_vm10, %v8551_v8  ;;  %v3731_v38 = vsel %vm10597_vm9, %v16663_v6, %v3730_v31  ;;  %v3735_v61 = vrot.slane %v3733_v32, 2  ;;  %v4379_v30 = vmul.f32 %v10661_v29, %v11026_v50  ;;  %v3734_v27 = vsel %vm10597_vm9, %v3732_v39, %v3733_v32  ;;  %v16666_v31 = vld [vmem:[#allocation78_spill] sm:$0xff]  ;;  %v16669_v39 = vld [vmem:[#allocation81_spill] sm:$0xff] }
 0x1b8   : > { %v4222_v22 = vadd.f32 %v3731_v38, %v16664_v37  ;;  %v4658_v8 = vmul.f32 %v10610_v0, %v16666_v31  ;;  %v4659_v56 = vmul.f32 %v16563_v10, %v16667_v53  ;;  %v16668_v38 = vrot.slane %v11802_v24, 7 }
 0x1b9   : > { %v3737_v6 = vsel %vm10597_vm9, %v3735_v61, %v3736_v17  ;;  %v4223_v37 = vadd.f32 %v3734_v27, %v11720_v19  ;;  %v4660_v17 = vmul.f32 %v16565_v14, %v16669_v39  ;;  %v16670_v61 = vld [vmem:[#allocation80_spill] sm:$0xff]  ;;  %v4956_v43 = vmul.f32 %v16569_v33, %v16666_v31 }
 0x1ba   : > { %v3740_v48 = vsel %vm10597_vm9, %v3738_v62, %v16668_v38  ;;  %v4224_v36 = vadd.f32 %v3737_v6, %v11724_v47  ;;  %v4504_v2 = vadd.f32 %v4376_v63, %v4222_v22  ;;  %v4661_v20 = vmul.f32 %v16567_v49, %v16670_v61  ;;  %v16671_v63 = vld [vmem:[#allocation36_spill] sm:$0xff] }
 0x1bb   : > { %v4225_v32 = vadd.f32 %v3740_v48, %v11728_v40  ;;  %v4505_v59 = vadd.f32 %v4377_v28, %v4223_v37  ;;  %v4957_v19 = vmul.f32 %v16570_v58, %v16667_v53  ;;  %v4958_v47 = vmul.f32 %v16571_v45, %v16669_v39  ;;  %v16678_v31 = vld [vmem:[#allocation24_spill] sm:$0xff] }
 0x1bc   : > { %v4506_v13 = vadd.f32 %v4378_v18, %v4224_v36  ;;  %v4786_v42 = vadd.f32 %v4658_v8, %v4504_v2  ;;  %v4959_v40 = vmul.f32 %v16572_v12, %v16670_v61  ;;  %v11850_v22 = vmul.f32 %v16671_v63, %v16583_v15  ;;  %v16675_v63 = vld [vmem:[#allocation30_spill] sm:$0xff] }
 0x1bd   : > { %v4507_v62 = vadd.f32 %v4379_v30, %v4225_v32  ;;  %v4787_v27 = vadd.f32 %v4659_v56, %v4505_v59  ;;  %v9669_v38 = vrot.slane %v4956_v43, 9  ;;  %v5278_v28 = vrot.slane %v4957_v19, 7 }
 0x1be   : > { %v4788_v6 = vadd.f32 %v4660_v17, %v4506_v13  ;;  %v5281_v2 = vrot.slane %v4958_v47, 7  ;;  %v5284_v36 = vrot.slane %v4959_v40, 7  ;;  %v15917_v8 = vrot.slane %v11850_v22, 7  ;;  %v16672_v17 = vld [vmem:[#allocation84_spill] sm:$0xff] }
 0x1bf   : > { %v4789_v18 = vadd.f32 %v4661_v20, %v4507_v62  ;;  %v5279_v30 = vsel %vm10597_vm9, %v9669_v38, %v5278_v28  ;;  %v5280_v48 = vrot.slane %v5278_v28, 2  ;;  %v5924_v37 = vmul.f32 %v16619_v5, %v16667_v53  ;;  %v16673_v62 = vld [vmem:[#allocation88_spill] sm:$0xff] }
 0x1c0   : > { %v5925_v32 = vmul.f32 %v16620_v23, %v16669_v39  ;;  %v5283_v33 = vrot.slane %v5281_v2, 2  ;;  %v5286_v59 = vrot.slane %v5284_v36, 2  ;;  %v5770_v13 = vadd.f32 %v5279_v30, %v4786_v42 }
 0x1c1   : > { %v5926_v20 = vmul.f32 %v16621_v26, %v16670_v61  ;;  %v5282_v43 = vsel %vm10597_vm9, %v5280_v48, %v5281_v2  ;;  %v5927_v56 = vmul.f32 %v16622_v1, %v16583_v15  ;;  %v6206_v19 = vmul.f32 %v16623_v3, %v16672_v17  ;;  %v16674_v48 = vld [vmem:[#allocation87_spill] sm:$0xff] }
 0x1c2   : > { %v6207_v47 = vmul.f32 %v16625_v52, %v16673_v62  ;;  %v5285_v40 = vsel %vm10597_vm9, %v5283_v33, %v5284_v36  ;;  %v5288_v42 = vsel %vm10597_vm9, %v5286_v59, %v15917_v8  ;;  %v5771_v38 = vadd.f32 %v5282_v43, %v4787_v27  ;;  %v16679_v36 = vld [vmem:[#allocation41_spill] sm:$0xff]  ;;  %v16680_v27 = vld [vmem:[#allocation32_spill] sm:$0xff]  ;;  %v16682_v43 = vld [vmem:[#allocation94_spill] sm:$0xff] }
 0x1c3   : > { %v6052_v28 = vadd.f32 %v5924_v37, %v5770_v13  ;;  %v5772_v2 = vadd.f32 %v5285_v40, %v4788_v6  ;;  %v5773_v30 = vadd.f32 %v5288_v42, %v4789_v18  ;;  %v6208_v35 = vmul.f32 %v16675_v63, %v16674_v48  ;;  %v16681_v18 = vld [vmem:[#allocation35_spill] sm:$0xff]  ;;  %v16683_v40 = vld [vmem:[#allocation42_spill] sm:$0xff] }
 0x1c4   : > { %v6209_v61 = vmul.f32 %v16677_v57, %v16676_v9  ;;  %v6053_v39 = vadd.f32 %v5925_v32, %v5771_v38  ;;  %v6504_v33 = vmul.f32 %v16678_v31, %v16672_v17  ;;  %v6505_v52 = vmul.f32 %v16679_v36, %v16673_v62 }
 0x1c5   : > { %v6334_v53 = vadd.f32 %v6206_v19, %v6052_v28  ;;  %v6054_v3 = vadd.f32 %v5926_v20, %v5772_v2  ;;  %v6055_v59 = vadd.f32 %v5927_v56, %v5773_v30  ;;  %v6506_v6 = vmul.f32 %v16680_v27, %v16674_v48 }
 0x1c6   : > { %v6507_v37 = vmul.f32 %v16681_v18, %v16676_v9  ;;  %v6335_v13 = vadd.f32 %v6207_v47, %v6053_v39  ;;  %v11889_v42 = vmul.f32 %v16683_v40, %v16682_v43  ;;  %v9685_v32 = vrot.slane %v6504_v33, 9 }
 0x1c7   : > { %v6826_v19 = vrot.slane %v6505_v52, 7  ;;  %v6336_v38 = vadd.f32 %v6208_v35, %v6054_v3  ;;  %v6337_v28 = vadd.f32 %v6209_v61, %v6055_v59  ;;  %v6829_v8 = vrot.slane %v6506_v6, 7  ;;  %v16684_v61 = vld [vmem:[#allocation72_spill] sm:$0xff] }
 0x1c8   : > { %v6832_v31 = vrot.slane %v6507_v37, 7  ;;  %v15926_v2 = vrot.slane %v11889_v42, 7  ;;  %v7472_v30 = vmul.f32 %v16519_v11, %v16673_v62  ;;  %v7473_v33 = vmul.f32 %v16520_v60, %v16674_v48  ;;  %v16686_v62 = vld [vmem:[#allocation4_spill] sm:$0xff] }
 0x1c9   : > { %v6827_v20 = vsel %vm10597_vm9, %v9685_v32, %v6826_v19  ;;  %v6828_v56 = vrot.slane %v6826_v19, 2  ;;  %v6831_v39 = vrot.slane %v6829_v8, 2  ;;  %v7474_v3 = vmul.f32 %v16521_v16, %v16676_v9  ;;  %v16687_v16 = vld [vmem:[#allocation73_spill] sm:$0xff] }
 0x1ca   : > { %v6834_v47 = vrot.slane %v6832_v31, 2  ;;  %v7318_v17 = vadd.f32 %v6827_v20, %v6334_v53  ;;  %v7475_v35 = vmul.f32 %v16522_v4, %v16682_v43  ;;  %v2122_v59 = vadd.f32 3.0, %v16684_v61 }
 0x1cb   : > { %v6830_v52 = vsel %vm10597_vm9, %v6828_v56, %v6829_v8  ;;  %v6833_v6 = vsel %vm10597_vm9, %v6831_v39, %v6832_v31  ;;  %v16685_v56 = vld [vmem:[#allocation49_spill] sm:$0xff]  ;;  %v3235_v4 = vmul.f32 %v16686_v62, %v11026_v50  ;;  %v11916_v31 = vmul.f32 %v16635_v34, %v16687_v16 }
 0x1cc   : > { %v6836_v53 = vsel %vm10597_vm9, %v6834_v47, %v15926_v2  ;;  %v7319_v37 = vadd.f32 %v6830_v52, %v6335_v13  ;;  %v7600_v32 = vadd.f32 %v7472_v30, %v7318_v17  ;;  %v7320_v19 = vadd.f32 %v6833_v6, %v6336_v38  ;;  %v16688_v38 = vld [vmem:[#allocation74_spill] sm:$0xff]  ;;  %v16690_v52 = vld [vmem:[#allocation76_spill] sm:$0xff]  ;;  %v11927_v2 = vpop.f32.mrf.mxu1 }
 0x1cd   : > { %v7321_v8 = vadd.f32 %v6836_v53, %v6337_v28  ;;  %v2163_v20 = vmax.f32 %v2122_v59, 0.0  ;;  %v2111_v40 = vadd.f32 3.0, %v16685_v56  ;;  %v16689_v28 = vld [vmem:[#allocation5_spill] sm:$0xff]  ;;  %16692 = vst [vmem:[#allocation68_spill] sm:$0xff] %v11927_v2 }
 0x1ce   : > { %v7601_v9 = vadd.f32 %v7473_v33, %v7319_v37  ;;  %v7728_v48 = vadd.f32 3.0, %v7600_v32  ;;  %v7602_v39 = vadd.f32 %v7474_v3, %v7320_v19  ;;  %v11920_v30 = vmul.f32 %v16689_v28, %v16688_v38  ;;  %v16691_v33 = vld [vmem:[#allocation17_spill] sm:$0xff]  ;;  %v11929_v3 = vpop.f32.mrf.mxu0  ;;  %v9921_v34 = vpop.f32.mrf.mxu1 }
 0x1cf   : > { %v7603_v60 = vadd.f32 %v7475_v35, %v7321_v8  ;;  %v2204_v11 = vmin.f32 %v2163_v20, 6.0  ;;  %v2152_v47 = vmax.f32 %v2111_v40, 0.0  ;;  %v11924_v59 = vmul.f32 %v16691_v33, %v16690_v52  ;;  %16693 = vst [vmem:[#allocation67_spill] sm:$0xff] %v11929_v3 }
 0x1d0   : > { %v7729_v13 = vadd.f32 3.0, %v7601_v9  ;;  %v7856_v17 = vmax.f32 %v7728_v48, 0.0  ;;  %v7730_v6 = vadd.f32 3.0, %v7602_v39  ;;  %v3413_v48 = vmul.f32 %v16640_v44, %v16687_v16 }
 0x1d1   : > { %v7731_v50 = vadd.f32 3.0, %v7603_v60  ;;  %v2245_v53 = vmul.f32 %v2204_v11, %v16684_v61  ;;  %v2193_v37 = vmin.f32 %v2152_v47, 6.0  ;;  %v3414_v19 = vmul.f32 %v16641_v25, %v16688_v38  ;;  %v9888_v11 = vpop.f32.mrf.mxu0 }
 0x1d2   : > { %v7857_v40 = vmax.f32 %v7729_v13, 0.0  ;;  %v7984_v35 = vmin.f32 %v7856_v17, 6.0  ;;  %v7858_v8 = vmax.f32 %v7730_v6, 0.0  ;;  %v3415_v3 = vmul.f32 %v16651_v46, %v16690_v52  ;;  %v11943_v6 = vpop.f32.mrf.mxu1 }
 0x1d3   : > { %v7859_v20 = vmax.f32 %v7731_v50, 0.0  ;;  %v2286_v33 = vmul.f32 0.16666667, %v2245_v53  ;;  %v2234_v28 = vmul.f32 %v2193_v37, %v16685_v56  ;;  %v16694_v13 = vrot.slane %v11802_v24, 7  ;;  %16696 = vst [vmem:[#allocation72_spill] sm:$0xff] %v11943_v6 }
 0x1d4   : > { %v7985_v61 = vmin.f32 %v7857_v40, 6.0  ;;  %v8112_v47 = vmul.f32 %v7984_v35, %v7600_v32  ;;  %v7986_v2 = vmin.f32 %v7858_v8, 6.0  ;;  %v3742_v53 = vrot.slane %v3413_v48, 7  ;;  %v9924_v35 = vpop.f32.mrf.mxu1 }
 0x1d5   : > { %v3741_v17 = vrot.slane %v16694_v13, 2  ;;  %v7987_v44 = vmin.f32 %v7859_v20, 6.0  ;;  %v2880_v62 = vcombine.high %v2286_v33, %v2286_v33  ;;  %v11941_v25 = vrot.slane %v2286_v33, %v10171_v7  ;;  %v16704_v35 = vld [vmem:[#allocation75_spill] sm:$0xff] }
 0x1d6   : > { %v8113_v50 = vmul.f32 %v7985_v61, %v7601_v9  ;;  %v8240_v56 = vmul.f32 0.16666667, %v8112_v47  ;;  %v2275_v34 = vmul.f32 0.16666667, %v2234_v28  ;;  %v8114_v37 = vmul.f32 %v7986_v2, %v7602_v39 }
 0x1d7   : > { %16695 = vst [vmem:[#allocation94_spill] sm:$0xff] %v11941_v25  ;;  %v8115_v32 = vmul.f32 %v7987_v44, %v7603_v60  ;;  %v11946_v40 = vrot.slane %v2880_v62, %v10171_v7  ;;  %v11950_v24 = vcombine.high %v11941_v25, %v11941_v25  ;;  %v3743_v9 = vsel %vm10597_vm9, %v3741_v17, %v3742_v53 }
 0x1d8   : > { %v8241_v8 = vmul.f32 0.16666667, %v8113_v50  ;;  %v2693_v20 = vcombine.high %v2275_v34, %v2275_v34  ;;  %v11953_v33 = vrot.slane %v2275_v34, %v10171_v7  ;;  %v8242_v28 = vmul.f32 0.16666667, %v8114_v37 }
 0x1d9   : > { %16697 = vst [vmem:[#allocation49_spill] sm:$0xff] %v11946_v40  ;;  %16698 = vst [vmem:[#allocation73_spill] sm:$0xff] %v11950_v24  ;;  %v8243_v48 = vmul.f32 0.16666667, %v8115_v32  ;;  %v11959_v60 = vcombine.high %v11946_v40, %v11946_v40  ;;  %v3744_v44 = vrot.slane %v3742_v53, 2  ;;  %v3745_v11 = vrot.slane %v3414_v19, 7 }
 0x1da   : > { %16699 = vst [vmem:[#allocation74_spill] sm:$0xff] %v11953_v33  ;;  %v8552_v62 = vcombine.low %v8240_v56, %v8241_v8  ;;  %v11962_v2 = vrot.slane %v2693_v20, %v10171_v7  ;;  %v11966_v39 = vcombine.high %v11953_v33, %v11953_v33  ;;  %v3748_v47 = vrot.slane %v3415_v3, 7  ;;  %v16716_v24 = vld [vmem:[#allocation98_spill] sm:$0xff] }
 0x1db   : > { %16700 = vst [vmem:[#allocation76_spill] sm:$0xff] %v11959_v60  ;;  %v8553_v61 = vcombine.low %v8242_v28, %v8243_v48  ;;  %v4226_v13 = vadd.f32 %v3743_v9, %v3235_v4  ;;  %v4380_v17 = vmul.f32 %v16614_v41, %v16687_v16  ;;  %v3746_v56 = vsel %vm10597_vm9, %v3744_v44, %v3745_v11  ;;  %v16705_v28 = vld [vmem:[#allocation79_spill] sm:$0xff] }
 0x1dc   : > { %16701 = vst [vmem:[#allocation139_spill] sm:$0xff] %v11962_v2  ;;  %16702 = vst [vmem:[#allocation140_spill] sm:$0xff] %v11966_v39  ;;  %v8560_v50 = vrot.slane %v8552_v62, %v10171_v7  ;;  %v11973_v34 = vcombine.high %v11962_v2, %v11962_v2  ;;  %v3747_v53 = vrot.slane %v3745_v11, 2  ;;  %v3750_v32 = vrot.slane %v3748_v47, 2 }
 0x1dd   : > { %v8567_v37 = vrot.slane %v8553_v61, %v10171_v7  ;;  %v4227_v19 = vadd.f32 %v3746_v56, %v11916_v31  ;;  %v4381_v4 = vmul.f32 %v16555_v21, %v16688_v38  ;;  %v4382_v3 = vmul.f32 %v16665_v51, %v16690_v52  ;;  %v16707_v61 = vld [vmem:[#allocation82_spill] sm:$0xff] }
 0x1de   : > { %16703 = vst [vmem:[#allocation141_spill] sm:$0xff] %v11973_v34  ;;  %v3749_v16 = vsel %vm10597_vm9, %v3747_v53, %v3748_v47  ;;  %v4383_v8 = vmul.f32 %v10661_v29, %v16704_v35  ;;  %v4508_v20 = vadd.f32 %v4380_v17, %v4226_v13  ;;  %v16706_v48 = vrot.slane %v16705_v28, 7  ;;  %v16708_v47 = vld [vmem:[#allocation86_spill] sm:$0xff] }
 0x1df   : > { %v8568_v9 = vcombine.low %v8560_v50, %v8567_v37  ;;  %v4228_v31 = vadd.f32 %v3749_v16, %v11920_v30  ;;  %v4509_v62 = vadd.f32 %v4381_v4, %v4227_v19  ;;  %v4662_v11 = vmul.f32 %v10610_v0, %v16583_v15  ;;  %v16709_v50 = vld [vmem:[#allocation85_spill] sm:$0xff]  ;;  %v16710_v16 = vld [vmem:[#allocation48_spill] sm:$0xff] }
 0x1e0   : > { %v3752_v44 = vsel %vm10597_vm9, %v3750_v32, %v16706_v48  ;;  %v4663_v52 = vmul.f32 %v16563_v10, %v16707_v61  ;;  %v4664_v13 = vmul.f32 %v16565_v14, %v16708_v47  ;;  %v4665_v56 = vmul.f32 %v16567_v49, %v16709_v50 }
 0x1e1   : > { %v4229_v38 = vadd.f32 %v3752_v44, %v11924_v59  ;;  %9951 = vmatprep.mubr.msk.f32.mxu1 %vm9028_vm10, %v8568_v9  ;;  %v4510_v17 = vadd.f32 %v4382_v3, %v4228_v31  ;;  %v4961_v30 = vmul.f32 %v16570_v58, %v16707_v61  ;;  %v4962_v59 = vmul.f32 %v16571_v45, %v16708_v47 }
 0x1e2   : > { %v4790_v37 = vadd.f32 %v4662_v11, %v4508_v20  ;;  %v4791_v32 = vadd.f32 %v4663_v52, %v4509_v62  ;;  %v4963_v19 = vmul.f32 %v16572_v12, %v16709_v50  ;;  %v4964_v35 = vmul.f32 %v10685_v55, %v16710_v16 }
 0x1e3   : > { %v4511_v53 = vadd.f32 %v4383_v8, %v4229_v38  ;;  %v4792_v4 = vadd.f32 %v4664_v13, %v4510_v17  ;;  %v16711_v3 = vrot.slane %v11850_v22, 7  ;;  %v5290_v28 = vrot.slane %v4961_v30, 7  ;;  %v16712_v30 = vld [vmem:[#allocation29_spill] sm:$0xff] }
 0x1e4   : > { %v5293_v44 = vrot.slane %v4962_v59, 7  ;;  %v5296_v31 = vrot.slane %v4963_v19, 7  ;;  %v5928_v60 = vmul.f32 %v16619_v5, %v16707_v61  ;;  %v5299_v62 = vrot.slane %v4964_v35, 7  ;;  %v16714_v19 = vld [vmem:[#allocation39_spill] sm:$0xff] }
 0x1e5   : > { %v5289_v9 = vrot.slane %v16711_v3, 2  ;;  %v4793_v48 = vadd.f32 %v4665_v56, %v4511_v53  ;;  %v5292_v20 = vrot.slane %v5290_v28, 2  ;;  %v5929_v38 = vmul.f32 %v16620_v23, %v16708_v47  ;;  %v16713_v53 = vld [vmem:[#allocation96_spill] sm:$0xff] }
 0x1e6   : > { %v5295_v11 = vrot.slane %v5293_v44, 2  ;;  %v5298_v52 = vrot.slane %v5296_v31, 2  ;;  %v5930_v22 = vmul.f32 %v16621_v26, %v16709_v50  ;;  %v5931_v56 = vmul.f32 %v16622_v1, %v16710_v16  ;;  %v16729_v16 = vld [vmem:[#allocation6_spill] sm:$0xff] }
 0x1e7   : > { %v5291_v8 = vsel %vm10597_vm9, %v5289_v9, %v5290_v28  ;;  %v5294_v17 = vsel %vm10597_vm9, %v5292_v20, %v5293_v44  ;;  %v6210_v59 = vmul.f32 %v16712_v30, %v16682_v43  ;;  %v6211_v35 = vmul.f32 %v16714_v19, %v16713_v53  ;;  %v16715_v44 = vld [vmem:[#allocation95_spill] sm:$0xff] }
 0x1e8   : > { %v5774_v13 = vadd.f32 %v5291_v8, %v4790_v37  ;;  %v5297_v3 = vsel %vm10597_vm9, %v5295_v11, %v5296_v31  ;;  %v5300_v37 = vsel %vm10597_vm9, %v5298_v52, %v5299_v62  ;;  %v5775_v9 = vadd.f32 %v5294_v17, %v4791_v32  ;;  %v16717_v32 = vld [vmem:[#allocation97_spill] sm:$0xff] }
 0x1e9   : > { %v5776_v8 = vadd.f32 %v5297_v3, %v4792_v4  ;;  %v5777_v40 = vadd.f32 %v5300_v37, %v4793_v48  ;;  %v6212_v20 = vmul.f32 %v16675_v63, %v16715_v44  ;;  %v6213_v25 = vmul.f32 %v16677_v57, %v16716_v24  ;;  %v16718_v4 = vld [vmem:[#allocation33_spill] sm:$0xff] }
 0x1ea   : > { %v6056_v28 = vadd.f32 %v5928_v60, %v5774_v13  ;;  %v6057_v34 = vadd.f32 %v5929_v38, %v5775_v9  ;;  %v6509_v39 = vmul.f32 %v16679_v36, %v16713_v53  ;;  %v6510_v31 = vmul.f32 %v16680_v27, %v16715_v44 }
 0x1eb   : > { %v6058_v11 = vadd.f32 %v5930_v22, %v5776_v8  ;;  %v6059_v62 = vadd.f32 %v5931_v56, %v5777_v40  ;;  %v6511_v60 = vmul.f32 %v16681_v18, %v16716_v24  ;;  %v6512_v48 = vmul.f32 %v16718_v4, %v16717_v32  ;;  %v16720_v8 = vld [vmem:[#allocation31_spill] sm:$0xff]  ;;  %v16725_v4 = vld [vmem:[#allocation25_spill] sm:$0xff] }
 0x1ec   : > { %v6338_v2 = vadd.f32 %v6210_v59, %v6056_v28  ;;  %v6339_v52 = vadd.f32 %v6211_v35, %v6057_v34  ;;  %v16719_v13 = vrot.slane %v11889_v42, 7  ;;  %v6838_v38 = vrot.slane %v6509_v39, 7  ;;  %v16721_v34 = vld [vmem:[#allocation43_spill] sm:$0xff]  ;;  %v16722_v39 = vld [vmem:[#allocation34_spill] sm:$0xff] }
 0x1ed   : > { %v6841_v59 = vrot.slane %v6510_v31, 7  ;;  %v6340_v3 = vadd.f32 %v6212_v20, %v6058_v11  ;;  %v6341_v37 = vadd.f32 %v6213_v25, %v6059_v62  ;;  %v6844_v9 = vrot.slane %v6511_v60, 7  ;;  %v16723_v31 = vld [vmem:[#allocation44_spill] sm:$0xff]  ;;  %v16724_v62 = vld [vmem:[#allocation27_spill] sm:$0xff] }
 0x1ee   : > { %v6837_v17 = vrot.slane %v16719_v13, 2  ;;  %v6847_v28 = vrot.slane %v6512_v48, 7  ;;  %v6840_v40 = vrot.slane %v6838_v38, 2  ;;  %v7476_v33 = vmul.f32 %v16720_v8, %v16713_v53 }
 0x1ef   : > { %v6843_v56 = vrot.slane %v6841_v59, 2  ;;  %v6846_v55 = vrot.slane %v6844_v9, 2  ;;  %v7477_v42 = vmul.f32 %v16721_v34, %v16715_v44  ;;  %v7478_v35 = vmul.f32 %v16722_v39, %v16716_v24  ;;  %v16726_v44 = vld [vmem:[#allocation78_spill] sm:$0xff] }
 0x1f0   : > { %v6839_v22 = vsel %vm10597_vm9, %v6837_v17, %v6838_v38  ;;  %v6842_v25 = vsel %vm10597_vm9, %v6840_v40, %v6841_v59  ;;  %v7479_v11 = vmul.f32 %v16723_v31, %v16717_v32  ;;  %v2123_v60 = vadd.f32 3.0, %v16724_v62  ;;  %v16727_v59 = vld [vmem:[#allocation4_spill] sm:$0xff]  ;;  %v16728_v32 = vld [vmem:[#allocation77_spill] sm:$0xff] }
 0x1f1   : > { %v7322_v6 = vadd.f32 %v6839_v22, %v6338_v2  ;;  %v6845_v20 = vsel %vm10597_vm9, %v6843_v56, %v6844_v9  ;;  %v6848_v2 = vsel %vm10597_vm9, %v6846_v55, %v6847_v28  ;;  %v7323_v48 = vadd.f32 %v6842_v25, %v6339_v52 }
 0x1f2   : > { %v7324_v13 = vadd.f32 %v6845_v20, %v6340_v3  ;;  %v7325_v38 = vadd.f32 %v6848_v2, %v6341_v37  ;;  %v2164_v22 = vmax.f32 %v2123_v60, 0.0  ;;  %v2112_v24 = vadd.f32 3.0, %v16725_v4  ;;  %v16730_v3 = vld [vmem:[#allocation81_spill] sm:$0xff]  ;;  %v16732_v20 = vld [vmem:[#allocation80_spill] sm:$0xff] }
 0x1f3   : > { %v7604_v17 = vadd.f32 %v7476_v33, %v7322_v6  ;;  %v12066_v40 = vmul.f32 %v16727_v59, %v16726_v44  ;;  %v7605_v9 = vadd.f32 %v7477_v42, %v7323_v48  ;;  %v12070_v50 = vmul.f32 %v16729_v16, %v16728_v32  ;;  %v16731_v6 = vld [vmem:[#allocation5_spill] sm:$0xff] }
 0x1f4   : > { %v7606_v56 = vadd.f32 %v7478_v35, %v7324_v13  ;;  %v7607_v47 = vadd.f32 %v7479_v11, %v7325_v38  ;;  %v2205_v55 = vmin.f32 %v2164_v22, 6.0  ;;  %v2153_v52 = vmax.f32 %v2112_v24, 0.0  ;;  %v16733_v60 = vld [vmem:[#allocation17_spill] sm:$0xff]  ;;  %v16734_v13 = vld [vmem:[#allocation3_spill] sm:$0xff] }
 0x1f5   : > { %v7732_v53 = vadd.f32 3.0, %v7604_v17  ;;  %v12074_v33 = vmul.f32 %v16731_v6, %v16730_v3  ;;  %v7733_v37 = vadd.f32 3.0, %v7605_v9  ;;  %v12078_v2 = vmul.f32 %v16733_v60, %v16732_v20  ;;  %v16735_v6 = vld [vmem:[#allocation10_spill] sm:$0xff]  ;;  %v16736_v60 = vld [vmem:[#allocation12_spill] sm:$0xff] }
 0x1f6   : > { %v7734_v28 = vadd.f32 3.0, %v7606_v56  ;;  %v7735_v42 = vadd.f32 3.0, %v7607_v47  ;;  %v2246_v35 = vmul.f32 %v2205_v55, %v16724_v62  ;;  %v2194_v48 = vmin.f32 %v2153_v52, 6.0 }
 0x1f7   : > { %v7860_v25 = vmax.f32 %v7732_v53, 0.0  ;;  %v3417_v11 = vmul.f32 %v16734_v13, %v16726_v44  ;;  %v7861_v38 = vmax.f32 %v7733_v37, 0.0  ;;  %v3418_v16 = vmul.f32 %v16735_v6, %v16728_v32 }
 0x1f8   : > { %v7862_v24 = vmax.f32 %v7734_v28, 0.0  ;;  %v7863_v61 = vmax.f32 %v7735_v42, 0.0  ;;  %v2287_v31 = vmul.f32 0.16666667, %v2246_v35  ;;  %v2235_v53 = vmul.f32 %v2194_v48, %v16725_v4  ;;  %v16738_v4 = vld [vmem:[#allocation20_spill] sm:$0xff] }
 0x1f9   : > { %v7988_v22 = vmin.f32 %v7860_v25, 6.0  ;;  %v3419_v39 = vmul.f32 %v16736_v60, %v16730_v3  ;;  %v7989_v34 = vmin.f32 %v7861_v38, 6.0  ;;  %v3420_v55 = vmul.f32 %v16651_v46, %v16732_v20 }
 0x1fa   : > { %v7990_v8 = vmin.f32 %v7862_v24, 6.0  ;;  %v7991_v44 = vmin.f32 %v7863_v61, 6.0  ;;  %v2897_v52 = vcombine.high %v2287_v31, %v2287_v31  ;;  %v12091_v37 = vrot.slane %v2287_v31, %v10171_v7 }
 0x1fb   : > { %v8116_v62 = vmul.f32 %v7988_v22, %v7604_v17  ;;  %v2276_v28 = vmul.f32 0.16666667, %v2235_v53  ;;  %v8117_v25 = vmul.f32 %v7989_v34, %v7605_v9  ;;  %v12095_v48 = vmul.f32 %v16738_v4, %v16583_v15 }
 0x1fc   : > { %16737 = vst [vmem:[#allocation75_spill] sm:$0xff] %v12091_v37  ;;  %v8118_v42 = vmul.f32 %v7990_v8, %v7606_v56  ;;  %v8119_v60 = vmul.f32 %v7991_v44, %v7607_v47  ;;  %v12098_v38 = vrot.slane %v2897_v52, %v10171_v7  ;;  %v12102_v17 = vcombine.high %v12091_v37, %v12091_v37  ;;  %v16743_v47 = vld [vmem:[#allocation15_spill] sm:$0xff] }
 0x1fd   : > { %v8244_v35 = vmul.f32 0.16666667, %v8116_v62  ;;  %v2710_v61 = vcombine.high %v2276_v28, %v2276_v28  ;;  %v8245_v24 = vmul.f32 0.16666667, %v8117_v25  ;;  %v12105_v22 = vrot.slane %v2276_v28, %v10171_v7 }
 0x1fe   : > { %16739 = vst [vmem:[#allocation79_spill] sm:$0xff] %v12098_v38  ;;  %16740 = vst [vmem:[#allocation27_spill] sm:$0xff] %v12102_v17  ;;  %v8246_v31 = vmul.f32 0.16666667, %v8118_v42  ;;  %v9654_v8 = vrot.slane %v3417_v11, 9  ;;  %v12109_v9 = vcombine.high %v12098_v38, %v12098_v38  ;;  %v12113_v56 = vmul.f32 %v16743_v47, %v12098_v38  ;;  %v12142_v17 = vpop.f32.mrf.mxu0 }
 0x1ff   : > { %16741 = vst [vmem:[#allocation25_spill] sm:$0xff] %v12105_v22  ;;  %v8247_v34 = vmul.f32 0.16666667, %v8119_v60  ;;  %v12116_v53 = vrot.slane %v2710_v61, %v10171_v7  ;;  %v8569_v62 = vcombine.low %v8244_v35, %v8245_v24  ;;  %v3755_v44 = vrot.slane %v3418_v16, 7  ;;  %16749 = vst [vmem:[#allocation144_spill] sm:$0xff] %v12142_v17 }
 0x200   : > { %16742 = vst [vmem:[#allocation78_spill] sm:$0xff] %v12109_v9  ;;  %16744 = vst [vmem:[#allocation77_spill] sm:$0xff] %v12113_v56  ;;  %v3758_v52 = vrot.slane %v3419_v39, 7  ;;  %v3761_v25 = vrot.slane %v3420_v55, 7  ;;  %v4384_v56 = vmul.f32 %v16614_v41, %v16728_v32  ;;  %v4385_v32 = vmul.f32 %v16555_v21, %v16730_v3  ;;  %v16753_v3 = vld [vmem:[#allocation87_spill] sm:$0xff] }
 0x201   : > { %16745 = vst [vmem:[#allocation81_spill] sm:$0xff] %v12116_v53  ;;  %v8570_v42 = vcombine.low %v8246_v31, %v8247_v34  ;;  %v12121_v60 = vcombine.high %v12116_v53, %v12116_v53  ;;  %v12125_v11 = vmul.f32 %v16727_v59, %v12116_v53  ;;  %v8577_v38 = vrot.slane %v8569_v62, %v10171_v7 }
 0x202   : > { %v12130_v61 = vmul.f32 %v16734_v13, %v12116_v53  ;;  %v3756_v16 = vsel %vm10597_vm9, %v9654_v8, %v3755_v44  ;;  %v3757_v39 = vrot.slane %v3755_v44, 2  ;;  %v3760_v35 = vrot.slane %v3758_v52, 2  ;;  %v12144_v8 = vpop.f32.mrf.mxu1 }
 0x203   : > { %16746 = vst [vmem:[#allocation80_spill] sm:$0xff] %v12121_v60  ;;  %16747 = vst [vmem:[#allocation142_spill] sm:$0xff] %v12125_v11  ;;  %v8584_v55 = vrot.slane %v8570_v42, %v10171_v7  ;;  %v3763_v24 = vrot.slane %v3761_v25, 2  ;;  %v15959_v31 = vrot.slane %v12095_v48, 7  ;;  %v4230_v62 = vadd.f32 %v3756_v16, %v12066_v40  ;;  %v16759_v60 = vld [vmem:[#allocation99_spill] sm:$0xff] }
 0x204   : > { %16748 = vst [vmem:[#allocation143_spill] sm:$0xff] %v12130_v61  ;;  %v3759_v28 = vsel %vm10597_vm9, %v3757_v39, %v3758_v52  ;;  %16750 = vst [vmem:[#allocation145_spill] sm:$0xff] %v12144_v8  ;;  %v3762_v42 = vsel %vm10597_vm9, %v3760_v35, %v3761_v25  ;;  %v9891_v39 = vpop.f32.mrf.mxu0  ;;  %v4387_v25 = vmul.f32 %v10661_v29, %v16583_v15  ;;  %v16758_v61 = vld [vmem:[#allocation100_spill] sm:$0xff] }
 0x205   : > { %v8585_v44 = vcombine.low %v8577_v38, %v8584_v55  ;;  %v3765_v34 = vsel %vm10597_vm9, %v3763_v24, %v15959_v31  ;;  %v4231_v52 = vadd.f32 %v3759_v28, %v12070_v50  ;;  %v4232_v40 = vadd.f32 %v3762_v42, %v12074_v33  ;;  %v9927_v55 = vpop.f32.mrf.mxu1  ;;  %v16751_v24 = vld [vmem:[#allocation84_spill] sm:$0xff] }
 0x206   : > { %v4233_v16 = vadd.f32 %v3765_v34, %v12078_v2  ;;  %v4386_v38 = vmul.f32 %v16665_v51, %v16732_v20  ;;  %v4512_v35 = vadd.f32 %v4384_v56, %v4230_v62  ;;  %v4666_v50 = vmul.f32 %v10610_v0, %v16751_v24  ;;  %v16752_v33 = vld [vmem:[#allocation88_spill] sm:$0xff] }
 0x207   : > { %9952 = vmatmul.mubr.msk.f32.gmra.mxu1 %vm9028_vm10, %v8585_v44  ;;  %v4667_v2 = vmul.f32 %v16563_v10, %v16752_v33  ;;  %v4513_v28 = vadd.f32 %v4385_v32, %v4231_v52  ;;  %v4668_v42 = vmul.f32 %v16565_v14, %v16753_v3  ;;  %v16754_v20 = vld [vmem:[#allocation92_spill] sm:$0xff]  ;;  %v4966_v31 = vmul.f32 %v16570_v58, %v16752_v33 }
 0x208   : > { %v4514_v34 = vadd.f32 %v4386_v38, %v4232_v40  ;;  %v4669_v39 = vmul.f32 %v16567_v49, %v16754_v20  ;;  %v4515_v55 = vadd.f32 %v4387_v25, %v4233_v16  ;;  %v4794_v44 = vadd.f32 %v4666_v50, %v4512_v35  ;;  %v16755_v40 = vld [vmem:[#allocation36_spill] sm:$0xff] }
 0x209   : > { %v4967_v56 = vmul.f32 %v16571_v45, %v16753_v3  ;;  %v4795_v62 = vadd.f32 %v4667_v2, %v4513_v28  ;;  %v4968_v52 = vmul.f32 %v16572_v12, %v16754_v20  ;;  %v12178_v32 = vmul.f32 %v16755_v40, %v16682_v43  ;;  %v16756_v28 = vld [vmem:[#allocation91_spill] sm:$0xff]  ;;  %v16761_v8 = vld [vmem:[#allocation104_spill] sm:$0xff] }
 0x20a   : > { %v4796_v24 = vadd.f32 %v4668_v42, %v4514_v34  ;;  %v4797_v38 = vadd.f32 %v4669_v39, %v4515_v55  ;;  %v5303_v37 = vrot.slane %v4966_v31, 7  ;;  %v5932_v16 = vmul.f32 %v16619_v5, %v16752_v33 }
 0x20b   : > { %v5306_v11 = vrot.slane %v4967_v56, 7  ;;  %v5309_v25 = vrot.slane %v4968_v52, 7  ;;  %v5933_v50 = vmul.f32 %v16620_v23, %v16753_v3  ;;  %v5934_v2 = vmul.f32 %v16621_v26, %v16754_v20 }
 0x20c   : > { %v16757_v34 = vrot.slane %v16756_v28, 9  ;;  %v5305_v39 = vrot.slane %v5303_v37, 2  ;;  %v5935_v55 = vmul.f32 %v16622_v1, %v16682_v43  ;;  %v6214_v35 = vmul.f32 %v16712_v30, %v16758_v61 }
 0x20d   : > { %v5308_v31 = vrot.slane %v5306_v11, 2  ;;  %v5311_v56 = vrot.slane %v5309_v25, 2  ;;  %v6215_v53 = vmul.f32 %v16714_v19, %v16759_v60  ;;  %v6217_v17 = vmul.f32 %v16677_v57, %v16761_v8 }
 0x20e   : > { %v5304_v42 = vsel %vm10597_vm9, %v16757_v34, %v5303_v37  ;;  %v5307_v22 = vsel %vm10597_vm9, %v5305_v39, %v5306_v11  ;;  %v16760_v34 = vld [vmem:[#allocation105_spill] sm:$0xff]  ;;  %v16763_v11 = vld [vmem:[#allocation24_spill] sm:$0xff]  ;;  %v6516_v57 = vmul.f32 %v16681_v18, %v16761_v8 }
 0x20f   : > { %v5778_v52 = vadd.f32 %v5304_v42, %v4794_v44  ;;  %v5310_v28 = vsel %vm10597_vm9, %v5308_v31, %v5309_v25  ;;  %v6216_v37 = vmul.f32 %v16675_v63, %v16760_v34  ;;  %v16762_v44 = vrot.slane %v12178_v32, 7 }
 0x210   : > { %v5779_v40 = vadd.f32 %v5307_v22, %v4795_v62  ;;  %v5780_v4 = vadd.f32 %v5310_v28, %v4796_v24  ;;  %v6513_v39 = vmul.f32 %v16763_v11, %v16758_v61  ;;  %v6514_v25 = vmul.f32 %v16679_v36, %v16759_v60  ;;  %v16764_v22 = vld [vmem:[#allocation107_spill] sm:$0xff]  ;;  %v16765_v62 = vld [vmem:[#allocation42_spill] sm:$0xff] }
 0x211   : > { %v5313_v42 = vsel %vm10597_vm9, %v5311_v56, %v16762_v44  ;;  %v6060_v20 = vadd.f32 %v5932_v16, %v5778_v52  ;;  %v6515_v31 = vmul.f32 %v16680_v27, %v16760_v34  ;;  %v12219_v24 = vmul.f32 %v16765_v62, %v16764_v22 }
 0x212   : > { %v5781_v3 = vadd.f32 %v5313_v42, %v4797_v38  ;;  %v6061_v33 = vadd.f32 %v5933_v50, %v5779_v40  ;;  %v6062_v13 = vadd.f32 %v5934_v2, %v5780_v4  ;;  %v9686_v38 = vrot.slane %v6513_v39, 9  ;;  %v16767_v2 = vld [vmem:[#allocation31_spill] sm:$0xff] }
 0x213   : > { %v6342_v9 = vadd.f32 %v6214_v35, %v6060_v20  ;;  %16766 = vst [vmem:[#allocation84_spill] sm:$0xff] %v12219_v24  ;;  %v6851_v16 = vrot.slane %v6514_v25, 7  ;;  %v6854_v44 = vrot.slane %v6515_v31, 7  ;;  %v6857_v42 = vrot.slane %v6516_v57, 7  ;;  %v16769_v57 = vld [vmem:[#allocation34_spill] sm:$0xff] }
 0x214   : > { %v6063_v56 = vadd.f32 %v5935_v55, %v5781_v3  ;;  %v6343_v52 = vadd.f32 %v6215_v53, %v6061_v33  ;;  %v6344_v28 = vadd.f32 %v6216_v37, %v6062_v13  ;;  %v15979_v20 = vrot.slane %v12219_v24, 7  ;;  %v16768_v13 = vld [vmem:[#allocation43_spill] sm:$0xff]  ;;  %v16770_v33 = vld [vmem:[#allocation44_spill] sm:$0xff] }
 0x215   : > { %v6852_v40 = vsel %vm10597_vm9, %v9686_v38, %v6851_v16  ;;  %v6853_v4 = vrot.slane %v6851_v16, 2  ;;  %v6856_v35 = vrot.slane %v6854_v44, 2  ;;  %v6859_v50 = vrot.slane %v6857_v42, 2 }
 0x216   : > { %v6345_v61 = vadd.f32 %v6217_v17, %v6063_v56  ;;  %v7326_v3 = vadd.f32 %v6852_v40, %v6342_v9  ;;  %v7480_v55 = vmul.f32 %v16767_v2, %v16759_v60  ;;  %v7481_v53 = vmul.f32 %v16768_v13, %v16760_v34  ;;  %v16773_v60 = vld [vmem:[#allocation109_spill] sm:$0xff] }
 0x217   : > { %v6855_v39 = vsel %vm10597_vm9, %v6853_v4, %v6854_v44  ;;  %v7482_v17 = vmul.f32 %v16769_v57, %v16761_v8  ;;  %v7483_v37 = vmul.f32 %v16770_v33, %v16764_v22  ;;  %v6858_v25 = vsel %vm10597_vm9, %v6856_v35, %v6857_v42  ;;  %v16771_v44 = vld [vmem:[#allocation55_spill] sm:$0xff]  ;;  %v16772_v4 = vld [vmem:[#allocation69_spill] sm:$0xff] }
 0x218   : > { %v6861_v9 = vsel %vm10597_vm9, %v6859_v50, %v15979_v20  ;;  %v7327_v31 = vadd.f32 %v6855_v39, %v6343_v52  ;;  %v7608_v56 = vadd.f32 %v7480_v55, %v7326_v3  ;;  %v7328_v38 = vadd.f32 %v6858_v25, %v6344_v28  ;;  %v16776_v55 = vld [vmem:[#allocation6_spill] sm:$0xff] }
 0x219   : > { %v7329_v16 = vadd.f32 %v6861_v9, %v6345_v61  ;;  %v2124_v40 = vadd.f32 3.0, %v16771_v44  ;;  %v2113_v62 = vadd.f32 3.0, %v16772_v4  ;;  %v12244_v11 = vcombine.high %v16773_v60, %v16773_v60  ;;  %v16775_v61 = vld [vmem:[#allocation82_spill] sm:$0xff]  ;;  %v16778_v9 = vld [vmem:[#allocation5_spill] sm:$0xff] }
 0x21a   : > { %v7609_v8 = vadd.f32 %v7481_v53, %v7327_v31  ;;  %v7736_v34 = vadd.f32 3.0, %v7608_v56  ;;  %v3243_v42 = vmul.f32 %v16727_v59, %v16583_v15  ;;  %v7610_v35 = vadd.f32 %v7482_v17, %v7328_v38  ;;  %v16777_v25 = vld [vmem:[#allocation86_spill] sm:$0xff]  ;;  %v16779_v15 = vld [vmem:[#allocation85_spill] sm:$0xff] }
 0x21b   : > { %16774 = vst [vmem:[#allocation91_spill] sm:$0xff] %v12244_v11  ;;  %v7611_v33 = vadd.f32 %v7483_v37, %v7329_v16  ;;  %v2165_v50 = vmax.f32 %v2124_v40, 0.0  ;;  %v2154_v52 = vmax.f32 %v2113_v62, 0.0  ;;  %v3244_v39 = vmul.f32 %v16776_v55, %v16775_v61  ;;  %v16780_v17 = vld [vmem:[#allocation17_spill] sm:$0xff] }
 0x21c   : > { %v7737_v3 = vadd.f32 3.0, %v7609_v8  ;;  %v7864_v28 = vmax.f32 %v7736_v34, 0.0  ;;  %v12252_v53 = vmul.f32 %v16778_v9, %v16777_v25  ;;  %v7738_v31 = vadd.f32 3.0, %v7610_v35 }
 0x21d   : > { %v7739_v20 = vadd.f32 3.0, %v7611_v33  ;;  %v2206_v57 = vmin.f32 %v2165_v50, 6.0  ;;  %v2195_v13 = vmin.f32 %v2154_v52, 6.0  ;;  %v12256_v37 = vmul.f32 %v16780_v17, %v16779_v15  ;;  %v16781_v50 = vld [vmem:[#allocation12_spill] sm:$0xff] }
 0x21e   : > { %v7865_v2 = vmax.f32 %v7737_v3, 0.0  ;;  %v7992_v24 = vmin.f32 %v7864_v28, 6.0  ;;  %v3422_v34 = vmul.f32 %v16735_v6, %v16775_v61  ;;  %v7866_v62 = vmax.f32 %v7738_v31, 0.0  ;;  %v16782_v31 = vld [vmem:[#allocation48_spill] sm:$0xff] }
 0x21f   : > { %v7867_v38 = vmax.f32 %v7739_v20, 0.0  ;;  %v2247_v16 = vmul.f32 %v2206_v57, %v16771_v44  ;;  %v2236_v40 = vmul.f32 %v2195_v13, %v16772_v4  ;;  %v3423_v52 = vmul.f32 %v16781_v50, %v16777_v25 }
 0x220   : > { %v7993_v9 = vmin.f32 %v7865_v2, 6.0  ;;  %v8120_v55 = vmul.f32 %v7992_v24, %v7608_v56  ;;  %v3424_v3 = vmul.f32 %v16651_v46, %v16779_v15  ;;  %v7994_v28 = vmin.f32 %v7866_v62, 6.0 }
 0x221   : > { %v7995_v17 = vmin.f32 %v7867_v38, 6.0  ;;  %v2288_v59 = vmul.f32 0.16666667, %v2247_v16  ;;  %v2277_v11 = vmul.f32 0.16666667, %v2236_v40  ;;  %v3425_v20 = vmul.f32 %v16743_v47, %v16782_v31 }
 0x222   : > { %v8121_v18 = vmul.f32 %v7993_v9, %v7609_v8  ;;  %v8248_v6 = vmul.f32 0.16666667, %v8120_v55  ;;  %v16783_v57 = vrot.slane %v12095_v48, 7  ;;  %v8122_v2 = vmul.f32 %v7994_v28, %v7610_v35 }
 0x223   : > { %v8123_v24 = vmul.f32 %v7995_v17, %v7611_v33  ;;  %v2914_v56 = vcombine.high %v2288_v59, %v2288_v59  ;;  %v12271_v44 = vrot.slane %v2288_v59, %v10171_v7  ;;  %v2727_v46 = vcombine.high %v2277_v11, %v2277_v11 }
 0x224   : > { %v3766_v13 = vrot.slane %v16783_v57, 2  ;;  %v8249_v4 = vmul.f32 0.16666667, %v8121_v18  ;;  %v12274_v62 = vrot.slane %v2277_v11, %v10171_v7  ;;  %v3767_v38 = vrot.slane %v3422_v34, 7 }
 0x225   : > { %16784 = vst [vmem:[#allocation55_spill] sm:$0xff] %v12271_v44  ;;  %v8250_v8 = vmul.f32 0.16666667, %v8122_v2  ;;  %v8251_v55 = vmul.f32 0.16666667, %v8123_v24  ;;  %v12277_v9 = vrot.slane %v2914_v56, %v10171_v7  ;;  %v12281_v48 = vcombine.high %v12271_v44, %v12271_v44  ;;  %v12304_v56 = vpop.f32.mrf.mxu0 }
 0x226   : > { %16785 = vst [vmem:[#allocation69_spill] sm:$0xff] %v12274_v62  ;;  %v8586_v33 = vcombine.low %v8248_v6, %v8249_v4  ;;  %v12284_v35 = vrot.slane %v2727_v46, %v10171_v7  ;;  %v12288_v18 = vcombine.high %v12274_v62, %v12274_v62  ;;  %v3768_v59 = vsel %vm10597_vm9, %v3766_v13, %v3767_v38  ;;  %v12306_v4 = vpop.f32.mrf.mxu1 }
 0x227   : > { %16786 = vst [vmem:[#allocation82_spill] sm:$0xff] %v12277_v9  ;;  %16787 = vst [vmem:[#allocation86_spill] sm:$0xff] %v12281_v48  ;;  %v8587_v11 = vcombine.low %v8250_v8, %v8251_v55  ;;  %v12294_v17 = vcombine.high %v12277_v9, %v12277_v9  ;;  %v3769_v34 = vrot.slane %v3767_v38, 2  ;;  %v3770_v16 = vrot.slane %v3423_v52, 7 }
 0x228   : > { %16788 = vst [vmem:[#allocation85_spill] sm:$0xff] %v12284_v35  ;;  %16789 = vst [vmem:[#allocation48_spill] sm:$0xff] %v12288_v18  ;;  %v8594_v40 = vrot.slane %v8586_v33, %v10171_v7  ;;  %v12299_v46 = vcombine.high %v12284_v35, %v12284_v35  ;;  %v3773_v6 = vrot.slane %v3424_v3, 7  ;;  %v3776_v28 = vrot.slane %v3425_v20, 7 }
 0x229   : > { %16790 = vst [vmem:[#allocation146_spill] sm:$0xff] %v12294_v17  ;;  %v8601_v57 = vrot.slane %v8587_v11, %v10171_v7  ;;  %v3771_v13 = vsel %vm10597_vm9, %v3769_v34, %v3770_v16  ;;  %v3772_v2 = vrot.slane %v3770_v16, 2  ;;  %v4234_v24 = vadd.f32 %v3768_v59, %v3243_v42  ;;  %16792 = vst [vmem:[#allocation148_spill] sm:$0xff] %v12304_v56  ;;  %v9894_v59 = vpop.f32.mrf.mxu0  ;;  %v9930_v11 = vpop.f32.mrf.mxu1 }
 0x22a   : > { %16791 = vst [vmem:[#allocation147_spill] sm:$0xff] %v12299_v46  ;;  %16793 = vst [vmem:[#allocation149_spill] sm:$0xff] %v12306_v4  ;;  %v3775_v52 = vrot.slane %v3773_v6, 2  ;;  %v4235_v38 = vadd.f32 %v3771_v13, %v3244_v39  ;;  %v4388_v8 = vmul.f32 %v16614_v41, %v16775_v61  ;;  %v4389_v3 = vmul.f32 %v16555_v21, %v16777_v25 }
 0x22b   : > { %v8602_v20 = vcombine.low %v8594_v40, %v8601_v57  ;;  %v3774_v55 = vsel %vm10597_vm9, %v3772_v2, %v3773_v6  ;;  %v4390_v33 = vmul.f32 %v16665_v51, %v16779_v15  ;;  %v4391_v42 = vmul.f32 %v10661_v29, %v16782_v31  ;;  %v16794_v15 = vld [vmem:[#allocation96_spill] sm:$0xff]  ;;  %v16795_v31 = vld [vmem:[#allocation95_spill] sm:$0xff]  ;;  %v16796_v2 = vld [vmem:[#allocation98_spill] sm:$0xff] }
 0x22c   : > { %v3777_v39 = vsel %vm10597_vm9, %v3775_v52, %v3776_v28  ;;  %v4236_v61 = vadd.f32 %v3774_v55, %v12252_v53  ;;  %v4516_v34 = vadd.f32 %v4388_v8, %v4234_v24  ;;  %v4517_v16 = vadd.f32 %v4389_v3, %v4235_v38 }
 0x22d   : > { %9954 = vmatprep.mubr.msk.f32.mxu1 %vm9028_vm10, %v8602_v20  ;;  %v4237_v25 = vadd.f32 %v3777_v39, %v12256_v37  ;;  %v4670_v40 = vmul.f32 %v10610_v0, %v16682_v43  ;;  %v4671_v6 = vmul.f32 %v16563_v10, %v16794_v15  ;;  %v4672_v57 = vmul.f32 %v16565_v14, %v16795_v31 }
 0x22e   : > { %v4518_v13 = vadd.f32 %v4390_v33, %v4236_v61  ;;  %v4673_v28 = vmul.f32 %v16567_v49, %v16796_v2  ;;  %v4970_v53 = vmul.f32 %v16570_v58, %v16794_v15  ;;  %v4971_v24 = vmul.f32 %v16571_v45, %v16795_v31 }
 0x22f   : > { %v4519_v37 = vadd.f32 %v4391_v42, %v4237_v25  ;;  %v4798_v52 = vadd.f32 %v4670_v40, %v4516_v34  ;;  %v4799_v38 = vadd.f32 %v4671_v6, %v4517_v16  ;;  %v4972_v8 = vmul.f32 %v16572_v12, %v16796_v2  ;;  %v16798_v6 = vld [vmem:[#allocation97_spill] sm:$0xff] }
 0x230   : > { %v4800_v3 = vadd.f32 %v4672_v57, %v4518_v13  ;;  %v16797_v20 = vrot.slane %v12178_v32, 7  ;;  %v5315_v33 = vrot.slane %v4970_v53, 7  ;;  %v5318_v59 = vrot.slane %v4971_v24, 7  ;;  %v16799_v24 = vld [vmem:[#allocation106_spill] sm:$0xff] }
 0x231   : > { %v4801_v11 = vadd.f32 %v4673_v28, %v4519_v37  ;;  %v5321_v39 = vrot.slane %v4972_v8, 7  ;;  %v5936_v61 = vmul.f32 %v16619_v5, %v16794_v15  ;;  %v5937_v46 = vmul.f32 %v16620_v23, %v16795_v31  ;;  %v16800_v8 = vld [vmem:[#allocation108_spill] sm:$0xff] }
 0x232   : > { %v5314_v55 = vrot.slane %v16797_v20, 2  ;;  %v5317_v34 = vrot.slane %v5315_v33, 2  ;;  %v5320_v16 = vrot.slane %v5318_v59, 2  ;;  %v5938_v25 = vmul.f32 %v16621_v26, %v16796_v2 }
 0x233   : > { %v5323_v32 = vrot.slane %v5321_v39, 2  ;;  %v5939_v57 = vmul.f32 %v16622_v1, %v16798_v6  ;;  %v6218_v13 = vmul.f32 %v16712_v30, %v16764_v22  ;;  %v6219_v37 = vmul.f32 %v16714_v19, %v16799_v24 }
 0x234   : > { %v5316_v42 = vsel %vm10597_vm9, %v5314_v55, %v5315_v33  ;;  %v5319_v28 = vsel %vm10597_vm9, %v5317_v34, %v5318_v59  ;;  %v5322_v53 = vsel %vm10597_vm9, %v5320_v16, %v5321_v39  ;;  %v6220_v20 = vmul.f32 %v16675_v63, %v16800_v8  ;;  %v16801_v55 = vld [vmem:[#allocation103_spill] sm:$0xff]  ;;  %v16803_v59 = vld [vmem:[#allocation40_spill] sm:$0xff] }
 0x235   : > { %v5782_v40 = vadd.f32 %v5316_v42, %v4798_v52  ;;  %v16802_v52 = vrot.slane %v16801_v55, 7  ;;  %v5783_v42 = vadd.f32 %v5319_v28, %v4799_v38  ;;  %v5784_v6 = vadd.f32 %v5322_v53, %v4800_v3  ;;  %v16804_v55 = vld [vmem:[#allocation35_spill] sm:$0xff]  ;;  %v16806_v3 = vld [vmem:[#allocation33_spill] sm:$0xff] }
 0x236   : > { %v6221_v34 = vmul.f32 %v16803_v59, %v16773_v60  ;;  %v6518_v39 = vmul.f32 %v16679_v36, %v16799_v24  ;;  %v6519_v16 = vmul.f32 %v16680_v27, %v16800_v8  ;;  %v6520_v48 = vmul.f32 %v16804_v55, %v16773_v60  ;;  %v16805_v38 = vld [vmem:[#allocation91_spill] sm:$0xff] }
 0x237   : > { %v5325_v33 = vsel %vm10597_vm9, %v5323_v32, %v16802_v52  ;;  %v6064_v35 = vadd.f32 %v5936_v61, %v5782_v40  ;;  %v6065_v62 = vadd.f32 %v5937_v46, %v5783_v42  ;;  %v6066_v17 = vadd.f32 %v5938_v25, %v5784_v6 }
 0x238   : > { %v5785_v18 = vadd.f32 %v5325_v33, %v4801_v11  ;;  %v6521_v61 = vmul.f32 %v16806_v3, %v16805_v38  ;;  %v16807_v11 = vld [vmem:[#allocation84_spill] sm:$0xff]  ;;  %v6863_v53 = vrot.slane %v6518_v39, 7  ;;  %v6866_v4 = vrot.slane %v6519_v16, 7 }
 0x239   : > { %v6346_v9 = vadd.f32 %v6218_v13, %v6064_v35  ;;  %v16808_v40 = vrot.slane %v16807_v11, 7  ;;  %v6347_v52 = vadd.f32 %v6219_v37, %v6065_v62  ;;  %v6348_v33 = vadd.f32 %v6220_v20, %v6066_v17  ;;  %v16810_v62 = vld [vmem:[#allocation43_spill] sm:$0xff]  ;;  %v16812_v20 = vld [vmem:[#allocation44_spill] sm:$0xff] }
 0x23a   : > { %v6067_v32 = vadd.f32 %v5939_v57, %v5785_v18  ;;  %v6869_v56 = vrot.slane %v6520_v48, 7  ;;  %v6865_v35 = vrot.slane %v6863_v53, 2  ;;  %v6872_v25 = vrot.slane %v6521_v61, 7  ;;  %v16809_v57 = vld [vmem:[#allocation31_spill] sm:$0xff]  ;;  %v16811_v48 = vld [vmem:[#allocation34_spill] sm:$0xff] }
 0x23b   : > { %v6862_v28 = vrot.slane %v16808_v40, 2  ;;  %v6868_v13 = vrot.slane %v6866_v4, 2  ;;  %v7484_v6 = vmul.f32 %v16809_v57, %v16799_v24  ;;  %v7485_v17 = vmul.f32 %v16810_v62, %v16800_v8  ;;  %v16816_v24 = vld [vmem:[#allocation37_spill] sm:$0xff]  ;;  %v16820_v62 = vld [vmem:[#allocation10_spill] sm:$0xff] }
 0x23c   : > { %v6349_v2 = vadd.f32 %v6221_v34, %v6067_v32  ;;  %v6871_v42 = vrot.slane %v6869_v56, 2  ;;  %v6867_v11 = vsel %vm10597_vm9, %v6865_v35, %v6866_v4  ;;  %v7486_v37 = vmul.f32 %v16811_v48, %v16773_v60  ;;  %v16813_v4 = vld [vmem:[#allocation68_spill] sm:$0xff]  ;;  %v16819_v48 = vld [vmem:[#allocation66_spill] sm:$0xff] }
 0x23d   : > { %v6864_v46 = vsel %vm10597_vm9, %v6862_v28, %v6863_v53  ;;  %v7487_v34 = vmul.f32 %v16812_v20, %v16805_v38  ;;  %v6870_v39 = vsel %vm10597_vm9, %v6868_v13, %v6869_v56  ;;  %v7331_v16 = vadd.f32 %v6867_v11, %v6347_v52  ;;  %v16814_v53 = vld [vmem:[#allocation67_spill] sm:$0xff]  ;;  %v16815_v60 = vld [vmem:[#allocation72_spill] sm:$0xff] }
 0x23e   : > { %v7330_v18 = vadd.f32 %v6864_v46, %v6346_v9  ;;  %v6873_v9 = vsel %vm10597_vm9, %v6871_v42, %v6872_v25  ;;  %v7332_v61 = vadd.f32 %v6870_v39, %v6348_v33  ;;  %v2125_v28 = vadd.f32 3.0, %v16813_v4  ;;  %v16817_v38 = vld [vmem:[#allocation4_spill] sm:$0xff]  ;;  %v16818_v33 = vld [vmem:[#allocation78_spill] sm:$0xff] }
 0x23f   : > { %v7333_v40 = vadd.f32 %v6873_v9, %v6349_v2  ;;  %v2114_v46 = vadd.f32 3.0, %v16814_v53  ;;  %v7613_v35 = vadd.f32 %v7485_v17, %v7331_v16  ;;  %v2126_v8 = vadd.f32 3.0, %v16815_v60 }
 0x240   : > { %v7612_v32 = vadd.f32 %v7484_v6, %v7330_v18  ;;  %v3327_v31 = vmul.f32 %v16817_v38, %v16816_v24  ;;  %v7614_v15 = vadd.f32 %v7486_v37, %v7332_v61  ;;  %v2166_v13 = vmax.f32 %v2125_v28, 0.0 }
 0x241   : > { %v7615_v56 = vadd.f32 %v7487_v34, %v7333_v40  ;;  %v2155_v20 = vmax.f32 %v2114_v46, 0.0  ;;  %v7741_v25 = vadd.f32 3.0, %v7613_v35  ;;  %v2167_v42 = vmax.f32 %v2126_v8, 0.0  ;;  %v16822_v46 = vld [vmem:[#allocation3_spill] sm:$0xff] }
 0x242   : > { %v7740_v3 = vadd.f32 3.0, %v7612_v32  ;;  %v3335_v2 = vmul.f32 %v16817_v38, %v16818_v33  ;;  %v7742_v18 = vadd.f32 3.0, %v7614_v15  ;;  %v2207_v11 = vmin.f32 %v2166_v13, 6.0 }
 0x243   : > { %v7743_v6 = vadd.f32 3.0, %v7615_v56  ;;  %v2196_v17 = vmin.f32 %v2155_v20, 6.0  ;;  %v7869_v39 = vmax.f32 %v7741_v25, 0.0  ;;  %v2208_v16 = vmin.f32 %v2167_v42, 6.0 }
 0x244   : > { %v7868_v52 = vmax.f32 %v7740_v3, 0.0  ;;  %v12400_v24 = vmul.f32 %v16820_v62, %v16819_v48  ;;  %v7870_v37 = vmax.f32 %v7742_v18, 0.0  ;;  %v2248_v61 = vmul.f32 %v2207_v11, %v16813_v4 }
 0x245   : > { %v7871_v34 = vmax.f32 %v7743_v6, 0.0  ;;  %v2237_v8 = vmul.f32 %v2196_v17, %v16814_v53  ;;  %v7997_v3 = vmin.f32 %v7869_v39, 6.0  ;;  %v2249_v28 = vmul.f32 %v2208_v16, %v16815_v60 }
 0x246   : > { %v7996_v9 = vmin.f32 %v7868_v52, 6.0  ;;  %16821 = vst [vmem:[#allocation97_spill] sm:$0xff] %v12400_v24  ;;  %v3525_v20 = vmul.f32 %v16822_v46, %v16818_v33  ;;  %v7998_v13 = vmin.f32 %v7870_v37, 6.0  ;;  %v2289_v52 = vmul.f32 0.16666667, %v2248_v61 }
 0x247   : > { %v7999_v25 = vmin.f32 %v7871_v34, 6.0  ;;  %v2278_v42 = vmul.f32 0.16666667, %v2237_v8  ;;  %v8125_v38 = vmul.f32 %v7997_v3, %v7613_v35  ;;  %v2290_v55 = vmul.f32 0.16666667, %v2249_v28 }
 0x248   : > { %v8124_v40 = vmul.f32 %v7996_v9, %v7612_v32  ;;  %v3526_v18 = vmul.f32 %v16820_v62, %v12271_v44  ;;  %v8126_v4 = vmul.f32 %v7998_v13, %v7614_v15  ;;  %v2931_v53 = vcombine.high %v2289_v52, %v2289_v52 }
 0x249   : > { %v8127_v6 = vmul.f32 %v7999_v25, %v7615_v56  ;;  %v12410_v32 = vrot.slane %v2289_v52, %v10171_v7  ;;  %v8253_v60 = vmul.f32 0.16666667, %v8125_v38  ;;  %v2744_v11 = vcombine.high %v2278_v42, %v2278_v42 }
 0x24a   : > { %v8252_v57 = vmul.f32 0.16666667, %v8124_v40  ;;  %v12413_v17 = vrot.slane %v2278_v42, %v10171_v7  ;;  %v2948_v39 = vcombine.high %v2290_v55, %v2290_v55  ;;  %v8254_v9 = vmul.f32 0.16666667, %v8126_v4 }
 0x24b   : > { %16823 = vst [vmem:[#allocation103_spill] sm:$0xff] %v12410_v32  ;;  %v8255_v16 = vmul.f32 0.16666667, %v8127_v6  ;;  %v12416_v35 = vrot.slane %v2931_v53, %v10171_v7  ;;  %v12420_v37 = vcombine.high %v12410_v32, %v12410_v32  ;;  %v12423_v56 = vrot.slane %v2744_v11, %v10171_v7 }
 0x24c   : > { %16824 = vst [vmem:[#allocation84_spill] sm:$0xff] %v12413_v17  ;;  %v8603_v15 = vcombine.low %v8252_v57, %v8253_v60  ;;  %v12427_v38 = vcombine.high %v12413_v17, %v12413_v17  ;;  %v2955_v34 = vrot.slane %v2290_v55, %v10171_v7  ;;  %v12431_v8 = vrot.slane %v2948_v39, %v10171_v7  ;;  %v16845_v17 = vld [vmem:[#allocation5_spill] sm:$0xff] }
 0x24d   : > { %16825 = vst [vmem:[#allocation68_spill] sm:$0xff] %v12416_v35  ;;  %16826 = vst [vmem:[#allocation67_spill] sm:$0xff] %v12420_v37  ;;  %v8604_v61 = vcombine.low %v8254_v9, %v8255_v16  ;;  %v16006_v3 = vrot.slane %v12400_v24, 7  ;;  %v9666_v40 = vrot.slane %v3525_v20, 9  ;;  %v12437_v57 = vcombine.high %v12423_v56, %v12423_v56  ;;  %v16834_v20 = vld [vmem:[#allocation70_spill] sm:$0xff]  ;;  %v16840_v24 = vld [vmem:[#allocation24_spill] sm:$0xff] }
 0x24e   : > { %16827 = vst [vmem:[#allocation72_spill] sm:$0xff] %v12423_v56  ;;  %16828 = vst [vmem:[#allocation150_spill] sm:$0xff] %v12427_v38  ;;  %v8611_v28 = vrot.slane %v8603_v15, %v10171_v7  ;;  %v12441_v13 = vmul.f32 %v16743_v47, %v12423_v56  ;;  %v12443_v25 = vcombine.high %v2955_v34, %v2955_v34  ;;  %v16835_v42 = vrot.slane %v16834_v20, 9  ;;  %v16844_v38 = vld [vmem:[#allocation87_spill] sm:$0xff] }
 0x24f   : > { %16829 = vst [vmem:[#allocation151_spill] sm:$0xff] %v12431_v8  ;;  %16830 = vst [vmem:[#allocation152_spill] sm:$0xff] %v12437_v57  ;;  %v8618_v55 = vrot.slane %v8604_v61, %v10171_v7  ;;  %v12448_v52 = vcombine.high %v12431_v8, %v12431_v8  ;;  %v4055_v6 = vrot.slane %v3526_v18, 7  ;;  %v4472_v11 = vmul.f32 %v16614_v41, %v16819_v48  ;;  %v16843_v57 = vld [vmem:[#allocation6_spill] sm:$0xff] }
 0x250   : > { %16831 = vst [vmem:[#allocation153_spill] sm:$0xff] %v12441_v13  ;;  %16832 = vst [vmem:[#allocation154_spill] sm:$0xff] %v12443_v25  ;;  %v4031_v4 = vsel %vm10597_vm9, %v16835_v42, %v16006_v3  ;;  %v4480_v39 = vmul.f32 %v16614_v41, %v12271_v44  ;;  %v4754_v61 = vmul.f32 %v10610_v0, %v16818_v33  ;;  %v16842_v13 = vld [vmem:[#allocation88_spill] sm:$0xff] }
 0x251   : > { %16833 = vst [vmem:[#allocation155_spill] sm:$0xff] %v12448_v52  ;;  %v4318_v60 = vadd.f32 %v4031_v4, %v3327_v31  ;;  %v8619_v9 = vcombine.low %v8611_v28, %v8618_v55  ;;  %v4056_v16 = vsel %vm10597_vm9, %v9666_v40, %v4055_v6  ;;  %v12463_v15 = vrot.slane %v4055_v6, 2  ;;  %v16837_v31 = vld [vmem:[#allocation9_spill] sm:$0xff] }
 0x252   : > { %v4326_v20 = vadd.f32 %v4056_v16, %v3335_v2  ;;  %v4762_v42 = vmul.f32 %v10610_v0, %v2955_v34  ;;  %v5064_v4 = vmul.f32 %v16837_v31, %v16818_v33  ;;  %v12473_v28 = vmul.f32 %v16570_v58, %v12271_v44 }
 0x253   : > { %16836 = vst [vmem:[#allocation70_spill] sm:$0xff] %v12463_v15  ;;  %v4600_v18 = vadd.f32 %v4472_v11, %v4318_v60  ;;  %9955 = vmatmul.mubr.msk.f32.gmra.mxu1 %vm9028_vm10, %v8619_v9  ;;  %v5073_v40 = vmul.f32 %v16837_v31, %v2955_v34  ;;  %v12478_v55 = vmul.f32 %v16570_v58, %v12443_v25 }
 0x254   : > { %16838 = vst [vmem:[#allocation156_spill] sm:$0xff] %v12473_v28  ;;  %v6020_v2 = vmul.f32 %v16619_v5, %v12271_v44  ;;  %v4608_v6 = vadd.f32 %v4480_v39, %v4326_v20  ;;  %v9681_v11 = vrot.slane %v5064_v4, 9  ;;  %v6302_v16 = vmul.f32 %v16712_v30, %v2955_v34  ;;  %v16846_v39 = vld [vmem:[#allocation92_spill] sm:$0xff] }
 0x255   : > { %16839 = vst [vmem:[#allocation157_spill] sm:$0xff] %v12478_v55  ;;  %v4882_v60 = vadd.f32 %v4754_v61, %v4600_v18  ;;  %v16021_v9 = vrot.slane %v12473_v28, 7  ;;  %v9682_v3 = vrot.slane %v5073_v40, 9  ;;  %v16022_v53 = vrot.slane %v12478_v55, 7  ;;  %v16847_v61 = vld [vmem:[#allocation17_spill] sm:$0xff] }
 0x256   : > { %v12486_v33 = vmul.f32 %v16840_v24, %v2955_v34  ;;  %v4890_v48 = vadd.f32 %v4762_v42, %v4608_v6  ;;  %v3248_v56 = vmul.f32 %v16843_v57, %v16842_v13  ;;  %v3249_v35 = vmul.f32 %v16845_v17, %v16844_v38  ;;  %v16849_v28 = vld [vmem:[#allocation13_spill] sm:$0xff] }
 0x257   : > { %v3250_v20 = vmul.f32 %v16847_v61, %v16846_v39  ;;  %v5579_v18 = vsel %vm10597_vm9, %v9681_v11, %v16021_v9  ;;  %v5604_v34 = vsel %vm10597_vm9, %v9682_v3, %v16022_v53  ;;  %v3427_v4 = vmul.f32 %v16820_v62, %v16842_v13  ;;  %v12511_v11 = vpop.f32.mrf.mxu0  ;;  %v12513_v9 = vpop.f32.mrf.mxu1  ;;  %v16852_v3 = vld [vmem:[#allocation20_spill] sm:$0xff] }
 0x258   : > { %16841 = vst [vmem:[#allocation158_spill] sm:$0xff] %v12486_v33  ;;  %v5866_v40 = vadd.f32 %v5579_v18, %v4882_v60  ;;  %v12505_v6 = vadd.f32 %v5604_v34, %v4890_v48  ;;  %v3428_v47 = vmul.f32 %v16781_v50, %v16844_v38  ;;  %v3429_v52 = vmul.f32 %v16849_v28, %v16846_v39 }
 0x259   : > { %16850 = vst [vmem:[#allocation87_spill] sm:$0xff] %v12511_v11  ;;  %16851 = vst [vmem:[#allocation92_spill] sm:$0xff] %v12513_v9  ;;  %v12517_v53 = vmul.f32 %v16852_v3, %v16682_v43  ;;  %v3780_v42 = vrot.slane %v3427_v4, 7  ;;  %v4392_v60 = vmul.f32 %v16614_v41, %v16842_v13  ;;  %v4393_v48 = vmul.f32 %v16555_v21, %v16844_v38  ;;  %v9897_v37 = vpop.f32.mrf.mxu0  ;;  %v9933_v32 = vpop.f32.mrf.mxu1  ;;  %v16853_v9 = vld [vmem:[#allocation90_spill] sm:$0xff] }
 0x25a   : > { %16848 = vst [vmem:[#allocation88_spill] sm:$0xff] %v12505_v6  ;;  %v6148_v18 = vadd.f32 %v6020_v2, %v5866_v40  ;;  %v3783_v34 = vrot.slane %v3428_v47, 7  ;;  %v3786_v6 = vrot.slane %v3429_v52, 7  ;;  %v4394_v33 = vmul.f32 %v16665_v51, %v16846_v39  ;;  %v16856_v2 = vld [vmem:[#allocation89_spill] sm:$0xff]  ;;  %v16857_v37 = vld [vmem:[#allocation100_spill] sm:$0xff]  ;;  %v16858_v39 = vld [vmem:[#allocation99_spill] sm:$0xff] }
 0x25b   : > { %v16854_v11 = vrot.slane %v16853_v9, 9  ;;  %v3782_v4 = vrot.slane %v3780_v42, 2  ;;  %v4395_v13 = vmul.f32 %v10661_v29, %v16682_v43  ;;  %v4674_v9 = vmul.f32 %v10610_v0, %v16857_v37  ;;  %v16861_v29 = vld [vmem:[#allocation104_spill] sm:$0xff] }
 0x25c   : > { %v12532_v38 = vadd.f32 %v6302_v16, %v6148_v18  ;;  %v3785_v47 = vrot.slane %v3783_v34, 2  ;;  %v3788_v52 = vrot.slane %v3786_v6, 2  ;;  %v16860_v18 = vrot.slane %v12517_v53, 7 }
 0x25d   : > { %v3781_v3 = vsel %vm10597_vm9, %v16854_v11, %v3780_v42  ;;  %v3784_v32 = vsel %vm10597_vm9, %v3782_v4, %v3783_v34  ;;  %v4675_v42 = vmul.f32 %v16563_v10, %v16858_v39  ;;  %v16859_v11 = vld [vmem:[#allocation105_spill] sm:$0xff]  ;;  %v4677_v55 = vmul.f32 %v16567_v49, %v16861_v29 }
 0x25e   : > { %16855 = vst [vmem:[#allocation90_spill] sm:$0xff] %v12532_v38  ;;  %v4238_v40 = vadd.f32 %v3781_v3, %v16856_v2  ;;  %v4676_v46 = vmul.f32 %v16565_v14, %v16859_v11  ;;  %v3787_v16 = vsel %vm10597_vm9, %v3785_v47, %v3786_v6  ;;  %v3790_v3 = vsel %vm10597_vm9, %v3788_v52, %v16860_v18 }
 0x25f   : > { %v4239_v2 = vadd.f32 %v3784_v32, %v3248_v56  ;;  %v4240_v34 = vadd.f32 %v3787_v16, %v3249_v35  ;;  %v4241_v4 = vadd.f32 %v3790_v3, %v3250_v20  ;;  %v4974_v8 = vmul.f32 %v16837_v31, %v16857_v37  ;;  %v16862_v56 = vld [vmem:[#allocation36_spill] sm:$0xff] }
 0x260   : > { %v4520_v38 = vadd.f32 %v4392_v60, %v4238_v40  ;;  %v4975_v6 = vmul.f32 %v16570_v58, %v16858_v39  ;;  %v4976_v47 = vmul.f32 %v16571_v45, %v16859_v11  ;;  %v4977_v35 = vmul.f32 %v16572_v12, %v16861_v29 }
 0x261   : > { %v4521_v15 = vadd.f32 %v4393_v48, %v4239_v2  ;;  %v4522_v44 = vadd.f32 %v4394_v33, %v4240_v34  ;;  %v4523_v52 = vadd.f32 %v4395_v13, %v4241_v4  ;;  %v12561_v20 = vmul.f32 %v16862_v56, %v16764_v22 }
 0x262   : > { %v4802_v25 = vadd.f32 %v4674_v9, %v4520_v38  ;;  %v9671_v40 = vrot.slane %v4974_v8, 9  ;;  %v5328_v32 = vrot.slane %v4975_v6, 7  ;;  %v5331_v48 = vrot.slane %v4976_v47, 7 }
 0x263   : > { %v4803_v60 = vadd.f32 %v4675_v42, %v4521_v15  ;;  %v4804_v38 = vadd.f32 %v4676_v46, %v4522_v44  ;;  %v4805_v9 = vadd.f32 %v4677_v55, %v4523_v52  ;;  %v5334_v16 = vrot.slane %v4977_v35, 7  ;;  %v16863_v42 = vld [vmem:[#allocation113_spill] sm:$0xff] }
 0x264   : > { %v16041_v18 = vrot.slane %v12561_v20, 7  ;;  %v5329_v33 = vsel %vm10597_vm9, %v9671_v40, %v5328_v32  ;;  %v5330_v13 = vrot.slane %v5328_v32, 2  ;;  %v5333_v3 = vrot.slane %v5331_v48, 2  ;;  %v16864_v32 = vld [vmem:[#allocation117_spill] sm:$0xff] }
 0x265   : > { %v5940_v2 = vmul.f32 %v16619_v5, %v16858_v39  ;;  %v5336_v34 = vrot.slane %v5334_v16, 2  ;;  %v5786_v4 = vadd.f32 %v5329_v33, %v4802_v25  ;;  %v5941_v8 = vmul.f32 %v16620_v23, %v16859_v11  ;;  %v16865_v33 = vld [vmem:[#allocation110_spill] sm:$0xff] }
 0x266   : > { %v5942_v44 = vmul.f32 %v16621_v26, %v16861_v29  ;;  %v5332_v46 = vsel %vm10597_vm9, %v5330_v13, %v5331_v48  ;;  %v5335_v15 = vsel %vm10597_vm9, %v5333_v3, %v5334_v16  ;;  %v5943_v55 = vmul.f32 %v16622_v1, %v16764_v22  ;;  %v16866_v13 = vld [vmem:[#allocation115_spill] sm:$0xff] }
 0x267   : > { %v6222_v6 = vmul.f32 %v16712_v30, %v16863_v42  ;;  %v5338_v25 = vsel %vm10597_vm9, %v5336_v34, %v16041_v18  ;;  %v5787_v47 = vadd.f32 %v5332_v46, %v4803_v60  ;;  %v5788_v52 = vadd.f32 %v5335_v15, %v4804_v38  ;;  %v16868_v15 = vld [vmem:[#allocation114_spill] sm:$0xff] }
 0x268   : > { %v6068_v35 = vadd.f32 %v5940_v2, %v5786_v4  ;;  %v5789_v40 = vadd.f32 %v5338_v25, %v4805_v9  ;;  %v6223_v48 = vmul.f32 %v16714_v19, %v16864_v32  ;;  %v6224_v16 = vmul.f32 %v16675_v63, %v16865_v33  ;;  %v16867_v9 = vld [vmem:[#allocation35_spill] sm:$0xff]  ;;  %v16869_v25 = vld [vmem:[#allocation42_spill] sm:$0xff] }
 0x269   : > { %v6225_v3 = vmul.f32 %v16803_v59, %v16866_v13  ;;  %v6069_v56 = vadd.f32 %v5941_v8, %v5787_v47  ;;  %v6070_v31 = vadd.f32 %v5942_v44, %v5788_v52  ;;  %v6522_v11 = vmul.f32 %v16840_v24, %v16863_v42  ;;  %v16872_v42 = vld [vmem:[#allocation43_spill] sm:$0xff] }
 0x26a   : > { %v6350_v29 = vadd.f32 %v6222_v6, %v6068_v35  ;;  %v6071_v34 = vadd.f32 %v5943_v55, %v5789_v40  ;;  %v6523_v60 = vmul.f32 %v16679_v36, %v16864_v32  ;;  %v6524_v38 = vmul.f32 %v16680_v27, %v16865_v33  ;;  %v16871_v40 = vld [vmem:[#allocation31_spill] sm:$0xff] }
 0x26b   : > { %v6525_v2 = vmul.f32 %v16867_v9, %v16866_v13  ;;  %v6351_v4 = vadd.f32 %v6223_v48, %v6069_v56  ;;  %v6352_v46 = vadd.f32 %v6224_v16, %v6070_v31  ;;  %v12600_v8 = vmul.f32 %v16869_v25, %v16868_v15  ;;  %v16873_v56 = vld [vmem:[#allocation34_spill] sm:$0xff]  ;;  %v16876_v25 = vld [vmem:[#allocation145_spill] sm:$0xff]  ;;  %v16879_v9 = vld [vmem:[#allocation96_spill] sm:$0xff] }
 0x26c   : > { %v9687_v44 = vrot.slane %v6522_v11, 9  ;;  %v6353_v6 = vadd.f32 %v6225_v3, %v6071_v34  ;;  %v6876_v47 = vrot.slane %v6523_v60, 7  ;;  %v6879_v52 = vrot.slane %v6524_v38, 7  ;;  %v16874_v60 = vld [vmem:[#allocation44_spill] sm:$0xff] }
 0x26d   : > { %16870 = vst [vmem:[#allocation89_spill] sm:$0xff] %v12600_v8  ;;  %v6882_v55 = vrot.slane %v6525_v2, 7  ;;  %v7488_v18 = vmul.f32 %v16871_v40, %v16864_v32  ;;  %v7489_v39 = vmul.f32 %v16872_v42, %v16865_v33  ;;  %v7490_v31 = vmul.f32 %v16873_v56, %v16866_v13  ;;  %v16875_v2 = vld [vmem:[#allocation144_spill] sm:$0xff] }
 0x26e   : > { %v6877_v48 = vsel %vm10597_vm9, %v9687_v44, %v6876_v47  ;;  %v6878_v16 = vrot.slane %v6876_v47, 2  ;;  %v6881_v11 = vrot.slane %v6879_v52, 2  ;;  %v7491_v38 = vmul.f32 %v16874_v60, %v16868_v15 }
 0x26f   : > { %v6884_v3 = vrot.slane %v6882_v55, 2  ;;  %v7334_v34 = vadd.f32 %v6877_v48, %v6350_v29  ;;  %v2115_v35 = vadd.f32 3.0, %v16875_v2  ;;  %v2127_v32 = vadd.f32 3.0, %v16876_v25  ;;  %v16878_v29 = vld [vmem:[#allocation4_spill] sm:$0xff] }
 0x270   : > { %v6880_v33 = vsel %vm10597_vm9, %v6878_v16, %v6879_v52  ;;  %v6883_v13 = vsel %vm10597_vm9, %v6881_v11, %v6882_v55  ;;  %v16877_v37 = vrot.slane %v12600_v8, 7  ;;  %v3251_v47 = vmul.f32 %v16878_v29, %v16682_v43  ;;  %v16880_v16 = vld [vmem:[#allocation95_spill] sm:$0xff]  ;;  %v16881_v43 = vld [vmem:[#allocation98_spill] sm:$0xff] }
 0x271   : > { %v7335_v48 = vadd.f32 %v6880_v33, %v6351_v4  ;;  %v7336_v24 = vadd.f32 %v6883_v13, %v6352_v46  ;;  %v7616_v56 = vadd.f32 %v7488_v18, %v7334_v34  ;;  %v2156_v42 = vmax.f32 %v2115_v35, 0.0 }
 0x272   : > { %v6886_v44 = vsel %vm10597_vm9, %v6884_v3, %v16877_v37  ;;  %v2168_v40 = vmax.f32 %v2127_v32, 0.0  ;;  %v3252_v52 = vmul.f32 %v16843_v57, %v16879_v9  ;;  %v12629_v55 = vmul.f32 %v16845_v17, %v16880_v16 }
 0x273   : > { %v7337_v60 = vadd.f32 %v6886_v44, %v6353_v6  ;;  %v7617_v11 = vadd.f32 %v7489_v39, %v7335_v48  ;;  %v7618_v8 = vadd.f32 %v7490_v31, %v7336_v24  ;;  %v7744_v37 = vadd.f32 3.0, %v7616_v56 }
 0x274   : > { %v2197_v3 = vmin.f32 %v2156_v42, 6.0  ;;  %v2209_v36 = vmin.f32 %v2168_v40, 6.0  ;;  %v3254_v33 = vmul.f32 %v16847_v61, %v16881_v43  ;;  %v3431_v18 = vmul.f32 %v16820_v62, %v16879_v9 }
 0x275   : > { %v7619_v27 = vadd.f32 %v7491_v38, %v7337_v60  ;;  %v7745_v32 = vadd.f32 3.0, %v7617_v11  ;;  %v7746_v13 = vadd.f32 3.0, %v7618_v8  ;;  %v7872_v46 = vmax.f32 %v7744_v37, 0.0 }
 0x276   : > { %v2238_v6 = vmul.f32 %v2197_v3, %v16875_v2  ;;  %v2250_v35 = vmul.f32 %v2209_v36, %v16876_v25  ;;  %v3432_v24 = vmul.f32 %v16781_v50, %v16880_v16  ;;  %v3433_v39 = vmul.f32 %v16849_v28, %v16881_v43 }
 0x277   : > { %v7747_v4 = vadd.f32 3.0, %v7619_v27  ;;  %v7873_v42 = vmax.f32 %v7745_v32, 0.0  ;;  %v7874_v40 = vmax.f32 %v7746_v13, 0.0  ;;  %v8000_v34 = vmin.f32 %v7872_v46, 6.0 }
 0x278   : > { %v2279_v60 = vmul.f32 0.16666667, %v2238_v6  ;;  %v2291_v38 = vmul.f32 0.16666667, %v2250_v35  ;;  %v16882_v44 = vrot.slane %v12517_v53, 7  ;;  %v3792_v37 = vrot.slane %v3431_v18, 7 }
 0x279   : > { %v7875_v31 = vmax.f32 %v7747_v4, 0.0  ;;  %v8001_v62 = vmin.f32 %v7873_v42, 6.0  ;;  %v8002_v2 = vmin.f32 %v7874_v40, 6.0  ;;  %v8128_v36 = vmul.f32 %v8000_v34, %v7616_v56 }
 0x27a   : > { %v3791_v48 = vrot.slane %v16882_v44, 2  ;;  %v2761_v25 = vcombine.high %v2279_v60, %v2279_v60  ;;  %v12644_v61 = vrot.slane %v2279_v60, %v10171_v7  ;;  %v2965_v17 = vcombine.high %v2291_v38, %v2291_v38 }
 0x27b   : > { %v8003_v3 = vmin.f32 %v7875_v31, 6.0  ;;  %v12647_v32 = vrot.slane %v2291_v38, %v10171_v7  ;;  %v8129_v13 = vmul.f32 %v8001_v62, %v7617_v11  ;;  %v8130_v4 = vmul.f32 %v8002_v2, %v7618_v8 }
 0x27c   : > { %16883 = vst [vmem:[#allocation144_spill] sm:$0xff] %v12644_v61  ;;  %v8256_v6 = vmul.f32 0.16666667, %v8128_v36  ;;  %v12650_v53 = vrot.slane %v2761_v25, %v10171_v7  ;;  %v12654_v18 = vcombine.high %v12644_v61, %v12644_v61  ;;  %v12657_v56 = vrot.slane %v2965_v17, %v10171_v7 }
 0x27d   : > { %16884 = vst [vmem:[#allocation145_spill] sm:$0xff] %v12647_v32  ;;  %v8131_v46 = vmul.f32 %v8003_v3, %v7619_v27  ;;  %v12661_v35 = vcombine.high %v12647_v32, %v12647_v32  ;;  %v8257_v42 = vmul.f32 0.16666667, %v8129_v13  ;;  %v8258_v40 = vmul.f32 0.16666667, %v8130_v4 }
 0x27e   : > { %16885 = vst [vmem:[#allocation96_spill] sm:$0xff] %v12650_v53  ;;  %16886 = vst [vmem:[#allocation95_spill] sm:$0xff] %v12654_v18  ;;  %v3793_v27 = vsel %vm10597_vm9, %v3791_v48, %v3792_v37  ;;  %v12667_v8 = vcombine.high %v12650_v53, %v12650_v53  ;;  %v12671_v11 = vcombine.high %v12657_v56, %v12657_v56  ;;  %v3794_v17 = vrot.slane %v3792_v37, 2 }
 0x27f   : > { %16887 = vst [vmem:[#allocation98_spill] sm:$0xff] %v12657_v56  ;;  %16888 = vst [vmem:[#allocation159_spill] sm:$0xff] %v12661_v35  ;;  %v8259_v62 = vmul.f32 0.16666667, %v8131_v46  ;;  %v3795_v31 = vrot.slane %v3432_v24, 7  ;;  %v8620_v34 = vcombine.low %v8256_v6, %v8257_v42  ;;  %v3798_v38 = vrot.slane %v3433_v39, 7 }
 0x280   : > { %16889 = vst [vmem:[#allocation160_spill] sm:$0xff] %v12667_v8  ;;  %16890 = vst [vmem:[#allocation161_spill] sm:$0xff] %v12671_v11  ;;  %v4242_v44 = vadd.f32 %v3793_v27, %v3251_v47  ;;  %v4396_v48 = vmul.f32 %v16614_v41, %v16879_v9  ;;  %v4397_v36 = vmul.f32 %v16555_v21, %v16880_v16  ;;  %v16891_v6 = vld [vmem:[#allocation101_spill] sm:$0xff]  ;;  %v16893_v27 = vld [vmem:[#allocation106_spill] sm:$0xff] }
 0x281   : > { %v8621_v60 = vcombine.low %v8258_v40, %v8259_v62  ;;  %v3796_v2 = vsel %vm10597_vm9, %v3794_v17, %v3795_v31  ;;  %v3797_v3 = vrot.slane %v3795_v31, 2  ;;  %v8628_v25 = vrot.slane %v8620_v34, %v10171_v7  ;;  %v16894_v31 = vld [vmem:[#allocation108_spill] sm:$0xff]  ;;  %v16895_v34 = vld [vmem:[#allocation109_spill] sm:$0xff]  ;;  %v16911_v56 = vld [vmem:[#allocation43_spill] sm:$0xff] }
 0x282   : > { %v3800_v37 = vrot.slane %v3798_v38, 2  ;;  %v4243_v24 = vadd.f32 %v3796_v2, %v3252_v52  ;;  %v4398_v47 = vmul.f32 %v16665_v51, %v16881_v43  ;;  %v4524_v4 = vadd.f32 %v4396_v48, %v4242_v44  ;;  %v16904_v11 = vld [vmem:[#allocation32_spill] sm:$0xff] }
 0x283   : > { %v8635_v13 = vrot.slane %v8621_v60, %v10171_v7  ;;  %v3799_v39 = vsel %vm10597_vm9, %v3797_v3, %v3798_v38  ;;  %v4678_v46 = vmul.f32 %v10610_v0, %v16764_v22  ;;  %v16892_v42 = vrot.slane %v16891_v6, 7 }
 0x284   : > { %v4244_v40 = vadd.f32 %v3799_v39, %v12629_v55  ;;  %v4525_v62 = vadd.f32 %v4397_v36, %v4243_v24  ;;  %v4679_v17 = vmul.f32 %v16563_v10, %v16893_v27  ;;  %v4680_v43 = vmul.f32 %v16565_v14, %v16894_v31 }
 0x285   : > { %v8636_v9 = vcombine.low %v8628_v25, %v8635_v13  ;;  %v3802_v16 = vsel %vm10597_vm9, %v3800_v37, %v16892_v42  ;;  %v4681_v60 = vmul.f32 %v16567_v49, %v16895_v34  ;;  %v4806_v44 = vadd.f32 %v4678_v46, %v4524_v4  ;;  %v16897_v25 = vld [vmem:[#allocation91_spill] sm:$0xff]  ;;  %v16898_v13 = vld [vmem:[#allocation28_spill] sm:$0xff] }
 0x286   : > { %v4245_v52 = vadd.f32 %v3802_v16, %v3254_v33  ;;  %v4526_v38 = vadd.f32 %v4398_v47, %v4244_v40  ;;  %v4979_v2 = vmul.f32 %v16570_v58, %v16893_v27  ;;  %v4980_v55 = vmul.f32 %v16571_v45, %v16894_v31  ;;  %v16896_v33 = vld [vmem:[#allocation102_spill] sm:$0xff] }
 0x287   : > { %9957 = vmatprep.mubr.msk.f32.mxu1 %vm9028_vm10, %v8636_v9  ;;  %v4807_v48 = vadd.f32 %v4679_v17, %v4525_v62  ;;  %v4981_v36 = vmul.f32 %v16572_v12, %v16895_v34  ;;  %v4982_v37 = vmul.f32 %v16898_v13, %v16897_v25  ;;  %v16899_v39 = vrot.slane %v12561_v20, 7 }
 0x288   : > { %v4527_v3 = vadd.f32 %v16896_v33, %v4245_v52  ;;  %v4808_v24 = vadd.f32 %v4680_v43, %v4526_v38  ;;  %v5340_v4 = vrot.slane %v4979_v2, 7  ;;  %v5343_v46 = vrot.slane %v4980_v55, 7 }
 0x289   : > { %v5339_v47 = vrot.slane %v16899_v39, 2  ;;  %v5346_v6 = vrot.slane %v4981_v36, 7  ;;  %v5349_v42 = vrot.slane %v4982_v37, 7  ;;  %v5944_v16 = vmul.f32 %v16619_v5, %v16893_v27 }
 0x28a   : > { %v4809_v9 = vadd.f32 %v4681_v60, %v4527_v3  ;;  %v5342_v62 = vrot.slane %v5340_v4, 2  ;;  %v5345_v52 = vrot.slane %v5343_v46, 2  ;;  %v5945_v17 = vmul.f32 %v16620_v23, %v16894_v31  ;;  %v16900_v3 = vld [vmem:[#allocation120_spill] sm:$0xff] }
 0x28b   : > { %v5341_v40 = vsel %vm10597_vm9, %v5339_v47, %v5340_v4  ;;  %v5348_v43 = vrot.slane %v5346_v6, 2  ;;  %v5946_v20 = vmul.f32 %v16621_v26, %v16895_v34  ;;  %v5947_v60 = vmul.f32 %v16622_v1, %v16897_v25 }
 0x28c   : > { %v5790_v38 = vadd.f32 %v5341_v40, %v4806_v44  ;;  %v5344_v2 = vsel %vm10597_vm9, %v5342_v62, %v5343_v46  ;;  %v5347_v55 = vsel %vm10597_vm9, %v5345_v52, %v5346_v6  ;;  %v6226_v33 = vmul.f32 %v16712_v30, %v16868_v15  ;;  %v16901_v40 = vld [vmem:[#allocation116_spill] sm:$0xff]  ;;  %v16902_v46 = vld [vmem:[#allocation122_spill] sm:$0xff]  ;;  %v16903_v6 = vld [vmem:[#allocation41_spill] sm:$0xff] }
 0x28d   : > { %v6227_v36 = vmul.f32 %v16714_v19, %v16900_v3  ;;  %v5350_v44 = vsel %vm10597_vm9, %v5348_v43, %v5349_v42  ;;  %v5791_v37 = vadd.f32 %v5344_v2, %v4807_v48  ;;  %v5792_v39 = vadd.f32 %v5347_v55, %v4808_v24  ;;  %v16905_v48 = vld [vmem:[#allocation35_spill] sm:$0xff] }
 0x28e   : > { %v6072_v47 = vadd.f32 %v5944_v16, %v5790_v38  ;;  %v5793_v4 = vadd.f32 %v5350_v44, %v4809_v9  ;;  %v6228_v8 = vmul.f32 %v16675_v63, %v16901_v40  ;;  %v6229_v62 = vmul.f32 %v16803_v59, %v16902_v46  ;;  %v16906_v9 = vld [vmem:[#allocation121_spill] sm:$0xff] }
 0x28f   : > { %v6527_v52 = vmul.f32 %v16903_v6, %v16900_v3  ;;  %v6073_v53 = vadd.f32 %v5945_v17, %v5791_v37  ;;  %v6074_v18 = vadd.f32 %v5946_v20, %v5792_v39  ;;  %v6528_v25 = vmul.f32 %v16904_v11, %v16901_v40  ;;  %v16907_v16 = vld [vmem:[#allocation33_spill] sm:$0xff]  ;;  %v16910_v37 = vld [vmem:[#allocation31_spill] sm:$0xff] }
 0x290   : > { %v6354_v61 = vadd.f32 %v6226_v33, %v6072_v47  ;;  %v6075_v42 = vadd.f32 %v5947_v60, %v5793_v4  ;;  %v6529_v24 = vmul.f32 %v16905_v48, %v16902_v46  ;;  %v6530_v43 = vmul.f32 %v16907_v16, %v16906_v9  ;;  %v16908_v38 = vld [vmem:[#allocation89_spill] sm:$0xff]  ;;  %v12770_v48 = vpop.f32.mrf.mxu1 }
 0x291   : > { %v16909_v2 = vrot.slane %v16908_v38, 7  ;;  %v6355_v44 = vadd.f32 %v6227_v36, %v6073_v53  ;;  %v6356_v34 = vadd.f32 %v6228_v8, %v6074_v18  ;;  %v6888_v31 = vrot.slane %v6527_v52, 7  ;;  %v16912_v53 = vld [vmem:[#allocation34_spill] sm:$0xff]  ;;  %v16913_v8 = vld [vmem:[#allocation44_spill] sm:$0xff]  ;;  %16920 = vst [vmem:[#allocation89_spill] sm:$0xff] %v12770_v48 }
 0x292   : > { %v6891_v27 = vrot.slane %v6528_v25, 7  ;;  %v6357_v17 = vadd.f32 %v6229_v62, %v6075_v42  ;;  %v6894_v20 = vrot.slane %v6529_v24, 7  ;;  %v6897_v33 = vrot.slane %v6530_v43, 7  ;;  %v16914_v52 = vld [vmem:[#allocation148_spill] sm:$0xff]  ;;  %v16915_v42 = vld [vmem:[#allocation149_spill] sm:$0xff] }
 0x293   : > { %v6887_v55 = vrot.slane %v16909_v2, 2  ;;  %v7492_v39 = vmul.f32 %v16910_v37, %v16900_v3  ;;  %v6890_v47 = vrot.slane %v6888_v31, 2  ;;  %v7493_v35 = vmul.f32 %v16911_v56, %v16901_v40  ;;  %v12768_v56 = vpop.f32.mrf.mxu0 }
 0x294   : > { %v6893_v4 = vrot.slane %v6891_v27, 2  ;;  %v6896_v38 = vrot.slane %v6894_v20, 2  ;;  %v7494_v18 = vmul.f32 %v16912_v53, %v16902_v46  ;;  %v7495_v25 = vmul.f32 %v16913_v8, %v16906_v9  ;;  %v16916_v9 = vld [vmem:[#allocation55_spill] sm:$0xff]  ;;  %16919 = vst [vmem:[#allocation102_spill] sm:$0xff] %v12768_v56 }
 0x295   : > { %v6889_v60 = vsel %vm10597_vm9, %v6887_v55, %v6888_v31  ;;  %v6892_v36 = vsel %vm10597_vm9, %v6890_v47, %v6891_v27  ;;  %v2116_v31 = vadd.f32 3.0, %v16914_v52  ;;  %v2128_v24 = vadd.f32 3.0, %v16915_v42 }
 0x296   : > { %v7338_v2 = vadd.f32 %v6889_v60, %v6354_v61  ;;  %v6895_v62 = vsel %vm10597_vm9, %v6893_v4, %v6894_v20  ;;  %v6898_v43 = vsel %vm10597_vm9, %v6896_v38, %v6897_v33  ;;  %v7339_v61 = vadd.f32 %v6892_v36, %v6355_v44  ;;  %v16917_v20 = vld [vmem:[#allocation86_spill] sm:$0xff]  ;;  %v9936_v36 = vpop.f32.mrf.mxu1 }
 0x297   : > { %v7340_v55 = vadd.f32 %v6895_v62, %v6356_v34  ;;  %v7341_v46 = vadd.f32 %v6898_v43, %v6357_v17  ;;  %v2157_v40 = vmax.f32 %v2116_v31, 0.0  ;;  %v2169_v3 = vmax.f32 %v2128_v24, 0.0  ;;  %v16921_v43 = vld [vmem:[#allocation154_spill] sm:$0xff] }
 0x298   : > { %v7620_v60 = vadd.f32 %v7492_v39, %v7338_v2  ;;  %v3336_v32 = vmul.f32 %v16843_v57, %v16916_v9  ;;  %v7621_v27 = vadd.f32 %v7493_v35, %v7339_v61  ;;  %v12766_v4 = vmul.f32 %v16781_v50, %v16917_v20  ;;  %v16922_v61 = vld [vmem:[#allocation70_spill] sm:$0xff] }
 0x299   : > { %v7622_v47 = vadd.f32 %v7494_v18, %v7340_v55  ;;  %v7623_v44 = vadd.f32 %v7495_v25, %v7341_v46  ;;  %v2198_v34 = vmin.f32 %v2157_v40, 6.0  ;;  %v2210_v33 = vmin.f32 %v2169_v3, 6.0  ;;  %v9900_v18 = vpop.f32.mrf.mxu0 }
 0x29a   : > { %v7748_v53 = vadd.f32 3.0, %v7620_v60  ;;  %16918 = vst [vmem:[#allocation101_spill] sm:$0xff] %v12766_v4  ;;  %v4481_v17 = vmul.f32 %v16555_v21, %v16917_v20  ;;  %v7749_v39 = vadd.f32 3.0, %v7621_v27  ;;  %v16079_v35 = vrot.slane %v12766_v4, 7 }
 0x29b   : > { %v7750_v38 = vadd.f32 3.0, %v7622_v47  ;;  %v7751_v62 = vadd.f32 3.0, %v7623_v44  ;;  %v2239_v31 = vmul.f32 %v2198_v34, %v16914_v52  ;;  %v2251_v24 = vmul.f32 %v2210_v33, %v16915_v42  ;;  %v16923_v42 = vld [vmem:[#allocation151_spill] sm:$0xff] }
 0x29c   : > { %v7876_v2 = vmax.f32 %v7748_v53, 0.0  ;;  %v4763_v46 = vmul.f32 %v16563_v10, %v16921_v43  ;;  %v7877_v40 = vmax.f32 %v7749_v39, 0.0  ;;  %v4059_v53 = vsel %vm10597_vm9, %v16922_v61, %v16079_v35  ;;  %v16942_v35 = vld [vmem:[#allocation100_spill] sm:$0xff] }
 0x29d   : > { %v7878_v3 = vmax.f32 %v7750_v38, 0.0  ;;  %v7879_v55 = vmax.f32 %v7751_v62, 0.0  ;;  %v2280_v18 = vmul.f32 0.16666667, %v2239_v31  ;;  %v2292_v36 = vmul.f32 0.16666667, %v2251_v24 }
 0x29e   : > { %v8004_v25 = vmin.f32 %v7876_v2, 6.0  ;;  %v4327_v9 = vadd.f32 %v4059_v53, %v3336_v32  ;;  %v8005_v48 = vmin.f32 %v7877_v40, 6.0  ;;  %v12786_v33 = vmul.f32 %v16571_v45, %v16923_v42 }
 0x29f   : > { %v8006_v52 = vmin.f32 %v7878_v3, 6.0  ;;  %v8007_v39 = vmin.f32 %v7879_v55, 6.0  ;;  %v2778_v38 = vcombine.high %v2280_v18, %v2280_v18  ;;  %v12789_v2 = vrot.slane %v2280_v18, %v10171_v7 }
 0x2a0   : > { %v8132_v34 = vmul.f32 %v8004_v25, %v7620_v60  ;;  %16924 = vst [vmem:[#allocation148_spill] sm:$0xff] %v12786_v33  ;;  %v2982_v43 = vcombine.high %v2292_v36, %v2292_v36  ;;  %v8133_v56 = vmul.f32 %v8005_v48, %v7621_v27  ;;  %v2989_v62 = vrot.slane %v2292_v36, %v10171_v7 }
 0x2a1   : > { %16925 = vst [vmem:[#allocation149_spill] sm:$0xff] %v12789_v2  ;;  %v8134_v4 = vmul.f32 %v8006_v52, %v7622_v47  ;;  %v8135_v31 = vmul.f32 %v8007_v39, %v7623_v44  ;;  %v12793_v32 = vrot.slane %v2778_v38, %v10171_v7  ;;  %v12797_v60 = vcombine.high %v12789_v2, %v12789_v2  ;;  %v16930_v47 = vld [vmem:[#allocation157_spill] sm:$0xff] }
 0x2a2   : > { %v8260_v61 = vmul.f32 0.16666667, %v8132_v34  ;;  %v2996_v24 = vrot.slane %v2982_v43, %v10171_v7  ;;  %v8261_v40 = vmul.f32 0.16666667, %v8133_v56  ;;  %v2997_v25 = vcombine.high %v2989_v62, %v2989_v62 }
 0x2a3   : > { %16926 = vst [vmem:[#allocation70_spill] sm:$0xff] %v12793_v32  ;;  %16927 = vst [vmem:[#allocation162_spill] sm:$0xff] %v12797_v60  ;;  %v8262_v3 = vmul.f32 0.16666667, %v8134_v4  ;;  %v4609_v53 = vadd.f32 %v4481_v17, %v4327_v9  ;;  %v8263_v55 = vmul.f32 0.16666667, %v8135_v31  ;;  %v12803_v27 = vmul.f32 %v16898_v13, %v2989_v62 }
 0x2a4   : > { %v12800_v48 = vcombine.high %v2996_v24, %v2996_v24  ;;  %v16931_v44 = vrot.slane %v16930_v47, 7  ;;  %v8637_v36 = vcombine.low %v8260_v61, %v8261_v40  ;;  %v16078_v34 = vrot.slane %v12786_v33, 7  ;;  %v16949_v4 = vld [vmem:[#allocation3_spill] sm:$0xff]  ;;  %v16955_v60 = vld [vmem:[#allocation20_spill] sm:$0xff]  ;;  %v16958_v13 = vld [vmem:[#allocation113_spill] sm:$0xff] }
 0x2a5   : > { %16929 = vst [vmem:[#allocation164_spill] sm:$0xff] %v12803_v27  ;;  %v4891_v52 = vadd.f32 %v4763_v46, %v4609_v53  ;;  %v6029_v43 = vmul.f32 %v16620_v23, %v16923_v42  ;;  %v8638_v56 = vcombine.low %v8262_v3, %v8263_v55  ;;  %v12812_v9 = vmul.f32 %v16622_v1, %v2989_v62  ;;  %v16936_v53 = vld [vmem:[#allocation24_spill] sm:$0xff]  ;;  %v16957_v27 = vld [vmem:[#allocation21_spill] sm:$0xff] }
 0x2a6   : > { %16928 = vst [vmem:[#allocation163_spill] sm:$0xff] %v12800_v48  ;;  %v5605_v18 = vrot.slane %v16931_v44, 2  ;;  %v12815_v17 = vmul.f32 %v16712_v30, %v2997_v25  ;;  %v8645_v39 = vrot.slane %v8637_v36, %v10171_v7  ;;  %v6311_v38 = vmul.f32 %v16714_v19, %v2996_v24 }
 0x2a7   : > { %16932 = vst [vmem:[#allocation157_spill] sm:$0xff] %v12812_v9  ;;  %v12825_v61 = vmul.f32 %v16675_v63, %v12800_v48  ;;  %v8652_v31 = vrot.slane %v8638_v56, %v10171_v7  ;;  %v12829_v3 = vmul.f32 %v16907_v16, %v2989_v62  ;;  %v12832_v55 = vmul.f32 %v16936_v53, %v2997_v25  ;;  %v16961_v9 = vld [vmem:[#allocation115_spill] sm:$0xff] }
 0x2a8   : > { %16933 = vst [vmem:[#allocation165_spill] sm:$0xff] %v12815_v17  ;;  %v5607_v46 = vsel %vm10597_vm9, %v5605_v18, %v16078_v34  ;;  %v12835_v47 = vmul.f32 %v16903_v6, %v2996_v24  ;;  %v12839_v44 = vmul.f32 %v16904_v11, %v12800_v48  ;;  %v12842_v18 = vmul.f32 %v16913_v8, %v2989_v62  ;;  %v16943_v48 = vld [vmem:[#allocation99_spill] sm:$0xff] }
 0x2a9   : > { %16934 = vst [vmem:[#allocation166_spill] sm:$0xff] %v12825_v61  ;;  %v5875_v40 = vadd.f32 %v5607_v46, %v4891_v52  ;;  %16935 = vst [vmem:[#allocation167_spill] sm:$0xff] %v12829_v3  ;;  %v12845_v36 = vmul.f32 %v16910_v37, %v2996_v24  ;;  %v8653_v52 = vcombine.low %v8645_v39, %v8652_v31  ;;  %v16945_v39 = vld [vmem:[#allocation105_spill] sm:$0xff] }
 0x2aa   : > { %16937 = vst [vmem:[#allocation168_spill] sm:$0xff] %v12832_v55  ;;  %16938 = vst [vmem:[#allocation169_spill] sm:$0xff] %v12835_v47  ;;  %v3255_v17 = vmul.f32 %v16878_v29, %v16942_v35  ;;  %v3256_v62 = vmul.f32 %v16843_v57, %v16943_v48  ;;  %v16948_v46 = vld [vmem:[#allocation17_spill] sm:$0xff]  ;;  %v16950_v34 = vrot.slane %v12835_v47, 7  ;;  %v16952_v3 = vrot.slane %v12839_v44, 7 }
 0x2ab   : > { %16939 = vst [vmem:[#allocation170_spill] sm:$0xff] %v12839_v44  ;;  %16940 = vst [vmem:[#allocation171_spill] sm:$0xff] %v12842_v18  ;;  %v6157_v56 = vadd.f32 %v6029_v43, %v5875_v40  ;;  %9958 = vmatmul.mubr.msk.f32.gmra.mxu1 %vm9028_vm10, %v8653_v52  ;;  %v16946_v43 = vld [vmem:[#allocation5_spill] sm:$0xff]  ;;  %v16947_v40 = vld [vmem:[#allocation104_spill] sm:$0xff]  ;;  %v4401_v44 = vmul.f32 %v16555_v21, %v16945_v39  ;;  %v4403_v16 = vmul.f32 %v16957_v27, %v16764_v22 }
 0x2ac   : > { %16941 = vst [vmem:[#allocation172_spill] sm:$0xff] %v12845_v36  ;;  %v3257_v31 = vmul.f32 %v16946_v43, %v16945_v39  ;;  %v3258_v25 = vmul.f32 %v16948_v46, %v16947_v40  ;;  %v3435_v36 = vmul.f32 %v16949_v4, %v16942_v35  ;;  %v12866_v18 = vrot.slane %v16950_v34, 2 }
 0x2ad   : > { %v12856_v24 = vadd.f32 %v6311_v38, %v6157_v56  ;;  %v12870_v55 = vrot.slane %v16952_v3, 2  ;;  %v16954_v38 = vld [vmem:[#allocation10_spill] sm:$0xff]  ;;  %v3437_v56 = vmul.f32 %v16781_v50, %v16945_v39  ;;  %v12880_v35 = vmul.f32 %v16955_v60, %v16764_v22 }
 0x2ae   : > { %16951 = vst [vmem:[#allocation99_spill] sm:$0xff] %v12866_v18  ;;  %v3436_v52 = vmul.f32 %v16954_v38, %v16943_v48  ;;  %v9656_v47 = vrot.slane %v3435_v36, 9  ;;  %v4400_v34 = vmul.f32 %v16614_v41, %v16943_v48  ;;  %v4402_v2 = vmul.f32 %v16665_v51, %v16947_v40 }
 0x2af   : > { %16944 = vst [vmem:[#allocation100_spill] sm:$0xff] %v12856_v24  ;;  %16953 = vst [vmem:[#allocation105_spill] sm:$0xff] %v12870_v55  ;;  %v3438_v24 = vmul.f32 %v16849_v28, %v16947_v40  ;;  %v3808_v3 = vrot.slane %v3437_v56, 7  ;;  %v4682_v36 = vmul.f32 %v10610_v0, %v16958_v13  ;;  %v16959_v55 = vld [vmem:[#allocation117_spill] sm:$0xff]  ;;  %v16960_v40 = vld [vmem:[#allocation110_spill] sm:$0xff]  ;;  %v4685_v42 = vmul.f32 %v16567_v49, %v16961_v9 }
 0x2b0   : > { %16956 = vst [vmem:[#allocation104_spill] sm:$0xff] %v12880_v35  ;;  %v3805_v18 = vrot.slane %v3436_v52, 7  ;;  %v4683_v39 = vmul.f32 %v16563_v10, %v16959_v55  ;;  %v4984_v10 = vmul.f32 %v16570_v58, %v16959_v55 }
 0x2b1   : > { %v3811_v32 = vrot.slane %v3438_v24, 7  ;;  %v3810_v56 = vrot.slane %v3808_v3, 2  ;;  %v4684_v24 = vmul.f32 %v16565_v14, %v16960_v40 }
 0x2b2   : > { %v3806_v48 = vsel %vm10597_vm9, %v9656_v47, %v3805_v18  ;;  %v3807_v52 = vrot.slane %v3805_v18, 2  ;;  %v16962_v47 = vld [vmem:[#allocation9_spill] sm:$0xff] }
 0x2b3   : > { %v3813_v61 = vrot.slane %v3811_v32, 2  ;;  %v4246_v33 = vadd.f32 %v3806_v48, %v3255_v17  ;;  %v3812_v0 = vsel %vm10597_vm9, %v3810_v56, %v3811_v32  ;;  %v4983_v18 = vmul.f32 %v16962_v47, %v16958_v13  ;;  %v16964_v13 = vld [vmem:[#allocation36_spill] sm:$0xff] }
 0x2b4   : > { %v3809_v22 = vsel %vm10597_vm9, %v3807_v52, %v3808_v3  ;;  %v16963_v17 = vrot.slane %v12880_v35, 7  ;;  %v4248_v21 = vadd.f32 %v3812_v0, %v3257_v31  ;;  %v4985_v3 = vmul.f32 %v16571_v45, %v16960_v40 }
 0x2b5   : > { %v4247_v14 = vadd.f32 %v3809_v22, %v3256_v62  ;;  %v4528_v49 = vadd.f32 %v4400_v34, %v4246_v33  ;;  %v4986_v32 = vmul.f32 %v16572_v12, %v16961_v9  ;;  %v12919_v52 = vmul.f32 %v16964_v13, %v16868_v15 }
 0x2b6   : > { %v3815_v48 = vsel %vm10597_vm9, %v3813_v61, %v16963_v17  ;;  %v4530_v58 = vadd.f32 %v4402_v2, %v4248_v21  ;;  %v9672_v27 = vrot.slane %v4983_v18, 9  ;;  %v5353_v61 = vrot.slane %v4984_v10, 7 }
 0x2b7   : > { %v4249_v41 = vadd.f32 %v3815_v48, %v3258_v25  ;;  %16965 = vst [vmem:[#allocation113_spill] sm:$0xff] %v12919_v52  ;;  %v4529_v56 = vadd.f32 %v4401_v44, %v4247_v14  ;;  %v4810_v35 = vadd.f32 %v4682_v36, %v4528_v49  ;;  %v5356_v22 = vrot.slane %v4985_v3, 7  ;;  %v16968_v3 = vld [vmem:[#allocation54_spill] sm:$0xff] }
 0x2b8   : > { %v5359_v0 = vrot.slane %v4986_v32, 7  ;;  %v4812_v25 = vadd.f32 %v4684_v24, %v4530_v58  ;;  %v16105_v62 = vrot.slane %v12919_v52, 7  ;;  %v5948_v31 = vmul.f32 %v16619_v5, %v16959_v55  ;;  %v16967_v24 = vld [vmem:[#allocation62_spill] sm:$0xff] }
 0x2b9   : > { %v4531_v51 = vadd.f32 %v4403_v16, %v4249_v41  ;;  %v4811_v33 = vadd.f32 %v4683_v39, %v4529_v56  ;;  %v5354_v17 = vsel %vm10597_vm9, %v9672_v27, %v5353_v61  ;;  %v5355_v48 = vrot.slane %v5353_v61, 2  ;;  %v16969_v56 = vld [vmem:[#allocation60_spill] sm:$0xff] }
 0x2ba   : > { %v5358_v14 = vrot.slane %v5356_v22, 2  ;;  %v5361_v21 = vrot.slane %v5359_v0, 2  ;;  %v5794_v49 = vadd.f32 %v5354_v17, %v4810_v35  ;;  %v5949_v10 = vmul.f32 %v16620_v23, %v16960_v40 }
 0x2bb   : > { %v4813_v34 = vadd.f32 %v4685_v42, %v4531_v51  ;;  %v5950_v41 = vmul.f32 %v16621_v26, %v16961_v9  ;;  %v5357_v58 = vsel %vm10597_vm9, %v5355_v48, %v5356_v22  ;;  %v5951_v51 = vmul.f32 %v16622_v1, %v16868_v15  ;;  %v16966_v42 = vld [vmem:[#allocation124_spill] sm:$0xff] }
 0x2bc   : > { %v5360_v16 = vsel %vm10597_vm9, %v5358_v14, %v5359_v0  ;;  %v6230_v2 = vmul.f32 %v16712_v30, %v16966_v42  ;;  %v5363_v27 = vsel %vm10597_vm9, %v5361_v21, %v16105_v62  ;;  %v5795_v44 = vadd.f32 %v5357_v58, %v4811_v33  ;;  %v16971_v58 = vld [vmem:[#allocation57_spill] sm:$0xff] }
 0x2bd   : > { %v5796_v35 = vadd.f32 %v5360_v16, %v4812_v25  ;;  %v6076_v36 = vadd.f32 %v5948_v31, %v5794_v49  ;;  %v5797_v39 = vadd.f32 %v5363_v27, %v4813_v34  ;;  %v6231_v18 = vmul.f32 %v16714_v19, %v16967_v24  ;;  %v16970_v31 = vld [vmem:[#allocation35_spill] sm:$0xff]  ;;  %v16972_v16 = vld [vmem:[#allocation42_spill] sm:$0xff] }
 0x2be   : > { %v6232_v32 = vmul.f32 %v16675_v63, %v16968_v3  ;;  %v6233_v61 = vmul.f32 %v16803_v59, %v16969_v56  ;;  %v6077_v22 = vadd.f32 %v5949_v10, %v5795_v44  ;;  %v6531_v48 = vmul.f32 %v16936_v53, %v16966_v42 }
 0x2bf   : > { %v6078_v0 = vadd.f32 %v5950_v41, %v5796_v35  ;;  %v6358_v17 = vadd.f32 %v6230_v2, %v6076_v36  ;;  %v6079_v14 = vadd.f32 %v5951_v51, %v5797_v39  ;;  %v6532_v33 = vmul.f32 %v16903_v6, %v16967_v24  ;;  %v16974_v39 = vld [vmem:[#allocation43_spill] sm:$0xff]  ;;  %v16977_v35 = vld [vmem:[#allocation92_spill] sm:$0xff] }
 0x2c0   : > { %v6533_v25 = vmul.f32 %v16904_v11, %v16968_v3  ;;  %v6534_v34 = vmul.f32 %v16970_v31, %v16969_v56  ;;  %v6359_v21 = vadd.f32 %v6231_v18, %v6077_v22  ;;  %v12958_v10 = vmul.f32 %v16972_v16, %v16971_v58  ;;  %v16975_v18 = vld [vmem:[#allocation34_spill] sm:$0xff] }
 0x2c1   : > { %v6360_v49 = vadd.f32 %v6232_v32, %v6078_v0  ;;  %v9688_v41 = vrot.slane %v6531_v48, 9  ;;  %v6361_v2 = vadd.f32 %v6233_v61, %v6079_v14  ;;  %v6901_v27 = vrot.slane %v6532_v33, 7 }
 0x2c2   : > { %16973 = vst [vmem:[#allocation173_spill] sm:$0xff] %v12958_v10  ;;  %v6904_v44 = vrot.slane %v6533_v25, 7  ;;  %v6907_v51 = vrot.slane %v6534_v34, 7  ;;  %v7496_v36 = vmul.f32 %v16910_v37, %v16967_v24  ;;  %v7497_v62 = vmul.f32 %v16974_v39, %v16968_v3  ;;  %v16976_v25 = vld [vmem:[#allocation87_spill] sm:$0xff]  ;;  %v16979_v39 = vld [vmem:[#allocation82_spill] sm:$0xff] }
 0x2c3   : > { %v7498_v32 = vmul.f32 %v16975_v18, %v16969_v56  ;;  %v6902_v22 = vsel %vm10597_vm9, %v9688_v41, %v6901_v27  ;;  %v6903_v0 = vrot.slane %v6901_v27, 2  ;;  %v7499_v33 = vmul.f32 %v16913_v8, %v16971_v58 }
 0x2c4   : > { %v6906_v48 = vrot.slane %v6904_v44, 2  ;;  %v6909_v61 = vrot.slane %v6907_v51, 2  ;;  %v7342_v14 = vadd.f32 %v6902_v22, %v6358_v17  ;;  %v2117_v34 = vadd.f32 3.0, %v16976_v25 }
 0x2c5   : > { %v2129_v53 = vadd.f32 3.0, %v16977_v35  ;;  %v6905_v3 = vsel %vm10597_vm9, %v6903_v0, %v6904_v44  ;;  %v16978_v24 = vrot.slane %v12958_v10, 7  ;;  %v12983_v17 = vmul.f32 %v16946_v43, %v16917_v20 }
 0x2c6   : > { %v6908_v56 = vsel %vm10597_vm9, %v6906_v48, %v6907_v51  ;;  %v7343_v27 = vadd.f32 %v6905_v3, %v6359_v21  ;;  %v7624_v9 = vadd.f32 %v7496_v36, %v7342_v14  ;;  %v2158_v40 = vmax.f32 %v2117_v34, 0.0  ;;  %v16980_v51 = vld [vmem:[#allocation146_spill] sm:$0xff]  ;;  %v16981_v3 = vld [vmem:[#allocation103_spill] sm:$0xff] }
 0x2c7   : > { %v6911_v41 = vsel %vm10597_vm9, %v6909_v61, %v16978_v24  ;;  %v7344_v22 = vadd.f32 %v6908_v56, %v6360_v49  ;;  %v2170_v55 = vmax.f32 %v2129_v53, 0.0  ;;  %v12987_v44 = vmul.f32 %v16948_v46, %v16979_v39 }
 0x2c8   : > { %v7345_v42 = vadd.f32 %v6911_v41, %v6361_v2  ;;  %v12991_v0 = vmul.f32 %v16878_v29, %v16980_v51  ;;  %v7625_v48 = vadd.f32 %v7497_v62, %v7343_v27  ;;  %v7752_v10 = vadd.f32 3.0, %v7624_v9 }
 0x2c9   : > { %v7626_v24 = vadd.f32 %v7498_v32, %v7344_v22  ;;  %v2199_v20 = vmin.f32 %v2158_v40, 6.0  ;;  %v2211_v58 = vmin.f32 %v2170_v55, 6.0  ;;  %v12995_v56 = vmul.f32 %v16843_v57, %v16981_v3  ;;  %v16982_v22 = vld [vmem:[#allocation67_spill] sm:$0xff] }
 0x2ca   : > { %v7627_v61 = vadd.f32 %v7499_v33, %v7345_v42  ;;  %v3528_v53 = vmul.f32 %v16849_v28, %v16979_v39  ;;  %v7753_v21 = vadd.f32 3.0, %v7625_v48  ;;  %v7880_v36 = vmax.f32 %v7752_v10, 0.0  ;;  %v16984_v10 = vld [vmem:[#allocation101_spill] sm:$0xff] }
 0x2cb   : > { %v7754_v49 = vadd.f32 3.0, %v7626_v24  ;;  %v2240_v14 = vmul.f32 %v2199_v20, %v16976_v25  ;;  %v2252_v62 = vmul.f32 %v2211_v58, %v16977_v35  ;;  %v3529_v42 = vmul.f32 %v16955_v60, %v16980_v51 }
 0x2cc   : > { %v7755_v2 = vadd.f32 3.0, %v7627_v61  ;;  %v3530_v55 = vmul.f32 %v16954_v38, %v16981_v3  ;;  %v7881_v40 = vmax.f32 %v7753_v21, 0.0  ;;  %v8008_v34 = vmin.f32 %v7880_v36, 6.0 }
 0x2cd   : > { %v7882_v32 = vmax.f32 %v7754_v49, 0.0  ;;  %v2281_v41 = vmul.f32 0.16666667, %v2240_v14  ;;  %v2293_v27 = vmul.f32 0.16666667, %v2252_v62  ;;  %v13007_v52 = vmul.f32 %v16781_v50, %v16982_v22 }
 0x2ce   : > { %v7883_v33 = vmax.f32 %v7755_v2, 0.0  ;;  %v16985_v20 = vrot.slane %v16984_v10, 7  ;;  %v8009_v58 = vmin.f32 %v7881_v40, 6.0  ;;  %v8136_v60 = vmul.f32 %v8008_v34, %v7624_v9 }
 0x2cf   : > { %16983 = vst [vmem:[#allocation87_spill] sm:$0xff] %v13007_v52  ;;  %v8010_v35 = vmin.f32 %v7882_v32, 6.0  ;;  %v2795_v28 = vcombine.high %v2281_v41, %v2281_v41  ;;  %v13012_v38 = vrot.slane %v2281_v41, %v10171_v7  ;;  %v2999_v21 = vcombine.high %v2293_v27, %v2293_v27 }
 0x2d0   : > { %v4060_v25 = vrot.slane %v16985_v20, 2  ;;  %v8011_v15 = vmin.f32 %v7883_v33, 6.0  ;;  %v13015_v49 = vrot.slane %v2293_v27, %v10171_v7  ;;  %v8137_v2 = vmul.f32 %v8009_v58, %v7625_v48 }
 0x2d1   : > { %16986 = vst [vmem:[#allocation92_spill] sm:$0xff] %v13012_v38  ;;  %v8138_v36 = vmul.f32 %v8010_v35, %v7626_v24  ;;  %v8264_v62 = vmul.f32 0.16666667, %v8136_v60  ;;  %v13018_v50 = vrot.slane %v2795_v28, %v10171_v7  ;;  %v13022_v40 = vcombine.high %v13012_v38, %v13012_v38 }
 0x2d2   : > { %v8139_v14 = vmul.f32 %v8011_v15, %v7627_v61  ;;  %v13026_v9 = vmul.f32 %v16878_v29, %v13012_v38  ;;  %v13030_v32 = vmul.f32 %v16949_v4, %v13012_v38  ;;  %v8265_v33 = vmul.f32 0.16666667, %v8137_v2 }
 0x2d3   : > { %16987 = vst [vmem:[#allocation101_spill] sm:$0xff] %v13018_v50  ;;  %16988 = vst [vmem:[#allocation174_spill] sm:$0xff] %v13022_v40  ;;  %v8266_v48 = vmul.f32 0.16666667, %v8138_v36  ;;  %v13034_v15 = vmul.f32 %v16962_v47, %v13012_v38  ;;  %v13038_v28 = vcombine.high %v13018_v50, %v13018_v50  ;;  %v13042_v61 = vrot.slane %v2999_v21, %v10171_v7  ;;  %v17006_v50 = vld [vmem:[#allocation23_spill] sm:$0xff]  ;;  %v17010_v47 = vld [vmem:[#allocation148_spill] sm:$0xff] }
 0x2d4   : > { %16989 = vst [vmem:[#allocation175_spill] sm:$0xff] %v13026_v9  ;;  %16990 = vst [vmem:[#allocation176_spill] sm:$0xff] %v13030_v32  ;;  %v8267_v24 = vmul.f32 0.16666667, %v8139_v14  ;;  %v13046_v34 = vcombine.high %v13015_v49, %v13015_v49  ;;  %v8654_v41 = vcombine.low %v8264_v62, %v8265_v33  ;;  %v4061_v20 = vrot.slane %v3528_v53, 7  ;;  %v17001_v32 = vld [vmem:[#allocation155_spill] sm:$0xff] }
 0x2d5   : > { %16991 = vst [vmem:[#allocation177_spill] sm:$0xff] %v13034_v15  ;;  %16992 = vst [vmem:[#allocation178_spill] sm:$0xff] %v13038_v28  ;;  %v13051_v58 = vcombine.high %v13042_v61, %v13042_v61  ;;  %v4064_v35 = vrot.slane %v3529_v42, 7  ;;  %v4067_v2 = vrot.slane %v3530_v55, 7  ;;  %v16995_v55 = vld [vmem:[#allocation21_spill] sm:$0xff]  ;;  %v17002_v15 = vld [vmem:[#allocation26_spill] sm:$0xff] }
 0x2d6   : > { %v8655_v27 = vcombine.low %v8266_v48, %v8267_v24  ;;  %v8662_v21 = vrot.slane %v8654_v41, %v10171_v7  ;;  %v4062_v60 = vsel %vm10597_vm9, %v4060_v25, %v4061_v20  ;;  %v4063_v62 = vrot.slane %v4061_v20, 2  ;;  %v16994_v24 = vld [vmem:[#allocation14_spill] sm:$0xff] }
 0x2d7   : > { %16993 = vst [vmem:[#allocation179_spill] sm:$0xff] %v13051_v58  ;;  %v4066_v33 = vrot.slane %v4064_v35, 2  ;;  %v4069_v48 = vrot.slane %v4067_v2, 2  ;;  %v4328_v53 = vadd.f32 %v4062_v60, %v12983_v17  ;;  %v4482_v10 = vmul.f32 %v16994_v24, %v16979_v39  ;;  %v17000_v39 = vld [vmem:[#allocation11_spill] sm:$0xff] }
 0x2d8   : > { %v8669_v14 = vrot.slane %v8655_v27, %v10171_v7  ;;  %v4065_v42 = vsel %vm10597_vm9, %v4063_v62, %v4064_v35  ;;  %v4483_v41 = vmul.f32 %v16995_v55, %v16980_v51  ;;  %v16996_v27 = vld [vmem:[#allocation7_spill] sm:$0xff]  ;;  %v16997_v20 = vrot.slane %v13007_v52, 7 }
 0x2d9   : > { %v4484_v36 = vmul.f32 %v16996_v27, %v16981_v3  ;;  %v4068_v25 = vsel %vm10597_vm9, %v4066_v33, %v4067_v2  ;;  %v4329_v60 = vadd.f32 %v4065_v42, %v12987_v44  ;;  %v4610_v3 = vadd.f32 %v4482_v10, %v4328_v53  ;;  %v16999_v51 = vld [vmem:[#allocation151_spill] sm:$0xff]  ;;  %v17007_v53 = vld [vmem:[#allocation22_spill] sm:$0xff] }
 0x2da   : > { %v8670_v9 = vcombine.low %v8662_v21, %v8669_v14  ;;  %v4071_v17 = vsel %vm10597_vm9, %v4069_v48, %v16997_v20  ;;  %v16998_v21 = vld [vmem:[#allocation16_spill] sm:$0xff]  ;;  %v4330_v35 = vadd.f32 %v4068_v25, %v12991_v0  ;;  %v4764_v2 = vmul.f32 %v17000_v39, %v16999_v51  ;;  %v17003_v48 = vld [vmem:[#allocation145_spill] sm:$0xff]  ;;  %v17005_v42 = vld [vmem:[#allocation159_spill] sm:$0xff] }
 0x2db   : > { %v4485_v14 = vmul.f32 %v16998_v21, %v16982_v22  ;;  %v4331_v62 = vadd.f32 %v4071_v17, %v12995_v56  ;;  %v4611_v33 = vadd.f32 %v4483_v41, %v4329_v60  ;;  %v4765_v28 = vmul.f32 %v17002_v15, %v17001_v32  ;;  %v17004_v20 = vld [vmem:[#allocation8_spill] sm:$0xff]  ;;  %v17008_v25 = vld [vmem:[#allocation98_spill] sm:$0xff] }
 0x2dc   : > { %9960 = vmatprep.mubr.msk.f32.mxu1 %vm9028_vm10, %v8670_v9  ;;  %v4766_v44 = vmul.f32 %v17004_v20, %v17003_v48  ;;  %v4767_v40 = vmul.f32 %v17006_v50, %v17005_v42  ;;  %v4612_v38 = vadd.f32 %v4484_v36, %v4330_v35  ;;  %v4892_v4 = vadd.f32 %v4764_v2, %v4610_v3 }
 0x2dd   : > { %v4613_v9 = vadd.f32 %v4485_v14, %v4331_v62  ;;  %v5076_v0 = vmul.f32 %v16572_v12, %v17001_v32  ;;  %v4893_v56 = vadd.f32 %v4765_v28, %v4611_v33  ;;  %v5077_v10 = vmul.f32 %v16964_v13, %v17003_v48 }
 0x2de   : > { %v5078_v41 = vmul.f32 %v17007_v53, %v17005_v42  ;;  %v13095_v17 = vmul.f32 %v16571_v45, %v17008_v25  ;;  %v4894_v60 = vadd.f32 %v4766_v44, %v4612_v38  ;;  %v17011_v36 = vrot.slane %v17010_v47, 7 }
 0x2df   : > { %v4895_v51 = vadd.f32 %v4767_v40, %v4613_v9  ;;  %v5609_v3 = vrot.slane %v5076_v0, 7  ;;  %v5612_v35 = vrot.slane %v5077_v10, 7  ;;  %v6030_v2 = vmul.f32 %v16621_v26, %v17001_v32 }
 0x2e0   : > { %17009 = vst [vmem:[#allocation14_spill] sm:$0xff] %v13095_v17  ;;  %v5608_v14 = vrot.slane %v17011_v36, 2  ;;  %v5615_v62 = vrot.slane %v5078_v41, 7  ;;  %v16146_v28 = vrot.slane %v13095_v17, 7  ;;  %v6031_v7 = vmul.f32 %v16622_v1, %v17003_v48 }
 0x2e1   : > { %v5611_v13 = vrot.slane %v5609_v3, 2  ;;  %v6032_v38 = vmul.f32 %v16619_v5, %v17005_v42  ;;  %v5614_v47 = vrot.slane %v5612_v35, 2  ;;  %v6033_v9 = vmul.f32 %v16620_v23, %v17008_v25  ;;  %v17013_v25 = vld [vmem:[#allocation166_spill] sm:$0xff] }
 0x2e2   : > { %v5610_v33 = vsel %vm10597_vm9, %v5608_v14, %v5609_v3  ;;  %v5617_v40 = vrot.slane %v5615_v62, 2  ;;  %v6313_v10 = vmul.f32 %v16803_v59, %v13015_v49  ;;  %v6314_v41 = vmul.f32 %v16712_v30, %v13046_v34 }
 0x2e3   : > { %v5876_v44 = vadd.f32 %v5610_v33, %v4892_v4  ;;  %v5613_v0 = vsel %vm10597_vm9, %v5611_v13, %v5612_v35  ;;  %v6315_v36 = vmul.f32 %v16714_v19, %v13042_v61  ;;  %v5616_v14 = vsel %vm10597_vm9, %v5614_v47, %v5615_v62 }
 0x2e4   : > { %v5619_v4 = vsel %vm10597_vm9, %v5617_v40, %v16146_v28  ;;  %v5877_v3 = vadd.f32 %v5613_v0, %v4893_v56  ;;  %v5878_v13 = vadd.f32 %v5616_v14, %v4894_v60  ;;  %v13126_v42 = vmul.f32 %v16675_v63, %v13051_v58  ;;  %v17037_v28 = vld [vmem:[#allocation15_spill] sm:$0xff] }
 0x2e5   : > { %v6158_v33 = vadd.f32 %v6030_v2, %v5876_v44  ;;  %v5879_v35 = vadd.f32 %v5619_v4, %v4895_v51  ;;  %v6624_v48 = vmul.f32 %v16970_v31, %v13015_v49  ;;  %v6625_v62 = vmul.f32 %v16972_v16, %v13046_v34  ;;  %v17018_v4 = vld [vmem:[#allocation105_spill] sm:$0xff] }
 0x2e6   : > { %17012 = vst [vmem:[#allocation11_spill] sm:$0xff] %v13126_v42  ;;  %v6159_v32 = vadd.f32 %v6031_v7, %v5877_v3  ;;  %v13135_v47 = vmul.f32 %v16903_v6, %v13042_v61  ;;  %v6160_v56 = vadd.f32 %v6032_v38, %v5878_v13  ;;  %v13139_v51 = vmul.f32 %v16904_v11, %v13051_v58  ;;  %v17038_v58 = vld [vmem:[#allocation104_spill] sm:$0xff] }
 0x2e7   : > { %v6440_v52 = vadd.f32 %v17013_v25, %v6158_v33  ;;  %v6161_v60 = vadd.f32 %v6033_v9, %v5879_v35  ;;  %v7157_v2 = vrot.slane %v6624_v48, 7  ;;  %v7160_v44 = vrot.slane %v6625_v62, 7  ;;  %v17023_v33 = vld [vmem:[#allocation52_spill] sm:$0xff] }
 0x2e8   : > { %17014 = vst [vmem:[#allocation26_spill] sm:$0xff] %v13135_v47  ;;  %17015 = vst [vmem:[#allocation148_spill] sm:$0xff] %v13139_v51  ;;  %v6441_v40 = vadd.f32 %v6313_v10, %v6159_v32  ;;  %v16145_v7 = vrot.slane %v13135_v47, 7  ;;  %v7578_v25 = vmul.f32 %v16975_v18, %v13015_v49  ;;  %v13144_v0 = vadd.f32 %v6314_v41, %v6160_v56  ;;  %v17028_v56 = vld [vmem:[#allocation107_spill] sm:$0xff] }
 0x2e9   : > { %v13146_v14 = vadd.f32 %v6315_v36, %v6161_v60  ;;  %v7158_v38 = vsel %vm10597_vm9, %v17018_v4, %v7157_v2  ;;  %v7159_v9 = vrot.slane %v7157_v2, 2  ;;  %v13151_v3 = vrot.slane %v7160_v44, 2  ;;  %v17029_v60 = vld [vmem:[#allocation106_spill] sm:$0xff]  ;;  %v17031_v4 = vld [vmem:[#allocation109_spill] sm:$0xff] }
 0x2ea   : > { %17016 = vst [vmem:[#allocation166_spill] sm:$0xff] %v13144_v0  ;;  %v13155_v32 = vrot.slane %v16145_v7, 2  ;;  %v16144_v48 = vrot.slane %v13139_v51, 7  ;;  %v7424_v10 = vadd.f32 %v7158_v38, %v6440_v52  ;;  %v13162_v41 = vmul.f32 %v16913_v8, %v13046_v34  ;;  %v17036_v7 = vld [vmem:[#allocation91_spill] sm:$0xff] }
 0x2eb   : > { %17017 = vst [vmem:[#allocation180_spill] sm:$0xff] %v13146_v14  ;;  %17019 = vst [vmem:[#allocation105_spill] sm:$0xff] %v13151_v3  ;;  %v7161_v49 = vsel %vm10597_vm9, %v7159_v9, %v7160_v44  ;;  %v13166_v36 = vmul.f32 %v16910_v37, %v13042_v61  ;;  %v13170_v13 = vcombine.high %v17023_v33, %v17023_v33  ;;  %v17030_v61 = vld [vmem:[#allocation108_spill] sm:$0xff]  ;;  %v17032_v9 = vld [vmem:[#allocation10_spill] sm:$0xff]  ;;  %v17039_v14 = vrot.slane %v17038_v58, 7 }
 0x2ec   : > { %17020 = vst [vmem:[#allocation181_spill] sm:$0xff] %v13155_v32  ;;  %17021 = vst [vmem:[#allocation182_spill] sm:$0xff] %v13162_v41  ;;  %v13174_v35 = vrot.slane %v16144_v48, 2  ;;  %v13176_v52 = vadd.f32 %v7161_v49, %v6441_v40  ;;  %v13178_v62 = vadd.f32 %v7578_v25, %v7424_v10  ;;  %v3259_v34 = vmul.f32 %v16878_v29, %v17028_v56  ;;  %v17034_v25 = vld [vmem:[#allocation12_spill] sm:$0xff]  ;;  %v17035_v49 = vld [vmem:[#allocation13_spill] sm:$0xff] }
 0x2ed   : > { %17022 = vst [vmem:[#allocation183_spill] sm:$0xff] %v13166_v36  ;;  %17024 = vst [vmem:[#allocation184_spill] sm:$0xff] %v13170_v13  ;;  %v3260_v2 = vmul.f32 %v16843_v57, %v17029_v60  ;;  %v3261_v44 = vmul.f32 %v16946_v43, %v17030_v61  ;;  %v3262_v38 = vmul.f32 %v16948_v46, %v17031_v4  ;;  %v3816_v0 = vrot.slane %v17039_v14, 2  ;;  %v17040_v14 = vld [vmem:[#allocation114_spill] sm:$0xff]  ;;  %v17046_v57 = vld [vmem:[#allocation113_spill] sm:$0xff] }
 0x2ee   : > { %17025 = vst [vmem:[#allocation185_spill] sm:$0xff] %v13174_v35  ;;  %17026 = vst [vmem:[#allocation186_spill] sm:$0xff] %v13176_v52  ;;  %v3440_v48 = vmul.f32 %v17032_v9, %v17029_v60  ;;  %v13191_v40 = vadd.f32 3.0, %v13178_v62  ;;  %v3441_v10 = vmul.f32 %v17034_v25, %v17030_v61  ;;  %v3442_v56 = vmul.f32 %v17035_v49, %v17031_v4  ;;  %v17044_v9 = vld [vmem:[#allocation121_spill] sm:$0xff] }
 0x2ef   : > { %17027 = vst [vmem:[#allocation187_spill] sm:$0xff] %v13178_v62  ;;  %v3443_v36 = vmul.f32 %v17037_v28, %v17036_v7  ;;  %v4404_v51 = vmul.f32 %v16996_v27, %v17029_v60  ;;  %v4405_v3 = vmul.f32 %v16998_v21, %v17030_v61  ;;  %v4406_v41 = vmul.f32 %v16994_v24, %v17031_v4  ;;  %v17041_v61 = vld [vmem:[#allocation120_spill] sm:$0xff] }
 0x2f0   : > { %17033 = vst [vmem:[#allocation107_spill] sm:$0xff] %v13191_v40  ;;  %v3817_v32 = vrot.slane %v3440_v48, 7  ;;  %v3820_v47 = vrot.slane %v3441_v10, 7  ;;  %v3823_v62 = vrot.slane %v3442_v56, 7  ;;  %v4407_v58 = vmul.f32 %v16995_v55, %v17036_v7  ;;  %v17042_v4 = vld [vmem:[#allocation116_spill] sm:$0xff] }
 0x2f1   : > { %v3826_v40 = vrot.slane %v3443_v36, 7  ;;  %v4686_v48 = vmul.f32 %v17004_v20, %v17040_v14  ;;  %v4687_v10 = vmul.f32 %v17006_v50, %v17041_v61  ;;  %v4688_v56 = vmul.f32 %v17000_v39, %v17042_v4 }
 0x2f2   : > { %v3818_v52 = vsel %vm10597_vm9, %v3816_v0, %v3817_v32  ;;  %v3819_v29 = vrot.slane %v3817_v32, 2  ;;  %v3822_v60 = vrot.slane %v3820_v47, 2  ;;  %v3825_v16 = vrot.slane %v3823_v62, 2  ;;  %v17043_v0 = vld [vmem:[#allocation122_spill] sm:$0xff] }
 0x2f3   : > { %v4250_v42 = vadd.f32 %v3818_v52, %v3259_v34  ;;  %v4689_v32 = vmul.f32 %v17002_v15, %v17043_v0  ;;  %v4988_v7 = vmul.f32 %v17007_v53, %v17041_v61  ;;  %v17045_v53 = vld [vmem:[#allocation28_spill] sm:$0xff] }
 0x2f4   : > { %v3821_v36 = vsel %vm10597_vm9, %v3819_v29, %v3820_v47  ;;  %v3824_v20 = vsel %vm10597_vm9, %v3822_v60, %v3823_v62  ;;  %v3827_v52 = vsel %vm10597_vm9, %v3825_v16, %v3826_v40  ;;  %v4989_v29 = vmul.f32 %v16571_v45, %v17042_v4 }
 0x2f5   : > { %v4251_v34 = vadd.f32 %v3821_v36, %v3260_v2  ;;  %v4532_v50 = vadd.f32 %v4404_v51, %v4250_v42  ;;  %v4252_v21 = vadd.f32 %v3824_v20, %v3261_v44  ;;  %v4253_v27 = vadd.f32 %v3827_v52, %v3262_v38 }
 0x2f6   : > { %v4990_v47 = vmul.f32 %v16572_v12, %v17043_v0  ;;  %v4991_v35 = vmul.f32 %v17045_v53, %v17044_v9  ;;  %v17047_v62 = vrot.slane %v17046_v57, 7  ;;  %v5365_v2 = vrot.slane %v4988_v7, 7  ;;  %v17057_v53 = vld [vmem:[#allocation68_spill] sm:$0xff] }
 0x2f7   : > { %v4533_v14 = vadd.f32 %v4405_v3, %v4251_v34  ;;  %v4814_v25 = vadd.f32 %v4686_v48, %v4532_v50  ;;  %v4534_v17 = vadd.f32 %v4406_v41, %v4252_v21  ;;  %v4535_v16 = vadd.f32 %v4407_v58, %v4253_v27  ;;  %v17049_v34 = vld [vmem:[#allocation46_spill] sm:$0xff] }
 0x2f8   : > { %v5364_v60 = vrot.slane %v17047_v62, 2  ;;  %v5368_v42 = vrot.slane %v4989_v29, 7  ;;  %v5371_v51 = vrot.slane %v4990_v47, 7  ;;  %v5374_v44 = vrot.slane %v4991_v35, 7  ;;  %v17048_v35 = vld [vmem:[#allocation57_spill] sm:$0xff]  ;;  %v17050_v47 = vld [vmem:[#allocation58_spill] sm:$0xff] }
 0x2f9   : > { %v4815_v20 = vadd.f32 %v4687_v10, %v4533_v14  ;;  %v5952_v38 = vmul.f32 %v16619_v5, %v17041_v61  ;;  %v4816_v40 = vadd.f32 %v4688_v56, %v4534_v17  ;;  %v4817_v36 = vadd.f32 %v4689_v32, %v4535_v16 }
 0x2fa   : > { %v5366_v50 = vsel %vm10597_vm9, %v5364_v60, %v5365_v2  ;;  %v5367_v3 = vrot.slane %v5365_v2, 2  ;;  %v5370_v48 = vrot.slane %v5368_v42, 2  ;;  %v5373_v52 = vrot.slane %v5371_v51, 2 }
 0x2fb   : > { %v5798_v57 = vadd.f32 %v5366_v50, %v4814_v25  ;;  %v5953_v27 = vmul.f32 %v16620_v23, %v17042_v4  ;;  %v5954_v41 = vmul.f32 %v16621_v26, %v17043_v0  ;;  %v5955_v17 = vmul.f32 %v16622_v1, %v17044_v9 }
 0x2fc   : > { %v5369_v21 = vsel %vm10597_vm9, %v5367_v3, %v5368_v42  ;;  %v6234_v58 = vmul.f32 %v16712_v30, %v17048_v35  ;;  %v5372_v14 = vsel %vm10597_vm9, %v5370_v48, %v5371_v51  ;;  %v5375_v25 = vsel %vm10597_vm9, %v5373_v52, %v5374_v44  ;;  %v17052_v3 = vld [vmem:[#allocation173_spill] sm:$0xff] }
 0x2fd   : > { %v5799_v10 = vadd.f32 %v5369_v21, %v4815_v20  ;;  %v6080_v56 = vadd.f32 %v5952_v38, %v5798_v57  ;;  %v5800_v32 = vadd.f32 %v5372_v14, %v4816_v40  ;;  %v5801_v7 = vadd.f32 %v5375_v25, %v4817_v36  ;;  %v17051_v36 = vld [vmem:[#allocation33_spill] sm:$0xff] }
 0x2fe   : > { %v6235_v29 = vmul.f32 %v16714_v19, %v17049_v34  ;;  %v6236_v62 = vmul.f32 %v16675_v63, %v17050_v47  ;;  %v6237_v16 = vmul.f32 %v16803_v59, %v17023_v33  ;;  %v6536_v42 = vmul.f32 %v16903_v6, %v17049_v34 }
 0x2ff   : > { %v6081_v60 = vadd.f32 %v5953_v27, %v5799_v10  ;;  %v6362_v2 = vadd.f32 %v6234_v58, %v6080_v56  ;;  %v6082_v51 = vadd.f32 %v5954_v41, %v5800_v32  ;;  %v6083_v44 = vadd.f32 %v5955_v17, %v5801_v7 }
 0x300   : > { %v6537_v20 = vmul.f32 %v16904_v11, %v17050_v47  ;;  %v6538_v38 = vmul.f32 %v16970_v31, %v17023_v33  ;;  %v6539_v50 = vmul.f32 %v17051_v36, %v13170_v13  ;;  %v17053_v48 = vrot.slane %v17052_v3, 7 }
 0x301   : > { %v6363_v40 = vadd.f32 %v6235_v29, %v6081_v60  ;;  %v6913_v57 = vrot.slane %v6536_v42, 7  ;;  %v6364_v27 = vadd.f32 %v6236_v62, %v6082_v51  ;;  %v6365_v21 = vadd.f32 %v6237_v16, %v6083_v44  ;;  %v17054_v29 = vld [vmem:[#allocation43_spill] sm:$0xff]  ;;  %v17055_v51 = vld [vmem:[#allocation102_spill] sm:$0xff] }
 0x302   : > { %v6912_v52 = vrot.slane %v17053_v48, 2  ;;  %v6916_v58 = vrot.slane %v6537_v20, 7  ;;  %v6919_v14 = vrot.slane %v6538_v38, 7  ;;  %v6922_v25 = vrot.slane %v6539_v50, 7 }
 0x303   : > { %v6915_v17 = vrot.slane %v6913_v57, 2  ;;  %v7500_v10 = vmul.f32 %v16910_v37, %v17049_v34  ;;  %v7501_v60 = vmul.f32 %v17054_v29, %v17050_v47  ;;  %v7502_v16 = vmul.f32 %v16975_v18, %v17023_v33 }
 0x304   : > { %v6914_v41 = vsel %vm10597_vm9, %v6912_v52, %v6913_v57  ;;  %v6918_v56 = vrot.slane %v6916_v58, 2  ;;  %v6921_v32 = vrot.slane %v6919_v14, 2  ;;  %v7503_v42 = vmul.f32 %v16913_v8, %v13170_v13  ;;  %v17056_v57 = vld [vmem:[#allocation89_spill] sm:$0xff] }
 0x305   : > { %v7346_v7 = vadd.f32 %v6914_v41, %v6362_v2  ;;  %v6917_v62 = vsel %vm10597_vm9, %v6915_v17, %v6916_v58  ;;  %v2118_v44 = vadd.f32 3.0, %v17055_v51  ;;  %v2130_v58 = vadd.f32 3.0, %v17056_v57 }
 0x306   : > { %v6920_v20 = vsel %vm10597_vm9, %v6918_v56, %v6919_v14  ;;  %v6923_v2 = vsel %vm10597_vm9, %v6921_v32, %v6922_v25  ;;  %v7347_v38 = vadd.f32 %v6917_v62, %v6363_v40  ;;  %v13289_v13 = vcombine.high %v17057_v53, %v17057_v53 }
 0x307   : > { %v7628_v50 = vadd.f32 %v7500_v10, %v7346_v7  ;;  %v7348_v3 = vadd.f32 %v6920_v20, %v6364_v27  ;;  %v7349_v48 = vadd.f32 %v6923_v2, %v6365_v21  ;;  %v2159_v52 = vmax.f32 %v2118_v44, 0.0 }
 0x308   : > { %v7629_v41 = vadd.f32 %v7501_v60, %v7347_v38  ;;  %17058 = vst [vmem:[#allocation106_spill] sm:$0xff] %v13289_v13  ;;  %v3341_v33 = vmul.f32 %v16946_v43, %v16982_v22  ;;  %v2171_v25 = vmax.f32 %v2130_v58, 0.0  ;;  %v3342_v27 = vmul.f32 %v16948_v46, %v17057_v53 }
 0x309   : > { %v7756_v17 = vadd.f32 3.0, %v7628_v50  ;;  %v7630_v14 = vadd.f32 %v7502_v16, %v7348_v3  ;;  %v7631_v56 = vadd.f32 %v7503_v42, %v7349_v48  ;;  %v2200_v47 = vmin.f32 %v2159_v52, 6.0  ;;  %v17059_v42 = vld [vmem:[#allocation87_spill] sm:$0xff] }
 0x30a   : > { %v7757_v40 = vadd.f32 3.0, %v7629_v41  ;;  %v3532_v21 = vmul.f32 %v17035_v49, %v17057_v53  ;;  %v2212_v62 = vmin.f32 %v2171_v25, 6.0  ;;  %v3533_v16 = vmul.f32 %v17037_v28, %v13289_v13  ;;  %v17061_v25 = vld [vmem:[#allocation2_spill] sm:$0xff] }
 0x30b   : > { %v7884_v10 = vmax.f32 %v7756_v17, 0.0  ;;  %v7758_v32 = vadd.f32 3.0, %v7630_v14  ;;  %v7759_v7 = vadd.f32 3.0, %v7631_v56  ;;  %v2241_v60 = vmul.f32 %v2200_v47, %v17055_v51 }
 0x30c   : > { %v7885_v44 = vmax.f32 %v7757_v40, 0.0  ;;  %v17060_v2 = vrot.slane %v17059_v42, 7  ;;  %v2253_v58 = vmul.f32 %v2212_v62, %v17056_v57  ;;  %v4073_v34 = vrot.slane %v3532_v21, 7 }
 0x30d   : > { %v8012_v20 = vmin.f32 %v7884_v10, 6.0  ;;  %v7886_v3 = vmax.f32 %v7758_v32, 0.0  ;;  %v7887_v48 = vmax.f32 %v7759_v7, 0.0  ;;  %v2282_v52 = vmul.f32 0.16666667, %v2241_v60 }
 0x30e   : > { %v4072_v38 = vrot.slane %v17060_v2, 2  ;;  %v8013_v17 = vmin.f32 %v7885_v44, 6.0  ;;  %v4076_v9 = vrot.slane %v3533_v16, 7  ;;  %v2294_v4 = vmul.f32 0.16666667, %v2253_v58 }
 0x30f   : > { %v8140_v22 = vmul.f32 %v8012_v20, %v7628_v50  ;;  %v8014_v0 = vmin.f32 %v7886_v3, 6.0  ;;  %v8015_v47 = vmin.f32 %v7887_v48, 6.0  ;;  %v2812_v51 = vcombine.high %v2282_v52, %v2282_v52 }
 0x310   : > { %v13304_v40 = vrot.slane %v2282_v52, %v17061_v25  ;;  %v8141_v10 = vmul.f32 %v8013_v17, %v7629_v41  ;;  %v4074_v32 = vsel %vm10597_vm9, %v4072_v38, %v4073_v34  ;;  %v3022_v62 = vrot.slane %v2294_v4, %v17061_v25  ;;  %v17066_v38 = vld [vmem:[#allocation98_spill] sm:$0xff]  ;;  %v17067_v52 = vld [vmem:[#allocation161_spill] sm:$0xff] }
 0x311   : > { %v8268_v28 = vmul.f32 0.16666667, %v8140_v22  ;;  %v8142_v7 = vmul.f32 %v8014_v0, %v7630_v14  ;;  %v8143_v60 = vmul.f32 %v8015_v47, %v7631_v56  ;;  %v13309_v57 = vrot.slane %v2812_v51, %v17061_v25  ;;  %v17068_v17 = vld [vmem:[#allocation14_spill] sm:$0xff] }
 0x312   : > { %17062 = vst [vmem:[#allocation108_spill] sm:$0xff] %v13304_v40  ;;  %v13313_v50 = vcombine.high %v13304_v40, %v13304_v40  ;;  %v8269_v21 = vmul.f32 0.16666667, %v8141_v10  ;;  %v4075_v44 = vrot.slane %v4073_v34, 2  ;;  %v4332_v20 = vadd.f32 %v4074_v32, %v3341_v33 }
 0x313   : > { %17063 = vst [vmem:[#allocation109_spill] sm:$0xff] %v13309_v57  ;;  %v8270_v41 = vmul.f32 0.16666667, %v8142_v7  ;;  %v8271_v22 = vmul.f32 0.16666667, %v8143_v60  ;;  %v13318_v16 = vcombine.high %v13309_v57, %v13309_v57  ;;  %v4486_v0 = vmul.f32 %v16994_v24, %v17057_v53  ;;  %v17083_v53 = vld [vmem:[#allocation157_spill] sm:$0xff] }
 0x314   : > { %17064 = vst [vmem:[#allocation91_spill] sm:$0xff] %v13313_v50  ;;  %v8671_v14 = vcombine.low %v8268_v28, %v8269_v21  ;;  %v3023_v56 = vcombine.high %v3022_v62, %v3022_v62  ;;  %v4077_v42 = vsel %vm10597_vm9, %v4075_v44, %v4076_v9  ;;  %v4487_v2 = vmul.f32 %v16995_v55, %v13289_v13  ;;  %v17085_v57 = vld [vmem:[#allocation119_spill] sm:$0xff] }
 0x315   : > { %17065 = vst [vmem:[#allocation104_spill] sm:$0xff] %v13318_v16  ;;  %v8672_v4 = vcombine.low %v8270_v41, %v8271_v22  ;;  %v4333_v34 = vadd.f32 %v4077_v42, %v3342_v27  ;;  %v4614_v33 = vadd.f32 %v4486_v0, %v4332_v20  ;;  %v4768_v3 = vmul.f32 %v17000_v39, %v17066_v38 }
 0x316   : > { %v8679_v48 = vrot.slane %v8671_v14, %v17061_v25  ;;  %v4769_v58 = vmul.f32 %v17002_v15, %v17067_v52  ;;  %v5080_v28 = vmul.f32 %v16572_v12, %v17067_v52  ;;  %v17069_v47 = vrot.slane %v17068_v17, 7  ;;  %v17073_v17 = vld [vmem:[#allocation110_spill] sm:$0xff] }
 0x317   : > { %v8686_v51 = vrot.slane %v8672_v4, %v17061_v25  ;;  %v4615_v10 = vadd.f32 %v4487_v2, %v4333_v34  ;;  %v4896_v32 = vadd.f32 %v4768_v3, %v4614_v33  ;;  %v6034_v27 = vmul.f32 %v16621_v26, %v17067_v52  ;;  %v17071_v33 = vld [vmem:[#allocation117_spill] sm:$0xff]  ;;  %v17072_v3 = vld [vmem:[#allocation6_spill] sm:$0xff] }
 0x318   : > { %v5620_v9 = vrot.slane %v17069_v47, 2  ;;  %v5621_v7 = vrot.slane %v5080_v28, 7  ;;  %v6317_v60 = vmul.f32 %v16803_v59, %v3022_v62  ;;  %v6628_v21 = vmul.f32 %v16970_v31, %v3022_v62 }
 0x319   : > { %v6629_v44 = vmul.f32 %v17051_v36, %v3023_v56  ;;  %v8687_v20 = vcombine.low %v8679_v48, %v8686_v51  ;;  %v4897_v41 = vadd.f32 %v4769_v58, %v4615_v10  ;;  %v7582_v22 = vmul.f32 %v16975_v18, %v3022_v62  ;;  %v17074_v58 = vld [vmem:[#allocation115_spill] sm:$0xff]  ;;  %v17077_v51 = vld [vmem:[#allocation185_spill] sm:$0xff] }
 0x31a   : > { %v13343_v0 = vmul.f32 %v16913_v8, %v3023_v56  ;;  %v5622_v14 = vsel %vm10597_vm9, %v5620_v9, %v5621_v7  ;;  %v5623_v42 = vrot.slane %v5621_v7, 2  ;;  %v7169_v2 = vrot.slane %v6628_v21, 7  ;;  %v17075_v56 = vld [vmem:[#allocation164_spill] sm:$0xff] }
 0x31b   : > { %v7172_v4 = vrot.slane %v6629_v44, 7  ;;  %9961 = vmatmul.mubr.msk.f32.gmra.mxu1 %vm9028_vm10, %v8687_v20  ;;  %v5880_v34 = vadd.f32 %v5622_v14, %v4896_v32  ;;  %v3264_v28 = vmul.f32 %v17072_v3, %v17071_v33  ;;  %v3265_v48 = vmul.f32 %v16946_v43, %v17073_v17  ;;  %v17078_v32 = vld [vmem:[#allocation10_spill] sm:$0xff]  ;;  %v17079_v14 = vld [vmem:[#allocation12_spill] sm:$0xff] }
 0x31c   : > { %17070 = vst [vmem:[#allocation120_spill] sm:$0xff] %v13343_v0  ;;  %v3266_v62 = vmul.f32 %v16948_v46, %v17074_v58  ;;  %v17076_v47 = vrot.slane %v17075_v56, 7  ;;  %v7170_v10 = vsel %vm10597_vm9, %v17077_v51, %v7169_v2  ;;  %v7171_v7 = vrot.slane %v7169_v2, 2  ;;  %v17082_v2 = vld [vmem:[#allocation7_spill] sm:$0xff] }
 0x31d   : > { %v3445_v21 = vmul.f32 %v17078_v32, %v17071_v33  ;;  %v6162_v20 = vadd.f32 %v6034_v27, %v5880_v34  ;;  %v3446_v0 = vmul.f32 %v17079_v14, %v17073_v17  ;;  %v3447_v52 = vmul.f32 %v17035_v49, %v17074_v58  ;;  %v17084_v27 = vld [vmem:[#allocation11_spill] sm:$0xff] }
 0x31e   : > { %v5625_v9 = vsel %vm10597_vm9, %v5623_v42, %v17076_v47  ;;  %v7173_v56 = vsel %vm10597_vm9, %v7171_v7, %v7172_v4  ;;  %v17080_v42 = vld [vmem:[#allocation114_spill] sm:$0xff]  ;;  %v17081_v47 = vld [vmem:[#allocation20_spill] sm:$0xff]  ;;  %v4408_v13 = vmul.f32 %v17082_v2, %v17071_v33  ;;  %v17086_v50 = vrot.slane %v17085_v57, 9 }
 0x31f   : > { %v5881_v44 = vadd.f32 %v5625_v9, %v4897_v41  ;;  %v13371_v38 = vmul.f32 %v17081_v47, %v17080_v42  ;;  %v3830_v51 = vrot.slane %v3445_v21, 7  ;;  %v6444_v34 = vadd.f32 %v17084_v27, %v6162_v20  ;;  %v17087_v47 = vld [vmem:[#allocation16_spill] sm:$0xff] }
 0x320   : > { %v3833_v9 = vrot.slane %v3446_v0, 7  ;;  %v3836_v16 = vrot.slane %v3447_v52, 7  ;;  %v4409_v21 = vmul.f32 %v17087_v47, %v17073_v17  ;;  %v17088_v0 = vld [vmem:[#allocation118_spill] sm:$0xff]  ;;  %v4410_v57 = vmul.f32 %v16994_v24, %v17074_v58  ;;  %v17092_v27 = vld [vmem:[#allocation124_spill] sm:$0xff] }
 0x321   : > { %v6163_v41 = vadd.f32 %v17083_v53, %v5881_v44  ;;  %v3831_v40 = vsel %vm10597_vm9, %v17086_v50, %v3830_v51  ;;  %v3832_v4 = vrot.slane %v3830_v51, 2  ;;  %v16182_v7 = vrot.slane %v13371_v38, 7 }
 0x322   : > { %v7428_v25 = vadd.f32 %v7170_v10, %v6444_v34  ;;  %v3835_v33 = vrot.slane %v3833_v9, 2  ;;  %v3838_v2 = vrot.slane %v3836_v16, 2  ;;  %v4254_v52 = vadd.f32 %v3831_v40, %v17088_v0 }
 0x323   : > { %v6445_v36 = vadd.f32 %v6317_v60, %v6163_v41  ;;  %v3834_v53 = vsel %vm10597_vm9, %v3832_v4, %v3833_v9  ;;  %v4411_v50 = vmul.f32 %v16995_v55, %v17080_v42  ;;  %v17096_v9 = vld [vmem:[#allocation54_spill] sm:$0xff] }
 0x324   : > { %v13393_v20 = vadd.f32 %v7582_v22, %v7428_v25  ;;  %v3837_v60 = vsel %vm10597_vm9, %v3835_v33, %v3836_v16  ;;  %v3840_v17 = vsel %vm10597_vm9, %v3838_v2, %v16182_v7  ;;  %v4255_v10 = vadd.f32 %v3834_v53, %v3264_v28  ;;  %v17094_v25 = vld [vmem:[#allocation62_spill] sm:$0xff]  ;;  %v17095_v22 = vld [vmem:[#allocation23_spill] sm:$0xff]  ;;  %v17097_v2 = vld [vmem:[#allocation60_spill] sm:$0xff] }
 0x325   : > { %v13391_v44 = vadd.f32 %v7173_v56, %v6445_v36  ;;  %v4256_v40 = vadd.f32 %v3837_v60, %v3265_v48  ;;  %v4257_v51 = vadd.f32 %v3840_v17, %v3266_v62  ;;  %v4536_v41 = vadd.f32 %v4408_v13, %v4254_v52  ;;  %v17093_v36 = vld [vmem:[#allocation8_spill] sm:$0xff]  ;;  %v17098_v13 = vld [vmem:[#allocation9_spill] sm:$0xff]  ;;  %v17099_v53 = vld [vmem:[#allocation22_spill] sm:$0xff] }
 0x326   : > { %17090 = vst [vmem:[#allocation57_spill] sm:$0xff] %v13393_v20  ;;  %v13402_v58 = vadd.f32 3.0, %v13393_v20  ;;  %v4690_v56 = vmul.f32 %v17093_v36, %v17092_v27  ;;  %v4691_v34 = vmul.f32 %v17095_v22, %v17094_v25  ;;  %v4692_v16 = vmul.f32 %v17000_v39, %v17096_v9 }
 0x327   : > { %17089 = vst [vmem:[#allocation113_spill] sm:$0xff] %v13391_v44  ;;  %v4537_v4 = vadd.f32 %v4409_v21, %v4255_v10  ;;  %v4538_v33 = vadd.f32 %v4410_v57, %v4256_v40  ;;  %v4539_v0 = vadd.f32 %v4411_v50, %v4257_v51  ;;  %v4693_v28 = vmul.f32 %v17002_v15, %v17097_v2  ;;  %v17100_v57 = vld [vmem:[#allocation36_spill] sm:$0xff] }
 0x328   : > { %17091 = vst [vmem:[#allocation173_spill] sm:$0xff] %v13402_v58  ;;  %v4818_v48 = vadd.f32 %v4690_v56, %v4536_v41  ;;  %v4992_v62 = vmul.f32 %v17098_v13, %v17092_v27  ;;  %v4993_v52 = vmul.f32 %v17099_v53, %v17094_v25  ;;  %v4994_v60 = vmul.f32 %v16571_v45, %v17096_v9 }
 0x329   : > { %v4819_v17 = vadd.f32 %v4691_v34, %v4537_v4  ;;  %v4820_v7 = vadd.f32 %v4692_v16, %v4538_v33  ;;  %v4821_v20 = vadd.f32 %v4693_v28, %v4539_v0  ;;  %v4995_v21 = vmul.f32 %v16572_v12, %v17097_v2 }
 0x32a   : > { %v13422_v50 = vmul.f32 %v17100_v57, %v17048_v35  ;;  %v9673_v10 = vrot.slane %v4992_v62, 9  ;;  %v5378_v40 = vrot.slane %v4993_v52, 7  ;;  %v5381_v51 = vrot.slane %v4994_v60, 7  ;;  %v17101_v60 = vld [vmem:[#allocation83_spill] sm:$0xff]  ;;  %v17102_v57 = vld [vmem:[#allocation56_spill] sm:$0xff] }
 0x32b   : > { %v5384_v41 = vrot.slane %v4995_v21, 7  ;;  %v5956_v56 = vmul.f32 %v16619_v5, %v17094_v25  ;;  %v5957_v58 = vmul.f32 %v16620_v23, %v17096_v9  ;;  %v5958_v34 = vmul.f32 %v16621_v26, %v17097_v2 }
 0x32c   : > { %v5379_v16 = vsel %vm10597_vm9, %v9673_v10, %v5378_v40  ;;  %v5380_v4 = vrot.slane %v5378_v40, 2  ;;  %v5383_v33 = vrot.slane %v5381_v51, 2  ;;  %v5959_v52 = vmul.f32 %v16622_v1, %v17048_v35  ;;  %v17103_v40 = vld [vmem:[#allocation59_spill] sm:$0xff] }
 0x32d   : > { %v5386_v28 = vrot.slane %v5384_v41, 2  ;;  %v5802_v62 = vadd.f32 %v5379_v16, %v4818_v48  ;;  %v6238_v21 = vmul.f32 %v16712_v30, %v17101_v60  ;;  %v6239_v10 = vmul.f32 %v16714_v19, %v17102_v57  ;;  %v17105_v30 = vld [vmem:[#allocation131_spill] sm:$0xff] }
 0x32e   : > { %v5382_v44 = vsel %vm10597_vm9, %v5380_v4, %v5381_v51  ;;  %v5385_v13 = vsel %vm10597_vm9, %v5383_v33, %v5384_v41  ;;  %v6240_v0 = vmul.f32 %v16675_v63, %v17103_v40  ;;  %v17104_v48 = vrot.slane %v13422_v50, 7  ;;  %v17106_v41 = vld [vmem:[#allocation24_spill] sm:$0xff] }
 0x32f   : > { %v5803_v2 = vadd.f32 %v5382_v44, %v4819_v17  ;;  %v5804_v9 = vadd.f32 %v5385_v13, %v4820_v7  ;;  %v6084_v25 = vadd.f32 %v5956_v56, %v5802_v62  ;;  %v6241_v51 = vmul.f32 %v16803_v59, %v17105_v30  ;;  %v17107_v44 = vld [vmem:[#allocation50_spill] sm:$0xff] }
 0x330   : > { %v5388_v16 = vsel %vm10597_vm9, %v5386_v28, %v17104_v48  ;;  %v6540_v4 = vmul.f32 %v17106_v41, %v17101_v60  ;;  %v6541_v33 = vmul.f32 %v16903_v6, %v17102_v57  ;;  %v6542_v26 = vmul.f32 %v16904_v11, %v17103_v40 }
 0x331   : > { %v5805_v27 = vadd.f32 %v5388_v16, %v4821_v20  ;;  %v6085_v19 = vadd.f32 %v5957_v58, %v5803_v2  ;;  %v6086_v63 = vadd.f32 %v5958_v34, %v5804_v9  ;;  %v6366_v1 = vadd.f32 %v6238_v21, %v6084_v25  ;;  %v17108_v20 = vld [vmem:[#allocation42_spill] sm:$0xff] }
 0x332   : > { %v6543_v7 = vmul.f32 %v16970_v31, %v17105_v30  ;;  %v13461_v13 = vmul.f32 %v17108_v20, %v17107_v44  ;;  %v9689_v17 = vrot.slane %v6540_v4, 9  ;;  %v6926_v48 = vrot.slane %v6541_v33, 7 }
 0x333   : > { %v6087_v28 = vadd.f32 %v5959_v52, %v5805_v27  ;;  %v6367_v56 = vadd.f32 %v6239_v10, %v6085_v19  ;;  %v6368_v62 = vadd.f32 %v6240_v0, %v6086_v63  ;;  %v6929_v16 = vrot.slane %v6542_v26, 7 }
 0x334   : > { %v6932_v58 = vrot.slane %v6543_v7, 7  ;;  %v16195_v25 = vrot.slane %v13461_v13, 7  ;;  %v7504_v9 = vmul.f32 %v16910_v37, %v17102_v57  ;;  %v6927_v27 = vsel %vm10597_vm9, %v9689_v17, %v6926_v48 }
 0x335   : > { %v6369_v41 = vadd.f32 %v6241_v51, %v6087_v28  ;;  %v6928_v2 = vrot.slane %v6926_v48, 2  ;;  %v6931_v34 = vrot.slane %v6929_v16, 2  ;;  %v7505_v52 = vmul.f32 %v17054_v29, %v17103_v40  ;;  %v17109_v51 = vld [vmem:[#allocation4_spill] sm:$0xff] }
 0x336   : > { %v6934_v21 = vrot.slane %v6932_v58, 2  ;;  %v7350_v19 = vadd.f32 %v6927_v27, %v6366_v1  ;;  %v7506_v26 = vmul.f32 %v16975_v18, %v17105_v30  ;;  %v7507_v63 = vmul.f32 %v16913_v8, %v17107_v44  ;;  %v17110_v27 = vld [vmem:[#allocation116_spill] sm:$0xff] }
 0x337   : > { %v6930_v0 = vsel %vm10597_vm9, %v6928_v2, %v6929_v16  ;;  %v6933_v10 = vsel %vm10597_vm9, %v6931_v34, %v6932_v58  ;;  %v3267_v4 = vmul.f32 %v17109_v51, %v17080_v42  ;;  %v3268_v33 = vmul.f32 %v17072_v3, %v17041_v61  ;;  %v17111_v2 = vld [vmem:[#allocation122_spill] sm:$0xff] }
 0x338   : > { %v6936_v1 = vsel %vm10597_vm9, %v6934_v21, %v16195_v25  ;;  %v7351_v28 = vadd.f32 %v6930_v0, %v6367_v56  ;;  %v7352_v7 = vadd.f32 %v6933_v10, %v6368_v62  ;;  %v7632_v17 = vadd.f32 %v7504_v9, %v7350_v19 }
 0x339   : > { %v7353_v48 = vadd.f32 %v6936_v1, %v6369_v41  ;;  %v3269_v16 = vmul.f32 %v16946_v43, %v17110_v27  ;;  %v3270_v58 = vmul.f32 %v16948_v46, %v17111_v2  ;;  %v3449_v42 = vmul.f32 %v17078_v32, %v17041_v61 }
 0x33a   : > { %v7633_v34 = vadd.f32 %v7505_v52, %v7351_v28  ;;  %v7634_v20 = vadd.f32 %v7506_v26, %v7352_v7  ;;  %v7760_v30 = vadd.f32 3.0, %v7632_v17  ;;  %v3450_v40 = vmul.f32 %v17079_v14, %v17110_v27 }
 0x33b   : > { %v7635_v21 = vadd.f32 %v7507_v63, %v7353_v48  ;;  %v3451_v56 = vmul.f32 %v17035_v49, %v17111_v2  ;;  %v17112_v41 = vrot.slane %v13371_v38, 7  ;;  %v3842_v9 = vrot.slane %v3449_v42, 7 }
 0x33c   : > { %v7761_v19 = vadd.f32 3.0, %v7633_v34  ;;  %v7762_v0 = vadd.f32 3.0, %v7634_v20  ;;  %v7888_v10 = vmax.f32 %v7760_v30, 0.0  ;;  %v3845_v1 = vrot.slane %v3450_v40, 7 }
 0x33d   : > { %v3841_v62 = vrot.slane %v17112_v41, 2  ;;  %v7763_v25 = vadd.f32 3.0, %v7635_v21  ;;  %v3844_v26 = vrot.slane %v3842_v9, 2  ;;  %v3848_v28 = vrot.slane %v3451_v56, 7 }
 0x33e   : > { %v7889_v7 = vmax.f32 %v7761_v19, 0.0  ;;  %v7890_v57 = vmax.f32 %v7762_v0, 0.0  ;;  %v8016_v63 = vmin.f32 %v7888_v10, 6.0  ;;  %v3847_v48 = vrot.slane %v3845_v1, 2 }
 0x33f   : > { %v3843_v52 = vsel %vm10597_vm9, %v3841_v62, %v3842_v9  ;;  %v7891_v60 = vmax.f32 %v7763_v25, 0.0  ;;  %v3846_v38 = vsel %vm10597_vm9, %v3844_v26, %v3845_v1  ;;  %v3850_v41 = vrot.slane %v3848_v28, 2  ;;  %v17113_v62 = vld [vmem:[#allocation125_spill] sm:$0xff] }
 0x340   : > { %v4258_v42 = vadd.f32 %v3843_v52, %v3267_v4  ;;  %v8017_v49 = vmin.f32 %v7889_v7, 6.0  ;;  %v8018_v14 = vmin.f32 %v7890_v57, 6.0  ;;  %v8144_v30 = vmul.f32 %v8016_v63, %v7632_v17  ;;  %v17115_v4 = vld [vmem:[#allocation7_spill] sm:$0xff]  ;;  %v17116_v7 = vld [vmem:[#allocation121_spill] sm:$0xff] }
 0x341   : > { %v3849_v40 = vsel %vm10597_vm9, %v3847_v48, %v3848_v28  ;;  %v8019_v32 = vmin.f32 %v7891_v60, 6.0  ;;  %v17114_v9 = vrot.slane %v17113_v62, 7  ;;  %v4259_v19 = vadd.f32 %v3846_v38, %v3268_v33  ;;  %v17119_v48 = vld [vmem:[#allocation52_spill] sm:$0xff] }
 0x342   : > { %v4260_v0 = vadd.f32 %v3849_v40, %v3269_v16  ;;  %v8145_v25 = vmul.f32 %v8017_v49, %v7633_v34  ;;  %v8146_v10 = vmul.f32 %v8018_v14, %v7634_v20  ;;  %v8272_v46 = vmul.f32 0.16666667, %v8144_v30  ;;  %v17117_v34 = vld [vmem:[#allocation46_spill] sm:$0xff] }
 0x343   : > { %v3852_v56 = vsel %vm10597_vm9, %v3850_v41, %v17114_v9  ;;  %v8147_v26 = vmul.f32 %v8019_v32, %v7635_v21  ;;  %v4412_v57 = vmul.f32 %v17115_v4, %v17041_v61  ;;  %v4413_v17 = vmul.f32 %v17087_v47, %v17110_v27  ;;  %v17118_v21 = vld [vmem:[#allocation58_spill] sm:$0xff] }
 0x344   : > { %v4261_v1 = vadd.f32 %v3852_v56, %v3270_v58  ;;  %v4414_v60 = vmul.f32 %v16994_v24, %v17111_v2  ;;  %v8273_v52 = vmul.f32 0.16666667, %v8145_v25  ;;  %v8274_v28 = vmul.f32 0.16666667, %v8146_v10  ;;  %v17120_v40 = vld [vmem:[#allocation2_spill] sm:$0xff]  ;;  %v17121_v25 = vld [vmem:[#allocation184_spill] sm:$0xff] }
 0x345   : > { %v4415_v33 = vmul.f32 %v16995_v55, %v17116_v7  ;;  %v4694_v49 = vmul.f32 %v17093_v36, %v17048_v35  ;;  %v8275_v14 = vmul.f32 0.16666667, %v8147_v26  ;;  %v4540_v20 = vadd.f32 %v4412_v57, %v4258_v42  ;;  %v17122_v10 = vld [vmem:[#allocation28_spill] sm:$0xff] }
 0x346   : > { %v4541_v32 = vadd.f32 %v4413_v17, %v4259_v19  ;;  %v4542_v16 = vadd.f32 %v4414_v60, %v4260_v0  ;;  %v8688_v58 = vcombine.low %v8272_v46, %v8273_v52  ;;  %v4695_v27 = vmul.f32 %v17095_v22, %v17117_v34 }
 0x347   : > { %v4543_v61 = vadd.f32 %v4415_v33, %v4261_v1  ;;  %v4696_v2 = vmul.f32 %v17000_v39, %v17118_v21  ;;  %v8689_v63 = vcombine.low %v8274_v28, %v8275_v14  ;;  %v4697_v38 = vmul.f32 %v17002_v15, %v17119_v48 }
 0x348   : > { %v4822_v41 = vadd.f32 %v4694_v49, %v4540_v20  ;;  %v4997_v30 = vmul.f32 %v17099_v53, %v17117_v34  ;;  %v8696_v42 = vrot.slane %v8688_v58, %v17120_v40  ;;  %v4823_v62 = vadd.f32 %v4695_v27, %v4541_v32  ;;  %v17125_v27 = vld [vmem:[#allocation38_spill] sm:$0xff] }
 0x349   : > { %v4824_v9 = vadd.f32 %v4696_v2, %v4542_v16  ;;  %v4998_v46 = vmul.f32 %v16571_v45, %v17118_v21  ;;  %v8703_v56 = vrot.slane %v8689_v63, %v17120_v40  ;;  %v4825_v19 = vadd.f32 %v4697_v38, %v4543_v61  ;;  %v17124_v16 = vld [vmem:[#allocation19_spill] sm:$0xff]  ;;  %v17126_v63 = vld [vmem:[#allocation29_spill] sm:$0xff] }
 0x34a   : > { %v4999_v0 = vmul.f32 %v16572_v12, %v17119_v48  ;;  %v5000_v1 = vmul.f32 %v17122_v10, %v17121_v25  ;;  %v17123_v26 = vrot.slane %v13422_v50, 7  ;;  %v5390_v17 = vrot.slane %v4997_v30, 7 }
 0x34b   : > { %v5393_v60 = vrot.slane %v4998_v46, 7  ;;  %v5960_v52 = vmul.f32 %v16619_v5, %v17117_v34  ;;  %v8704_v28 = vcombine.low %v8696_v42, %v8703_v56  ;;  %v5961_v49 = vmul.f32 %v16620_v23, %v17118_v21  ;;  %v17127_v46 = vld [vmem:[#allocation53_spill] sm:$0xff]  ;;  %v17128_v56 = vld [vmem:[#allocation39_spill] sm:$0xff] }
 0x34c   : > { %v5389_v57 = vrot.slane %v17123_v26, 2  ;;  %v5396_v7 = vrot.slane %v4999_v0, 7  ;;  %v5399_v33 = vrot.slane %v5000_v1, 7  ;;  %v5392_v20 = vrot.slane %v5390_v17, 2  ;;  %v17129_v1 = vld [vmem:[#allocation65_spill] sm:$0xff]  ;;  %v17130_v26 = vld [vmem:[#allocation30_spill] sm:$0xff] }
 0x34d   : > { %v5395_v32 = vrot.slane %v5393_v60, 2  ;;  %v5962_v50 = vmul.f32 %v17124_v16, %v17119_v48  ;;  %9963 = vmatprep.mubr.msk.f32.mxu1 %vm9028_vm10, %v8704_v28  ;;  %v5963_v2 = vmul.f32 %v17125_v27, %v17121_v25  ;;  %v6242_v38 = vmul.f32 %v17126_v63, %v17107_v44  ;;  %v17131_v25 = vld [vmem:[#allocation123_spill] sm:$0xff] }
 0x34e   : > { %v5391_v14 = vsel %vm10597_vm9, %v5389_v57, %v5390_v17  ;;  %v5398_v58 = vrot.slane %v5396_v7, 2  ;;  %v5394_v30 = vsel %vm10597_vm9, %v5392_v20, %v5393_v60  ;;  %v6243_v0 = vmul.f32 %v17128_v56, %v17127_v46 }
 0x34f   : > { %v5806_v61 = vadd.f32 %v5391_v14, %v4822_v41  ;;  %v5397_v42 = vsel %vm10597_vm9, %v5395_v32, %v5396_v7  ;;  %v6244_v57 = vmul.f32 %v17130_v26, %v17129_v1  ;;  %v5807_v17 = vadd.f32 %v5394_v30, %v4823_v62  ;;  %v17132_v62 = vld [vmem:[#allocation111_spill] sm:$0xff] }
 0x350   : > { %v5400_v41 = vsel %vm10597_vm9, %v5398_v58, %v5399_v33  ;;  %v5808_v28 = vadd.f32 %v5397_v42, %v4824_v9  ;;  %v6245_v48 = vmul.f32 %v16803_v59, %v17131_v25  ;;  %v6545_v60 = vmul.f32 %v16903_v6, %v17127_v46  ;;  %v17133_v9 = vld [vmem:[#allocation33_spill] sm:$0xff] }
 0x351   : > { %v6088_v14 = vadd.f32 %v5960_v52, %v5806_v61  ;;  %v5809_v10 = vadd.f32 %v5400_v41, %v4825_v19  ;;  %v6546_v7 = vmul.f32 %v16904_v11, %v17129_v1  ;;  %v6089_v20 = vadd.f32 %v5961_v49, %v5807_v17 }
 0x352   : > { %v6090_v32 = vadd.f32 %v5962_v50, %v5808_v28  ;;  %v6547_v34 = vmul.f32 %v16970_v31, %v17131_v25  ;;  %v6548_v52 = vmul.f32 %v17133_v9, %v17132_v62  ;;  %v17134_v19 = vrot.slane %v13461_v13, 7 }
 0x353   : > { %v6370_v21 = vadd.f32 %v6242_v38, %v6088_v14  ;;  %v6091_v33 = vadd.f32 %v5963_v2, %v5809_v10  ;;  %v6938_v61 = vrot.slane %v6545_v60, 7  ;;  %v6371_v30 = vadd.f32 %v6243_v0, %v6089_v20 }
 0x354   : > { %v6937_v58 = vrot.slane %v17134_v19, 2  ;;  %v6372_v42 = vadd.f32 %v6244_v57, %v6090_v32  ;;  %v6941_v41 = vrot.slane %v6546_v7, 7  ;;  %v6944_v6 = vrot.slane %v6547_v34, 7  ;;  %v17135_v32 = vld [vmem:[#allocation124_spill] sm:$0xff] }
 0x355   : > { %v6373_v59 = vadd.f32 %v6245_v48, %v6091_v33  ;;  %v6940_v50 = vrot.slane %v6938_v61, 2  ;;  %v6947_v38 = vrot.slane %v6548_v52, 7  ;;  %v7508_v2 = vmul.f32 %v16910_v37, %v17127_v46  ;;  %v17136_v52 = vld [vmem:[#allocation62_spill] sm:$0xff] }
 0x356   : > { %v6939_v49 = vsel %vm10597_vm9, %v6937_v58, %v6938_v61  ;;  %v6943_v17 = vrot.slane %v6941_v41, 2  ;;  %v6946_v28 = vrot.slane %v6944_v6, 2  ;;  %v7509_v0 = vmul.f32 %v17054_v29, %v17129_v1 }
 0x357   : > { %v7354_v10 = vadd.f32 %v6939_v49, %v6370_v21  ;;  %v6942_v13 = vsel %vm10597_vm9, %v6940_v50, %v6941_v41  ;;  %v7510_v34 = vmul.f32 %v16975_v18, %v17131_v25  ;;  %v7511_v48 = vmul.f32 %v16913_v8, %v17132_v62  ;;  %v17137_v41 = vld [vmem:[#allocation54_spill] sm:$0xff]  ;;  %v17138_v50 = vld [vmem:[#allocation60_spill] sm:$0xff] }
 0x358   : > { %v6945_v57 = vsel %vm10597_vm9, %v6943_v17, %v6944_v6  ;;  %v6948_v21 = vsel %vm10597_vm9, %v6946_v28, %v6947_v38  ;;  %v7355_v14 = vadd.f32 %v6942_v13, %v6371_v30  ;;  %v3271_v33 = vmul.f32 %v17109_v51, %v17135_v32  ;;  %v17139_v6 = vld [vmem:[#allocation17_spill] sm:$0xff]  ;;  %v17140_v30 = vld [vmem:[#allocation3_spill] sm:$0xff]  ;;  %v17142_v13 = vld [vmem:[#allocation12_spill] sm:$0xff] }
 0x359   : > { %v7636_v60 = vadd.f32 %v7508_v2, %v7354_v10  ;;  %v7356_v7 = vadd.f32 %v6945_v57, %v6372_v42  ;;  %v7357_v20 = vadd.f32 %v6948_v21, %v6373_v59  ;;  %v3272_v19 = vmul.f32 %v17072_v3, %v17136_v52  ;;  %v17141_v59 = vld [vmem:[#allocation10_spill] sm:$0xff]  ;;  %v17143_v57 = vld [vmem:[#allocation13_spill] sm:$0xff]  ;;  %v17144_v25 = vld [vmem:[#allocation20_spill] sm:$0xff] }
 0x35a   : > { %v7637_v58 = vadd.f32 %v7509_v0, %v7355_v14  ;;  %v3273_v49 = vmul.f32 %v16946_v43, %v17137_v41  ;;  %v3274_v17 = vmul.f32 %v17139_v6, %v17138_v50  ;;  %v3453_v42 = vmul.f32 %v17140_v30, %v17135_v32 }
 0x35b   : > { %v7764_v61 = vadd.f32 3.0, %v7636_v60  ;;  %v7638_v9 = vadd.f32 %v7510_v34, %v7356_v7  ;;  %v7639_v38 = vadd.f32 %v7511_v48, %v7357_v20  ;;  %v3454_v28 = vmul.f32 %v17141_v59, %v17136_v52 }
 0x35c   : > { %v7765_v10 = vadd.f32 3.0, %v7637_v58  ;;  %v3455_v0 = vmul.f32 %v17142_v13, %v17137_v41  ;;  %v3456_v21 = vmul.f32 %v17143_v57, %v17138_v50  ;;  %v13605_v34 = vmul.f32 %v17144_v25, %v17048_v35 }
 0x35d   : > { %v7892_v2 = vmax.f32 %v7764_v61, 0.0  ;;  %v7766_v14 = vadd.f32 3.0, %v7638_v9  ;;  %v7767_v62 = vadd.f32 3.0, %v7639_v38  ;;  %v9658_v48 = vrot.slane %v3453_v42, 9 }
 0x35e   : > { %v7893_v7 = vmax.f32 %v7765_v10, 0.0  ;;  %v3855_v32 = vrot.slane %v3454_v28, 7  ;;  %v3858_v30 = vrot.slane %v3455_v0, 7  ;;  %v3861_v61 = vrot.slane %v3456_v21, 7 }
 0x35f   : > { %v8020_v20 = vmin.f32 %v7892_v2, 6.0  ;;  %v7894_v1 = vmax.f32 %v7766_v14, 0.0  ;;  %v7895_v46 = vmax.f32 %v7767_v62, 0.0  ;;  %v16216_v59 = vrot.slane %v13605_v34, 7 }
 0x360   : > { %v8021_v13 = vmin.f32 %v7893_v7, 6.0  ;;  %v3856_v57 = vsel %vm10597_vm9, %v9658_v48, %v3855_v32  ;;  %v3857_v43 = vrot.slane %v3855_v32, 2  ;;  %v3860_v25 = vrot.slane %v3858_v30, 2 }
 0x361   : > { %v8148_v6 = vmul.f32 %v8020_v20, %v7636_v60  ;;  %v8022_v3 = vmin.f32 %v7894_v1, 6.0  ;;  %v8023_v51 = vmin.f32 %v7895_v46, 6.0  ;;  %v3863_v8 = vrot.slane %v3861_v61, 2  ;;  %v17148_v20 = vld [vmem:[#allocation131_spill] sm:$0xff] }
 0x362   : > { %v8149_v42 = vmul.f32 %v8021_v13, %v7637_v58  ;;  %v3859_v28 = vsel %vm10597_vm9, %v3857_v43, %v3858_v30  ;;  %v4262_v2 = vadd.f32 %v3856_v57, %v3271_v33  ;;  %v3862_v21 = vsel %vm10597_vm9, %v3860_v25, %v3861_v61  ;;  %v17147_v57 = vld [vmem:[#allocation59_spill] sm:$0xff] }
 0x363   : > { %v8276_v10 = vmul.f32 0.16666667, %v8148_v6  ;;  %v8150_v62 = vmul.f32 %v8022_v3, %v7638_v9  ;;  %v8151_v0 = vmul.f32 %v8023_v51, %v7639_v38  ;;  %v3865_v60 = vsel %vm10597_vm9, %v3863_v8, %v16216_v59  ;;  %v17145_v8 = vld [vmem:[#allocation83_spill] sm:$0xff]  ;;  %v17146_v38 = vld [vmem:[#allocation56_spill] sm:$0xff] }
 0x364   : > { %v8277_v1 = vmul.f32 0.16666667, %v8149_v42  ;;  %v4263_v46 = vadd.f32 %v3859_v28, %v3272_v19  ;;  %v4264_v14 = vadd.f32 %v3862_v21, %v3273_v49  ;;  %v4265_v48 = vadd.f32 %v3865_v60, %v3274_v17  ;;  %v17149_v60 = vld [vmem:[#allocation36_spill] sm:$0xff] }
 0x365   : > { %v8278_v58 = vmul.f32 0.16666667, %v8150_v62  ;;  %v8279_v6 = vmul.f32 0.16666667, %v8151_v0  ;;  %v4416_v43 = vmul.f32 %v17115_v4, %v17136_v52  ;;  %v4417_v3 = vmul.f32 %v17087_v47, %v17137_v41 }
 0x366   : > { %v8705_v51 = vcombine.low %v8276_v10, %v8277_v1  ;;  %v4418_v25 = vmul.f32 %v16994_v24, %v17138_v50  ;;  %v4419_v9 = vmul.f32 %v16995_v55, %v17048_v35  ;;  %v4698_v33 = vmul.f32 %v17093_v36, %v17145_v8  ;;  %v17151_v8 = vld [vmem:[#allocation130_spill] sm:$0xff] }
 0x367   : > { %v8706_v19 = vcombine.low %v8278_v58, %v8279_v6  ;;  %v4544_v49 = vadd.f32 %v4416_v43, %v4262_v2  ;;  %v4545_v17 = vadd.f32 %v4417_v3, %v4263_v46  ;;  %v4699_v30 = vmul.f32 %v17095_v22, %v17146_v38 }
 0x368   : > { %v8713_v52 = vrot.slane %v8705_v51, %v17120_v40  ;;  %v4546_v13 = vadd.f32 %v4418_v25, %v4264_v14  ;;  %v4547_v41 = vadd.f32 %v4419_v9, %v4265_v48  ;;  %v4700_v7 = vmul.f32 %v17000_v39, %v17147_v57  ;;  %v17150_v25 = vld [vmem:[#allocation71_spill] sm:$0xff] }
 0x369   : > { %v8720_v50 = vrot.slane %v8706_v19, %v17120_v40  ;;  %v4701_v32 = vmul.f32 %v17002_v15, %v17148_v20  ;;  %v4826_v61 = vadd.f32 %v4698_v33, %v4544_v49  ;;  %v4827_v42 = vadd.f32 %v4699_v30, %v4545_v17 }
 0x36a   : > { %v4828_v10 = vadd.f32 %v4700_v7, %v4546_v13  ;;  %v5002_v28 = vmul.f32 %v17099_v53, %v17146_v38  ;;  %v5003_v2 = vmul.f32 %v16571_v45, %v17147_v57  ;;  %v5004_v62 = vmul.f32 %v16572_v12, %v17148_v20  ;;  %v17153_v13 = vld [vmem:[#allocation112_spill] sm:$0xff]  ;;  %v17154_v7 = vld [vmem:[#allocation135_spill] sm:$0xff] }
 0x36b   : > { %v8721_v0 = vcombine.low %v8713_v52, %v8720_v50  ;;  %v4829_v21 = vadd.f32 %v4701_v32, %v4547_v41  ;;  %v13644_v1 = vmul.f32 %v17149_v60, %v17107_v44  ;;  %v5964_v46 = vmul.f32 %v16619_v5, %v17146_v38  ;;  %v17155_v32 = vld [vmem:[#allocation74_spill] sm:$0xff] }
 0x36c   : > { %v5403_v14 = vrot.slane %v5002_v28, 7  ;;  %v5406_v48 = vrot.slane %v5003_v2, 7  ;;  %v5409_v58 = vrot.slane %v5004_v62, 7  ;;  %v5965_v6 = vmul.f32 %v16620_v23, %v17147_v57  ;;  %v17156_v28 = vld [vmem:[#allocation40_spill] sm:$0xff] }
 0x36d   : > { %9964 = vmatmul.mubr.msk.f32.gmra.mxu1 %vm9028_vm10, %v8721_v0  ;;  %v16220_v43 = vrot.slane %v13644_v1, 7  ;;  %v5966_v3 = vmul.f32 %v17124_v16, %v17148_v20  ;;  %v5967_v51 = vmul.f32 %v17125_v27, %v17107_v44  ;;  %v6246_v9 = vmul.f32 %v17126_v63, %v17150_v25  ;;  %v17158_v20 = vld [vmem:[#allocation41_spill] sm:$0xff] }
 0x36e   : > { %v17152_v33 = vrot.slane %v17151_v8, 9  ;;  %v5405_v49 = vrot.slane %v5403_v14, 2  ;;  %v5408_v17 = vrot.slane %v5406_v48, 2  ;;  %v5411_v30 = vrot.slane %v5409_v58, 2 }
 0x36f   : > { %v6247_v41 = vmul.f32 %v17128_v56, %v17153_v13  ;;  %v6248_v50 = vmul.f32 %v17130_v26, %v17154_v7  ;;  %v6249_v2 = vmul.f32 %v17156_v28, %v17155_v32  ;;  %v6550_v57 = vmul.f32 %v17158_v20, %v17153_v13 }
 0x370   : > { %v5404_v19 = vsel %vm10597_vm9, %v17152_v33, %v5403_v14  ;;  %v5407_v62 = vsel %vm10597_vm9, %v5405_v49, %v5406_v48  ;;  %v5410_v0 = vsel %vm10597_vm9, %v5408_v17, %v5409_v58  ;;  %v17157_v14 = vld [vmem:[#allocation24_spill] sm:$0xff]  ;;  %v6551_v48 = vmul.f32 %v16904_v11, %v17154_v7  ;;  %v17160_v17 = vld [vmem:[#allocation42_spill] sm:$0xff] }
 0x371   : > { %v5810_v52 = vadd.f32 %v5404_v19, %v4826_v61  ;;  %v5413_v61 = vsel %vm10597_vm9, %v5411_v30, %v16220_v43  ;;  %v6549_v8 = vmul.f32 %v17157_v14, %v17150_v25  ;;  %v5811_v33 = vadd.f32 %v5407_v62, %v4827_v42  ;;  %v17159_v49 = vld [vmem:[#allocation140_spill] sm:$0xff] }
 0x372   : > { %v5812_v19 = vadd.f32 %v5410_v0, %v4828_v10  ;;  %v5813_v59 = vadd.f32 %v5413_v61, %v4829_v21  ;;  %v6552_v58 = vmul.f32 %v16970_v31, %v17155_v32  ;;  %v13686_v38 = vmul.f32 %v17160_v17, %v17159_v49 }
 0x373   : > { %v6092_v60 = vadd.f32 %v5964_v46, %v5810_v52  ;;  %v6093_v30 = vadd.f32 %v5965_v6, %v5811_v33  ;;  %v9690_v10 = vrot.slane %v6549_v8, 9  ;;  %v6951_v21 = vrot.slane %v6550_v57, 7 }
 0x374   : > { %v6094_v43 = vadd.f32 %v5966_v3, %v5812_v19  ;;  %v6095_v14 = vadd.f32 %v5967_v51, %v5813_v59  ;;  %v6954_v46 = vrot.slane %v6551_v48, 7  ;;  %v6957_v52 = vrot.slane %v6552_v58, 7  ;;  %v17161_v3 = vld [vmem:[#allocation44_spill] sm:$0xff]  ;;  %v17166_v19 = vld [vmem:[#allocation6_spill] sm:$0xff] }
 0x375   : > { %v6374_v42 = vadd.f32 %v6246_v9, %v6092_v60  ;;  %v6375_v62 = vadd.f32 %v6247_v41, %v6093_v30  ;;  %v16224_v25 = vrot.slane %v13686_v38, 7  ;;  %v6952_v31 = vsel %vm10597_vm9, %v9690_v10, %v6951_v21  ;;  %v17167_v58 = vld [vmem:[#allocation58_spill] sm:$0xff]  ;;  %v17168_v30 = vld [vmem:[#allocation5_spill] sm:$0xff] }
 0x376   : > { %v6376_v0 = vadd.f32 %v6248_v50, %v6094_v43  ;;  %v6377_v61 = vadd.f32 %v6249_v2, %v6095_v14  ;;  %v6953_v11 = vrot.slane %v6951_v21, 2  ;;  %v6956_v20 = vrot.slane %v6954_v46, 2  ;;  %v17162_v14 = vld [vmem:[#allocation25_spill] sm:$0xff] }
 0x377   : > { %v6959_v17 = vrot.slane %v6957_v52, 2  ;;  %v7358_v28 = vadd.f32 %v6952_v31, %v6374_v42  ;;  %v7512_v59 = vmul.f32 %v16910_v37, %v17153_v13  ;;  %v7513_v57 = vmul.f32 %v17054_v29, %v17154_v7 }
 0x378   : > { %v7514_v60 = vmul.f32 %v16975_v18, %v17155_v32  ;;  %v6955_v6 = vsel %vm10597_vm9, %v6953_v11, %v6954_v46  ;;  %v6958_v43 = vsel %vm10597_vm9, %v6956_v20, %v6957_v52  ;;  %v7515_v51 = vmul.f32 %v17161_v3, %v17159_v49  ;;  %v17164_v11 = vld [vmem:[#allocation4_spill] sm:$0xff]  ;;  %v17165_v20 = vld [vmem:[#allocation46_spill] sm:$0xff] }
 0x379   : > { %v6961_v31 = vsel %vm10597_vm9, %v6959_v17, %v16224_v25  ;;  %v7359_v9 = vadd.f32 %v6955_v6, %v6375_v62  ;;  %v7360_v41 = vadd.f32 %v6958_v43, %v6376_v0  ;;  %v7640_v2 = vadd.f32 %v7512_v59, %v7358_v28  ;;  %v17169_v52 = vld [vmem:[#allocation52_spill] sm:$0xff]  ;;  %v17170_v62 = vld [vmem:[#allocation17_spill] sm:$0xff]  ;;  %v17171_v0 = vld [vmem:[#allocation10_spill] sm:$0xff] }
 0x37a   : > { %v7361_v50 = vadd.f32 %v6961_v31, %v6377_v61  ;;  %v13709_v8 = vcombine.high %v17162_v14, %v17162_v14  ;;  %v3275_v33 = vmul.f32 %v17164_v11, %v17048_v35  ;;  %v3276_v48 = vmul.f32 %v17166_v19, %v17165_v20  ;;  %v17172_v59 = vld [vmem:[#allocation12_spill] sm:$0xff]  ;;  %v17173_v35 = vld [vmem:[#allocation13_spill] sm:$0xff] }
 0x37b   : > { %v3277_v17 = vmul.f32 %v17168_v30, %v17167_v58  ;;  %v7641_v42 = vadd.f32 %v7513_v57, %v7359_v9  ;;  %v7642_v10 = vadd.f32 %v7514_v60, %v7360_v41  ;;  %v7768_v46 = vadd.f32 3.0, %v7640_v2  ;;  %v17174_v57 = vld [vmem:[#allocation184_spill] sm:$0xff]  ;;  %v17175_v60 = vld [vmem:[#allocation15_spill] sm:$0xff] }
 0x37c   : > { %17163 = vst [vmem:[#allocation102_spill] sm:$0xff] %v13709_v8  ;;  %v7643_v21 = vadd.f32 %v7515_v51, %v7361_v50  ;;  %v3278_v28 = vmul.f32 %v17170_v62, %v17169_v52  ;;  %v3458_v61 = vmul.f32 %v17171_v0, %v17165_v20  ;;  %v3459_v6 = vmul.f32 %v17172_v59, %v17167_v58 }
 0x37d   : > { %v3460_v43 = vmul.f32 %v17173_v35, %v17169_v52  ;;  %v7769_v31 = vadd.f32 3.0, %v7641_v42  ;;  %v7770_v25 = vadd.f32 3.0, %v7642_v10  ;;  %v7896_v32 = vmax.f32 %v7768_v46, 0.0 }
 0x37e   : > { %v7771_v11 = vadd.f32 3.0, %v7643_v21  ;;  %v3461_v51 = vmul.f32 %v17175_v60, %v17174_v57  ;;  %v17176_v9 = vrot.slane %v13605_v34, 7  ;;  %v3867_v50 = vrot.slane %v3458_v61, 7 }
 0x37f   : > { %v3870_v7 = vrot.slane %v3459_v6, 7  ;;  %v7897_v13 = vmax.f32 %v7769_v31, 0.0  ;;  %v7898_v0 = vmax.f32 %v7770_v25, 0.0  ;;  %v8024_v30 = vmin.f32 %v7896_v32, 6.0 }
 0x380   : > { %v3866_v41 = vrot.slane %v17176_v9, 2  ;;  %v7899_v62 = vmax.f32 %v7771_v11, 0.0  ;;  %v3869_v35 = vrot.slane %v3867_v50, 2  ;;  %v3873_v3 = vrot.slane %v3460_v43, 7 }
 0x381   : > { %v3872_v19 = vrot.slane %v3870_v7, 2  ;;  %v8025_v18 = vmin.f32 %v7897_v13, 6.0  ;;  %v8026_v46 = vmin.f32 %v7898_v0, 6.0  ;;  %v8152_v37 = vmul.f32 %v8024_v30, %v7640_v2 }
 0x382   : > { %v3868_v59 = vsel %vm10597_vm9, %v3866_v41, %v3867_v50  ;;  %v8027_v29 = vmin.f32 %v7899_v62, 6.0  ;;  %v3871_v34 = vsel %vm10597_vm9, %v3869_v35, %v3870_v7  ;;  %v3875_v6 = vrot.slane %v3873_v3, 2  ;;  %v17179_v35 = vld [vmem:[#allocation123_spill] sm:$0xff] }
 0x383   : > { %v3874_v61 = vsel %vm10597_vm9, %v3872_v19, %v3873_v3  ;;  %v3876_v25 = vrot.slane %v3461_v51, 7  ;;  %v8153_v11 = vmul.f32 %v8025_v18, %v7641_v42  ;;  %v8154_v32 = vmul.f32 %v8026_v46, %v7642_v10 }
 0x384   : > { %v8155_v31 = vmul.f32 %v8027_v29, %v7643_v21  ;;  %v8280_v9 = vmul.f32 0.16666667, %v8152_v37  ;;  %v4266_v43 = vadd.f32 %v3868_v59, %v3275_v33  ;;  %v4267_v13 = vadd.f32 %v3871_v34, %v3276_v48  ;;  %v17177_v48 = vld [vmem:[#allocation53_spill] sm:$0xff] }
 0x385   : > { %v3877_v41 = vsel %vm10597_vm9, %v3875_v6, %v3876_v25  ;;  %v4268_v0 = vadd.f32 %v3874_v61, %v3277_v17  ;;  %v8281_v62 = vmul.f32 0.16666667, %v8153_v11  ;;  %v8282_v2 = vmul.f32 0.16666667, %v8154_v32 }
 0x386   : > { %v8283_v30 = vmul.f32 0.16666667, %v8155_v31  ;;  %v4269_v50 = vadd.f32 %v3877_v41, %v3278_v28  ;;  %v4420_v7 = vmul.f32 %v17115_v4, %v17165_v20  ;;  %v4421_v3 = vmul.f32 %v17087_v47, %v17167_v58 }
 0x387   : > { %v4422_v18 = vmul.f32 %v16994_v24, %v17169_v52  ;;  %v4423_v37 = vmul.f32 %v16995_v55, %v17174_v57  ;;  %v8722_v29 = vcombine.low %v8280_v9, %v8281_v62  ;;  %v4702_v19 = vmul.f32 %v17093_v36, %v17107_v44  ;;  %v17178_v52 = vld [vmem:[#allocation65_spill] sm:$0xff] }
 0x388   : > { %v8723_v33 = vcombine.low %v8282_v2, %v8283_v30  ;;  %v4703_v17 = vmul.f32 %v17095_v22, %v17177_v48  ;;  %v4548_v42 = vadd.f32 %v4420_v7, %v4266_v43  ;;  %v4549_v10 = vadd.f32 %v4421_v3, %v4267_v13  ;;  %v17181_v30 = vld [vmem:[#allocation111_spill] sm:$0xff] }
 0x389   : > { %v4550_v20 = vadd.f32 %v4422_v18, %v4268_v0  ;;  %v4551_v21 = vadd.f32 %v4423_v37, %v4269_v50  ;;  %v8730_v58 = vrot.slane %v8722_v29, %v17120_v40  ;;  %v4704_v59 = vmul.f32 %v17000_v39, %v17178_v52 }
 0x38a   : > { %v8737_v28 = vrot.slane %v8723_v33, %v17120_v40  ;;  %v4705_v57 = vmul.f32 %v17002_v15, %v17179_v35  ;;  %v4830_v51 = vadd.f32 %v4702_v19, %v4548_v42  ;;  %v4831_v46 = vadd.f32 %v4703_v17, %v4549_v10  ;;  %v17182_v33 = vld [vmem:[#allocation139_spill] sm:$0xff]  ;;  %v17183_v17 = vld [vmem:[#allocation141_spill] sm:$0xff] }
 0x38b   : > { %v5006_v34 = vmul.f32 %v17099_v53, %v17177_v48  ;;  %v5007_v61 = vmul.f32 %v16571_v45, %v17178_v52  ;;  %v4832_v25 = vadd.f32 %v4704_v59, %v4550_v20  ;;  %v5008_v32 = vmul.f32 %v16572_v12, %v17179_v35 }
 0x38c   : > { %v8738_v6 = vcombine.low %v8730_v58, %v8737_v28  ;;  %v4833_v11 = vadd.f32 %v4705_v57, %v4551_v21  ;;  %v17180_v31 = vrot.slane %v13644_v1, 7  ;;  %v5968_v13 = vmul.f32 %v16619_v5, %v17177_v48  ;;  %v17184_v21 = vld [vmem:[#allocation40_spill] sm:$0xff]  ;;  %v17185_v28 = vld [vmem:[#allocation41_spill] sm:$0xff]  ;;  %v17186_v57 = vld [vmem:[#allocation138_spill] sm:$0xff] }
 0x38d   : > { %v5415_v41 = vrot.slane %v5006_v34, 7  ;;  %v5418_v43 = vrot.slane %v5007_v61, 7  ;;  %v5421_v0 = vrot.slane %v5008_v32, 7  ;;  %v5969_v62 = vmul.f32 %v16620_v23, %v17178_v52 }
 0x38e   : > { %v5414_v9 = vrot.slane %v17180_v31, 2  ;;  %9966 = vmatprep.mubr.msk.f32.mxu1 %vm9028_vm10, %v8738_v6  ;;  %v5970_v2 = vmul.f32 %v17124_v16, %v17179_v35  ;;  %v5971_v50 = vmul.f32 %v17125_v27, %v17181_v30  ;;  %v6250_v18 = vmul.f32 %v17126_v63, %v17159_v49  ;;  %v17190_v30 = vld [vmem:[#allocation33_spill] sm:$0xff] }
 0x38f   : > { %v5417_v7 = vrot.slane %v5415_v41, 2  ;;  %v5420_v3 = vrot.slane %v5418_v43, 2  ;;  %v5423_v37 = vrot.slane %v5421_v0, 2  ;;  %v6251_v19 = vmul.f32 %v17128_v56, %v17182_v33 }
 0x390   : > { %v5416_v1 = vsel %vm10597_vm9, %v5414_v9, %v5415_v41  ;;  %v6252_v42 = vmul.f32 %v17130_v26, %v17183_v17  ;;  %v6253_v58 = vmul.f32 %v17184_v21, %v17162_v14  ;;  %v6554_v59 = vmul.f32 %v17185_v28, %v17182_v33  ;;  %v17188_v9 = vld [vmem:[#allocation32_spill] sm:$0xff] }
 0x391   : > { %v5814_v29 = vadd.f32 %v5416_v1, %v4830_v51  ;;  %v5419_v10 = vsel %vm10597_vm9, %v5417_v7, %v5418_v43  ;;  %v5422_v20 = vsel %vm10597_vm9, %v5420_v3, %v5421_v0  ;;  %v17187_v51 = vrot.slane %v17186_v57, 7  ;;  %v17189_v43 = vld [vmem:[#allocation35_spill] sm:$0xff] }
 0x392   : > { %v5815_v61 = vadd.f32 %v5419_v10, %v4831_v46  ;;  %v5816_v6 = vadd.f32 %v5422_v20, %v4832_v25  ;;  %v6555_v41 = vmul.f32 %v17188_v9, %v17183_v17  ;;  %v6556_v0 = vmul.f32 %v17189_v43, %v17162_v14  ;;  %v17192_v20 = vld [vmem:[#allocation31_spill] sm:$0xff] }
 0x393   : > { %v5425_v34 = vsel %vm10597_vm9, %v5423_v37, %v17187_v51  ;;  %v6096_v32 = vadd.f32 %v5968_v13, %v5814_v29  ;;  %v6557_v1 = vmul.f32 %v17190_v30, %v13709_v8  ;;  %v17191_v57 = vrot.slane %v13686_v38, 7  ;;  %v17193_v38 = vld [vmem:[#allocation43_spill] sm:$0xff] }
 0x394   : > { %v5817_v31 = vadd.f32 %v5425_v34, %v4833_v11  ;;  %v6097_v7 = vadd.f32 %v5969_v62, %v5815_v61  ;;  %v6098_v3 = vadd.f32 %v5970_v2, %v5816_v6  ;;  %v6963_v46 = vrot.slane %v6554_v59, 7  ;;  %v17194_v59 = vld [vmem:[#allocation34_spill] sm:$0xff] }
 0x395   : > { %v6378_v60 = vadd.f32 %v6250_v18, %v6096_v32  ;;  %v6962_v35 = vrot.slane %v17191_v57, 2  ;;  %v6966_v25 = vrot.slane %v6555_v41, 7  ;;  %v6969_v13 = vrot.slane %v6556_v0, 7  ;;  %v17199_v57 = vld [vmem:[#allocation5_spill] sm:$0xff] }
 0x396   : > { %v6099_v37 = vadd.f32 %v5971_v50, %v5817_v31  ;;  %v6379_v11 = vadd.f32 %v6251_v19, %v6097_v7  ;;  %v6380_v29 = vadd.f32 %v6252_v42, %v6098_v3  ;;  %v6972_v10 = vrot.slane %v6557_v1, 7  ;;  %v17197_v31 = vld [vmem:[#allocation6_spill] sm:$0xff]  ;;  %v17198_v3 = vld [vmem:[#allocation59_spill] sm:$0xff] }
 0x397   : > { %v7516_v51 = vmul.f32 %v17192_v20, %v17182_v33  ;;  %v6964_v30 = vsel %vm10597_vm9, %v6962_v35, %v6963_v46  ;;  %v6965_v62 = vrot.slane %v6963_v46, 2  ;;  %v6968_v2 = vrot.slane %v6966_v25, 2  ;;  %v17196_v35 = vld [vmem:[#allocation56_spill] sm:$0xff]  ;;  %v17200_v46 = vld [vmem:[#allocation131_spill] sm:$0xff] }
 0x398   : > { %v6381_v34 = vadd.f32 %v6253_v58, %v6099_v37  ;;  %v6971_v18 = vrot.slane %v6969_v13, 2  ;;  %v7362_v61 = vadd.f32 %v6964_v30, %v6378_v60  ;;  %v7517_v50 = vmul.f32 %v17193_v38, %v17183_v17  ;;  %v17195_v58 = vld [vmem:[#allocation44_spill] sm:$0xff] }
 0x399   : > { %v7518_v6 = vmul.f32 %v17194_v59, %v17162_v14  ;;  %v6967_v19 = vsel %vm10597_vm9, %v6965_v62, %v6966_v25  ;;  %v6970_v42 = vsel %vm10597_vm9, %v6968_v2, %v6969_v13  ;;  %v7519_v32 = vmul.f32 %v17195_v58, %v13709_v8  ;;  %v17201_v25 = vld [vmem:[#allocation17_spill] sm:$0xff]  ;;  %v17202_v13 = vld [vmem:[#allocation10_spill] sm:$0xff]  ;;  %v17203_v33 = vld [vmem:[#allocation12_spill] sm:$0xff] }
 0x39a   : > { %v3280_v41 = vmul.f32 %v17197_v31, %v17196_v35  ;;  %v6973_v60 = vsel %vm10597_vm9, %v6971_v18, %v6972_v10  ;;  %v7363_v0 = vadd.f32 %v6967_v19, %v6379_v11  ;;  %v7364_v30 = vadd.f32 %v6970_v42, %v6380_v29  ;;  %v17204_v11 = vld [vmem:[#allocation13_spill] sm:$0xff] }
 0x39b   : > { %v7644_v1 = vadd.f32 %v7516_v51, %v7362_v61  ;;  %v7365_v7 = vadd.f32 %v6973_v60, %v6381_v34  ;;  %v3281_v37 = vmul.f32 %v17199_v57, %v17198_v3  ;;  %v3282_v62 = vmul.f32 %v17201_v25, %v17200_v46  ;;  %v17205_v51 = vld [vmem:[#allocation20_spill] sm:$0xff] }
 0x39c   : > { %v3463_v2 = vmul.f32 %v17202_v13, %v17196_v35  ;;  %v7645_v8 = vadd.f32 %v7517_v50, %v7363_v0  ;;  %v7646_v14 = vadd.f32 %v7518_v6, %v7364_v30  ;;  %v3464_v52 = vmul.f32 %v17203_v33, %v17198_v3  ;;  %v17206_v50 = vld [vmem:[#allocation64_spill] sm:$0xff] }
 0x39d   : > { %v7772_v17 = vadd.f32 3.0, %v7644_v1  ;;  %v7647_v10 = vadd.f32 %v7519_v32, %v7365_v7  ;;  %v3465_v29 = vmul.f32 %v17204_v11, %v17200_v46  ;;  %v13830_v34 = vmul.f32 %v17205_v51, %v17107_v44 }
 0x39e   : > { %v3880_v18 = vrot.slane %v3463_v2, 7  ;;  %v7773_v61 = vadd.f32 3.0, %v7645_v8  ;;  %v7774_v19 = vadd.f32 3.0, %v7646_v14  ;;  %v3883_v60 = vrot.slane %v3464_v52, 7 }
 0x39f   : > { %v7900_v42 = vmax.f32 %v7772_v17, 0.0  ;;  %v7775_v13 = vadd.f32 3.0, %v7647_v10  ;;  %v17207_v6 = vrot.slane %v17206_v50, 9  ;;  %v3886_v32 = vrot.slane %v3465_v29, 7 }
 0x3a0   : > { %v3882_v30 = vrot.slane %v3880_v18, 2  ;;  %v7901_v7 = vmax.f32 %v7773_v61, 0.0  ;;  %v7902_v33 = vmax.f32 %v7774_v19, 0.0  ;;  %v3885_v25 = vrot.slane %v3883_v60, 2 }
 0x3a1   : > { %v3881_v0 = vsel %vm10597_vm9, %v17207_v6, %v3880_v18  ;;  %v8028_v11 = vmin.f32 %v7900_v42, 6.0  ;;  %v7903_v57 = vmax.f32 %v7775_v13, 0.0  ;;  %v3888_v51 = vrot.slane %v3886_v32, 2  ;;  %v17208_v18 = vld [vmem:[#allocation61_spill] sm:$0xff] }
 0x3a2   : > { %v3884_v2 = vsel %vm10597_vm9, %v3882_v30, %v3883_v60  ;;  %v16239_v17 = vrot.slane %v13830_v34, 7  ;;  %v8029_v52 = vmin.f32 %v7901_v7, 6.0  ;;  %v8030_v31 = vmin.f32 %v7902_v33, 6.0 }
 0x3a3   : > { %v8156_v48 = vmul.f32 %v8028_v11, %v7644_v1  ;;  %v3887_v50 = vsel %vm10597_vm9, %v3885_v25, %v3886_v32  ;;  %v8031_v6 = vmin.f32 %v7903_v57, 6.0  ;;  %v4270_v13 = vadd.f32 %v3881_v0, %v17208_v18  ;;  %v17211_v32 = vld [vmem:[#allocation135_spill] sm:$0xff] }
 0x3a4   : > { %v3890_v29 = vsel %vm10597_vm9, %v3888_v51, %v16239_v17  ;;  %v4271_v61 = vadd.f32 %v3884_v2, %v3280_v41  ;;  %v8157_v19 = vmul.f32 %v8029_v52, %v7645_v8  ;;  %v8158_v42 = vmul.f32 %v8030_v31, %v7646_v14  ;;  %v17209_v31 = vld [vmem:[#allocation71_spill] sm:$0xff]  ;;  %v17210_v51 = vld [vmem:[#allocation112_spill] sm:$0xff] }
 0x3a5   : > { %v8284_v60 = vmul.f32 0.16666667, %v8156_v48  ;;  %v4272_v30 = vadd.f32 %v3887_v50, %v3281_v37  ;;  %v8159_v58 = vmul.f32 %v8031_v6, %v7647_v10  ;;  %v4273_v7 = vadd.f32 %v3890_v29, %v3282_v62  ;;  %v17213_v29 = vld [vmem:[#allocation9_spill] sm:$0xff]  ;;  %v17219_v17 = vld [vmem:[#allocation24_spill] sm:$0xff] }
 0x3a6   : > { %v4424_v33 = vmul.f32 %v17115_v4, %v17196_v35  ;;  %v4425_v1 = vmul.f32 %v17087_v47, %v17198_v3  ;;  %v8285_v57 = vmul.f32 0.16666667, %v8157_v19  ;;  %v8286_v25 = vmul.f32 0.16666667, %v8158_v42 }
 0x3a7   : > { %v4426_v11 = vmul.f32 %v16994_v24, %v17200_v46  ;;  %v4427_v41 = vmul.f32 %v16995_v55, %v17107_v44  ;;  %v8287_v8 = vmul.f32 0.16666667, %v8159_v58  ;;  %v4706_v37 = vmul.f32 %v17093_v36, %v17209_v31  ;;  %v17212_v46 = vld [vmem:[#allocation74_spill] sm:$0xff] }
 0x3a8   : > { %v4552_v14 = vadd.f32 %v4424_v33, %v4270_v13  ;;  %v4553_v48 = vadd.f32 %v4425_v1, %v4271_v61  ;;  %v8739_v62 = vcombine.low %v8284_v60, %v8285_v57  ;;  %v4707_v3 = vmul.f32 %v17095_v22, %v17210_v51 }
 0x3a9   : > { %v4554_v10 = vadd.f32 %v4426_v11, %v4272_v30  ;;  %v4555_v35 = vadd.f32 %v4427_v41, %v4273_v7  ;;  %v8740_v0 = vcombine.low %v8286_v25, %v8287_v8  ;;  %v4708_v2 = vmul.f32 %v17000_v39, %v17211_v32  ;;  %v17214_v7 = vld [vmem:[#allocation36_spill] sm:$0xff] }
 0x3aa   : > { %v4709_v52 = vmul.f32 %v17002_v15, %v17212_v46  ;;  %v4834_v50 = vadd.f32 %v4706_v37, %v4552_v14  ;;  %v8747_v58 = vrot.slane %v8739_v62, %v17120_v40  ;;  %v4835_v6 = vadd.f32 %v4707_v3, %v4553_v48 }
 0x3ab   : > { %v5010_v18 = vmul.f32 %v17213_v29, %v17209_v31  ;;  %v5011_v13 = vmul.f32 %v17099_v53, %v17210_v51  ;;  %v8754_v61 = vrot.slane %v8740_v0, %v17120_v40  ;;  %v4836_v19 = vadd.f32 %v4708_v2, %v4554_v10 }
 0x3ac   : > { %v4837_v42 = vadd.f32 %v4709_v52, %v4555_v35  ;;  %v5012_v60 = vmul.f32 %v16571_v45, %v17211_v32  ;;  %v5013_v30 = vmul.f32 %v16572_v12, %v17212_v46  ;;  %v13874_v33 = vmul.f32 %v17214_v7, %v17159_v49 }
 0x3ad   : > { %v9675_v1 = vrot.slane %v5010_v18, 9  ;;  %v5428_v57 = vrot.slane %v5011_v13, 7  ;;  %v8755_v25 = vcombine.low %v8747_v58, %v8754_v61  ;;  %v5972_v41 = vmul.f32 %v16619_v5, %v17210_v51  ;;  %v17215_v58 = vld [vmem:[#allocation81_spill] sm:$0xff]  ;;  %v17216_v13 = vld [vmem:[#allocation80_spill] sm:$0xff] }
 0x3ae   : > { %v5431_v11 = vrot.slane %v5012_v60, 7  ;;  %v5973_v8 = vmul.f32 %v16620_v23, %v17211_v32  ;;  %v5434_v37 = vrot.slane %v5013_v30, 7  ;;  %v16241_v62 = vrot.slane %v13874_v33, 7  ;;  %v17229_v51 = vld [vmem:[#allocation17_spill] sm:$0xff] }
 0x3af   : > { %v5429_v14 = vsel %vm10597_vm9, %v9675_v1, %v5428_v57  ;;  %v5430_v48 = vrot.slane %v5428_v57, 2  ;;  %9967 = vmatmul.mubr.msk.f32.gmra.mxu1 %vm9028_vm10, %v8755_v25  ;;  %v5974_v3 = vmul.f32 %v17124_v16, %v17212_v46  ;;  %v5975_v0 = vmul.f32 %v17125_v27, %v17159_v49  ;;  %v17217_v1 = vld [vmem:[#allocation69_spill] sm:$0xff] }
 0x3b0   : > { %v5433_v10 = vrot.slane %v5431_v11, 2  ;;  %v5818_v35 = vadd.f32 %v5429_v14, %v4834_v50  ;;  %v5436_v52 = vrot.slane %v5434_v37, 2  ;;  %v6254_v18 = vmul.f32 %v17126_v63, %v17215_v58  ;;  %v17218_v14 = vld [vmem:[#allocation48_spill] sm:$0xff] }
 0x3b1   : > { %v5432_v2 = vsel %vm10597_vm9, %v5430_v48, %v5431_v11  ;;  %v6255_v61 = vmul.f32 %v17128_v56, %v17216_v13  ;;  %v6256_v57 = vmul.f32 %v17130_v26, %v17217_v1  ;;  %v6257_v48 = vmul.f32 %v17184_v21, %v17218_v14 }
 0x3b2   : > { %v5435_v60 = vsel %vm10597_vm9, %v5433_v10, %v5434_v37  ;;  %v5819_v50 = vadd.f32 %v5432_v2, %v4835_v6  ;;  %v6100_v30 = vadd.f32 %v5972_v41, %v5818_v35  ;;  %v5438_v25 = vsel %vm10597_vm9, %v5436_v52, %v16241_v62  ;;  %v17221_v2 = vld [vmem:[#allocation42_spill] sm:$0xff] }
 0x3b3   : > { %v5820_v11 = vadd.f32 %v5435_v60, %v4836_v19  ;;  %v6558_v7 = vmul.f32 %v17219_v17, %v17215_v58  ;;  %v5821_v29 = vadd.f32 %v5438_v25, %v4837_v42  ;;  %v6559_v6 = vmul.f32 %v17185_v28, %v17216_v13  ;;  %v17220_v19 = vld [vmem:[#allocation85_spill] sm:$0xff] }
 0x3b4   : > { %v6101_v55 = vadd.f32 %v5973_v8, %v5819_v50  ;;  %v6382_v37 = vadd.f32 %v6254_v18, %v6100_v30  ;;  %v6560_v10 = vmul.f32 %v17188_v9, %v17217_v1  ;;  %v6561_v35 = vmul.f32 %v17189_v43, %v17218_v14 }
 0x3b5   : > { %v6102_v41 = vadd.f32 %v5974_v3, %v5820_v11  ;;  %v13914_v52 = vmul.f32 %v17221_v2, %v17220_v19  ;;  %v6103_v60 = vadd.f32 %v5975_v0, %v5821_v29  ;;  %v9691_v17 = vrot.slane %v6558_v7, 9  ;;  %v17222_v0 = vld [vmem:[#allocation44_spill] sm:$0xff] }
 0x3b6   : > { %v6383_v62 = vadd.f32 %v6255_v61, %v6101_v55  ;;  %v6976_v42 = vrot.slane %v6559_v6, 7  ;;  %v6979_v18 = vrot.slane %v6560_v10, 7  ;;  %v6982_v50 = vrot.slane %v6561_v35, 7 }
 0x3b7   : > { %v6384_v8 = vadd.f32 %v6256_v57, %v6102_v41  ;;  %v16250_v30 = vrot.slane %v13914_v52, 7  ;;  %v6385_v3 = vadd.f32 %v6257_v48, %v6103_v60  ;;  %v7520_v58 = vmul.f32 %v17192_v20, %v17216_v13  ;;  %v17224_v60 = vld [vmem:[#allocation53_spill] sm:$0xff]  ;;  %v17228_v13 = vld [vmem:[#allocation123_spill] sm:$0xff] }
 0x3b8   : > { %v6977_v25 = vsel %vm10597_vm9, %v9691_v17, %v6976_v42  ;;  %v6978_v11 = vrot.slane %v6976_v42, 2  ;;  %v6981_v46 = vrot.slane %v6979_v18, 2  ;;  %v6984_v2 = vrot.slane %v6982_v50, 2  ;;  %v17223_v17 = vld [vmem:[#allocation4_spill] sm:$0xff]  ;;  %v17225_v42 = vld [vmem:[#allocation6_spill] sm:$0xff] }
 0x3b9   : > { %v7366_v32 = vadd.f32 %v6977_v25, %v6382_v37  ;;  %v7521_v55 = vmul.f32 %v17193_v38, %v17217_v1  ;;  %v7522_v7 = vmul.f32 %v17194_v59, %v17218_v14  ;;  %v7523_v61 = vmul.f32 %v17222_v0, %v17220_v19  ;;  %v17226_v25 = vld [vmem:[#allocation65_spill] sm:$0xff] }
 0x3ba   : > { %v6980_v29 = vsel %vm10597_vm9, %v6978_v11, %v6979_v18  ;;  %v3283_v57 = vmul.f32 %v17223_v17, %v17107_v44  ;;  %v6983_v48 = vsel %vm10597_vm9, %v6981_v46, %v6982_v50  ;;  %v6986_v37 = vsel %vm10597_vm9, %v6984_v2, %v16250_v30  ;;  %v17227_v11 = vld [vmem:[#allocation5_spill] sm:$0xff]  ;;  %v17230_v50 = vld [vmem:[#allocation10_spill] sm:$0xff] }
 0x3bb   : > { %v7367_v6 = vadd.f32 %v6980_v29, %v6383_v62  ;;  %v7648_v41 = vadd.f32 %v7520_v58, %v7366_v32  ;;  %v7368_v10 = vadd.f32 %v6983_v48, %v6384_v8  ;;  %v7369_v35 = vadd.f32 %v6986_v37, %v6385_v3  ;;  %v17231_v32 = vld [vmem:[#allocation12_spill] sm:$0xff]  ;;  %v17232_v58 = vld [vmem:[#allocation13_spill] sm:$0xff] }
 0x3bc   : > { %v3284_v18 = vmul.f32 %v17225_v42, %v17224_v60  ;;  %v3285_v14 = vmul.f32 %v17227_v11, %v17226_v25  ;;  %v3286_v46 = vmul.f32 %v17229_v51, %v17228_v13  ;;  %v3467_v17 = vmul.f32 %v17230_v50, %v17224_v60 }
 0x3bd   : > { %v7649_v1 = vadd.f32 %v7521_v55, %v7367_v6  ;;  %v7776_v44 = vadd.f32 3.0, %v7648_v41  ;;  %v7650_v31 = vadd.f32 %v7522_v7, %v7368_v10  ;;  %v7651_v2 = vadd.f32 %v7523_v61, %v7369_v35 }
 0x3be   : > { %v3468_v62 = vmul.f32 %v17231_v32, %v17226_v25  ;;  %v3469_v8 = vmul.f32 %v17232_v58, %v17228_v13  ;;  %v17233_v48 = vrot.slane %v13830_v34, 7  ;;  %v3892_v37 = vrot.slane %v3467_v17, 7 }
 0x3bf   : > { %v7777_v3 = vadd.f32 3.0, %v7649_v1  ;;  %v7904_v29 = vmax.f32 %v7776_v44, 0.0  ;;  %v7778_v6 = vadd.f32 3.0, %v7650_v31  ;;  %v7779_v30 = vadd.f32 3.0, %v7651_v2 }
 0x3c0   : > { %v3891_v55 = vrot.slane %v17233_v48, 2  ;;  %v3895_v51 = vrot.slane %v3468_v62, 7  ;;  %v3898_v11 = vrot.slane %v3469_v8, 7  ;;  %v3894_v61 = vrot.slane %v3892_v37, 2  ;;  %v17234_v8 = vld [vmem:[#allocation136_spill] sm:$0xff] }
 0x3c1   : > { %v7905_v42 = vmax.f32 %v7777_v3, 0.0  ;;  %v8032_v50 = vmin.f32 %v7904_v29, 6.0  ;;  %v7906_v10 = vmax.f32 %v7778_v6, 0.0  ;;  %v7907_v35 = vmax.f32 %v7779_v30, 0.0 }
 0x3c2   : > { %v3893_v7 = vsel %vm10597_vm9, %v3891_v55, %v3892_v37  ;;  %v3897_v32 = vrot.slane %v3895_v51, 2  ;;  %v3900_v58 = vrot.slane %v3898_v11, 2  ;;  %v3896_v34 = vsel %vm10597_vm9, %v3894_v61, %v3895_v51 }
 0x3c3   : > { %v8033_v0 = vmin.f32 %v7905_v42, 6.0  ;;  %v8160_v44 = vmul.f32 %v8032_v50, %v7648_v41  ;;  %v4274_v17 = vadd.f32 %v3893_v7, %v3283_v57  ;;  %v8034_v48 = vmin.f32 %v7906_v10, 6.0  ;;  %v17238_v10 = vld [vmem:[#allocation141_spill] sm:$0xff] }
 0x3c4   : > { %v8035_v59 = vmin.f32 %v7907_v35, 6.0  ;;  %v3899_v62 = vsel %vm10597_vm9, %v3897_v32, %v3898_v11  ;;  %v17235_v3 = vrot.slane %v17234_v8, 7  ;;  %v4275_v37 = vadd.f32 %v3896_v34, %v3284_v18  ;;  %v17239_v35 = vld [vmem:[#allocation25_spill] sm:$0xff] }
 0x3c5   : > { %v8161_v55 = vmul.f32 %v8033_v0, %v7649_v1  ;;  %v8288_v30 = vmul.f32 0.16666667, %v8160_v44  ;;  %v4276_v6 = vadd.f32 %v3899_v62, %v3285_v14  ;;  %v8162_v42 = vmul.f32 %v8034_v48, %v7650_v31  ;;  %v17236_v14 = vld [vmem:[#allocation137_spill] sm:$0xff] }
 0x3c6   : > { %v3902_v29 = vsel %vm10597_vm9, %v3900_v58, %v17235_v3  ;;  %v8163_v41 = vmul.f32 %v8035_v59, %v7651_v2  ;;  %v4428_v51 = vmul.f32 %v17115_v4, %v17224_v60  ;;  %v4429_v7 = vmul.f32 %v17087_v47, %v17226_v25  ;;  %v17237_v58 = vld [vmem:[#allocation139_spill] sm:$0xff] }
 0x3c7   : > { %v4277_v50 = vadd.f32 %v3902_v29, %v3286_v46  ;;  %v8289_v57 = vmul.f32 0.16666667, %v8161_v55  ;;  %v4430_v11 = vmul.f32 %v16994_v24, %v17228_v13  ;;  %v4710_v32 = vmul.f32 %v17093_v36, %v17159_v49 }
 0x3c8   : > { %v8290_v1 = vmul.f32 0.16666667, %v8162_v42  ;;  %v8291_v0 = vmul.f32 0.16666667, %v8163_v41  ;;  %v4556_v18 = vadd.f32 %v4428_v51, %v4274_v17  ;;  %v4557_v46 = vadd.f32 %v4429_v7, %v4275_v37  ;;  %v17241_v37 = vld [vmem:[#allocation28_spill] sm:$0xff] }
 0x3c9   : > { %v4559_v31 = vadd.f32 %v17236_v14, %v4277_v50  ;;  %v8756_v59 = vcombine.low %v8288_v30, %v8289_v57  ;;  %v4558_v2 = vadd.f32 %v4430_v11, %v4276_v6  ;;  %v4711_v60 = vmul.f32 %v17095_v22, %v17237_v58  ;;  %v17240_v30 = vld [vmem:[#allocation102_spill] sm:$0xff] }
 0x3ca   : > { %v8757_v61 = vcombine.low %v8290_v1, %v8291_v0  ;;  %v4712_v25 = vmul.f32 %v17000_v39, %v17238_v10  ;;  %v4713_v13 = vmul.f32 %v17002_v15, %v17239_v35  ;;  %v4838_v44 = vadd.f32 %v4710_v32, %v4556_v18 }
 0x3cb   : > { %v8764_v34 = vrot.slane %v8756_v59, %v17120_v40  ;;  %v4839_v48 = vadd.f32 %v4711_v60, %v4557_v46  ;;  %v5015_v17 = vmul.f32 %v17099_v53, %v17237_v58  ;;  %v5016_v62 = vmul.f32 %v16571_v45, %v17238_v10 }
 0x3cc   : > { %v8771_v8 = vrot.slane %v8757_v61, %v17120_v40  ;;  %v4840_v3 = vadd.f32 %v4712_v25, %v4558_v2  ;;  %v4841_v29 = vadd.f32 %v4713_v13, %v4559_v31  ;;  %v5017_v55 = vmul.f32 %v16572_v12, %v17239_v35  ;;  %v17243_v25 = vld [vmem:[#allocation147_spill] sm:$0xff] }
 0x3cd   : > { %v5018_v6 = vmul.f32 %v17241_v37, %v17240_v30  ;;  %v17242_v42 = vrot.slane %v13874_v33, 7  ;;  %v5440_v50 = vrot.slane %v5015_v17, 7  ;;  %v5443_v51 = vrot.slane %v5016_v62, 7 }
 0x3ce   : > { %v8772_v57 = vcombine.low %v8764_v34, %v8771_v8  ;;  %v5446_v7 = vrot.slane %v5017_v55, 7  ;;  %v5976_v11 = vmul.f32 %v16619_v5, %v17237_v58  ;;  %v5977_v32 = vmul.f32 %v16620_v23, %v17238_v10  ;;  %v17244_v55 = vld [vmem:[#allocation84_spill] sm:$0xff] }
 0x3cf   : > { %v5439_v41 = vrot.slane %v17242_v42, 2  ;;  %v5442_v0 = vrot.slane %v5440_v50, 2  ;;  %v5445_v18 = vrot.slane %v5443_v51, 2  ;;  %v5449_v14 = vrot.slane %v5018_v6, 7  ;;  %v17245_v42 = vld [vmem:[#allocation150_spill] sm:$0xff] }
 0x3d0   : > { %9969 = vmatprep.mubr.msk.f32.mxu1 %vm9028_vm10, %v8772_v57  ;;  %v5448_v33 = vrot.slane %v5446_v7, 2  ;;  %v5978_v59 = vmul.f32 %v17124_v16, %v17239_v35  ;;  %v5979_v46 = vmul.f32 %v17125_v27, %v17240_v30  ;;  %v6258_v61 = vmul.f32 %v17126_v63, %v17220_v19 }
 0x3d1   : > { %v5441_v1 = vsel %vm10597_vm9, %v5439_v41, %v5440_v50  ;;  %v5444_v2 = vsel %vm10597_vm9, %v5442_v0, %v5443_v51  ;;  %v5447_v60 = vsel %vm10597_vm9, %v5445_v18, %v5446_v7  ;;  %v6259_v13 = vmul.f32 %v17128_v56, %v17243_v25 }
 0x3d2   : > { %v5822_v31 = vadd.f32 %v5441_v1, %v4838_v44  ;;  %v5450_v44 = vsel %vm10597_vm9, %v5448_v33, %v5449_v14  ;;  %v5823_v34 = vadd.f32 %v5444_v2, %v4839_v48  ;;  %v5824_v17 = vadd.f32 %v5447_v60, %v4840_v3  ;;  %v17246_v3 = vld [vmem:[#allocation72_spill] sm:$0xff] }
 0x3d3   : > { %v5825_v8 = vadd.f32 %v5450_v44, %v4841_v29  ;;  %v6260_v6 = vmul.f32 %v17130_v26, %v17244_v55  ;;  %v6261_v41 = vmul.f32 %v17184_v21, %v17245_v42  ;;  %v6563_v50 = vmul.f32 %v17185_v28, %v17243_v25  ;;  %v17247_v29 = vld [vmem:[#allocation33_spill] sm:$0xff] }
 0x3d4   : > { %v6104_v62 = vadd.f32 %v5976_v11, %v5822_v31  ;;  %v6105_v51 = vadd.f32 %v5977_v32, %v5823_v34  ;;  %v6106_v57 = vadd.f32 %v5978_v59, %v5824_v17  ;;  %v6564_v1 = vmul.f32 %v17188_v9, %v17244_v55 }
 0x3d5   : > { %v6107_v0 = vadd.f32 %v5979_v46, %v5825_v8  ;;  %v6565_v48 = vmul.f32 %v17189_v43, %v17245_v42  ;;  %v6566_v11 = vmul.f32 %v17247_v29, %v17246_v3  ;;  %v17248_v18 = vrot.slane %v13914_v52, 7 }
 0x3d6   : > { %v6386_v7 = vadd.f32 %v6258_v61, %v6104_v62  ;;  %v6387_v33 = vadd.f32 %v6259_v13, %v6105_v51  ;;  %v6388_v31 = vadd.f32 %v6260_v6, %v6106_v57  ;;  %v6988_v2 = vrot.slane %v6563_v50, 7  ;;  %v17249_v13 = vld [vmem:[#allocation34_spill] sm:$0xff] }
 0x3d7   : > { %v6987_v14 = vrot.slane %v17248_v18, 2  ;;  %v6991_v60 = vrot.slane %v6564_v1, 7  ;;  %v6389_v32 = vadd.f32 %v6261_v41, %v6107_v0  ;;  %v6994_v59 = vrot.slane %v6565_v48, 7  ;;  %v17250_v41 = vld [vmem:[#allocation44_spill] sm:$0xff]  ;;  %v17251_v1 = vld [vmem:[#allocation71_spill] sm:$0xff]  ;;  %v17254_v18 = vld [vmem:[#allocation6_spill] sm:$0xff] }
 0x3d8   : > { %v6997_v61 = vrot.slane %v6566_v11, 7  ;;  %v7524_v44 = vmul.f32 %v17192_v20, %v17243_v25  ;;  %v6990_v34 = vrot.slane %v6988_v2, 2  ;;  %v7525_v62 = vmul.f32 %v17193_v38, %v17244_v55  ;;  %v17252_v0 = vld [vmem:[#allocation4_spill] sm:$0xff] }
 0x3d9   : > { %v6989_v46 = vsel %vm10597_vm9, %v6987_v14, %v6988_v2  ;;  %v6993_v17 = vrot.slane %v6991_v60, 2  ;;  %v6996_v52 = vrot.slane %v6994_v59, 2  ;;  %v7526_v6 = vmul.f32 %v17249_v13, %v17245_v42  ;;  %v17253_v11 = vld [vmem:[#allocation112_spill] sm:$0xff]  ;;  %v17256_v42 = vld [vmem:[#allocation5_spill] sm:$0xff] }
 0x3da   : > { %v7370_v8 = vadd.f32 %v6989_v46, %v6386_v7  ;;  %v7527_v50 = vmul.f32 %v17250_v41, %v17246_v3  ;;  %v6992_v51 = vsel %vm10597_vm9, %v6990_v34, %v6991_v60  ;;  %v3287_v48 = vmul.f32 %v17252_v0, %v17251_v1  ;;  %v17255_v3 = vld [vmem:[#allocation135_spill] sm:$0xff]  ;;  %v17257_v60 = vld [vmem:[#allocation74_spill] sm:$0xff]  ;;  %v17258_v34 = vld [vmem:[#allocation17_spill] sm:$0xff] }
 0x3db   : > { %v6995_v57 = vsel %vm10597_vm9, %v6993_v17, %v6994_v59  ;;  %v3288_v14 = vmul.f32 %v17254_v18, %v17253_v11  ;;  %v6998_v7 = vsel %vm10597_vm9, %v6996_v52, %v6997_v61  ;;  %v7371_v2 = vadd.f32 %v6992_v51, %v6387_v33  ;;  %v17259_v59 = vld [vmem:[#allocation3_spill] sm:$0xff]  ;;  %v17260_v18 = vld [vmem:[#allocation10_spill] sm:$0xff]  ;;  %v17261_v33 = vld [vmem:[#allocation12_spill] sm:$0xff] }
 0x3dc   : > { %v7372_v46 = vadd.f32 %v6995_v57, %v6388_v31  ;;  %v7652_v29 = vadd.f32 %v7524_v44, %v7370_v8  ;;  %v7373_v37 = vadd.f32 %v6998_v7, %v6389_v32  ;;  %v3289_v55 = vmul.f32 %v17256_v42, %v17255_v3  ;;  %v17262_v32 = vld [vmem:[#allocation13_spill] sm:$0xff]  ;;  %v17263_v52 = vld [vmem:[#allocation20_spill] sm:$0xff] }
 0x3dd   : > { %v3290_v25 = vmul.f32 %v17258_v34, %v17257_v60  ;;  %v3471_v17 = vmul.f32 %v17259_v59, %v17251_v1  ;;  %v7653_v30 = vadd.f32 %v7525_v62, %v7371_v2  ;;  %v3472_v58 = vmul.f32 %v17260_v18, %v17253_v11 }
 0x3de   : > { %v7654_v35 = vadd.f32 %v7526_v6, %v7372_v46  ;;  %v7780_v10 = vadd.f32 3.0, %v7652_v29  ;;  %v7655_v61 = vadd.f32 %v7527_v50, %v7373_v37  ;;  %v3473_v31 = vmul.f32 %v17261_v33, %v17255_v3 }
 0x3df   : > { %v3474_v44 = vmul.f32 %v17262_v32, %v17257_v60  ;;  %v14057_v8 = vmul.f32 %v17263_v52, %v17159_v49  ;;  %v7781_v51 = vadd.f32 3.0, %v7653_v30  ;;  %v9660_v62 = vrot.slane %v3471_v17, 9 }
 0x3e0   : > { %v7782_v57 = vadd.f32 3.0, %v7654_v35  ;;  %v7908_v1 = vmax.f32 %v7780_v10, 0.0  ;;  %v7783_v6 = vadd.f32 3.0, %v7655_v61  ;;  %v3905_v7 = vrot.slane %v3472_v58, 7 }
 0x3e1   : > { %v3908_v2 = vrot.slane %v3473_v31, 7  ;;  %v3911_v46 = vrot.slane %v3474_v44, 7  ;;  %v7909_v59 = vmax.f32 %v7781_v51, 0.0  ;;  %v16260_v33 = vrot.slane %v14057_v8, 7 }
 0x3e2   : > { %v7910_v37 = vmax.f32 %v7782_v57, 0.0  ;;  %v8036_v50 = vmin.f32 %v7908_v1, 6.0  ;;  %v7911_v18 = vmax.f32 %v7783_v6, 0.0  ;;  %v3906_v32 = vsel %vm10597_vm9, %v9660_v62, %v3905_v7 }
 0x3e3   : > { %v3907_v34 = vrot.slane %v3905_v7, 2  ;;  %v3910_v52 = vrot.slane %v3908_v2, 2  ;;  %v8037_v42 = vmin.f32 %v7909_v59, 6.0  ;;  %v3913_v10 = vrot.slane %v3911_v46, 2 }
 0x3e4   : > { %v8038_v0 = vmin.f32 %v7910_v37, 6.0  ;;  %v8164_v41 = vmul.f32 %v8036_v50, %v7652_v29  ;;  %v8039_v17 = vmin.f32 %v7911_v18, 6.0  ;;  %v4278_v44 = vadd.f32 %v3906_v32, %v3287_v48  ;;  %v17266_v32 = vld [vmem:[#allocation80_spill] sm:$0xff] }
 0x3e5   : > { %v3909_v58 = vsel %vm10597_vm9, %v3907_v34, %v3908_v2  ;;  %v3912_v31 = vsel %vm10597_vm9, %v3910_v52, %v3911_v46  ;;  %v8165_v51 = vmul.f32 %v8037_v42, %v7653_v30  ;;  %v3915_v62 = vsel %vm10597_vm9, %v3913_v10, %v16260_v33  ;;  %v17264_v42 = vld [vmem:[#allocation21_spill] sm:$0xff]  ;;  %v17268_v10 = vld [vmem:[#allocation48_spill] sm:$0xff] }
 0x3e6   : > { %v8166_v57 = vmul.f32 %v8038_v0, %v7654_v35  ;;  %v8292_v1 = vmul.f32 0.16666667, %v8164_v41  ;;  %v8167_v59 = vmul.f32 %v8039_v17, %v7655_v61  ;;  %v4279_v6 = vadd.f32 %v3909_v58, %v3288_v14  ;;  %v17265_v0 = vld [vmem:[#allocation81_spill] sm:$0xff]  ;;  %v17275_v33 = vld [vmem:[#allocation24_spill] sm:$0xff] }
 0x3e7   : > { %v4280_v29 = vadd.f32 %v3912_v31, %v3289_v55  ;;  %v4281_v7 = vadd.f32 %v3915_v62, %v3290_v25  ;;  %v8293_v18 = vmul.f32 0.16666667, %v8165_v51  ;;  %v4432_v34 = vmul.f32 %v17115_v4, %v17253_v11 }
 0x3e8   : > { %v8294_v37 = vmul.f32 0.16666667, %v8166_v57  ;;  %v4433_v48 = vmul.f32 %v17087_v47, %v17255_v3  ;;  %v8295_v30 = vmul.f32 0.16666667, %v8167_v59  ;;  %v4434_v35 = vmul.f32 %v16994_v24, %v17257_v60  ;;  %v17267_v3 = vld [vmem:[#allocation69_spill] sm:$0xff] }
 0x3e9   : > { %v4435_v41 = vmul.f32 %v17264_v42, %v17159_v49  ;;  %v4714_v14 = vmul.f32 %v17093_v36, %v17265_v0  ;;  %v8773_v55 = vcombine.low %v8292_v1, %v8293_v18  ;;  %v4560_v25 = vadd.f32 %v4432_v34, %v4278_v44  ;;  %v17269_v57 = vld [vmem:[#allocation9_spill] sm:$0xff] }
 0x3ea   : > { %v4561_v61 = vadd.f32 %v4433_v48, %v4279_v6  ;;  %v4715_v52 = vmul.f32 %v17095_v22, %v17266_v32  ;;  %v8774_v11 = vcombine.low %v8294_v37, %v8295_v30  ;;  %v4562_v2 = vadd.f32 %v4434_v35, %v4280_v29 }
 0x3eb   : > { %v4563_v46 = vadd.f32 %v4435_v41, %v4281_v7  ;;  %v4716_v50 = vmul.f32 %v17000_v39, %v17267_v3  ;;  %v8781_v60 = vrot.slane %v8773_v55, %v17120_v40  ;;  %v4717_v17 = vmul.f32 %v17002_v15, %v17268_v10  ;;  %v17270_v7 = vld [vmem:[#allocation36_spill] sm:$0xff] }
 0x3ec   : > { %v4842_v58 = vadd.f32 %v4714_v14, %v4560_v25  ;;  %v4843_v31 = vadd.f32 %v4715_v52, %v4561_v61  ;;  %v8788_v51 = vrot.slane %v8774_v11, %v17120_v40  ;;  %v5019_v1 = vmul.f32 %v17269_v57, %v17265_v0 }
 0x3ed   : > { %v4844_v44 = vadd.f32 %v4716_v50, %v4562_v2  ;;  %v5020_v62 = vmul.f32 %v17099_v53, %v17266_v32  ;;  %v4845_v59 = vadd.f32 %v4717_v17, %v4563_v46  ;;  %v5021_v6 = vmul.f32 %v16571_v45, %v17267_v3  ;;  %v17271_v50 = vld [vmem:[#allocation152_spill] sm:$0xff] }
 0x3ee   : > { %v5022_v29 = vmul.f32 %v16572_v12, %v17268_v10  ;;  %v14098_v18 = vmul.f32 %v17270_v7, %v17220_v19  ;;  %v8789_v37 = vcombine.low %v8781_v60, %v8788_v51  ;;  %v9676_v34 = vrot.slane %v5019_v1, 9  ;;  %v17272_v51 = vld [vmem:[#allocation144_spill] sm:$0xff] }
 0x3ef   : > { %v5453_v48 = vrot.slane %v5020_v62, 7  ;;  %v5980_v30 = vmul.f32 %v16619_v5, %v17266_v32  ;;  %v5456_v35 = vrot.slane %v5021_v6, 7  ;;  %v5981_v14 = vmul.f32 %v16620_v23, %v17267_v3  ;;  %v17273_v62 = vld [vmem:[#allocation95_spill] sm:$0xff] }
 0x3f0   : > { %v5459_v41 = vrot.slane %v5022_v29, 7  ;;  %v16264_v0 = vrot.slane %v14098_v18, 7  ;;  %9970 = vmatmul.mubr.msk.f32.gmra.mxu1 %vm9028_vm10, %v8789_v37  ;;  %v5982_v61 = vmul.f32 %v17124_v16, %v17268_v10  ;;  %v5983_v52 = vmul.f32 %v17125_v27, %v17220_v19  ;;  %v17274_v29 = vld [vmem:[#allocation96_spill] sm:$0xff] }
 0x3f1   : > { %v5454_v55 = vsel %vm10597_vm9, %v9676_v34, %v5453_v48  ;;  %v5455_v25 = vrot.slane %v5453_v48, 2  ;;  %v5458_v11 = vrot.slane %v5456_v35, 2  ;;  %v6262_v60 = vmul.f32 %v17126_v63, %v17271_v50 }
 0x3f2   : > { %v5461_v2 = vrot.slane %v5459_v41, 2  ;;  %v5826_v46 = vadd.f32 %v5454_v55, %v4842_v58  ;;  %v6263_v1 = vmul.f32 %v17128_v56, %v17272_v51  ;;  %v6264_v6 = vmul.f32 %v17130_v26, %v17273_v62 }
 0x3f3   : > { %v5457_v17 = vsel %vm10597_vm9, %v5455_v25, %v5456_v35  ;;  %v6265_v37 = vmul.f32 %v17184_v21, %v17274_v29  ;;  %v5460_v34 = vsel %vm10597_vm9, %v5458_v11, %v5459_v41  ;;  %v6567_v7 = vmul.f32 %v17275_v33, %v17271_v50 }
 0x3f4   : > { %v5463_v58 = vsel %vm10597_vm9, %v5461_v2, %v16264_v0  ;;  %v5827_v48 = vadd.f32 %v5457_v17, %v4843_v31  ;;  %v6108_v55 = vadd.f32 %v5980_v30, %v5826_v46  ;;  %v5828_v35 = vadd.f32 %v5460_v34, %v4844_v44  ;;  %v17276_v31 = vld [vmem:[#allocation160_spill] sm:$0xff]  ;;  %v17277_v30 = vld [vmem:[#allocation42_spill] sm:$0xff] }
 0x3f5   : > { %v5829_v25 = vadd.f32 %v5463_v58, %v4845_v59  ;;  %v6568_v57 = vmul.f32 %v17185_v28, %v17272_v51  ;;  %v6569_v41 = vmul.f32 %v17188_v9, %v17273_v62  ;;  %v6570_v11 = vmul.f32 %v17189_v43, %v17274_v29 }
 0x3f6   : > { %v6109_v10 = vadd.f32 %v5981_v14, %v5827_v48  ;;  %v6390_v3 = vadd.f32 %v6262_v60, %v6108_v55  ;;  %v6110_v32 = vadd.f32 %v5982_v61, %v5828_v35  ;;  %v14138_v44 = vmul.f32 %v17277_v30, %v17276_v31 }
 0x3f7   : > { %v6111_v2 = vadd.f32 %v5983_v52, %v5829_v25  ;;  %v9692_v59 = vrot.slane %v6567_v7, 9  ;;  %v7001_v17 = vrot.slane %v6568_v57, 7  ;;  %v7004_v34 = vrot.slane %v6569_v41, 7 }
 0x3f8   : > { %17278 = vst [vmem:[#allocation89_spill] sm:$0xff] %v14138_v44  ;;  %v6391_v46 = vadd.f32 %v6263_v1, %v6109_v10  ;;  %v7007_v58 = vrot.slane %v6570_v11, 7  ;;  %v6392_v0 = vadd.f32 %v6264_v6, %v6110_v32  ;;  %v16268_v60 = vrot.slane %v14138_v44, 7  ;;  %v17279_v32 = vld [vmem:[#allocation44_spill] sm:$0xff] }
 0x3f9   : > { %v6393_v14 = vadd.f32 %v6265_v37, %v6111_v2  ;;  %v7528_v48 = vmul.f32 %v17192_v20, %v17272_v51  ;;  %v7002_v61 = vsel %vm10597_vm9, %v9692_v59, %v7001_v17  ;;  %v7003_v52 = vrot.slane %v7001_v17, 2  ;;  %v17280_v37 = vld [vmem:[#allocation70_spill] sm:$0xff]  ;;  %v17288_v51 = vld [vmem:[#allocation17_spill] sm:$0xff] }
 0x3fa   : > { %v7006_v55 = vrot.slane %v7004_v34, 2  ;;  %v7009_v35 = vrot.slane %v7007_v58, 2  ;;  %v7374_v25 = vadd.f32 %v7002_v61, %v6390_v3  ;;  %v7529_v10 = vmul.f32 %v17193_v38, %v17273_v62  ;;  %v17282_v61 = vld [vmem:[#allocation4_spill] sm:$0xff]  ;;  %v17287_v62 = vld [vmem:[#allocation25_spill] sm:$0xff] }
 0x3fb   : > { %v7530_v57 = vmul.f32 %v17249_v13, %v17274_v29  ;;  %v7531_v7 = vmul.f32 %v17279_v32, %v17276_v31  ;;  %v7005_v1 = vsel %vm10597_vm9, %v7003_v52, %v7004_v34  ;;  %v14161_v41 = vcombine.high %v17280_v37, %v17280_v37  ;;  %v17283_v34 = vld [vmem:[#allocation139_spill] sm:$0xff]  ;;  %v17284_v52 = vld [vmem:[#allocation6_spill] sm:$0xff] }
 0x3fc   : > { %v7008_v6 = vsel %vm10597_vm9, %v7006_v55, %v7007_v58  ;;  %v7011_v3 = vsel %vm10597_vm9, %v7009_v35, %v16268_v60  ;;  %v7375_v11 = vadd.f32 %v7005_v1, %v6391_v46  ;;  %v7656_v17 = vadd.f32 %v7528_v48, %v7374_v25  ;;  %v17285_v58 = vld [vmem:[#allocation141_spill] sm:$0xff]  ;;  %v17292_v1 = vld [vmem:[#allocation102_spill] sm:$0xff] }
 0x3fd   : > { %17281 = vst [vmem:[#allocation87_spill] sm:$0xff] %v14161_v41  ;;  %v7376_v2 = vadd.f32 %v7008_v6, %v6392_v0  ;;  %v7377_v59 = vadd.f32 %v7011_v3, %v6393_v14  ;;  %v3291_v30 = vmul.f32 %v17282_v61, %v17159_v49  ;;  %v3292_v33 = vmul.f32 %v17284_v52, %v17283_v34  ;;  %v17286_v55 = vld [vmem:[#allocation5_spill] sm:$0xff]  ;;  %v17289_v0 = vld [vmem:[#allocation10_spill] sm:$0xff]  ;;  %v17290_v14 = vld [vmem:[#allocation12_spill] sm:$0xff] }
 0x3fe   : > { %v3293_v29 = vmul.f32 %v17286_v55, %v17285_v58  ;;  %v3294_v35 = vmul.f32 %v17288_v51, %v17287_v62  ;;  %v7657_v60 = vadd.f32 %v7529_v10, %v7375_v11  ;;  %v7784_v13 = vadd.f32 3.0, %v7656_v17  ;;  %v17291_v49 = vld [vmem:[#allocation13_spill] sm:$0xff]  ;;  %v17293_v6 = vld [vmem:[#allocation15_spill] sm:$0xff] }
 0x3ff   : > { %v7658_v50 = vadd.f32 %v7530_v57, %v7376_v2  ;;  %v7659_v32 = vadd.f32 %v7531_v7, %v7377_v59  ;;  %v3476_v46 = vmul.f32 %v17289_v0, %v17283_v34  ;;  %v3477_v48 = vmul.f32 %v17290_v14, %v17285_v58 }
 0x400   : > { %v3478_v25 = vmul.f32 %v17291_v49, %v17287_v62  ;;  %v3479_v3 = vmul.f32 %v17293_v6, %v17292_v1  ;;  %v7785_v61 = vadd.f32 3.0, %v7657_v60  ;;  %v7912_v51 = vmax.f32 %v7784_v13, 0.0 }
 0x401   : > { %v7786_v55 = vadd.f32 3.0, %v7658_v50  ;;  %v7787_v52 = vadd.f32 3.0, %v7659_v32  ;;  %v17294_v10 = vrot.slane %v14057_v8, 7  ;;  %v3917_v7 = vrot.slane %v3476_v46, 7 }
 0x402   : > { %v3920_v11 = vrot.slane %v3477_v48, 7  ;;  %v3923_v2 = vrot.slane %v3478_v25, 7  ;;  %v7913_v59 = vmax.f32 %v7785_v61, 0.0  ;;  %v8040_v14 = vmin.f32 %v7912_v51, 6.0 }
 0x403   : > { %v3916_v57 = vrot.slane %v17294_v10, 2  ;;  %v7914_v0 = vmax.f32 %v7786_v55, 0.0  ;;  %v7915_v38 = vmax.f32 %v7787_v52, 0.0  ;;  %v3919_v20 = vrot.slane %v3917_v7, 2 }
 0x404   : > { %v3922_v44 = vrot.slane %v3920_v11, 2  ;;  %v3925_v6 = vrot.slane %v3923_v2, 2  ;;  %v8041_v41 = vmin.f32 %v7913_v59, 6.0  ;;  %v8168_v13 = vmul.f32 %v8040_v14, %v7656_v17 }
 0x405   : > { %v3918_v49 = vsel %vm10597_vm9, %v3916_v57, %v3917_v7  ;;  %v8042_v43 = vmin.f32 %v7914_v0, 6.0  ;;  %v8043_v9 = vmin.f32 %v7915_v38, 6.0  ;;  %v3921_v8 = vsel %vm10597_vm9, %v3919_v20, %v3920_v11 }
 0x406   : > { %v3924_v46 = vsel %vm10597_vm9, %v3922_v44, %v3923_v2  ;;  %v3926_v61 = vrot.slane %v3479_v3, 7  ;;  %v4282_v55 = vadd.f32 %v3918_v49, %v3291_v30  ;;  %v8169_v52 = vmul.f32 %v8041_v41, %v7657_v60  ;;  %v17295_v60 = vld [vmem:[#allocation147_spill] sm:$0xff]  ;;  %v17296_v49 = vld [vmem:[#allocation84_spill] sm:$0xff] }
 0x407   : > { %v8170_v51 = vmul.f32 %v8042_v43, %v7658_v50  ;;  %v8171_v48 = vmul.f32 %v8043_v9, %v7659_v32  ;;  %v8296_v25 = vmul.f32 0.16666667, %v8168_v13  ;;  %v4283_v57 = vadd.f32 %v3921_v8, %v3292_v33 }
 0x408   : > { %v3927_v10 = vsel %vm10597_vm9, %v3925_v6, %v3926_v61  ;;  %v4284_v7 = vadd.f32 %v3924_v46, %v3293_v29  ;;  %v4436_v38 = vmul.f32 %v17115_v4, %v17283_v34  ;;  %v8297_v17 = vmul.f32 0.16666667, %v8169_v52  ;;  %v17298_v52 = vld [vmem:[#allocation72_spill] sm:$0xff] }
 0x409   : > { %v8298_v0 = vmul.f32 0.16666667, %v8170_v51  ;;  %v8299_v20 = vmul.f32 0.16666667, %v8171_v48  ;;  %v4285_v14 = vadd.f32 %v3927_v10, %v3294_v35  ;;  %v4437_v44 = vmul.f32 %v17087_v47, %v17285_v58  ;;  %v17299_v51 = vld [vmem:[#allocation28_spill] sm:$0xff] }
 0x40a   : > { %v4438_v43 = vmul.f32 %v16994_v24, %v17287_v62  ;;  %v4439_v9 = vmul.f32 %v17264_v42, %v17292_v1  ;;  %v4564_v50 = vadd.f32 %v4436_v38, %v4282_v55  ;;  %v8790_v30 = vcombine.low %v8296_v25, %v8297_v17  ;;  %v17297_v1 = vld [vmem:[#allocation150_spill] sm:$0xff] }
 0x40b   : > { %v8791_v33 = vcombine.low %v8298_v0, %v8299_v20  ;;  %v4718_v29 = vmul.f32 %v17093_v36, %v17220_v19  ;;  %v4719_v32 = vmul.f32 %v17095_v22, %v17295_v60  ;;  %v4565_v41 = vadd.f32 %v4437_v44, %v4283_v57 }
 0x40c   : > { %v4566_v34 = vadd.f32 %v4438_v43, %v4284_v7  ;;  %v4567_v35 = vadd.f32 %v4439_v9, %v4285_v14  ;;  %v4720_v58 = vmul.f32 %v17000_v39, %v17296_v49  ;;  %v8798_v62 = vrot.slane %v8790_v30, %v17120_v40 }
 0x40d   : > { %v8805_v6 = vrot.slane %v8791_v33, %v17120_v40  ;;  %v4721_v3 = vmul.f32 %v17002_v15, %v17297_v1  ;;  %v4846_v11 = vadd.f32 %v4718_v29, %v4564_v50  ;;  %v4847_v2 = vadd.f32 %v4719_v32, %v4565_v41  ;;  %v17301_v29 = vld [vmem:[#allocation149_spill] sm:$0xff] }
 0x40e   : > { %v4848_v59 = vadd.f32 %v4720_v58, %v4566_v34  ;;  %v5024_v13 = vmul.f32 %v17099_v53, %v17295_v60  ;;  %v5025_v8 = vmul.f32 %v16571_v45, %v17296_v49  ;;  %v5026_v55 = vmul.f32 %v16572_v12, %v17297_v1 }
 0x40f   : > { %v8806_v46 = vcombine.low %v8798_v62, %v8805_v6  ;;  %v4849_v61 = vadd.f32 %v4721_v3, %v4567_v35  ;;  %v5027_v48 = vmul.f32 %v17299_v51, %v17298_v52  ;;  %v17300_v25 = vrot.slane %v14098_v18, 7  ;;  %v17302_v35 = vld [vmem:[#allocation162_spill] sm:$0xff] }
 0x410   : > { %v5465_v57 = vrot.slane %v5024_v13, 7  ;;  %v5468_v7 = vrot.slane %v5025_v8, 7  ;;  %v5984_v38 = vmul.f32 %v16619_v5, %v17295_v60  ;;  %v5471_v17 = vrot.slane %v5026_v55, 7  ;;  %v17303_v55 = vld [vmem:[#allocation32_spill] sm:$0xff] }
 0x411   : > { %v5464_v10 = vrot.slane %v17300_v25, 2  ;;  %9972 = vmatprep.mubr.msk.f32.mxu1 %vm9028_vm10, %v8806_v46  ;;  %v5474_v0 = vrot.slane %v5027_v48, 7  ;;  %v5985_v20 = vmul.f32 %v16620_v23, %v17296_v49  ;;  %v5986_v14 = vmul.f32 %v17124_v16, %v17297_v1  ;;  %v17304_v25 = vld [vmem:[#allocation35_spill] sm:$0xff] }
 0x412   : > { %v5467_v18 = vrot.slane %v5465_v57, 2  ;;  %v5470_v43 = vrot.slane %v5468_v7, 2  ;;  %v5987_v9 = vmul.f32 %v17125_v27, %v17298_v52  ;;  %v5473_v50 = vrot.slane %v5471_v17, 2 }
 0x413   : > { %v5466_v44 = vsel %vm10597_vm9, %v5464_v10, %v5465_v57  ;;  %v6266_v33 = vmul.f32 %v17126_v63, %v17276_v31  ;;  %v6267_v32 = vmul.f32 %v17128_v56, %v17301_v29  ;;  %v6268_v58 = vmul.f32 %v17130_v26, %v17302_v35 }
 0x414   : > { %v5830_v30 = vadd.f32 %v5466_v44, %v4846_v11  ;;  %v5469_v41 = vsel %vm10597_vm9, %v5467_v18, %v5468_v7  ;;  %v5472_v34 = vsel %vm10597_vm9, %v5470_v43, %v5471_v17  ;;  %v6269_v62 = vmul.f32 %v17184_v21, %v17280_v37  ;;  %v17305_v44 = vld [vmem:[#allocation87_spill] sm:$0xff]  ;;  %v17306_v18 = vld [vmem:[#allocation33_spill] sm:$0xff] }
 0x415   : > { %v5475_v6 = vsel %vm10597_vm9, %v5473_v50, %v5474_v0  ;;  %v5831_v3 = vadd.f32 %v5469_v41, %v4847_v2  ;;  %v5832_v11 = vadd.f32 %v5472_v34, %v4848_v59  ;;  %v6572_v46 = vmul.f32 %v17185_v28, %v17301_v29  ;;  %v17307_v2 = vld [vmem:[#allocation89_spill] sm:$0xff] }
 0x416   : > { %v6112_v13 = vadd.f32 %v5984_v38, %v5830_v30  ;;  %v5833_v8 = vadd.f32 %v5475_v6, %v4849_v61  ;;  %v6573_v48 = vmul.f32 %v17303_v55, %v17302_v35  ;;  %v6574_v10 = vmul.f32 %v17304_v25, %v17280_v37 }
 0x417   : > { %v6113_v57 = vadd.f32 %v5985_v20, %v5831_v3  ;;  %v6114_v7 = vadd.f32 %v5986_v14, %v5832_v11  ;;  %v6575_v43 = vmul.f32 %v17306_v18, %v17305_v44  ;;  %v17308_v59 = vrot.slane %v17307_v2, 7  ;;  %v17309_v11 = vld [vmem:[#allocation31_spill] sm:$0xff]  ;;  %v17314_v2 = vld [vmem:[#allocation6_spill] sm:$0xff] }
 0x418   : > { %v6394_v17 = vadd.f32 %v6266_v33, %v6112_v13  ;;  %v6115_v0 = vadd.f32 %v5987_v9, %v5833_v8  ;;  %v7013_v61 = vrot.slane %v6572_v46, 7  ;;  %v7016_v50 = vrot.slane %v6573_v48, 7  ;;  %v17310_v13 = vld [vmem:[#allocation43_spill] sm:$0xff]  ;;  %v17312_v48 = vld [vmem:[#allocation44_spill] sm:$0xff] }
 0x419   : > { %v7012_v38 = vrot.slane %v17308_v59, 2  ;;  %v6395_v30 = vadd.f32 %v6267_v32, %v6113_v57  ;;  %v6396_v41 = vadd.f32 %v6268_v58, %v6114_v7  ;;  %v7019_v34 = vrot.slane %v6574_v10, 7 }
 0x41a   : > { %v7022_v6 = vrot.slane %v6575_v43, 7  ;;  %v6397_v51 = vadd.f32 %v6269_v62, %v6115_v0  ;;  %v7015_v20 = vrot.slane %v7013_v61, 2  ;;  %v7018_v14 = vrot.slane %v7016_v50, 2  ;;  %v17311_v62 = vld [vmem:[#allocation34_spill] sm:$0xff]  ;;  %v17313_v0 = vld [vmem:[#allocation80_spill] sm:$0xff] }
 0x41b   : > { %v7014_v52 = vsel %vm10597_vm9, %v7012_v38, %v7013_v61  ;;  %v7021_v33 = vrot.slane %v7019_v34, 2  ;;  %v7532_v9 = vmul.f32 %v17309_v11, %v17301_v29  ;;  %v7533_v8 = vmul.f32 %v17310_v13, %v17302_v35  ;;  %v17315_v38 = vld [vmem:[#allocation69_spill] sm:$0xff] }
 0x41c   : > { %v7378_v3 = vadd.f32 %v7014_v52, %v6394_v17  ;;  %v7017_v32 = vsel %vm10597_vm9, %v7015_v20, %v7016_v50  ;;  %v7020_v58 = vsel %vm10597_vm9, %v7018_v14, %v7019_v34  ;;  %v7534_v46 = vmul.f32 %v17311_v62, %v17280_v37  ;;  %v17316_v61 = vld [vmem:[#allocation5_spill] sm:$0xff]  ;;  %v17317_v34 = vld [vmem:[#allocation48_spill] sm:$0xff] }
 0x41d   : > { %v7535_v10 = vmul.f32 %v17312_v48, %v17305_v44  ;;  %v7023_v52 = vsel %vm10597_vm9, %v7021_v33, %v7022_v6  ;;  %v7379_v57 = vadd.f32 %v7017_v32, %v6395_v30  ;;  %v7380_v7 = vadd.f32 %v7020_v58, %v6396_v41  ;;  %v17318_v20 = vld [vmem:[#allocation17_spill] sm:$0xff]  ;;  %v17319_v44 = vld [vmem:[#allocation10_spill] sm:$0xff]  ;;  %v17320_v30 = vld [vmem:[#allocation12_spill] sm:$0xff] }
 0x41e   : > { %v7660_v17 = vadd.f32 %v7532_v9, %v7378_v3  ;;  %v7381_v43 = vadd.f32 %v7023_v52, %v6397_v51  ;;  %v3296_v59 = vmul.f32 %v17314_v2, %v17313_v0  ;;  %v3297_v50 = vmul.f32 %v17316_v61, %v17315_v38  ;;  %v17321_v51 = vld [vmem:[#allocation13_spill] sm:$0xff]  ;;  %v17322_v3 = vld [vmem:[#allocation20_spill] sm:$0xff]  ;;  %v17325_v48 = vld [vmem:[#allocation142_spill] sm:$0xff] }
 0x41f   : > { %v3298_v14 = vmul.f32 %v17318_v20, %v17317_v34  ;;  %v7661_v18 = vadd.f32 %v7533_v8, %v7379_v57  ;;  %v7662_v37 = vadd.f32 %v7534_v46, %v7380_v7  ;;  %v3481_v29 = vmul.f32 %v17319_v44, %v17313_v0 }
 0x420   : > { %v7788_v35 = vadd.f32 3.0, %v7660_v17  ;;  %v7663_v6 = vadd.f32 %v7535_v10, %v7381_v43  ;;  %v3482_v41 = vmul.f32 %v17320_v30, %v17315_v38  ;;  %v3483_v33 = vmul.f32 %v17321_v51, %v17317_v34  ;;  %v17323_v30 = vld [vmem:[#allocation143_spill] sm:$0xff] }
 0x421   : > { %v14282_v9 = vmul.f32 %v17322_v3, %v17220_v19  ;;  %v7789_v32 = vadd.f32 3.0, %v7661_v18  ;;  %v7790_v58 = vadd.f32 3.0, %v7662_v37  ;;  %v3930_v8 = vrot.slane %v3481_v29, 7 }
 0x422   : > { %v7916_v52 = vmax.f32 %v7788_v35, 0.0  ;;  %v7791_v46 = vadd.f32 3.0, %v7663_v6  ;;  %v3933_v57 = vrot.slane %v3482_v41, 7  ;;  %v3936_v7 = vrot.slane %v3483_v33, 7 }
 0x423   : > { %v16285_v44 = vrot.slane %v14282_v9, 7  ;;  %v7917_v10 = vmax.f32 %v7789_v32, 0.0  ;;  %v7918_v43 = vmax.f32 %v7790_v58, 0.0  ;;  %v17324_v1 = vrot.slane %v17323_v30, 9 }
 0x424   : > { %v8044_v20 = vmin.f32 %v7916_v52, 6.0  ;;  %v7919_v61 = vmax.f32 %v7791_v46, 0.0  ;;  %v3932_v3 = vrot.slane %v3930_v8, 2  ;;  %v3935_v49 = vrot.slane %v3933_v57, 2 }
 0x425   : > { %v3931_v51 = vsel %vm10597_vm9, %v17324_v1, %v3930_v8  ;;  %v3938_v2 = vrot.slane %v3936_v7, 2  ;;  %v8045_v60 = vmin.f32 %v7917_v10, 6.0  ;;  %v8046_v35 = vmin.f32 %v7918_v43, 6.0 }
 0x426   : > { %v8172_v29 = vmul.f32 %v8044_v20, %v7660_v17  ;;  %v4286_v41 = vadd.f32 %v3931_v51, %v17325_v48  ;;  %v8047_v33 = vmin.f32 %v7919_v61, 6.0  ;;  %v3934_v32 = vsel %vm10597_vm9, %v3932_v3, %v3933_v57 }
 0x427   : > { %v3937_v58 = vsel %vm10597_vm9, %v3935_v49, %v3936_v7  ;;  %v3940_v1 = vsel %vm10597_vm9, %v3938_v2, %v16285_v44  ;;  %v8173_v30 = vmul.f32 %v8045_v60, %v7661_v18  ;;  %v8174_v52 = vmul.f32 %v8046_v35, %v7662_v37  ;;  %v17326_v18 = vld [vmem:[#allocation152_spill] sm:$0xff] }
 0x428   : > { %v8300_v8 = vmul.f32 0.16666667, %v8172_v29  ;;  %v4287_v46 = vadd.f32 %v3934_v32, %v3296_v59  ;;  %v8175_v10 = vmul.f32 %v8047_v33, %v7663_v6  ;;  %v4288_v17 = vadd.f32 %v3937_v58, %v3297_v50  ;;  %v17330_v58 = vld [vmem:[#allocation9_spill] sm:$0xff] }
 0x429   : > { %v4289_v20 = vadd.f32 %v3940_v1, %v3298_v14  ;;  %v4440_v48 = vmul.f32 %v17115_v4, %v17313_v0  ;;  %v8301_v61 = vmul.f32 0.16666667, %v8173_v30  ;;  %v8302_v51 = vmul.f32 0.16666667, %v8174_v52  ;;  %v17327_v0 = vld [vmem:[#allocation144_spill] sm:$0xff] }
 0x42a   : > { %v4441_v49 = vmul.f32 %v17087_v47, %v17315_v38  ;;  %v4442_v3 = vmul.f32 %v16994_v24, %v17317_v34  ;;  %v8303_v57 = vmul.f32 0.16666667, %v8175_v10  ;;  %v4443_v37 = vmul.f32 %v17264_v42, %v17220_v19  ;;  %v17328_v38 = vld [vmem:[#allocation95_spill] sm:$0xff]  ;;  %v17329_v34 = vld [vmem:[#allocation96_spill] sm:$0xff] }
 0x42b   : > { %v4568_v60 = vadd.f32 %v4440_v48, %v4286_v41  ;;  %v4722_v2 = vmul.f32 %v17093_v36, %v17326_v18  ;;  %v8807_v59 = vcombine.low %v8300_v8, %v8301_v61  ;;  %v4723_v6 = vmul.f32 %v17095_v22, %v17327_v0 }
 0x42c   : > { %v4569_v50 = vadd.f32 %v4441_v49, %v4287_v46  ;;  %v4570_v14 = vadd.f32 %v4442_v3, %v4288_v17  ;;  %v8808_v7 = vcombine.low %v8302_v51, %v8303_v57  ;;  %v4571_v43 = vadd.f32 %v4443_v37, %v4289_v20  ;;  %v17331_v20 = vld [vmem:[#allocation36_spill] sm:$0xff] }
 0x42d   : > { %v4724_v35 = vmul.f32 %v17000_v39, %v17328_v38  ;;  %v4725_v29 = vmul.f32 %v17002_v15, %v17329_v34  ;;  %v8815_v33 = vrot.slane %v8807_v59, %v17120_v40  ;;  %v4850_v41 = vadd.f32 %v4722_v2, %v4568_v60 }
 0x42e   : > { %v4851_v32 = vadd.f32 %v4723_v6, %v4569_v50  ;;  %v5028_v1 = vmul.f32 %v17330_v58, %v17326_v18  ;;  %v8822_v30 = vrot.slane %v8808_v7, %v17120_v40  ;;  %v5029_v46 = vmul.f32 %v17099_v53, %v17327_v0  ;;  %v17332_v7 = vld [vmem:[#allocation92_spill] sm:$0xff] }
 0x42f   : > { %v4852_v52 = vadd.f32 %v4724_v35, %v4570_v14  ;;  %v4853_v8 = vadd.f32 %v4725_v29, %v4571_v43  ;;  %v5030_v10 = vmul.f32 %v16571_v45, %v17328_v38  ;;  %v5031_v17 = vmul.f32 %v16572_v12, %v17329_v34 }
 0x430   : > { %v14326_v48 = vmul.f32 %v17331_v20, %v17276_v31  ;;  %v9677_v61 = vrot.slane %v5028_v1, 9  ;;  %v8823_v51 = vcombine.low %v8815_v33, %v8822_v30  ;;  %v5478_v49 = vrot.slane %v5029_v46, 7  ;;  %v17333_v1 = vld [vmem:[#allocation174_spill] sm:$0xff] }
 0x431   : > { %v5988_v3 = vmul.f32 %v16619_v5, %v17327_v0  ;;  %v5989_v57 = vmul.f32 %v16620_v23, %v17328_v38  ;;  %v5481_v37 = vrot.slane %v5030_v10, 7  ;;  %v5484_v60 = vrot.slane %v5031_v17, 7  ;;  %v17334_v10 = vld [vmem:[#allocation101_spill] sm:$0xff] }
 0x432   : > { %v5990_v59 = vmul.f32 %v17124_v16, %v17329_v34  ;;  %9973 = vmatmul.mubr.msk.f32.gmra.mxu1 %vm9028_vm10, %v8823_v51  ;;  %v5479_v50 = vsel %vm10597_vm9, %v9677_v61, %v5478_v49  ;;  %v5480_v14 = vrot.slane %v5478_v49, 2  ;;  %v5991_v6 = vmul.f32 %v17125_v27, %v17276_v31  ;;  %v17335_v61 = vld [vmem:[#allocation178_spill] sm:$0xff]  ;;  %v17336_v49 = vld [vmem:[#allocation24_spill] sm:$0xff] }
 0x433   : > { %v6270_v43 = vmul.f32 %v17126_v63, %v17332_v7  ;;  %v5483_v35 = vrot.slane %v5481_v37, 2  ;;  %v5486_v29 = vrot.slane %v5484_v60, 2  ;;  %v5834_v33 = vadd.f32 %v5479_v50, %v4850_v41 }
 0x434   : > { %v6271_v30 = vmul.f32 %v17128_v56, %v17333_v1  ;;  %v5482_v46 = vsel %vm10597_vm9, %v5480_v14, %v5481_v37  ;;  %v6272_v17 = vmul.f32 %v17130_v26, %v17334_v10  ;;  %v6273_v51 = vmul.f32 %v17184_v21, %v17335_v61 }
 0x435   : > { %v6576_v44 = vmul.f32 %v17336_v49, %v17332_v7  ;;  %v5485_v2 = vsel %vm10597_vm9, %v5483_v35, %v5484_v60  ;;  %v17337_v41 = vrot.slane %v14326_v48, 7  ;;  %v5835_v58 = vadd.f32 %v5482_v46, %v4851_v32  ;;  %v17338_v35 = vld [vmem:[#allocation108_spill] sm:$0xff]  ;;  %v17339_v7 = vld [vmem:[#allocation42_spill] sm:$0xff] }
 0x436   : > { %v6116_v20 = vadd.f32 %v5988_v3, %v5834_v33  ;;  %v5836_v37 = vadd.f32 %v5485_v2, %v4852_v52  ;;  %v6577_v34 = vmul.f32 %v17185_v28, %v17333_v1  ;;  %v6578_v38 = vmul.f32 %v17303_v55, %v17334_v10 }
 0x437   : > { %v5488_v50 = vsel %vm10597_vm9, %v5486_v29, %v17337_v41  ;;  %v6117_v0 = vadd.f32 %v5989_v57, %v5835_v58  ;;  %v6579_v60 = vmul.f32 %v17304_v25, %v17335_v61  ;;  %v14366_v18 = vmul.f32 %v17339_v7, %v17338_v35  ;;  %v17345_v7 = vld [vmem:[#allocation5_spill] sm:$0xff] }
 0x438   : > { %v5837_v14 = vadd.f32 %v5488_v50, %v4853_v8  ;;  %v6398_v49 = vadd.f32 %v6270_v43, %v6116_v20  ;;  %v6118_v29 = vadd.f32 %v5990_v59, %v5836_v37  ;;  %v9693_v3 = vrot.slane %v6576_v44, 9 }
 0x439   : > { %v7026_v52 = vrot.slane %v6577_v34, 7  ;;  %v6399_v8 = vadd.f32 %v6271_v30, %v6117_v0  ;;  %v7029_v2 = vrot.slane %v6578_v38, 7  ;;  %v7032_v33 = vrot.slane %v6579_v60, 7  ;;  %v17340_v34 = vld [vmem:[#allocation44_spill] sm:$0xff] }
 0x43a   : > { %v6119_v32 = vadd.f32 %v5991_v6, %v5837_v14  ;;  %v16295_v46 = vrot.slane %v14366_v18, 7  ;;  %v6400_v41 = vadd.f32 %v6272_v17, %v6118_v29  ;;  %v7536_v59 = vmul.f32 %v17309_v11, %v17333_v1  ;;  %v17341_v60 = vld [vmem:[#allocation4_spill] sm:$0xff] }
 0x43b   : > { %v7027_v58 = vsel %vm10597_vm9, %v9693_v3, %v7026_v52  ;;  %v7028_v20 = vrot.slane %v7026_v52, 2  ;;  %v7031_v57 = vrot.slane %v7029_v2, 2  ;;  %v7034_v43 = vrot.slane %v7032_v33, 2  ;;  %v17343_v3 = vld [vmem:[#allocation6_spill] sm:$0xff] }
 0x43c   : > { %v6401_v50 = vadd.f32 %v6273_v51, %v6119_v32  ;;  %v7382_v25 = vadd.f32 %v7027_v58, %v6398_v49  ;;  %v7537_v0 = vmul.f32 %v17310_v13, %v17334_v10  ;;  %v7538_v38 = vmul.f32 %v17311_v62, %v17335_v61  ;;  %v17342_v32 = vld [vmem:[#allocation147_spill] sm:$0xff]  ;;  %v17347_v61 = vld [vmem:[#allocation17_spill] sm:$0xff] }
 0x43d   : > { %v7030_v44 = vsel %vm10597_vm9, %v7028_v20, %v7029_v2  ;;  %v7539_v6 = vmul.f32 %v17340_v34, %v17338_v35  ;;  %v7033_v30 = vsel %vm10597_vm9, %v7031_v57, %v7032_v33  ;;  %v7036_v17 = vsel %vm10597_vm9, %v7034_v43, %v16295_v46  ;;  %v17344_v20 = vld [vmem:[#allocation84_spill] sm:$0xff]  ;;  %v17346_v57 = vld [vmem:[#allocation150_spill] sm:$0xff] }
 0x43e   : > { %v7383_v51 = vadd.f32 %v7030_v44, %v6399_v8  ;;  %v7664_v49 = vadd.f32 %v7536_v59, %v7382_v25  ;;  %v7384_v37 = vadd.f32 %v7033_v30, %v6400_v41  ;;  %v7385_v14 = vadd.f32 %v7036_v17, %v6401_v50  ;;  %v17348_v25 = vld [vmem:[#allocation10_spill] sm:$0xff]  ;;  %v17349_v41 = vld [vmem:[#allocation12_spill] sm:$0xff]  ;;  %v17350_v44 = vld [vmem:[#allocation13_spill] sm:$0xff] }
 0x43f   : > { %v3299_v29 = vmul.f32 %v17341_v60, %v17220_v19  ;;  %v3300_v52 = vmul.f32 %v17343_v3, %v17342_v32  ;;  %v3301_v33 = vmul.f32 %v17345_v7, %v17344_v20  ;;  %v3302_v10 = vmul.f32 %v17347_v61, %v17346_v57 }
 0x440   : > { %v7665_v2 = vadd.f32 %v7537_v0, %v7383_v51  ;;  %v7792_v58 = vadd.f32 3.0, %v7664_v49  ;;  %v7666_v1 = vadd.f32 %v7538_v38, %v7384_v37  ;;  %v7667_v43 = vadd.f32 %v7539_v6, %v7385_v14 }
 0x441   : > { %v3485_v8 = vmul.f32 %v17348_v25, %v17342_v32  ;;  %v3486_v50 = vmul.f32 %v17349_v41, %v17344_v20  ;;  %v3487_v0 = vmul.f32 %v17350_v44, %v17346_v57  ;;  %v17351_v30 = vrot.slane %v14282_v9, 7 }
 0x442   : > { %v7793_v19 = vadd.f32 3.0, %v7665_v2  ;;  %v7920_v59 = vmax.f32 %v7792_v58, 0.0  ;;  %v7794_v51 = vadd.f32 3.0, %v7666_v1  ;;  %v7795_v46 = vadd.f32 3.0, %v7667_v43 }
 0x443   : > { %v3941_v17 = vrot.slane %v17351_v30, 2  ;;  %v3942_v7 = vrot.slane %v3485_v8, 7  ;;  %v3945_v61 = vrot.slane %v3486_v50, 7  ;;  %v3948_v37 = vrot.slane %v3487_v0, 7 }
 0x444   : > { %v7921_v38 = vmax.f32 %v7793_v19, 0.0  ;;  %v8048_v6 = vmin.f32 %v7920_v59, 6.0  ;;  %v4444_v14 = vmul.f32 %v17115_v4, %v17342_v32  ;;  %v7922_v25 = vmax.f32 %v7794_v51, 0.0 }
 0x445   : > { %v7923_v41 = vmax.f32 %v7795_v46, 0.0  ;;  %v3943_v58 = vsel %vm10597_vm9, %v3941_v17, %v3942_v7  ;;  %v3944_v3 = vrot.slane %v3942_v7, 2  ;;  %v3947_v9 = vrot.slane %v3945_v61, 2  ;;  %v17352_v46 = vld [vmem:[#allocation153_spill] sm:$0xff] }
 0x446   : > { %v8049_v44 = vmin.f32 %v7921_v38, 6.0  ;;  %v8176_v60 = vmul.f32 %v8048_v6, %v7664_v49  ;;  %v3950_v30 = vrot.slane %v3948_v37, 2  ;;  %v8050_v34 = vmin.f32 %v7922_v25, 6.0 }
 0x447   : > { %v8051_v62 = vmin.f32 %v7923_v41, 6.0  ;;  %v3946_v8 = vsel %vm10597_vm9, %v3944_v3, %v3945_v61  ;;  %v4290_v50 = vadd.f32 %v3943_v58, %v3299_v29  ;;  %v3949_v32 = vsel %vm10597_vm9, %v3947_v9, %v3948_v37  ;;  %v17357_v9 = vld [vmem:[#allocation70_spill] sm:$0xff] }
 0x448   : > { %v8177_v19 = vmul.f32 %v8049_v44, %v7665_v2  ;;  %v8304_v59 = vmul.f32 0.16666667, %v8176_v60  ;;  %v17353_v0 = vrot.slane %v17352_v46, 7  ;;  %v8178_v17 = vmul.f32 %v8050_v34, %v7666_v1  ;;  %v17354_v2 = vld [vmem:[#allocation72_spill] sm:$0xff] }
 0x449   : > { %v8179_v49 = vmul.f32 %v8051_v62, %v7667_v43  ;;  %v4291_v51 = vadd.f32 %v3946_v8, %v3300_v52  ;;  %v4292_v38 = vadd.f32 %v3949_v32, %v3301_v33  ;;  %v4445_v61 = vmul.f32 %v17087_v47, %v17344_v20  ;;  %v17355_v52 = vld [vmem:[#allocation149_spill] sm:$0xff]  ;;  %v17356_v33 = vld [vmem:[#allocation162_spill] sm:$0xff] }
 0x44a   : > { %v3952_v7 = vsel %vm10597_vm9, %v3950_v30, %v17353_v0  ;;  %v8305_v25 = vmul.f32 0.16666667, %v8177_v19  ;;  %v4446_v60 = vmul.f32 %v16994_v24, %v17346_v57  ;;  %v8306_v29 = vmul.f32 0.16666667, %v8178_v17  ;;  %v17359_v17 = vld [vmem:[#allocation28_spill] sm:$0xff] }
 0x44b   : > { %v4293_v41 = vadd.f32 %v3952_v7, %v3302_v10  ;;  %v8307_v3 = vmul.f32 0.16666667, %v8179_v49  ;;  %v4447_v44 = vmul.f32 %v17264_v42, %v17354_v2  ;;  %v4572_v6 = vadd.f32 %v4444_v14, %v4290_v50  ;;  %v17358_v7 = vld [vmem:[#allocation87_spill] sm:$0xff] }
 0x44c   : > { %v8824_v37 = vcombine.low %v8304_v59, %v8305_v25  ;;  %v4573_v58 = vadd.f32 %v4445_v61, %v4291_v51  ;;  %v4574_v1 = vadd.f32 %v4446_v60, %v4292_v38  ;;  %v4726_v62 = vmul.f32 %v17093_v36, %v17276_v31 }
 0x44d   : > { %v8825_v34 = vcombine.low %v8306_v29, %v8307_v3  ;;  %v4575_v10 = vadd.f32 %v4447_v44, %v4293_v41  ;;  %v4727_v20 = vmul.f32 %v17095_v22, %v17355_v52  ;;  %v4728_v57 = vmul.f32 %v17000_v39, %v17356_v33 }
 0x44e   : > { %v8832_v43 = vrot.slane %v8824_v37, %v17120_v40  ;;  %v4729_v30 = vmul.f32 %v17002_v15, %v17357_v9  ;;  %v4854_v14 = vadd.f32 %v4726_v62, %v4572_v6  ;;  %v5033_v8 = vmul.f32 %v17099_v53, %v17355_v52 }
 0x44f   : > { %v8839_v50 = vrot.slane %v8825_v34, %v17120_v40  ;;  %v4855_v19 = vadd.f32 %v4727_v20, %v4573_v58  ;;  %v4856_v59 = vadd.f32 %v4728_v57, %v4574_v1  ;;  %v5034_v32 = vmul.f32 %v16571_v45, %v17356_v33 }
 0x450   : > { %v4857_v46 = vadd.f32 %v4729_v30, %v4575_v10  ;;  %v5035_v0 = vmul.f32 %v16572_v12, %v17357_v9  ;;  %v5036_v49 = vmul.f32 %v17359_v17, %v17358_v7  ;;  %v17360_v51 = vrot.slane %v14326_v48, 7  ;;  %v17361_v10 = vld [vmem:[#allocation91_spill] sm:$0xff]  ;;  %v17362_v30 = vld [vmem:[#allocation109_spill] sm:$0xff] }
 0x451   : > { %v8840_v25 = vcombine.low %v8832_v43, %v8839_v50  ;;  %v5490_v41 = vrot.slane %v5033_v8, 7  ;;  %v5493_v61 = vrot.slane %v5034_v32, 7  ;;  %v5992_v60 = vmul.f32 %v16619_v5, %v17355_v52  ;;  %v17363_v50 = vld [vmem:[#allocation104_spill] sm:$0xff]  ;;  %v17365_v17 = vld [vmem:[#allocation45_spill] sm:$0xff] }
 0x452   : > { %v5489_v38 = vrot.slane %v17360_v51, 2  ;;  %v5496_v29 = vrot.slane %v5035_v0, 7  ;;  %v5499_v3 = vrot.slane %v5036_v49, 7  ;;  %v5993_v2 = vmul.f32 %v16620_v23, %v17356_v33 }
 0x453   : > { %v5994_v44 = vmul.f32 %v17124_v16, %v17357_v9  ;;  %9975 = vmatprep.mubr.msk.f32.mxu1 %vm9028_vm10, %v8840_v25  ;;  %v5492_v6 = vrot.slane %v5490_v41, 2  ;;  %v5495_v37 = vrot.slane %v5493_v61, 2  ;;  %v5995_v58 = vmul.f32 %v17125_v27, %v17358_v7  ;;  %v17366_v7 = vld [vmem:[#allocation33_spill] sm:$0xff] }
 0x454   : > { %v5491_v48 = vsel %vm10597_vm9, %v5489_v38, %v5490_v41  ;;  %v5498_v1 = vrot.slane %v5496_v29, 2  ;;  %v6274_v34 = vmul.f32 %v17126_v63, %v17338_v35  ;;  %v6275_v20 = vmul.f32 %v17128_v56, %v17361_v10 }
 0x455   : > { %v5838_v62 = vadd.f32 %v5491_v48, %v4854_v14  ;;  %v5494_v57 = vsel %vm10597_vm9, %v5492_v6, %v5493_v61  ;;  %v5497_v43 = vsel %vm10597_vm9, %v5495_v37, %v5496_v29  ;;  %v6276_v8 = vmul.f32 %v17130_v26, %v17362_v30  ;;  %v17364_v61 = vld [vmem:[#allocation35_spill] sm:$0xff] }
 0x456   : > { %v6277_v32 = vmul.f32 %v17184_v21, %v17363_v50  ;;  %v5500_v14 = vsel %vm10597_vm9, %v5498_v1, %v5499_v3  ;;  %v5839_v0 = vadd.f32 %v5494_v57, %v4855_v19  ;;  %v5840_v49 = vadd.f32 %v5497_v43, %v4856_v59 }
 0x457   : > { %v6120_v51 = vadd.f32 %v5992_v60, %v5838_v62  ;;  %v5841_v38 = vadd.f32 %v5500_v14, %v4857_v46  ;;  %v6581_v25 = vmul.f32 %v17185_v28, %v17361_v10  ;;  %v6582_v41 = vmul.f32 %v17303_v55, %v17362_v30 }
 0x458   : > { %v6583_v29 = vmul.f32 %v17364_v61, %v17363_v50  ;;  %v6121_v48 = vadd.f32 %v5993_v2, %v5839_v0  ;;  %v6122_v6 = vadd.f32 %v5994_v44, %v5840_v49  ;;  %v6584_v9 = vmul.f32 %v17366_v7, %v17365_v17  ;;  %v17369_v49 = vld [vmem:[#allocation44_spill] sm:$0xff] }
 0x459   : > { %v6402_v37 = vadd.f32 %v6274_v34, %v6120_v51  ;;  %v6123_v3 = vadd.f32 %v5995_v58, %v5841_v38  ;;  %v17367_v19 = vrot.slane %v14366_v18, 7  ;;  %v7038_v46 = vrot.slane %v6581_v25, 7 }
 0x45a   : > { %v7041_v60 = vrot.slane %v6582_v41, 7  ;;  %v6403_v1 = vadd.f32 %v6275_v20, %v6121_v48  ;;  %v6404_v62 = vadd.f32 %v6276_v8, %v6122_v6  ;;  %v7044_v57 = vrot.slane %v6583_v29, 7  ;;  %v17368_v8 = vld [vmem:[#allocation34_spill] sm:$0xff]  ;;  %v17370_v48 = vld [vmem:[#allocation152_spill] sm:$0xff] }
 0x45b   : > { %v7037_v59 = vrot.slane %v17367_v19, 2  ;;  %v7047_v43 = vrot.slane %v6584_v9, 7  ;;  %v6405_v14 = vadd.f32 %v6277_v32, %v6123_v3  ;;  %v7040_v2 = vrot.slane %v7038_v46, 2  ;;  %v17371_v6 = vld [vmem:[#allocation4_spill] sm:$0xff]  ;;  %v17373_v19 = vld [vmem:[#allocation6_spill] sm:$0xff] }
 0x45c   : > { %v7043_v44 = vrot.slane %v7041_v60, 2  ;;  %v7046_v34 = vrot.slane %v7044_v57, 2  ;;  %v7540_v58 = vmul.f32 %v17309_v11, %v17361_v10  ;;  %v7541_v18 = vmul.f32 %v17310_v13, %v17362_v30  ;;  %v17372_v3 = vld [vmem:[#allocation144_spill] sm:$0xff] }
 0x45d   : > { %v7039_v33 = vsel %vm10597_vm9, %v7037_v59, %v7038_v46  ;;  %v7042_v20 = vsel %vm10597_vm9, %v7040_v2, %v7041_v60  ;;  %v7542_v32 = vmul.f32 %v17368_v8, %v17363_v50  ;;  %v7543_v51 = vmul.f32 %v17369_v49, %v17365_v17  ;;  %v17374_v46 = vld [vmem:[#allocation95_spill] sm:$0xff]  ;;  %v17375_v60 = vld [vmem:[#allocation5_spill] sm:$0xff]  ;;  %v17376_v17 = vld [vmem:[#allocation96_spill] sm:$0xff] }
 0x45e   : > { %v7386_v0 = vadd.f32 %v7039_v33, %v6402_v37  ;;  %v7045_v9 = vsel %vm10597_vm9, %v7043_v44, %v7044_v57  ;;  %v7048_v33 = vsel %vm10597_vm9, %v7046_v34, %v7047_v43  ;;  %v7387_v38 = vadd.f32 %v7042_v20, %v6403_v1  ;;  %v17377_v50 = vld [vmem:[#allocation17_spill] sm:$0xff]  ;;  %v17378_v1 = vld [vmem:[#allocation3_spill] sm:$0xff] }
 0x45f   : > { %v7388_v25 = vadd.f32 %v7045_v9, %v6404_v62  ;;  %v7389_v29 = vadd.f32 %v7048_v33, %v6405_v14  ;;  %v3303_v37 = vmul.f32 %v17371_v6, %v17370_v48  ;;  %v3304_v59 = vmul.f32 %v17373_v19, %v17372_v3  ;;  %v17379_v14 = vld [vmem:[#allocation10_spill] sm:$0xff] }
 0x460   : > { %v7668_v41 = vadd.f32 %v7540_v58, %v7386_v0  ;;  %v3305_v57 = vmul.f32 %v17375_v60, %v17374_v46  ;;  %v7669_v2 = vadd.f32 %v7541_v18, %v7387_v38  ;;  %v3306_v30 = vmul.f32 %v17377_v50, %v17376_v17  ;;  %v17380_v0 = vld [vmem:[#allocation12_spill] sm:$0xff]  ;;  %v17381_v18 = vld [vmem:[#allocation13_spill] sm:$0xff] }
 0x461   : > { %v7670_v44 = vadd.f32 %v7542_v32, %v7388_v25  ;;  %v7671_v43 = vadd.f32 %v7543_v51, %v7389_v29  ;;  %v3489_v62 = vmul.f32 %v17378_v1, %v17370_v48  ;;  %v3490_v34 = vmul.f32 %v17379_v14, %v17372_v3  ;;  %v17382_v25 = vld [vmem:[#allocation20_spill] sm:$0xff] }
 0x462   : > { %v7796_v7 = vadd.f32 3.0, %v7668_v41  ;;  %v3491_v58 = vmul.f32 %v17380_v0, %v17374_v46  ;;  %v7797_v20 = vadd.f32 3.0, %v7669_v2  ;;  %v3492_v32 = vmul.f32 %v17381_v18, %v17376_v17 }
 0x463   : > { %v7798_v9 = vadd.f32 3.0, %v7670_v44  ;;  %v7799_v38 = vadd.f32 3.0, %v7671_v43  ;;  %v14510_v10 = vmul.f32 %v17382_v25, %v17276_v31  ;;  %v9662_v51 = vrot.slane %v3489_v62, 9 }
 0x464   : > { %v7924_v33 = vmax.f32 %v7796_v7, 0.0  ;;  %v3955_v29 = vrot.slane %v3490_v34, 7  ;;  %v7925_v48 = vmax.f32 %v7797_v20, 0.0  ;;  %v3958_v14 = vrot.slane %v3491_v58, 7 }
 0x465   : > { %v7926_v1 = vmax.f32 %v7798_v9, 0.0  ;;  %v7927_v60 = vmax.f32 %v7799_v38, 0.0  ;;  %v3961_v7 = vrot.slane %v3492_v32, 7  ;;  %v16305_v34 = vrot.slane %v14510_v10, 7 }
 0x466   : > { %v8052_v50 = vmin.f32 %v7924_v33, 6.0  ;;  %v3956_v0 = vsel %vm10597_vm9, %v9662_v51, %v3955_v29  ;;  %v3957_v19 = vrot.slane %v3955_v29, 2  ;;  %v8053_v52 = vmin.f32 %v7925_v48, 6.0  ;;  %v17386_v29 = vld [vmem:[#allocation178_spill] sm:$0xff] }
 0x467   : > { %v8054_v6 = vmin.f32 %v7926_v1, 6.0  ;;  %v3960_v49 = vrot.slane %v3958_v14, 2  ;;  %v8055_v8 = vmin.f32 %v7927_v60, 6.0  ;;  %v3963_v62 = vrot.slane %v3961_v7, 2 }
 0x468   : > { %v8180_v18 = vmul.f32 %v8052_v50, %v7668_v41  ;;  %v3959_v25 = vsel %vm10597_vm9, %v3957_v19, %v3958_v14  ;;  %v8181_v20 = vmul.f32 %v8053_v52, %v7669_v2  ;;  %v4294_v41 = vadd.f32 %v3956_v0, %v3303_v37  ;;  %v17383_v37 = vld [vmem:[#allocation92_spill] sm:$0xff] }
 0x469   : > { %v8182_v9 = vmul.f32 %v8054_v6, %v7670_v44  ;;  %v3962_v33 = vsel %vm10597_vm9, %v3960_v49, %v3961_v7  ;;  %v8183_v38 = vmul.f32 %v8055_v8, %v7671_v43  ;;  %v3965_v50 = vsel %vm10597_vm9, %v3963_v62, %v16305_v34  ;;  %v17384_v44 = vld [vmem:[#allocation174_spill] sm:$0xff] }
 0x46a   : > { %v8308_v58 = vmul.f32 0.16666667, %v8180_v18  ;;  %v4295_v60 = vadd.f32 %v3959_v25, %v3304_v59  ;;  %v8309_v1 = vmul.f32 0.16666667, %v8181_v20  ;;  %v4296_v19 = vadd.f32 %v3962_v33, %v3305_v57  ;;  %v17385_v25 = vld [vmem:[#allocation101_spill] sm:$0xff] }
 0x46b   : > { %v8310_v32 = vmul.f32 0.16666667, %v8182_v9  ;;  %v4297_v14 = vadd.f32 %v3965_v50, %v3306_v30  ;;  %v8311_v51 = vmul.f32 0.16666667, %v8183_v38  ;;  %v4448_v52 = vmul.f32 %v17115_v4, %v17372_v3 }
 0x46c   : > { %v4449_v6 = vmul.f32 %v17087_v47, %v17374_v46  ;;  %v4450_v8 = vmul.f32 %v16994_v24, %v17376_v17  ;;  %v8841_v49 = vcombine.low %v8308_v58, %v8309_v1  ;;  %v4451_v2 = vmul.f32 %v17264_v42, %v17276_v31 }
 0x46d   : > { %v4730_v59 = vmul.f32 %v17093_v36, %v17383_v37  ;;  %v4731_v30 = vmul.f32 %v17095_v22, %v17384_v44  ;;  %v8842_v57 = vcombine.low %v8310_v32, %v8311_v51  ;;  %v4576_v43 = vadd.f32 %v4448_v52, %v4294_v41 }
 0x46e   : > { %v4577_v0 = vadd.f32 %v4449_v6, %v4295_v60  ;;  %v4578_v3 = vadd.f32 %v4450_v8, %v4296_v19  ;;  %v8849_v18 = vrot.slane %v8841_v49, %v17120_v40  ;;  %v4579_v46 = vadd.f32 %v4451_v2, %v4297_v14  ;;  %v17387_v60 = vld [vmem:[#allocation36_spill] sm:$0xff]  ;;  %v17388_v8 = vld [vmem:[#allocation177_spill] sm:$0xff] }
 0x46f   : > { %v4732_v17 = vmul.f32 %v17000_v39, %v17385_v25  ;;  %v4733_v48 = vmul.f32 %v17002_v15, %v17386_v29  ;;  %v8856_v7 = vrot.slane %v8842_v57, %v17120_v40  ;;  %v4858_v62 = vadd.f32 %v4730_v59, %v4576_v43 }
 0x470   : > { %v4859_v20 = vadd.f32 %v4731_v30, %v4577_v0  ;;  %v5038_v9 = vmul.f32 %v17099_v53, %v17384_v44  ;;  %v5039_v38 = vmul.f32 %v16571_v45, %v17385_v25  ;;  %v5040_v50 = vmul.f32 %v16572_v12, %v17386_v29 }
 0x471   : > { %v4860_v58 = vadd.f32 %v4732_v17, %v4578_v3  ;;  %v4861_v33 = vadd.f32 %v4733_v48, %v4579_v46  ;;  %v8857_v41 = vcombine.low %v8849_v18, %v8856_v7  ;;  %v14549_v1 = vmul.f32 %v17387_v60, %v17338_v35  ;;  %v17390_v3 = vld [vmem:[#allocation51_spill] sm:$0xff] }
 0x472   : > { %v5503_v32 = vrot.slane %v5038_v9, 7  ;;  %v5996_v19 = vmul.f32 %v16619_v5, %v17384_v44  ;;  %v5506_v14 = vrot.slane %v5039_v38, 7  ;;  %v5509_v51 = vrot.slane %v5040_v50, 7  ;;  %v17391_v17 = vld [vmem:[#allocation47_spill] sm:$0xff]  ;;  %v17393_v38 = vld [vmem:[#allocation93_spill] sm:$0xff] }
 0x473   : > { %v5997_v52 = vmul.f32 %v16620_v23, %v17385_v25  ;;  %v5998_v6 = vmul.f32 %v17124_v16, %v17386_v29  ;;  %9976 = vmatmul.mubr.msk.f32.gmra.mxu1 %vm9028_vm10, %v8857_v41  ;;  %v17389_v49 = vrot.slane %v17388_v8, 9  ;;  %v16308_v59 = vrot.slane %v14549_v1, 7  ;;  %v17392_v7 = vld [vmem:[#allocation127_spill] sm:$0xff] }
 0x474   : > { %v5505_v37 = vrot.slane %v5503_v32, 2  ;;  %v5999_v30 = vmul.f32 %v17125_v27, %v17338_v35  ;;  %v5508_v57 = vrot.slane %v5506_v14, 2  ;;  %v5511_v43 = vrot.slane %v5509_v51, 2 }
 0x475   : > { %v5504_v2 = vsel %vm10597_vm9, %v17389_v49, %v5503_v32  ;;  %v6278_v18 = vmul.f32 %v17126_v63, %v17390_v3  ;;  %v6279_v48 = vmul.f32 %v17128_v56, %v17391_v17  ;;  %v6280_v9 = vmul.f32 %v17130_v26, %v17392_v7 }
 0x476   : > { %v5842_v0 = vadd.f32 %v5504_v2, %v4858_v62  ;;  %v5507_v46 = vsel %vm10597_vm9, %v5505_v37, %v5506_v14  ;;  %v6281_v50 = vmul.f32 %v17184_v21, %v17393_v38  ;;  %v5510_v41 = vsel %vm10597_vm9, %v5508_v57, %v5509_v51  ;;  %v17394_v2 = vld [vmem:[#allocation24_spill] sm:$0xff] }
 0x477   : > { %v5513_v62 = vsel %vm10597_vm9, %v5511_v43, %v16308_v59  ;;  %v5843_v32 = vadd.f32 %v5507_v46, %v4859_v20  ;;  %v5844_v14 = vadd.f32 %v5510_v41, %v4860_v58  ;;  %v6585_v37 = vmul.f32 %v17394_v2, %v17390_v3  ;;  %v17395_v20 = vld [vmem:[#allocation133_spill] sm:$0xff] }
 0x478   : > { %v6124_v8 = vadd.f32 %v5996_v19, %v5842_v0  ;;  %v5845_v49 = vadd.f32 %v5513_v62, %v4861_v33  ;;  %v6586_v34 = vmul.f32 %v17185_v28, %v17391_v17  ;;  %v6587_v51 = vmul.f32 %v17303_v55, %v17392_v7  ;;  %v17396_v19 = vld [vmem:[#allocation42_spill] sm:$0xff]  ;;  %v17408_v3 = vld [vmem:[#allocation17_spill] sm:$0xff] }
 0x479   : > { %v6125_v60 = vadd.f32 %v5997_v52, %v5843_v32  ;;  %v6588_v57 = vmul.f32 %v17364_v61, %v17393_v38  ;;  %v6126_v25 = vadd.f32 %v5998_v6, %v5844_v14  ;;  %v14591_v58 = vmul.f32 %v17396_v19, %v17395_v20  ;;  %v17402_v19 = vld [vmem:[#allocation4_spill] sm:$0xff] }
 0x47a   : > { %v6406_v29 = vadd.f32 %v6278_v18, %v6124_v8  ;;  %v6127_v43 = vadd.f32 %v5999_v30, %v5845_v49  ;;  %v9694_v33 = vrot.slane %v6585_v37, 9  ;;  %v7051_v46 = vrot.slane %v6586_v34, 7  ;;  %v17398_v34 = vld [vmem:[#allocation34_spill] sm:$0xff] }
 0x47b   : > { %17397 = vst [vmem:[#allocation14_spill] sm:$0xff] %v14591_v58  ;;  %v6407_v0 = vadd.f32 %v6279_v48, %v6125_v60  ;;  %v7054_v41 = vrot.slane %v6587_v51, 7  ;;  %v7057_v62 = vrot.slane %v6588_v57, 7  ;;  %v6408_v59 = vadd.f32 %v6280_v9, %v6126_v25  ;;  %v17399_v25 = vld [vmem:[#allocation44_spill] sm:$0xff]  ;;  %v17400_v51 = vld [vmem:[#allocation63_spill] sm:$0xff] }
 0x47c   : > { %v6409_v52 = vadd.f32 %v6281_v50, %v6127_v43  ;;  %v16313_v18 = vrot.slane %v14591_v58, 7  ;;  %v7544_v32 = vmul.f32 %v17309_v11, %v17391_v17  ;;  %v7052_v6 = vsel %vm10597_vm9, %v9694_v33, %v7051_v46  ;;  %v17407_v17 = vld [vmem:[#allocation70_spill] sm:$0xff] }
 0x47d   : > { %v7053_v30 = vrot.slane %v7051_v46, 2  ;;  %v7056_v8 = vrot.slane %v7054_v41, 2  ;;  %v7059_v14 = vrot.slane %v7057_v62, 2  ;;  %v7390_v49 = vadd.f32 %v7052_v6, %v6406_v29 }
 0x47e   : > { %v7545_v60 = vmul.f32 %v17310_v13, %v17392_v7  ;;  %v7546_v48 = vmul.f32 %v17398_v34, %v17393_v38  ;;  %v7547_v9 = vmul.f32 %v17399_v25, %v17395_v20  ;;  %v14614_v57 = vcombine.high %v17400_v51, %v17400_v51 }
 0x47f   : > { %v7055_v50 = vsel %vm10597_vm9, %v7053_v30, %v7054_v41  ;;  %v7058_v37 = vsel %vm10597_vm9, %v7056_v8, %v7057_v62  ;;  %v7061_v29 = vsel %vm10597_vm9, %v7059_v14, %v16313_v18  ;;  %v7672_v6 = vadd.f32 %v7544_v32, %v7390_v49  ;;  %v17403_v41 = vld [vmem:[#allocation149_spill] sm:$0xff]  ;;  %v17404_v30 = vld [vmem:[#allocation6_spill] sm:$0xff] }
 0x480   : > { %17401 = vst [vmem:[#allocation117_spill] sm:$0xff] %v14614_v57  ;;  %v7391_v43 = vadd.f32 %v7055_v50, %v6407_v0  ;;  %v7392_v33 = vadd.f32 %v7058_v37, %v6408_v59  ;;  %v7393_v46 = vadd.f32 %v7061_v29, %v6409_v52  ;;  %v3307_v2 = vmul.f32 %v17402_v19, %v17276_v31  ;;  %v17405_v62 = vld [vmem:[#allocation162_spill] sm:$0xff]  ;;  %v17406_v8 = vld [vmem:[#allocation5_spill] sm:$0xff]  ;;  %v17410_v52 = vld [vmem:[#allocation12_spill] sm:$0xff] }
 0x481   : > { %v3308_v38 = vmul.f32 %v17404_v30, %v17403_v41  ;;  %v3309_v7 = vmul.f32 %v17406_v8, %v17405_v62  ;;  %v3310_v14 = vmul.f32 %v17408_v3, %v17407_v17  ;;  %v7800_v34 = vadd.f32 3.0, %v7672_v6  ;;  %v17409_v59 = vld [vmem:[#allocation10_spill] sm:$0xff]  ;;  %v17411_v31 = vld [vmem:[#allocation13_spill] sm:$0xff]  ;;  %v17412_v50 = vld [vmem:[#allocation87_spill] sm:$0xff] }
 0x482   : > { %v7673_v18 = vadd.f32 %v7545_v60, %v7391_v43  ;;  %v7674_v44 = vadd.f32 %v7546_v48, %v7392_v33  ;;  %v7675_v25 = vadd.f32 %v7547_v9, %v7393_v46  ;;  %v3494_v0 = vmul.f32 %v17409_v59, %v17403_v41  ;;  %v17413_v37 = vld [vmem:[#allocation15_spill] sm:$0xff] }
 0x483   : > { %v3495_v32 = vmul.f32 %v17410_v52, %v17405_v62  ;;  %v3496_v49 = vmul.f32 %v17411_v31, %v17407_v17  ;;  %v3497_v29 = vmul.f32 %v17413_v37, %v17412_v50  ;;  %v7928_v3 = vmax.f32 %v7800_v34, 0.0 }
 0x484   : > { %v7801_v19 = vadd.f32 3.0, %v7673_v18  ;;  %v7802_v8 = vadd.f32 3.0, %v7674_v44  ;;  %v7803_v30 = vadd.f32 3.0, %v7675_v25  ;;  %v17414_v60 = vrot.slane %v14510_v10, 7 }
 0x485   : > { %v3967_v9 = vrot.slane %v3494_v0, 7  ;;  %v3970_v43 = vrot.slane %v3495_v32, 7  ;;  %v3973_v33 = vrot.slane %v3496_v49, 7  ;;  %v8056_v52 = vmin.f32 %v7928_v3, 6.0 }
 0x486   : > { %v3966_v48 = vrot.slane %v17414_v60, 2  ;;  %v7929_v46 = vmax.f32 %v7801_v19, 0.0  ;;  %v7930_v59 = vmax.f32 %v7802_v8, 0.0  ;;  %v7931_v13 = vmax.f32 %v7803_v30, 0.0 }
 0x487   : > { %v3969_v11 = vrot.slane %v3967_v9, 2  ;;  %v3972_v58 = vrot.slane %v3970_v43, 2  ;;  %v3975_v37 = vrot.slane %v3973_v33, 2  ;;  %v8184_v34 = vmul.f32 %v8056_v52, %v7672_v6 }
 0x488   : > { %v3968_v31 = vsel %vm10597_vm9, %v3966_v48, %v3967_v9  ;;  %v8057_v57 = vmin.f32 %v7929_v46, 6.0  ;;  %v8058_v61 = vmin.f32 %v7930_v59, 6.0  ;;  %v8059_v55 = vmin.f32 %v7931_v13, 6.0 }
 0x489   : > { %v3971_v10 = vsel %vm10597_vm9, %v3969_v11, %v3970_v43  ;;  %v3974_v0 = vsel %vm10597_vm9, %v3972_v58, %v3973_v33  ;;  %v3976_v19 = vrot.slane %v3497_v29, 7  ;;  %v4298_v8 = vadd.f32 %v3968_v31, %v3307_v2  ;;  %v17416_v31 = vld [vmem:[#allocation109_spill] sm:$0xff] }
 0x48a   : > { %v8185_v30 = vmul.f32 %v8057_v57, %v7673_v18  ;;  %v8186_v3 = vmul.f32 %v8058_v61, %v7674_v44  ;;  %v8187_v32 = vmul.f32 %v8059_v55, %v7675_v25  ;;  %v8312_v49 = vmul.f32 0.16666667, %v8184_v34  ;;  %v17415_v18 = vld [vmem:[#allocation91_spill] sm:$0xff] }
 0x48b   : > { %v3977_v60 = vsel %vm10597_vm9, %v3975_v37, %v3976_v19  ;;  %v4299_v48 = vadd.f32 %v3971_v10, %v3308_v38  ;;  %v4300_v9 = vadd.f32 %v3974_v0, %v3309_v7  ;;  %v4452_v13 = vmul.f32 %v17115_v4, %v17403_v41 }
 0x48c   : > { %v8313_v6 = vmul.f32 0.16666667, %v8185_v30  ;;  %v8314_v59 = vmul.f32 0.16666667, %v8186_v3  ;;  %v8315_v11 = vmul.f32 0.16666667, %v8187_v32  ;;  %v4301_v52 = vadd.f32 %v3977_v60, %v3310_v14 }
 0x48d   : > { %v4453_v58 = vmul.f32 %v17087_v47, %v17405_v62  ;;  %v4454_v61 = vmul.f32 %v16994_v24, %v17407_v17  ;;  %v4455_v55 = vmul.f32 %v17264_v42, %v17412_v50  ;;  %v4580_v44 = vadd.f32 %v4452_v13, %v4298_v8  ;;  %v17417_v50 = vld [vmem:[#allocation104_spill] sm:$0xff] }
 0x48e   : > { %v8858_v2 = vcombine.low %v8312_v49, %v8313_v6  ;;  %v8859_v38 = vcombine.low %v8314_v59, %v8315_v11  ;;  %v4734_v7 = vmul.f32 %v17093_v36, %v17338_v35  ;;  %v4735_v25 = vmul.f32 %v17095_v22, %v17415_v18  ;;  %v17419_v6 = vld [vmem:[#allocation45_spill] sm:$0xff] }
 0x48f   : > { %v4581_v57 = vadd.f32 %v4453_v58, %v4299_v48  ;;  %v4582_v41 = vadd.f32 %v4454_v61, %v4300_v9  ;;  %v4583_v14 = vadd.f32 %v4455_v55, %v4301_v52  ;;  %v4736_v62 = vmul.f32 %v17000_v39, %v17416_v31  ;;  %v17420_v61 = vld [vmem:[#allocation132_spill] sm:$0xff] }
 0x490   : > { %v8866_v17 = vrot.slane %v8858_v2, %v17120_v40  ;;  %v8873_v37 = vrot.slane %v8859_v38, %v17120_v40  ;;  %v4737_v29 = vmul.f32 %v17002_v15, %v17417_v50  ;;  %v4862_v43 = vadd.f32 %v4734_v7, %v4580_v44  ;;  %v17421_v38 = vld [vmem:[#allocation134_spill] sm:$0xff] }
 0x491   : > { %v4863_v33 = vadd.f32 %v4735_v25, %v4581_v57  ;;  %v4864_v46 = vadd.f32 %v4736_v62, %v4582_v41  ;;  %v5042_v34 = vmul.f32 %v17099_v53, %v17415_v18  ;;  %v5043_v10 = vmul.f32 %v16571_v45, %v17416_v31  ;;  %v17422_v62 = vld [vmem:[#allocation32_spill] sm:$0xff] }
 0x492   : > { %v8874_v0 = vcombine.low %v8866_v17, %v8873_v37  ;;  %v4865_v19 = vadd.f32 %v4737_v29, %v4583_v14  ;;  %v5044_v8 = vmul.f32 %v16572_v12, %v17417_v50  ;;  %v17418_v30 = vrot.slane %v14549_v1, 7  ;;  %v17423_v37 = vld [vmem:[#allocation129_spill] sm:$0xff] }
 0x493   : > { %v5515_v32 = vrot.slane %v5042_v34, 7  ;;  %v5518_v49 = vrot.slane %v5043_v10, 7  ;;  %v6000_v60 = vmul.f32 %v16619_v5, %v17415_v18  ;;  %v6001_v48 = vmul.f32 %v16620_v23, %v17416_v31 }
 0x494   : > { %v5514_v3 = vrot.slane %v17418_v30, 2  ;;  %9978 = vmatprep.mubr.msk.f32.mxu1 %vm9028_vm10, %v8874_v0  ;;  %v5521_v9 = vrot.slane %v5044_v8, 7  ;;  %v6002_v13 = vmul.f32 %v17124_v16, %v17417_v50  ;;  %v6003_v59 = vmul.f32 %v17125_v27, %v17419_v6  ;;  %v17425_v30 = vld [vmem:[#allocation35_spill] sm:$0xff]  ;;  %v17428_v6 = vld [vmem:[#allocation14_spill] sm:$0xff] }
 0x495   : > { %v6282_v1 = vmul.f32 %v17126_v63, %v17395_v20  ;;  %v5517_v52 = vrot.slane %v5515_v32, 2  ;;  %v5520_v58 = vrot.slane %v5518_v49, 2  ;;  %v6283_v55 = vmul.f32 %v17128_v56, %v17420_v61 }
 0x496   : > { %v5516_v11 = vsel %vm10597_vm9, %v5514_v3, %v5515_v32  ;;  %v5523_v44 = vrot.slane %v5521_v9, 2  ;;  %v6284_v7 = vmul.f32 %v17130_v26, %v17421_v38  ;;  %v6285_v25 = vmul.f32 %v17184_v21, %v17400_v51  ;;  %v17426_v32 = vld [vmem:[#allocation117_spill] sm:$0xff] }
 0x497   : > { %v5846_v2 = vadd.f32 %v5516_v11, %v4862_v43  ;;  %v5519_v57 = vsel %vm10597_vm9, %v5517_v52, %v5518_v49  ;;  %v5522_v41 = vsel %vm10597_vm9, %v5520_v58, %v5521_v9  ;;  %v6590_v14 = vmul.f32 %v17185_v28, %v17420_v61  ;;  %v17427_v49 = vld [vmem:[#allocation33_spill] sm:$0xff] }
 0x498   : > { %v6591_v17 = vmul.f32 %v17422_v62, %v17421_v38  ;;  %v17424_v29 = vrot.slane %v17423_v37, 7  ;;  %v5847_v34 = vadd.f32 %v5519_v57, %v4863_v33  ;;  %v5848_v10 = vadd.f32 %v5522_v41, %v4864_v46 }
 0x499   : > { %v6128_v0 = vadd.f32 %v6000_v60, %v5846_v2  ;;  %v6592_v3 = vmul.f32 %v17425_v30, %v17400_v51  ;;  %v6593_v9 = vmul.f32 %v17427_v49, %v17426_v32  ;;  %v17429_v11 = vrot.slane %v17428_v6, 7  ;;  %v17436_v6 = vld [vmem:[#allocation101_spill] sm:$0xff] }
 0x49a   : > { %v5525_v43 = vsel %vm10597_vm9, %v5523_v44, %v17424_v29  ;;  %v6129_v58 = vadd.f32 %v6001_v48, %v5847_v34  ;;  %v6130_v50 = vadd.f32 %v6002_v13, %v5848_v10  ;;  %v7063_v37 = vrot.slane %v6590_v14, 7  ;;  %v17430_v13 = vld [vmem:[#allocation31_spill] sm:$0xff] }
 0x49b   : > { %v5849_v8 = vadd.f32 %v5525_v43, %v4865_v19  ;;  %v7062_v52 = vrot.slane %v17429_v11, 2  ;;  %v6410_v31 = vadd.f32 %v6282_v1, %v6128_v0  ;;  %v7066_v62 = vrot.slane %v6591_v17, 7  ;;  %v17434_v0 = vld [vmem:[#allocation174_spill] sm:$0xff]  ;;  %v17437_v11 = vld [vmem:[#allocation5_spill] sm:$0xff] }
 0x49c   : > { %v7069_v44 = vrot.slane %v6592_v3, 7  ;;  %v7072_v33 = vrot.slane %v6593_v9, 7  ;;  %v6411_v46 = vadd.f32 %v6283_v55, %v6129_v58  ;;  %v6412_v60 = vadd.f32 %v6284_v7, %v6130_v50  ;;  %v17432_v55 = vld [vmem:[#allocation34_spill] sm:$0xff] }
 0x49d   : > { %v6131_v18 = vadd.f32 %v6003_v59, %v5849_v8  ;;  %v7064_v19 = vsel %vm10597_vm9, %v7062_v52, %v7063_v37  ;;  %v7065_v2 = vrot.slane %v7063_v37, 2  ;;  %v7068_v41 = vrot.slane %v7066_v62, 2  ;;  %v17431_v59 = vld [vmem:[#allocation43_spill] sm:$0xff]  ;;  %v17435_v8 = vld [vmem:[#allocation6_spill] sm:$0xff]  ;;  %v17439_v37 = vld [vmem:[#allocation17_spill] sm:$0xff] }
 0x49e   : > { %v7071_v29 = vrot.slane %v7069_v44, 2  ;;  %v7394_v43 = vadd.f32 %v7064_v19, %v6410_v31  ;;  %v7548_v1 = vmul.f32 %v17430_v13, %v17420_v61  ;;  %v7549_v14 = vmul.f32 %v17431_v59, %v17421_v38  ;;  %v17433_v31 = vld [vmem:[#allocation44_spill] sm:$0xff]  ;;  %v17438_v58 = vld [vmem:[#allocation178_spill] sm:$0xff] }
 0x49f   : > { %v6413_v57 = vadd.f32 %v6285_v25, %v6131_v18  ;;  %v7067_v48 = vsel %vm10597_vm9, %v7065_v2, %v7066_v62  ;;  %v7550_v50 = vmul.f32 %v17432_v55, %v17400_v51  ;;  %v7070_v7 = vsel %vm10597_vm9, %v7068_v41, %v7069_v44  ;;  %v17440_v19 = vld [vmem:[#allocation10_spill] sm:$0xff] }
 0x4a0   : > { %v7073_v18 = vsel %vm10597_vm9, %v7071_v29, %v7072_v33  ;;  %v7395_v25 = vadd.f32 %v7067_v48, %v6411_v46  ;;  %v7551_v17 = vmul.f32 %v17433_v31, %v17426_v32  ;;  %v7396_v62 = vadd.f32 %v7070_v7, %v6412_v60  ;;  %v17441_v60 = vld [vmem:[#allocation12_spill] sm:$0xff] }
 0x4a1   : > { %v7397_v34 = vadd.f32 %v7073_v18, %v6413_v57  ;;  %v7676_v10 = vadd.f32 %v7548_v1, %v7394_v43  ;;  %v3312_v3 = vmul.f32 %v17435_v8, %v17434_v0  ;;  %v3313_v52 = vmul.f32 %v17437_v11, %v17436_v6  ;;  %v17442_v43 = vld [vmem:[#allocation13_spill] sm:$0xff]  ;;  %v17443_v1 = vld [vmem:[#allocation20_spill] sm:$0xff] }
 0x4a2   : > { %v7677_v9 = vadd.f32 %v7549_v14, %v7395_v25  ;;  %v3314_v44 = vmul.f32 %v17439_v37, %v17438_v58  ;;  %v3499_v33 = vmul.f32 %v17440_v19, %v17434_v0  ;;  %v7678_v46 = vadd.f32 %v7550_v50, %v7396_v62  ;;  %v17444_v50 = vld [vmem:[#allocation176_spill] sm:$0xff] }
 0x4a3   : > { %v7679_v2 = vadd.f32 %v7551_v17, %v7397_v34  ;;  %v7804_v41 = vadd.f32 3.0, %v7676_v10  ;;  %v3500_v57 = vmul.f32 %v17441_v60, %v17436_v6  ;;  %v3501_v48 = vmul.f32 %v17442_v43, %v17438_v58 }
 0x4a4   : > { %v7805_v29 = vadd.f32 3.0, %v7677_v9  ;;  %v14735_v14 = vmul.f32 %v17443_v1, %v17338_v35  ;;  %v3980_v7 = vrot.slane %v3499_v33, 7  ;;  %v7806_v18 = vadd.f32 3.0, %v7678_v46 }
 0x4a5   : > { %v7807_v25 = vadd.f32 3.0, %v7679_v2  ;;  %v7932_v49 = vmax.f32 %v7804_v41, 0.0  ;;  %v3983_v32 = vrot.slane %v3500_v57, 7  ;;  %v17445_v17 = vrot.slane %v17444_v50, 9 }
 0x4a6   : > { %v7933_v51 = vmax.f32 %v7805_v29, 0.0  ;;  %v3982_v34 = vrot.slane %v3980_v7, 2  ;;  %v3986_v38 = vrot.slane %v3501_v48, 7  ;;  %v7934_v61 = vmax.f32 %v7806_v18, 0.0  ;;  %v17446_v48 = vld [vmem:[#allocation175_spill] sm:$0xff] }
 0x4a7   : > { %v3981_v62 = vsel %vm10597_vm9, %v17445_v17, %v3980_v7  ;;  %v7935_v60 = vmax.f32 %v7807_v25, 0.0  ;;  %v8060_v43 = vmin.f32 %v7932_v49, 6.0  ;;  %v3985_v19 = vrot.slane %v3983_v32, 2 }
 0x4a8   : > { %v8061_v37 = vmin.f32 %v7933_v51, 6.0  ;;  %v3984_v33 = vsel %vm10597_vm9, %v3982_v34, %v3983_v32  ;;  %v3988_v1 = vrot.slane %v3986_v38, 2  ;;  %v16328_v41 = vrot.slane %v14735_v14, 7 }
 0x4a9   : > { %v8062_v57 = vmin.f32 %v7934_v61, 6.0  ;;  %v8063_v29 = vmin.f32 %v7935_v60, 6.0  ;;  %v8188_v11 = vmul.f32 %v8060_v43, %v7676_v10  ;;  %v3987_v50 = vsel %vm10597_vm9, %v3985_v19, %v3986_v38 }
 0x4aa   : > { %v8189_v17 = vmul.f32 %v8061_v37, %v7677_v9  ;;  %v3990_v49 = vsel %vm10597_vm9, %v3988_v1, %v16328_v41  ;;  %v4302_v51 = vadd.f32 %v3981_v62, %v17446_v48  ;;  %v4303_v7 = vadd.f32 %v3984_v33, %v3312_v3  ;;  %v17448_v1 = vld [vmem:[#allocation47_spill] sm:$0xff] }
 0x4ab   : > { %v8190_v18 = vmul.f32 %v8062_v57, %v7678_v46  ;;  %v8191_v32 = vmul.f32 %v8063_v29, %v7679_v2  ;;  %v8316_v25 = vmul.f32 0.16666667, %v8188_v11  ;;  %v4304_v34 = vadd.f32 %v3987_v50, %v3313_v52  ;;  %v17447_v52 = vld [vmem:[#allocation51_spill] sm:$0xff]  ;;  %v17450_v57 = vld [vmem:[#allocation93_spill] sm:$0xff] }
 0x4ac   : > { %v8317_v8 = vmul.f32 0.16666667, %v8189_v17  ;;  %v4305_v61 = vadd.f32 %v3990_v49, %v3314_v44  ;;  %v4456_v10 = vmul.f32 %v17115_v4, %v17434_v0  ;;  %v4457_v38 = vmul.f32 %v17087_v47, %v17436_v6  ;;  %v17449_v33 = vld [vmem:[#allocation127_spill] sm:$0xff]  ;;  %v17451_v49 = vld [vmem:[#allocation9_spill] sm:$0xff] }
 0x4ad   : > { %v8318_v9 = vmul.f32 0.16666667, %v8190_v18  ;;  %v8319_v37 = vmul.f32 0.16666667, %v8191_v32  ;;  %v4458_v19 = vmul.f32 %v16994_v24, %v17438_v58  ;;  %v4459_v3 = vmul.f32 %v17264_v42, %v17338_v35 }
 0x4ae   : > { %v8875_v46 = vcombine.low %v8316_v25, %v8317_v8  ;;  %v4584_v2 = vadd.f32 %v4456_v10, %v4302_v51  ;;  %v4585_v11 = vadd.f32 %v4457_v38, %v4303_v7  ;;  %v4738_v44 = vmul.f32 %v17093_v36, %v17447_v52 }
 0x4af   : > { %v8876_v60 = vcombine.low %v8318_v9, %v8319_v37  ;;  %v4586_v43 = vadd.f32 %v4458_v19, %v4304_v34  ;;  %v4587_v0 = vadd.f32 %v4459_v3, %v4305_v61  ;;  %v4739_v6 = vmul.f32 %v17095_v22, %v17448_v1  ;;  %v17452_v61 = vld [vmem:[#allocation36_spill] sm:$0xff] }
 0x4b0   : > { %v8883_v62 = vrot.slane %v8875_v46, %v17120_v40  ;;  %v4740_v58 = vmul.f32 %v17000_v39, %v17449_v33  ;;  %v4741_v29 = vmul.f32 %v17002_v15, %v17450_v57  ;;  %v4866_v8 = vadd.f32 %v4738_v44, %v4584_v2 }
 0x4b1   : > { %v8890_v50 = vrot.slane %v8876_v60, %v17120_v40  ;;  %v4867_v17 = vadd.f32 %v4739_v6, %v4585_v11  ;;  %v5046_v48 = vmul.f32 %v17451_v49, %v17447_v52  ;;  %v5047_v51 = vmul.f32 %v17099_v53, %v17448_v1 }
 0x4b2   : > { %v4868_v7 = vadd.f32 %v4740_v58, %v4586_v43  ;;  %v4869_v18 = vadd.f32 %v4741_v29, %v4587_v0  ;;  %v5048_v32 = vmul.f32 %v16571_v45, %v17449_v33  ;;  %v5049_v25 = vmul.f32 %v16572_v12, %v17450_v57  ;;  %v17453_v29 = vld [vmem:[#allocation37_spill] sm:$0xff] }
 0x4b3   : > { %v8891_v34 = vcombine.low %v8883_v62, %v8890_v50  ;;  %v14779_v10 = vmul.f32 %v17452_v61, %v17395_v20  ;;  %v9679_v38 = vrot.slane %v5046_v48, 9  ;;  %v5528_v9 = vrot.slane %v5047_v51, 7  ;;  %v17454_v48 = vld [vmem:[#allocation66_spill] sm:$0xff]  ;;  %v17457_v61 = vld [vmem:[#allocation24_spill] sm:$0xff] }
 0x4b4   : > { %v5531_v37 = vrot.slane %v5048_v32, 7  ;;  %v5534_v19 = vrot.slane %v5049_v25, 7  ;;  %v6004_v3 = vmul.f32 %v16619_v5, %v17448_v1  ;;  %v6005_v46 = vmul.f32 %v16620_v23, %v17449_v33  ;;  %v17455_v32 = vld [vmem:[#allocation94_spill] sm:$0xff] }
 0x4b5   : > { %9979 = vmatmul.mubr.msk.f32.gmra.mxu1 %vm9028_vm10, %v8891_v34  ;;  %v5529_v2 = vsel %vm10597_vm9, %v9679_v38, %v5528_v9  ;;  %v5530_v11 = vrot.slane %v5528_v9, 2  ;;  %v16333_v44 = vrot.slane %v14779_v10, 7  ;;  %v6006_v60 = vmul.f32 %v17124_v16, %v17450_v57 }
 0x4b6   : > { %v5533_v43 = vrot.slane %v5531_v37, 2  ;;  %v5536_v0 = vrot.slane %v5534_v19, 2  ;;  %v5850_v6 = vadd.f32 %v5529_v2, %v4866_v8  ;;  %v6007_v62 = vmul.f32 %v17125_v27, %v17395_v20 }
 0x4b7   : > { %v5532_v58 = vsel %vm10597_vm9, %v5530_v11, %v5531_v37  ;;  %v6286_v50 = vmul.f32 %v17126_v63, %v17453_v29  ;;  %v6287_v51 = vmul.f32 %v17128_v56, %v17454_v48  ;;  %v6288_v25 = vmul.f32 %v17130_v26, %v17455_v32  ;;  %v17456_v11 = vld [vmem:[#allocation73_spill] sm:$0xff] }
 0x4b8   : > { %v5535_v34 = vsel %vm10597_vm9, %v5533_v43, %v5534_v19  ;;  %v5538_v8 = vsel %vm10597_vm9, %v5536_v0, %v16333_v44  ;;  %v5851_v38 = vadd.f32 %v5532_v58, %v4867_v17  ;;  %v6132_v9 = vadd.f32 %v6004_v3, %v5850_v6  ;;  %v17458_v43 = vld [vmem:[#allocation32_spill] sm:$0xff] }
 0x4b9   : > { %v5852_v37 = vadd.f32 %v5535_v34, %v4868_v7  ;;  %v5853_v2 = vadd.f32 %v5538_v8, %v4869_v18  ;;  %v6289_v41 = vmul.f32 %v17184_v21, %v17456_v11  ;;  %v6594_v49 = vmul.f32 %v17457_v61, %v17453_v29  ;;  %v17459_v7 = vld [vmem:[#allocation49_spill] sm:$0xff]  ;;  %v17460_v18 = vld [vmem:[#allocation42_spill] sm:$0xff]  ;;  %v17466_v61 = vld [vmem:[#allocation104_spill] sm:$0xff] }
 0x4ba   : > { %v6133_v42 = vadd.f32 %v6005_v46, %v5851_v38  ;;  %v6414_v57 = vadd.f32 %v6286_v50, %v6132_v9  ;;  %v6595_v19 = vmul.f32 %v17185_v28, %v17454_v48  ;;  %v6596_v33 = vmul.f32 %v17458_v43, %v17455_v32 }
 0x4bb   : > { %v6134_v1 = vadd.f32 %v6006_v60, %v5852_v37  ;;  %v6135_v0 = vadd.f32 %v6007_v62, %v5853_v2  ;;  %v6597_v17 = vmul.f32 %v17425_v30, %v17456_v11  ;;  %v14819_v3 = vmul.f32 %v17460_v18, %v17459_v7 }
 0x4bc   : > { %v6415_v6 = vadd.f32 %v6287_v51, %v6133_v42  ;;  %v9695_v58 = vrot.slane %v6594_v49, 9  ;;  %v7076_v34 = vrot.slane %v6595_v19, 7  ;;  %v7079_v46 = vrot.slane %v6596_v33, 7  ;;  %v17461_v51 = vld [vmem:[#allocation4_spill] sm:$0xff] }
 0x4bd   : > { %v6416_v50 = vadd.f32 %v6288_v25, %v6134_v1  ;;  %v6417_v8 = vadd.f32 %v6289_v41, %v6135_v0  ;;  %v7082_v38 = vrot.slane %v6597_v17, 7  ;;  %v16339_v9 = vrot.slane %v14819_v3, 7 }
 0x4be   : > { %v7077_v60 = vsel %vm10597_vm9, %v9695_v58, %v7076_v34  ;;  %v7078_v62 = vrot.slane %v7076_v34, 2  ;;  %v7081_v37 = vrot.slane %v7079_v46, 2  ;;  %v7552_v2 = vmul.f32 %v17430_v13, %v17454_v48  ;;  %v17462_v34 = vld [vmem:[#allocation91_spill] sm:$0xff] }
 0x4bf   : > { %v7084_v44 = vrot.slane %v7082_v38, 2  ;;  %v7398_v18 = vadd.f32 %v7077_v60, %v6414_v57  ;;  %v7553_v42 = vmul.f32 %v17431_v59, %v17455_v32  ;;  %v7554_v1 = vmul.f32 %v17432_v55, %v17456_v11  ;;  %v17467_v11 = vld [vmem:[#allocation17_spill] sm:$0xff] }
 0x4c0   : > { %v7080_v41 = vsel %vm10597_vm9, %v7078_v62, %v7079_v46  ;;  %v7083_v33 = vsel %vm10597_vm9, %v7081_v37, %v7082_v38  ;;  %v7555_v49 = vmul.f32 %v17433_v31, %v17459_v7  ;;  %v3315_v25 = vmul.f32 %v17461_v51, %v17338_v35  ;;  %v17463_v46 = vld [vmem:[#allocation6_spill] sm:$0xff]  ;;  %v17464_v62 = vld [vmem:[#allocation109_spill] sm:$0xff] }
 0x4c1   : > { %v7086_v57 = vsel %vm10597_vm9, %v7084_v44, %v16339_v9  ;;  %v7399_v19 = vadd.f32 %v7080_v41, %v6415_v6  ;;  %v7400_v0 = vadd.f32 %v7083_v33, %v6416_v50  ;;  %v7680_v17 = vadd.f32 %v7552_v2, %v7398_v18  ;;  %v17465_v38 = vld [vmem:[#allocation5_spill] sm:$0xff]  ;;  %v17468_v51 = vld [vmem:[#allocation10_spill] sm:$0xff]  ;;  %v17469_v6 = vld [vmem:[#allocation12_spill] sm:$0xff] }
 0x4c2   : > { %v7401_v58 = vadd.f32 %v7086_v57, %v6417_v8  ;;  %v3316_v60 = vmul.f32 %v17463_v46, %v17462_v34  ;;  %v3317_v37 = vmul.f32 %v17465_v38, %v17464_v62  ;;  %v3318_v32 = vmul.f32 %v17467_v11, %v17466_v61  ;;  %v17470_v50 = vld [vmem:[#allocation13_spill] sm:$0xff] }
 0x4c3   : > { %v7681_v48 = vadd.f32 %v7553_v42, %v7399_v19  ;;  %v7682_v35 = vadd.f32 %v7554_v1, %v7400_v0  ;;  %v7808_v29 = vadd.f32 3.0, %v7680_v17  ;;  %v3503_v52 = vmul.f32 %v17468_v51, %v17462_v34 }
 0x4c4   : > { %v7683_v44 = vadd.f32 %v7555_v49, %v7401_v58  ;;  %v3504_v18 = vmul.f32 %v17469_v6, %v17464_v62  ;;  %v3505_v8 = vmul.f32 %v17470_v50, %v17466_v61  ;;  %v17471_v2 = vrot.slane %v14735_v14, 7 }
 0x4c5   : > { %v7809_v33 = vadd.f32 3.0, %v7681_v48  ;;  %v7810_v57 = vadd.f32 3.0, %v7682_v35  ;;  %v7936_v9 = vmax.f32 %v7808_v29, 0.0  ;;  %v3992_v11 = vrot.slane %v3503_v52, 7 }
 0x4c6   : > { %v3991_v41 = vrot.slane %v17471_v2, 2  ;;  %v7811_v42 = vadd.f32 3.0, %v7683_v44  ;;  %v3995_v1 = vrot.slane %v3504_v18, 7  ;;  %v3998_v19 = vrot.slane %v3505_v8, 7  ;;  %v17472_v8 = vld [vmem:[#allocation126_spill] sm:$0xff] }
 0x4c7   : > { %v4460_v0 = vmul.f32 %v17115_v4, %v17462_v34  ;;  %v7937_v49 = vmax.f32 %v7809_v33, 0.0  ;;  %v7938_v58 = vmax.f32 %v7810_v57, 0.0  ;;  %v8064_v51 = vmin.f32 %v7936_v9, 6.0 }
 0x4c8   : > { %v3993_v6 = vsel %vm10597_vm9, %v3991_v41, %v3992_v11  ;;  %v7939_v50 = vmax.f32 %v7811_v42, 0.0  ;;  %v3994_v38 = vrot.slane %v3992_v11, 2  ;;  %v3997_v14 = vrot.slane %v3995_v1, 2 }
 0x4c9   : > { %v4000_v2 = vrot.slane %v3998_v19, 2  ;;  %v8065_v46 = vmin.f32 %v7937_v49, 6.0  ;;  %v8066_v31 = vmin.f32 %v7938_v58, 6.0  ;;  %v8192_v29 = vmul.f32 %v8064_v51, %v7680_v17 }
 0x4ca   : > { %v4306_v52 = vadd.f32 %v3993_v6, %v3315_v25  ;;  %v8067_v55 = vmin.f32 %v7939_v50, 6.0  ;;  %v3996_v18 = vsel %vm10597_vm9, %v3994_v38, %v3995_v1  ;;  %v3999_v34 = vsel %vm10597_vm9, %v3997_v14, %v3998_v19  ;;  %v17474_v14 = vld [vmem:[#allocation128_spill] sm:$0xff] }
 0x4cb   : > { %v17473_v9 = vrot.slane %v17472_v8, 7  ;;  %v8193_v33 = vmul.f32 %v8065_v46, %v7681_v48  ;;  %v8194_v11 = vmul.f32 %v8066_v31, %v7682_v35  ;;  %v8320_v57 = vmul.f32 0.16666667, %v8192_v29  ;;  %v17475_v46 = vld [vmem:[#allocation132_spill] sm:$0xff]  ;;  %v17477_v35 = vld [vmem:[#allocation63_spill] sm:$0xff] }
 0x4cc   : > { %v4307_v42 = vadd.f32 %v3996_v18, %v3316_v60  ;;  %v8195_v49 = vmul.f32 %v8067_v55, %v7683_v44  ;;  %v4308_v58 = vadd.f32 %v3999_v34, %v3317_v37  ;;  %v4461_v25 = vmul.f32 %v17087_v47, %v17464_v62  ;;  %v17476_v60 = vld [vmem:[#allocation134_spill] sm:$0xff] }
 0x4cd   : > { %v4002_v41 = vsel %vm10597_vm9, %v4000_v2, %v17473_v9  ;;  %v8321_v17 = vmul.f32 0.16666667, %v8193_v33  ;;  %v8322_v38 = vmul.f32 0.16666667, %v8194_v11  ;;  %v4462_v6 = vmul.f32 %v16994_v24, %v17466_v61  ;;  %v17478_v33 = vld [vmem:[#allocation117_spill] sm:$0xff]  ;;  %v17479_v11 = vld [vmem:[#allocation28_spill] sm:$0xff] }
 0x4ce   : > { %v4309_v51 = vadd.f32 %v4002_v41, %v3318_v32  ;;  %v4588_v50 = vadd.f32 %v4460_v0, %v4306_v52  ;;  %v8323_v1 = vmul.f32 0.16666667, %v8195_v49  ;;  %v4589_v19 = vadd.f32 %v4461_v25, %v4307_v42 }
 0x4cf   : > { %v4742_v31 = vmul.f32 %v17093_v36, %v17395_v20  ;;  %v8892_v48 = vcombine.low %v8320_v57, %v8321_v17  ;;  %v4590_v55 = vadd.f32 %v4462_v6, %v4308_v58  ;;  %v4743_v32 = vmul.f32 %v17095_v22, %v17475_v46 }
 0x4d0   : > { %v4591_v2 = vadd.f32 %v17474_v14, %v4309_v51  ;;  %v4744_v62 = vmul.f32 %v17000_v39, %v17476_v60  ;;  %v8893_v37 = vcombine.low %v8322_v38, %v8323_v1  ;;  %v4745_v61 = vmul.f32 %v17002_v15, %v17477_v35 }
 0x4d1   : > { %v4870_v44 = vadd.f32 %v4742_v31, %v4588_v50  ;;  %v5051_v0 = vmul.f32 %v17099_v53, %v17475_v46  ;;  %v8900_v29 = vrot.slane %v8892_v48, %v17120_v40  ;;  %v4871_v52 = vadd.f32 %v4743_v32, %v4589_v19 }
 0x4d2   : > { %v4872_v18 = vadd.f32 %v4744_v62, %v4590_v55  ;;  %v5052_v34 = vmul.f32 %v16571_v45, %v17476_v60  ;;  %v8907_v8 = vrot.slane %v8893_v37, %v17120_v40  ;;  %v4873_v9 = vadd.f32 %v4745_v61, %v4591_v2  ;;  %v17481_v37 = vld [vmem:[#allocation76_spill] sm:$0xff] }
 0x4d3   : > { %v5053_v41 = vmul.f32 %v16572_v12, %v17477_v35  ;;  %v5054_v57 = vmul.f32 %v17479_v11, %v17478_v33  ;;  %v17480_v42 = vrot.slane %v14779_v10, 7  ;;  %v5540_v58 = vrot.slane %v5051_v0, 7  ;;  %v17482_v0 = vld [vmem:[#allocation75_spill] sm:$0xff] }
 0x4d4   : > { %v5543_v51 = vrot.slane %v5052_v34, 7  ;;  %v6008_v25 = vmul.f32 %v16619_v5, %v17475_v46  ;;  %v8908_v17 = vcombine.low %v8900_v29, %v8907_v8  ;;  %v6009_v50 = vmul.f32 %v16620_v23, %v17476_v60 }
 0x4d5   : > { %v5539_v49 = vrot.slane %v17480_v42, 2  ;;  %v5546_v38 = vrot.slane %v5053_v41, 7  ;;  %v5549_v6 = vrot.slane %v5054_v57, 7  ;;  %v5542_v19 = vrot.slane %v5540_v58, 2  ;;  %v17483_v42 = vld [vmem:[#allocation27_spill] sm:$0xff] }
 0x4d6   : > { %v5545_v14 = vrot.slane %v5543_v51, 2  ;;  %v6010_v10 = vmul.f32 %v17124_v16, %v17477_v35  ;;  %9981 = vmatprep.mubr.msk.f32.mxu1 %vm9028_vm10, %v8908_v17  ;;  %v6011_v48 = vmul.f32 %v17125_v27, %v17478_v33  ;;  %v6290_v55 = vmul.f32 %v17126_v63, %v17459_v7 }
 0x4d7   : > { %v5541_v1 = vsel %vm10597_vm9, %v5539_v49, %v5540_v58  ;;  %v5548_v2 = vrot.slane %v5546_v38, 2  ;;  %v5544_v32 = vsel %vm10597_vm9, %v5542_v19, %v5543_v51  ;;  %v6291_v61 = vmul.f32 %v17128_v56, %v17481_v37 }
 0x4d8   : > { %v5854_v31 = vadd.f32 %v5541_v1, %v4870_v44  ;;  %v5547_v62 = vsel %vm10597_vm9, %v5545_v14, %v5546_v38  ;;  %v6292_v29 = vmul.f32 %v17130_v26, %v17482_v0  ;;  %v5855_v34 = vadd.f32 %v5544_v32, %v4871_v52  ;;  %v17484_v52 = vld [vmem:[#allocation79_spill] sm:$0xff] }
 0x4d9   : > { %v5550_v44 = vsel %vm10597_vm9, %v5548_v2, %v5549_v6  ;;  %v5856_v8 = vadd.f32 %v5547_v62, %v4872_v18  ;;  %v6293_v49 = vmul.f32 %v17184_v21, %v17483_v42  ;;  %v6599_v58 = vmul.f32 %v17185_v28, %v17481_v37  ;;  %v17485_v18 = vld [vmem:[#allocation33_spill] sm:$0xff] }
 0x4da   : > { %v6136_v41 = vadd.f32 %v6008_v25, %v5854_v31  ;;  %v5857_v57 = vadd.f32 %v5550_v44, %v4873_v9  ;;  %v6600_v51 = vmul.f32 %v17458_v43, %v17482_v0  ;;  %v6137_v17 = vadd.f32 %v6009_v50, %v5855_v34 }
 0x4db   : > { %v6138_v38 = vadd.f32 %v6010_v10, %v5856_v8  ;;  %v6601_v19 = vmul.f32 %v17425_v30, %v17483_v42  ;;  %v6602_v25 = vmul.f32 %v17485_v18, %v17484_v52  ;;  %v17486_v9 = vrot.slane %v14819_v3, 7 }
 0x4dc   : > { %v6418_v1 = vadd.f32 %v6290_v55, %v6136_v41  ;;  %v6139_v6 = vadd.f32 %v6011_v48, %v5857_v57  ;;  %v7088_v2 = vrot.slane %v6599_v58, 7  ;;  %v6419_v31 = vadd.f32 %v6291_v61, %v6137_v17 }
 0x4dd   : > { %v7087_v14 = vrot.slane %v17486_v9, 2  ;;  %v6420_v32 = vadd.f32 %v6292_v29, %v6138_v38  ;;  %v7091_v62 = vrot.slane %v6600_v51, 7  ;;  %v7094_v44 = vrot.slane %v6601_v19, 7  ;;  %v17487_v29 = vld [vmem:[#allocation34_spill] sm:$0xff]  ;;  %v17490_v9 = vld [vmem:[#allocation4_spill] sm:$0xff] }
 0x4de   : > { %v6421_v11 = vadd.f32 %v6293_v49, %v6139_v6  ;;  %v7090_v10 = vrot.slane %v7088_v2, 2  ;;  %v7097_v55 = vrot.slane %v6602_v25, 7  ;;  %v7556_v41 = vmul.f32 %v17430_v13, %v17481_v37  ;;  %v17488_v49 = vld [vmem:[#allocation44_spill] sm:$0xff]  ;;  %v17489_v25 = vld [vmem:[#allocation51_spill] sm:$0xff]  ;;  %v17495_v37 = vld [vmem:[#allocation93_spill] sm:$0xff] }
 0x4df   : > { %v7089_v50 = vsel %vm10597_vm9, %v7087_v14, %v7088_v2  ;;  %v7093_v34 = vrot.slane %v7091_v62, 2  ;;  %v7096_v8 = vrot.slane %v7094_v44, 2  ;;  %v7557_v61 = vmul.f32 %v17431_v59, %v17482_v0  ;;  %v17491_v2 = vld [vmem:[#allocation47_spill] sm:$0xff] }
 0x4e0   : > { %v7402_v48 = vadd.f32 %v7089_v50, %v6418_v1  ;;  %v7092_v3 = vsel %vm10597_vm9, %v7090_v10, %v7091_v62  ;;  %v7558_v57 = vmul.f32 %v17487_v29, %v17483_v42  ;;  %v7559_v58 = vmul.f32 %v17488_v49, %v17484_v52  ;;  %v17492_v62 = vld [vmem:[#allocation6_spill] sm:$0xff]  ;;  %v17493_v42 = vld [vmem:[#allocation127_spill] sm:$0xff]  ;;  %v17494_v52 = vld [vmem:[#allocation5_spill] sm:$0xff] }
 0x4e1   : > { %v7095_v51 = vsel %vm10597_vm9, %v7093_v34, %v7094_v44  ;;  %v7098_v17 = vsel %vm10597_vm9, %v7096_v8, %v7097_v55  ;;  %v7403_v38 = vadd.f32 %v7092_v3, %v6419_v31  ;;  %v3319_v14 = vmul.f32 %v17490_v9, %v17489_v25  ;;  %v17496_v44 = vld [vmem:[#allocation17_spill] sm:$0xff]  ;;  %v17497_v31 = vld [vmem:[#allocation3_spill] sm:$0xff]  ;;  %v17499_v3 = vld [vmem:[#allocation12_spill] sm:$0xff] }
 0x4e2   : > { %v7684_v1 = vadd.f32 %v7556_v41, %v7402_v48  ;;  %v7404_v19 = vadd.f32 %v7095_v51, %v6420_v32  ;;  %v7405_v6 = vadd.f32 %v7098_v17, %v6421_v11  ;;  %v3320_v50 = vmul.f32 %v17492_v62, %v17491_v2  ;;  %v17498_v11 = vld [vmem:[#allocation10_spill] sm:$0xff]  ;;  %v17500_v51 = vld [vmem:[#allocation13_spill] sm:$0xff] }
 0x4e3   : > { %v7685_v10 = vadd.f32 %v7557_v61, %v7403_v38  ;;  %v3321_v0 = vmul.f32 %v17494_v52, %v17493_v42  ;;  %v3322_v34 = vmul.f32 %v17496_v44, %v17495_v37  ;;  %v3507_v32 = vmul.f32 %v17497_v31, %v17489_v25  ;;  %v17501_v44 = vld [vmem:[#allocation20_spill] sm:$0xff] }
 0x4e4   : > { %v7812_v18 = vadd.f32 3.0, %v7684_v1  ;;  %v7686_v33 = vadd.f32 %v7558_v57, %v7404_v19  ;;  %v7687_v55 = vadd.f32 %v7559_v58, %v7405_v6  ;;  %v3508_v8 = vmul.f32 %v17498_v11, %v17491_v2 }
 0x4e5   : > { %v7813_v48 = vadd.f32 3.0, %v7685_v10  ;;  %v3509_v61 = vmul.f32 %v17499_v3, %v17493_v42  ;;  %v3510_v17 = vmul.f32 %v17500_v51, %v17495_v37  ;;  %v14962_v57 = vmul.f32 %v17501_v44, %v17395_v20 }
 0x4e6   : > { %v7940_v41 = vmax.f32 %v7812_v18, 0.0  ;;  %v7814_v38 = vadd.f32 3.0, %v7686_v33  ;;  %v7815_v35 = vadd.f32 3.0, %v7687_v55  ;;  %v9664_v58 = vrot.slane %v3507_v32, 9 }
 0x4e7   : > { %v7941_v19 = vmax.f32 %v7813_v48, 0.0  ;;  %v4005_v25 = vrot.slane %v3508_v8, 7  ;;  %v4008_v31 = vrot.slane %v3509_v61, 7  ;;  %v4011_v18 = vrot.slane %v3510_v17, 7 }
 0x4e8   : > { %v8068_v6 = vmin.f32 %v7940_v41, 6.0  ;;  %v7942_v11 = vmax.f32 %v7814_v38, 0.0  ;;  %v7943_v52 = vmax.f32 %v7815_v35, 0.0  ;;  %v16350_v60 = vrot.slane %v14962_v57, 7 }
 0x4e9   : > { %v8069_v3 = vmin.f32 %v7941_v19, 6.0  ;;  %v4006_v51 = vsel %vm10597_vm9, %v9664_v58, %v4005_v25  ;;  %v4007_v46 = vrot.slane %v4005_v25, 2  ;;  %v4010_v44 = vrot.slane %v4008_v31, 2 }
 0x4ea   : > { %v8196_v62 = vmul.f32 %v8068_v6, %v7684_v1  ;;  %v8070_v9 = vmin.f32 %v7942_v11, 6.0  ;;  %v8071_v49 = vmin.f32 %v7943_v52, 6.0  ;;  %v4013_v29 = vrot.slane %v4011_v18, 2  ;;  %v17505_v6 = vld [vmem:[#allocation94_spill] sm:$0xff] }
 0x4eb   : > { %v8197_v32 = vmul.f32 %v8069_v3, %v7685_v10  ;;  %v4009_v8 = vsel %vm10597_vm9, %v4007_v46, %v4008_v31  ;;  %v4310_v41 = vadd.f32 %v4006_v51, %v3319_v14  ;;  %v4012_v17 = vsel %vm10597_vm9, %v4010_v44, %v4011_v18  ;;  %v17502_v14 = vld [vmem:[#allocation21_spill] sm:$0xff]  ;;  %v17504_v3 = vld [vmem:[#allocation66_spill] sm:$0xff] }
 0x4ec   : > { %v8324_v48 = vmul.f32 0.16666667, %v8196_v62  ;;  %v8198_v35 = vmul.f32 %v8070_v9, %v7686_v33  ;;  %v8199_v61 = vmul.f32 %v8071_v49, %v7687_v55  ;;  %v4015_v1 = vsel %vm10597_vm9, %v4013_v29, %v16350_v60  ;;  %v17503_v29 = vld [vmem:[#allocation37_spill] sm:$0xff] }
 0x4ed   : > { %v8325_v11 = vmul.f32 0.16666667, %v8197_v32  ;;  %v4311_v52 = vadd.f32 %v4009_v8, %v3320_v50  ;;  %v4312_v38 = vadd.f32 %v4012_v17, %v3321_v0  ;;  %v4313_v58 = vadd.f32 %v4015_v1, %v3322_v34  ;;  %v17506_v31 = vld [vmem:[#allocation73_spill] sm:$0xff] }
 0x4ee   : > { %v8326_v10 = vmul.f32 0.16666667, %v8198_v35  ;;  %v8327_v62 = vmul.f32 0.16666667, %v8199_v61  ;;  %v4464_v46 = vmul.f32 %v17115_v4, %v17491_v2  ;;  %v4465_v33 = vmul.f32 %v17087_v47, %v17493_v42 }
 0x4ef   : > { %v8909_v49 = vcombine.low %v8324_v48, %v8325_v11  ;;  %v4466_v9 = vmul.f32 %v16994_v24, %v17495_v37  ;;  %v4467_v44 = vmul.f32 %v17502_v14, %v17395_v20  ;;  %v4746_v50 = vmul.f32 %v17093_v36, %v17503_v29 }
 0x4f0   : > { %v8910_v0 = vcombine.low %v8326_v10, %v8327_v62  ;;  %v4592_v34 = vadd.f32 %v4464_v46, %v4310_v41  ;;  %v4593_v55 = vadd.f32 %v4465_v33, %v4311_v52  ;;  %v4747_v51 = vmul.f32 %v17095_v22, %v17504_v3  ;;  %v17507_v41 = vld [vmem:[#allocation9_spill] sm:$0xff] }
 0x4f1   : > { %v8917_v2 = vrot.slane %v8909_v49, %v17120_v40  ;;  %v4594_v19 = vadd.f32 %v4466_v9, %v4312_v38  ;;  %v4595_v42 = vadd.f32 %v4467_v44, %v4313_v58  ;;  %v4748_v25 = vmul.f32 %v17000_v39, %v17505_v6  ;;  %v17508_v38 = vld [vmem:[#allocation36_spill] sm:$0xff] }
 0x4f2   : > { %v8924_v37 = vrot.slane %v8910_v0, %v17120_v40  ;;  %v4749_v18 = vmul.f32 %v17002_v15, %v17506_v31  ;;  %v4874_v32 = vadd.f32 %v4746_v50, %v4592_v34  ;;  %v4875_v48 = vadd.f32 %v4747_v51, %v4593_v55 }
 0x4f3   : > { %v4876_v8 = vadd.f32 %v4748_v25, %v4594_v19  ;;  %v5055_v35 = vmul.f32 %v17507_v41, %v17503_v29  ;;  %v5056_v61 = vmul.f32 %v17099_v53, %v17504_v3  ;;  %v5057_v17 = vmul.f32 %v16571_v45, %v17505_v6  ;;  %v17509_v19 = vld [vmem:[#allocation78_spill] sm:$0xff]  ;;  %v17510_v25 = vld [vmem:[#allocation55_spill] sm:$0xff] }
 0x4f4   : > { %v8925_v1 = vcombine.low %v8917_v2, %v8924_v37  ;;  %v4877_v11 = vadd.f32 %v4749_v18, %v4595_v42  ;;  %v5058_v52 = vmul.f32 %v16572_v12, %v17506_v31  ;;  %v15003_v58 = vmul.f32 %v17508_v38, %v17459_v7 }
 0x4f5   : > { %v9680_v10 = vrot.slane %v5055_v35, 9  ;;  %v5553_v62 = vrot.slane %v5056_v61, 7  ;;  %v5556_v46 = vrot.slane %v5057_v17, 7  ;;  %v6012_v33 = vmul.f32 %v16619_v5, %v17504_v3  ;;  %v17511_v35 = vld [vmem:[#allocation86_spill] sm:$0xff] }
 0x4f6   : > { %9982 = vmatmul.mubr.msk.f32.gmra.mxu1 %vm9028_vm10, %v8925_v1  ;;  %v5559_v49 = vrot.slane %v5058_v52, 7  ;;  %v16353_v9 = vrot.slane %v15003_v58, 7  ;;  %v6013_v44 = vmul.f32 %v16620_v23, %v17505_v6  ;;  %v6014_v29 = vmul.f32 %v17124_v16, %v17506_v31  ;;  %v17512_v17 = vld [vmem:[#allocation82_spill] sm:$0xff] }
 0x4f7   : > { %v5554_v50 = vsel %vm10597_vm9, %v9680_v10, %v5553_v62  ;;  %v5555_v0 = vrot.slane %v5553_v62, 2  ;;  %v5558_v34 = vrot.slane %v5556_v46, 2  ;;  %v6015_v55 = vmul.f32 %v17125_v27, %v17459_v7 }
 0x4f8   : > { %v5561_v51 = vrot.slane %v5559_v49, 2  ;;  %v5858_v2 = vadd.f32 %v5554_v50, %v4874_v32  ;;  %v6294_v42 = vmul.f32 %v17126_v63, %v17509_v19  ;;  %v6295_v37 = vmul.f32 %v17128_v56, %v17510_v25 }
 0x4f9   : > { %v5557_v18 = vsel %vm10597_vm9, %v5555_v0, %v5556_v46  ;;  %v5560_v41 = vsel %vm10597_vm9, %v5558_v34, %v5559_v49  ;;  %v6296_v61 = vmul.f32 %v17130_v26, %v17511_v35  ;;  %v6297_v1 = vmul.f32 %v17184_v21, %v17512_v17  ;;  %v17513_v46 = vld [vmem:[#allocation24_spill] sm:$0xff] }
 0x4fa   : > { %v5563_v32 = vsel %vm10597_vm9, %v5561_v51, %v16353_v9  ;;  %v5859_v52 = vadd.f32 %v5557_v18, %v4875_v48  ;;  %v5860_v10 = vadd.f32 %v5560_v41, %v4876_v8  ;;  %v6140_v62 = vadd.f32 %v6012_v33, %v5858_v2  ;;  %v17514_v48 = vld [vmem:[#allocation146_spill] sm:$0xff] }
 0x4fb   : > { %v5861_v50 = vadd.f32 %v5563_v32, %v4877_v11  ;;  %v6603_v0 = vmul.f32 %v17513_v46, %v17509_v19  ;;  %v6604_v49 = vmul.f32 %v17185_v28, %v17510_v25  ;;  %v6605_v34 = vmul.f32 %v17458_v43, %v17511_v35  ;;  %v17515_v8 = vld [vmem:[#allocation42_spill] sm:$0xff] }
 0x4fc   : > { %v6141_v60 = vadd.f32 %v6013_v44, %v5859_v52  ;;  %v6142_v38 = vadd.f32 %v6014_v29, %v5860_v10  ;;  %v6422_v31 = vadd.f32 %v6294_v42, %v6140_v62  ;;  %v6606_v6 = vmul.f32 %v17425_v30, %v17512_v17 }
 0x4fd   : > { %v6143_v51 = vadd.f32 %v6015_v55, %v5861_v50  ;;  %v15043_v33 = vmul.f32 %v17515_v8, %v17514_v48  ;;  %v9696_v11 = vrot.slane %v6603_v0, 9  ;;  %v7101_v2 = vrot.slane %v6604_v49, 7 }
 0x4fe   : > { %v6423_v19 = vadd.f32 %v6295_v37, %v6141_v60  ;;  %v6424_v18 = vadd.f32 %v6296_v61, %v6142_v38  ;;  %v7104_v41 = vrot.slane %v6605_v34, 7  ;;  %v7107_v32 = vrot.slane %v6606_v6, 7  ;;  %v17517_v6 = vld [vmem:[#allocation34_spill] sm:$0xff]  ;;  %v17518_v37 = vld [vmem:[#allocation44_spill] sm:$0xff] }
 0x4ff   : > { %17516 = vst [vmem:[#allocation110_spill] sm:$0xff] %v15043_v33  ;;  %v6425_v46 = vadd.f32 %v6297_v1, %v6143_v51  ;;  %v7102_v44 = vsel %vm10597_vm9, %v9696_v11, %v7101_v2  ;;  %v7103_v29 = vrot.slane %v7101_v2, 2  ;;  %v16358_v42 = vrot.slane %v15043_v33, 7  ;;  %v17519_v11 = vld [vmem:[#allocation4_spill] sm:$0xff] }
 0x500   : > { %v7106_v52 = vrot.slane %v7104_v41, 2  ;;  %v7109_v10 = vrot.slane %v7107_v32, 2  ;;  %v7406_v55 = vadd.f32 %v7102_v44, %v6422_v31  ;;  %v7560_v62 = vmul.f32 %v17430_v13, %v17510_v25  ;;  %v17521_v44 = vld [vmem:[#allocation6_spill] sm:$0xff]  ;;  %v17525_v25 = vld [vmem:[#allocation17_spill] sm:$0xff] }
 0x501   : > { %v7105_v50 = vsel %vm10597_vm9, %v7103_v29, %v7104_v41  ;;  %v7561_v60 = vmul.f32 %v17431_v59, %v17511_v35  ;;  %v7562_v38 = vmul.f32 %v17517_v6, %v17512_v17  ;;  %v7563_v61 = vmul.f32 %v17518_v37, %v17514_v48  ;;  %v17520_v41 = vld [vmem:[#allocation132_spill] sm:$0xff]  ;;  %v17522_v17 = vld [vmem:[#allocation134_spill] sm:$0xff]  ;;  %v17523_v35 = vld [vmem:[#allocation5_spill] sm:$0xff] }
 0x502   : > { %v7108_v1 = vsel %vm10597_vm9, %v7106_v52, %v7107_v32  ;;  %v7111_v31 = vsel %vm10597_vm9, %v7109_v10, %v16358_v42  ;;  %v7407_v0 = vadd.f32 %v7105_v50, %v6423_v19  ;;  %v7688_v49 = vadd.f32 %v7560_v62, %v7406_v55  ;;  %v17524_v52 = vld [vmem:[#allocation63_spill] sm:$0xff]  ;;  %v17526_v19 = vld [vmem:[#allocation10_spill] sm:$0xff]  ;;  %v17528_v50 = vld [vmem:[#allocation13_spill] sm:$0xff] }
 0x503   : > { %v7408_v34 = vadd.f32 %v7108_v1, %v6424_v18  ;;  %v7409_v51 = vadd.f32 %v7111_v31, %v6425_v46  ;;  %v3323_v2 = vmul.f32 %v17519_v11, %v17395_v20  ;;  %v3324_v29 = vmul.f32 %v17521_v44, %v17520_v41  ;;  %v17527_v46 = vld [vmem:[#allocation12_spill] sm:$0xff]  ;;  %v17529_v1 = vld [vmem:[#allocation117_spill] sm:$0xff]  ;;  %v17530_v31 = vld [vmem:[#allocation15_spill] sm:$0xff] }
 0x504   : > { %v7689_v9 = vadd.f32 %v7561_v60, %v7407_v0  ;;  %v7816_v8 = vadd.f32 3.0, %v7688_v49  ;;  %v3325_v32 = vmul.f32 %v17523_v35, %v17522_v17  ;;  %v3326_v3 = vmul.f32 %v17525_v25, %v17524_v52 }
 0x505   : > { %v7690_v37 = vadd.f32 %v7562_v38, %v7408_v34  ;;  %v7691_v10 = vadd.f32 %v7563_v61, %v7409_v51  ;;  %v3512_v18 = vmul.f32 %v17526_v19, %v17520_v41  ;;  %v3513_v55 = vmul.f32 %v17527_v46, %v17522_v17 }
 0x506   : > { %v7817_v20 = vadd.f32 3.0, %v7689_v9  ;;  %v7944_v62 = vmax.f32 %v7816_v8, 0.0  ;;  %v3514_v60 = vmul.f32 %v17528_v50, %v17524_v52  ;;  %v3515_v0 = vmul.f32 %v17530_v31, %v17529_v1 }
 0x507   : > { %v7818_v42 = vadd.f32 3.0, %v7690_v37  ;;  %v7819_v11 = vadd.f32 3.0, %v7691_v10  ;;  %v17531_v25 = vrot.slane %v14962_v57, 7  ;;  %v4017_v61 = vrot.slane %v3512_v18, 7 }
 0x508   : > { %v7945_v34 = vmax.f32 %v7817_v20, 0.0  ;;  %v8072_v51 = vmin.f32 %v7944_v62, 6.0  ;;  %v4020_v19 = vrot.slane %v3513_v55, 7  ;;  %v4023_v35 = vrot.slane %v3514_v60, 7 }
 0x509   : > { %v4016_v38 = vrot.slane %v17531_v25, 2  ;;  %v7946_v44 = vmax.f32 %v7818_v42, 0.0  ;;  %v7947_v46 = vmax.f32 %v7819_v11, 0.0  ;;  %v4019_v6 = vrot.slane %v4017_v61, 2 }
 0x50a   : > { %v8073_v50 = vmin.f32 %v7945_v34, 6.0  ;;  %v8200_v59 = vmul.f32 %v8072_v51, %v7688_v49  ;;  %v4022_v13 = vrot.slane %v4020_v19, 2  ;;  %v4025_v31 = vrot.slane %v4023_v35, 2 }
 0x50b   : > { %v4018_v8 = vsel %vm10597_vm9, %v4016_v38, %v4017_v61  ;;  %v8074_v33 = vmin.f32 %v7946_v44, 6.0  ;;  %v8075_v30 = vmin.f32 %v7947_v46, 6.0  ;;  %v4021_v57 = vsel %vm10597_vm9, %v4019_v6, %v4020_v19 }
 0x50c   : > { %v4026_v25 = vrot.slane %v3515_v0, 7  ;;  %v8201_v18 = vmul.f32 %v8073_v50, %v7689_v9  ;;  %v8328_v20 = vmul.f32 0.16666667, %v8200_v59  ;;  %v4024_v42 = vsel %vm10597_vm9, %v4022_v13, %v4023_v35  ;;  %v17534_v50 = vld [vmem:[#allocation27_spill] sm:$0xff] }
 0x50d   : > { %v4314_v11 = vadd.f32 %v4018_v8, %v3323_v2  ;;  %v8202_v55 = vmul.f32 %v8074_v33, %v7690_v37  ;;  %v8203_v62 = vmul.f32 %v8075_v30, %v7691_v10  ;;  %v4315_v49 = vadd.f32 %v4021_v57, %v3324_v29  ;;  %v17533_v10 = vld [vmem:[#allocation75_spill] sm:$0xff] }
 0x50e   : > { %v4027_v60 = vsel %vm10597_vm9, %v4025_v31, %v4026_v25  ;;  %v8329_v38 = vmul.f32 0.16666667, %v8201_v18  ;;  %v4316_v61 = vadd.f32 %v4024_v42, %v3325_v32  ;;  %v4468_v46 = vmul.f32 %v17115_v4, %v17520_v41  ;;  %v17532_v41 = vld [vmem:[#allocation76_spill] sm:$0xff]  ;;  %v17535_v42 = vld [vmem:[#allocation79_spill] sm:$0xff] }
 0x50f   : > { %v4317_v44 = vadd.f32 %v4027_v60, %v3326_v3  ;;  %v8330_v6 = vmul.f32 0.16666667, %v8202_v55  ;;  %v8331_v19 = vmul.f32 0.16666667, %v8203_v62  ;;  %v4469_v59 = vmul.f32 %v17087_v47, %v17522_v17 }
 0x510   : > { %v4470_v13 = vmul.f32 %v16994_v24, %v17524_v52  ;;  %v8926_v9 = vcombine.low %v8328_v20, %v8329_v38  ;;  %v4471_v30 = vmul.f32 %v17502_v14, %v17529_v1  ;;  %v4596_v35 = vadd.f32 %v4468_v46, %v4314_v11  ;;  %v17536_v11 = vld [vmem:[#allocation28_spill] sm:$0xff] }
 0x511   : > { %v4750_v33 = vmul.f32 %v17093_v36, %v17459_v7  ;;  %v8927_v3 = vcombine.low %v8330_v6, %v8331_v19  ;;  %v4597_v37 = vadd.f32 %v4469_v59, %v4315_v49  ;;  %v4751_v29 = vmul.f32 %v17095_v22, %v17532_v41 }
 0x512   : > { %v4598_v2 = vadd.f32 %v4470_v13, %v4316_v61  ;;  %v8934_v32 = vrot.slane %v8926_v9, %v17120_v40  ;;  %v4599_v17 = vadd.f32 %v4471_v30, %v4317_v44  ;;  %v4752_v52 = vmul.f32 %v17000_v39, %v17533_v10 }
 0x513   : > { %v4753_v0 = vmul.f32 %v17002_v15, %v17534_v50  ;;  %v8941_v1 = vrot.slane %v8927_v3, %v17120_v40  ;;  %v4878_v34 = vadd.f32 %v4750_v33, %v4596_v35  ;;  %v4879_v51 = vadd.f32 %v4751_v29, %v4597_v37  ;;  %v17538_v37 = vld [vmem:[#allocation103_spill] sm:$0xff] }
 0x514   : > { %v5060_v8 = vmul.f32 %v17099_v53, %v17532_v41  ;;  %v4880_v31 = vadd.f32 %v4752_v52, %v4598_v2  ;;  %v5061_v25 = vmul.f32 %v16571_v45, %v17533_v10  ;;  %v5062_v18 = vmul.f32 %v16572_v12, %v17534_v50  ;;  %v17539_v29 = vld [vmem:[#allocation67_spill] sm:$0xff] }
 0x515   : > { %v4881_v57 = vadd.f32 %v4753_v0, %v4599_v17  ;;  %v8942_v20 = vcombine.low %v8934_v32, %v8941_v1  ;;  %v5063_v55 = vmul.f32 %v17536_v11, %v17535_v42  ;;  %v17537_v62 = vrot.slane %v15003_v58, 7  ;;  %v17554_v11 = vld [vmem:[#allocation73_spill] sm:$0xff] }
 0x516   : > { %v5565_v49 = vrot.slane %v5060_v8, 7  ;;  %v5568_v38 = vrot.slane %v5061_v25, 7  ;;  %v5571_v61 = vrot.slane %v5062_v18, 7  ;;  %v6016_v44 = vmul.f32 %v16619_v5, %v17532_v41  ;;  %v17540_v25 = vld [vmem:[#allocation68_spill] sm:$0xff] }
 0x517   : > { %v5564_v60 = vrot.slane %v17537_v62, 2  ;;  %v6017_v46 = vmul.f32 %v16620_v23, %v17533_v10  ;;  %9984 = vmatprep.mubr.msk.f32.mxu1 %vm9028_vm10, %v8942_v20  ;;  %v5574_v59 = vrot.slane %v5063_v55, 7  ;;  %v6018_v58 = vmul.f32 %v17124_v16, %v17534_v50 }
 0x518   : > { %v5567_v19 = vrot.slane %v5565_v49, 2  ;;  %v5570_v13 = vrot.slane %v5568_v38, 2  ;;  %v5573_v9 = vrot.slane %v5571_v61, 2  ;;  %v6019_v35 = vmul.f32 %v17125_v27, %v17535_v42 }
 0x519   : > { %v5566_v6 = vsel %vm10597_vm9, %v5564_v60, %v5565_v49  ;;  %v6298_v3 = vmul.f32 %v17126_v63, %v17514_v48  ;;  %v6299_v2 = vmul.f32 %v17128_v56, %v17538_v37  ;;  %v6300_v32 = vmul.f32 %v17130_v26, %v17539_v29  ;;  %v17541_v49 = vld [vmem:[#allocation35_spill] sm:$0xff]  ;;  %v17553_v63 = vld [vmem:[#allocation5_spill] sm:$0xff] }
 0x51a   : > { %v5862_v30 = vadd.f32 %v5566_v6, %v4878_v34  ;;  %v5569_v33 = vsel %vm10597_vm9, %v5567_v19, %v5568_v38  ;;  %v5572_v17 = vsel %vm10597_vm9, %v5570_v13, %v5571_v61  ;;  %v5575_v52 = vsel %vm10597_vm9, %v5573_v9, %v5574_v59 }
 0x51b   : > { %v5863_v0 = vadd.f32 %v5569_v33, %v4879_v51  ;;  %v5864_v34 = vadd.f32 %v5572_v17, %v4880_v31  ;;  %v5865_v8 = vadd.f32 %v5575_v52, %v4881_v57  ;;  %v6301_v18 = vmul.f32 %v17184_v21, %v17540_v25  ;;  %v17542_v51 = vld [vmem:[#allocation106_spill] sm:$0xff]  ;;  %v17546_v52 = vld [vmem:[#allocation31_spill] sm:$0xff] }
 0x51c   : > { %v6144_v1 = vadd.f32 %v6016_v44, %v5862_v30  ;;  %v6608_v20 = vmul.f32 %v17185_v28, %v17538_v37  ;;  %v6609_v60 = vmul.f32 %v17458_v43, %v17539_v29  ;;  %v6610_v38 = vmul.f32 %v17541_v49, %v17540_v25  ;;  %v17543_v44 = vld [vmem:[#allocation33_spill] sm:$0xff]  ;;  %v17544_v57 = vld [vmem:[#allocation110_spill] sm:$0xff] }
 0x51d   : > { %v6145_v55 = vadd.f32 %v6017_v46, %v5863_v0  ;;  %v6146_v61 = vadd.f32 %v6018_v58, %v5864_v34  ;;  %v6147_v6 = vadd.f32 %v6019_v35, %v5865_v8  ;;  %v6611_v31 = vmul.f32 %v17543_v44, %v17542_v51  ;;  %v17547_v44 = vld [vmem:[#allocation43_spill] sm:$0xff] }
 0x51e   : > { %v6426_v62 = vadd.f32 %v6298_v3, %v6144_v1  ;;  %v17545_v19 = vrot.slane %v17544_v57, 7  ;;  %v7113_v9 = vrot.slane %v6608_v20, 7  ;;  %v7116_v30 = vrot.slane %v6609_v60, 7 }
 0x51f   : > { %v6427_v13 = vadd.f32 %v6299_v2, %v6145_v55  ;;  %v7119_v33 = vrot.slane %v6610_v38, 7  ;;  %v6428_v46 = vadd.f32 %v6300_v32, %v6146_v61  ;;  %v6429_v3 = vadd.f32 %v6301_v18, %v6147_v6  ;;  %v17548_v2 = vld [vmem:[#allocation34_spill] sm:$0xff]  ;;  %v17549_v32 = vld [vmem:[#allocation44_spill] sm:$0xff] }
 0x520   : > { %v7112_v59 = vrot.slane %v17545_v19, 2  ;;  %v7122_v17 = vrot.slane %v6611_v31, 7  ;;  %v7564_v0 = vmul.f32 %v17546_v52, %v17538_v37  ;;  %v7115_v35 = vrot.slane %v7113_v9, 2  ;;  %v17550_v61 = vld [vmem:[#allocation66_spill] sm:$0xff] }
 0x521   : > { %v7118_v1 = vrot.slane %v7116_v30, 2  ;;  %v7121_v34 = vrot.slane %v7119_v33, 2  ;;  %v7565_v57 = vmul.f32 %v17547_v44, %v17539_v29  ;;  %v7566_v20 = vmul.f32 %v17548_v2, %v17540_v25 }
 0x522   : > { %v7114_v58 = vsel %vm10597_vm9, %v7112_v59, %v7113_v9  ;;  %v7567_v18 = vmul.f32 %v17549_v32, %v17542_v51  ;;  %v7117_v55 = vsel %vm10597_vm9, %v7115_v35, %v7116_v30  ;;  %v17555_v51 = vld [vmem:[#allocation17_spill] sm:$0xff]  ;;  %v17556_v30 = vld [vmem:[#allocation12_spill] sm:$0xff] }
 0x523   : > { %v7410_v8 = vadd.f32 %v7114_v58, %v6426_v62  ;;  %v7120_v60 = vsel %vm10597_vm9, %v7118_v1, %v7119_v33  ;;  %v7123_v38 = vsel %vm10597_vm9, %v7121_v34, %v7122_v17  ;;  %v17551_v62 = vld [vmem:[#allocation6_spill] sm:$0xff]  ;;  %v7411_v31 = vadd.f32 %v7117_v55, %v6427_v13  ;;  %v17557_v33 = vld [vmem:[#allocation13_spill] sm:$0xff]  ;;  %v17558_v13 = vld [vmem:[#allocation20_spill] sm:$0xff] }
 0x524   : > { %v3328_v6 = vmul.f32 %v17551_v62, %v17550_v61  ;;  %v7412_v19 = vadd.f32 %v7120_v60, %v6428_v46  ;;  %v7413_v59 = vadd.f32 %v7123_v38, %v6429_v3  ;;  %v17552_v58 = vld [vmem:[#allocation94_spill] sm:$0xff]  ;;  %v3330_v53 = vmul.f32 %v17555_v51, %v17554_v11  ;;  %v17560_v3 = vld [vmem:[#allocation97_spill] sm:$0xff] }
 0x525   : > { %v7692_v9 = vadd.f32 %v7564_v0, %v7410_v8  ;;  %v3329_v5 = vmul.f32 %v17553_v63, %v17552_v58  ;;  %v3518_v35 = vmul.f32 %v17556_v30, %v17552_v58  ;;  %v3519_v1 = vmul.f32 %v17557_v33, %v17554_v11 }
 0x526   : > { %v7693_v17 = vadd.f32 %v7565_v57, %v7411_v31  ;;  %v7694_v34 = vadd.f32 %v7566_v20, %v7412_v19  ;;  %v7695_v25 = vadd.f32 %v7567_v18, %v7413_v59  ;;  %v15181_v46 = vmul.f32 %v17558_v13, %v17459_v7 }
 0x527   : > { %v7820_v61 = vadd.f32 3.0, %v7692_v9  ;;  %v17561_v0 = vrot.slane %v17560_v3, 7  ;;  %v4033_v55 = vrot.slane %v3518_v35, 7  ;;  %v4036_v60 = vrot.slane %v3519_v1, 7 }
 0x528   : > { %17559 = vst [vmem:[#allocation115_spill] sm:$0xff] %v15181_v46  ;;  %v7821_v38 = vadd.f32 3.0, %v7693_v17  ;;  %v7822_v29 = vadd.f32 3.0, %v7694_v34  ;;  %v7823_v37 = vadd.f32 3.0, %v7695_v25  ;;  %v16374_v18 = vrot.slane %v15181_v46, 7 }
 0x529   : > { %v4032_v8 = vrot.slane %v17561_v0, 2  ;;  %v7948_v36 = vmax.f32 %v7820_v61, 0.0  ;;  %v4035_v57 = vrot.slane %v4033_v55, 2  ;;  %v4038_v20 = vrot.slane %v4036_v60, 2 }
 0x52a   : > { %v7949_v31 = vmax.f32 %v7821_v38, 0.0  ;;  %v7950_v19 = vmax.f32 %v7822_v29, 0.0  ;;  %v7951_v59 = vmax.f32 %v7823_v37, 0.0  ;;  %v4473_v61 = vmul.f32 %v17087_v47, %v17552_v58  ;;  %v17562_v58 = vld [vmem:[#allocation55_spill] sm:$0xff] }
 0x52b   : > { %v4034_v42 = vsel %vm10597_vm9, %v4032_v8, %v4033_v55  ;;  %v8076_v13 = vmin.f32 %v7948_v36, 6.0  ;;  %v4037_v3 = vsel %vm10597_vm9, %v4035_v57, %v4036_v60  ;;  %v4040_v35 = vsel %vm10597_vm9, %v4038_v20, %v16374_v18 }
 0x52c   : > { %v4319_v1 = vadd.f32 %v4034_v42, %v3328_v6  ;;  %v8077_v0 = vmin.f32 %v7949_v31, 6.0  ;;  %v8078_v8 = vmin.f32 %v7950_v19, 6.0  ;;  %v8079_v55 = vmin.f32 %v7951_v59, 6.0 }
 0x52d   : > { %v8204_v4 = vmul.f32 %v8076_v13, %v7692_v9  ;;  %v4320_v38 = vadd.f32 %v4037_v3, %v3329_v5  ;;  %v4321_v29 = vadd.f32 %v4040_v35, %v3330_v53  ;;  %v4474_v36 = vmul.f32 %v16994_v24, %v17554_v11  ;;  %v17563_v53 = vld [vmem:[#allocation86_spill] sm:$0xff] }
 0x52e   : > { %v4475_v37 = vmul.f32 %v17502_v14, %v17459_v7  ;;  %v8205_v60 = vmul.f32 %v8077_v0, %v7693_v17  ;;  %v8206_v57 = vmul.f32 %v8078_v8, %v7694_v34  ;;  %v8207_v46 = vmul.f32 %v8079_v55, %v7695_v25  ;;  %v17564_v11 = vld [vmem:[#allocation82_spill] sm:$0xff]  ;;  %v17566_v0 = vld [vmem:[#allocation156_spill] sm:$0xff] }
 0x52f   : > { %v8332_v20 = vmul.f32 0.16666667, %v8204_v4  ;;  %v4601_v42 = vadd.f32 %v4473_v61, %v4319_v1  ;;  %v4602_v6 = vadd.f32 %v4474_v36, %v4320_v38  ;;  %v4755_v31 = vmul.f32 %v17095_v22, %v17562_v58  ;;  %v17565_v1 = vld [vmem:[#allocation36_spill] sm:$0xff] }
 0x530   : > { %v4603_v18 = vadd.f32 %v4475_v37, %v4321_v29  ;;  %v8333_v19 = vmul.f32 0.16666667, %v8205_v60  ;;  %v8334_v9 = vmul.f32 0.16666667, %v8206_v57  ;;  %v8335_v5 = vmul.f32 0.16666667, %v8207_v46 }
 0x531   : > { %v4756_v59 = vmul.f32 %v17000_v39, %v17563_v53  ;;  %v4757_v13 = vmul.f32 %v17002_v15, %v17564_v11  ;;  %v4883_v3 = vadd.f32 %v4755_v31, %v4601_v42  ;;  %v5066_v25 = vmul.f32 %v16571_v45, %v17563_v53 }
 0x532   : > { %v5067_v4 = vmul.f32 %v16572_v12, %v17564_v11  ;;  %v8943_v17 = vcombine.low %v8332_v20, %v8333_v19  ;;  %v8944_v34 = vcombine.low %v8334_v9, %v8335_v5  ;;  %v15212_v61 = vmul.f32 %v17565_v1, %v17514_v48  ;;  %v17568_v9 = vld [vmem:[#allocation154_spill] sm:$0xff] }
 0x533   : > { %v4884_v35 = vadd.f32 %v4756_v59, %v4602_v6  ;;  %v4885_v46 = vadd.f32 %v4757_v13, %v4603_v18  ;;  %v17567_v8 = vrot.slane %v17566_v0, 7  ;;  %v5581_v38 = vrot.slane %v5066_v25, 7  ;;  %v17569_v13 = vld [vmem:[#allocation151_spill] sm:$0xff] }
 0x534   : > { %v5584_v29 = vrot.slane %v5067_v4, 7  ;;  %v8951_v36 = vrot.slane %v8943_v17, %v17120_v40  ;;  %v8958_v37 = vrot.slane %v8944_v34, %v17120_v40  ;;  %v16375_v60 = vrot.slane %v15212_v61, 7 }
 0x535   : > { %v5580_v55 = vrot.slane %v17567_v8, 2  ;;  %v6021_v57 = vmul.f32 %v16620_v23, %v17563_v53  ;;  %v5583_v42 = vrot.slane %v5581_v38, 2  ;;  %v6022_v18 = vmul.f32 %v17124_v16, %v17564_v11  ;;  %v17570_v11 = vld [vmem:[#allocation155_spill] sm:$0xff] }
 0x536   : > { %v5586_v6 = vrot.slane %v5584_v29, 2  ;;  %v8959_v58 = vcombine.low %v8951_v36, %v8958_v37  ;;  %v6023_v19 = vmul.f32 %v17125_v27, %v17514_v48  ;;  %v6303_v5 = vmul.f32 %v17128_v56, %v17568_v9 }
 0x537   : > { %v5582_v20 = vsel %vm10597_vm9, %v5580_v55, %v5581_v38  ;;  %v5585_v59 = vsel %vm10597_vm9, %v5583_v42, %v5584_v29  ;;  %v6304_v25 = vmul.f32 %v17130_v26, %v17569_v13  ;;  %v6613_v1 = vmul.f32 %v17185_v28, %v17568_v9  ;;  %v17571_v55 = vld [vmem:[#allocation145_spill] sm:$0xff]  ;;  %v17572_v38 = vld [vmem:[#allocation42_spill] sm:$0xff] }
 0x538   : > { %v5867_v31 = vadd.f32 %v5582_v20, %v4883_v3  ;;  %v5588_v53 = vsel %vm10597_vm9, %v5586_v6, %v16375_v60  ;;  %v6305_v3 = vmul.f32 %v17184_v21, %v17570_v11  ;;  %9985 = vmatmul.mubr.msk.f32.gmra.mxu1 %vm9028_vm10, %v8959_v58  ;;  %v5868_v4 = vadd.f32 %v5585_v59, %v4884_v35 }
 0x539   : > { %v5869_v17 = vadd.f32 %v5588_v53, %v4885_v46  ;;  %v6614_v0 = vmul.f32 %v17458_v43, %v17569_v13  ;;  %v6615_v8 = vmul.f32 %v17541_v49, %v17570_v11  ;;  %v15248_v29 = vmul.f32 %v17572_v38, %v17571_v55  ;;  %v17573_v53 = vld [vmem:[#allocation158_spill] sm:$0xff] }
 0x53a   : > { %v6149_v34 = vadd.f32 %v6021_v57, %v5867_v31  ;;  %v7568_v36 = vmul.f32 %v17546_v52, %v17568_v9  ;;  %v6150_v37 = vadd.f32 %v6022_v18, %v5868_v4  ;;  %v7126_v57 = vrot.slane %v6613_v1, 7 }
 0x53b   : > { %v6151_v35 = vadd.f32 %v6023_v19, %v5869_v17  ;;  %v7129_v20 = vrot.slane %v6614_v0, 7  ;;  %v7132_v42 = vrot.slane %v6615_v8, 7  ;;  %v7135_v6 = vrot.slane %v15248_v29, 7  ;;  %v17575_v19 = vld [vmem:[#allocation90_spill] sm:$0xff] }
 0x53c   : > { %v6431_v46 = vadd.f32 %v6303_v5, %v6149_v34  ;;  %v7569_v58 = vmul.f32 %v17547_v44, %v17569_v13  ;;  %v6432_v31 = vadd.f32 %v6304_v25, %v6150_v37  ;;  %v17574_v60 = vrot.slane %v17573_v53, 9  ;;  %v17576_v25 = vld [vmem:[#allocation4_spill] sm:$0xff] }
 0x53d   : > { %v6433_v59 = vadd.f32 %v6305_v3, %v6151_v35  ;;  %v7128_v49 = vrot.slane %v7126_v57, 2  ;;  %v7131_v9 = vrot.slane %v7129_v20, 2  ;;  %v7134_v18 = vrot.slane %v7132_v42, 2 }
 0x53e   : > { %v7127_v38 = vsel %vm10597_vm9, %v17574_v60, %v7126_v57  ;;  %v7570_v4 = vmul.f32 %v17548_v2, %v17570_v11  ;;  %v7571_v13 = vmul.f32 %v17549_v32, %v17571_v55  ;;  %v3331_v3 = vmul.f32 %v17576_v25, %v17459_v7  ;;  %v17580_v25 = vld [vmem:[#allocation7_spill] sm:$0xff] }
 0x53f   : > { %v7414_v5 = vadd.f32 %v7127_v38, %v17575_v19  ;;  %v7130_v17 = vsel %vm10597_vm9, %v7128_v49, %v7129_v20  ;;  %v3332_v60 = vmul.f32 %v17551_v62, %v17532_v41  ;;  %v7133_v34 = vsel %vm10597_vm9, %v7131_v9, %v7132_v42  ;;  %v15276_v49 = vpop.f32.mrf.mxu1  ;;  %v17577_v9 = vld [vmem:[#allocation10_spill] sm:$0xff] }
 0x540   : > { %v7136_v11 = vsel %vm10597_vm9, %v7134_v18, %v7135_v6  ;;  %v7415_v1 = vadd.f32 %v7130_v17, %v6431_v46  ;;  %v7416_v8 = vadd.f32 %v7133_v34, %v6432_v31  ;;  %v3333_v7 = vmul.f32 %v17553_v63, %v17533_v10  ;;  %v17578_v31 = vld [vmem:[#allocation115_spill] sm:$0xff] }
 0x541   : > { %v7696_v0 = vadd.f32 %v7568_v36, %v7414_v5  ;;  %v7417_v32 = vadd.f32 %v7136_v11, %v6433_v59  ;;  %v3334_v62 = vmul.f32 %v17555_v51, %v17534_v50  ;;  %v3521_v57 = vmul.f32 %v17577_v9, %v17532_v41 }
 0x542   : > { %v7697_v37 = vadd.f32 %v7569_v58, %v7415_v1  ;;  %v3522_v20 = vmul.f32 %v17556_v30, %v17533_v10  ;;  %v7698_v46 = vadd.f32 %v7570_v4, %v7416_v8  ;;  %v3523_v42 = vmul.f32 %v17557_v33, %v17534_v50  ;;  %v15290_v58 = vpop.f32.mrf.mxu1 }
 0x543   : > { %v7824_v35 = vadd.f32 3.0, %v7696_v0  ;;  %v7699_v36 = vadd.f32 %v7571_v13, %v7417_v32  ;;  %v17579_v59 = vrot.slane %v17578_v31, 7  ;;  %v4042_v18 = vrot.slane %v3521_v57, 7 }
 0x544   : > { %v7825_v63 = vadd.f32 3.0, %v7697_v37  ;;  %v4045_v51 = vrot.slane %v3522_v20, 7  ;;  %v7826_v19 = vadd.f32 3.0, %v7698_v46  ;;  %v4048_v17 = vrot.slane %v3523_v42, 7  ;;  %v15296_v11 = vpop.f32.mrf.mxu1 }
 0x545   : > { %v4041_v53 = vrot.slane %v17579_v59, 2  ;;  %v7952_v38 = vmax.f32 %v7824_v35, 0.0  ;;  %v7827_v5 = vadd.f32 3.0, %v7699_v36  ;;  %v4476_v30 = vmul.f32 %v17580_v25, %v17532_v41 }
 0x546   : > { %v7953_v4 = vmax.f32 %v7825_v63, 0.0  ;;  %v4044_v34 = vrot.slane %v4042_v18, 2  ;;  %v7954_v1 = vmax.f32 %v7826_v19, 0.0  ;;  %v4047_v32 = vrot.slane %v4045_v51, 2  ;;  %v17581_v63 = vld [vmem:[#allocation77_spill] sm:$0xff] }
 0x547   : > { %v8080_v13 = vmin.f32 %v7952_v38, 6.0  ;;  %v4043_v33 = vsel %vm10597_vm9, %v4041_v53, %v4042_v18  ;;  %v7955_v8 = vmax.f32 %v7827_v5, 0.0  ;;  %v4050_v35 = vrot.slane %v4048_v17, 2 }
 0x548   : > { %v8081_v9 = vmin.f32 %v7953_v4, 6.0  ;;  %v4046_v20 = vsel %vm10597_vm9, %v4044_v34, %v4045_v51  ;;  %v4322_v42 = vadd.f32 %v4043_v33, %v3331_v3  ;;  %v8082_v31 = vmin.f32 %v7954_v1, 6.0  ;;  %v15306_v4 = vpop.f32.mrf.mxu1  ;;  %v17583_v34 = vld [vmem:[#allocation79_spill] sm:$0xff] }
 0x549   : > { %v8208_v57 = vmul.f32 %v8080_v13, %v7696_v0  ;;  %v8083_v41 = vmin.f32 %v7955_v8, 6.0  ;;  %v4049_v59 = vsel %vm10597_vm9, %v4047_v32, %v4048_v17  ;;  %v17582_v53 = vrot.slane %v17581_v63, 7 }
 0x54a   : > { %v8209_v18 = vmul.f32 %v8081_v9, %v7697_v37  ;;  %v4323_v5 = vadd.f32 %v4046_v20, %v3332_v60  ;;  %v4324_v25 = vadd.f32 %v4049_v59, %v3333_v7  ;;  %v8210_v0 = vmul.f32 %v8082_v31, %v7698_v46  ;;  %v15314_v37 = vpop.f32.mrf.mxu1  ;;  %v17584_v46 = vld [vmem:[#allocation8_spill] sm:$0xff] }
 0x54b   : > { %v4052_v38 = vsel %vm10597_vm9, %v4050_v35, %v17582_v53  ;;  %v8336_v19 = vmul.f32 0.16666667, %v8208_v57  ;;  %v8211_v13 = vmul.f32 %v8083_v41, %v7699_v36  ;;  %v4477_v3 = vmul.f32 %v17087_v47, %v17533_v10  ;;  %v17585_v47 = vld [vmem:[#allocation103_spill] sm:$0xff]  ;;  %v17588_v41 = vld [vmem:[#allocation22_spill] sm:$0xff] }
 0x54c   : > { %v4325_v51 = vadd.f32 %v4052_v38, %v3334_v62  ;;  %v8337_v33 = vmul.f32 0.16666667, %v8209_v18  ;;  %v4478_v17 = vmul.f32 %v16994_v24, %v17534_v50  ;;  %v4479_v1 = vmul.f32 %v17502_v14, %v17583_v34  ;;  %v17586_v24 = vld [vmem:[#allocation67_spill] sm:$0xff]  ;;  %v17587_v14 = vld [vmem:[#allocation68_spill] sm:$0xff]  ;;  %v15329_v63 = vpop.f32.mrf.mxu1 }
 0x54d   : > { %v4604_v8 = vadd.f32 %v4476_v30, %v4322_v42  ;;  %v8338_v60 = vmul.f32 0.16666667, %v8210_v0  ;;  %v8339_v7 = vmul.f32 0.16666667, %v8211_v13  ;;  %v4605_v32 = vadd.f32 %v4477_v3, %v4323_v5  ;;  %v17590_v18 = vld [vmem:[#allocation28_spill] sm:$0xff] }
 0x54e   : > { %v4758_v36 = vmul.f32 %v17584_v46, %v17514_v48  ;;  %v8960_v62 = vcombine.low %v8336_v19, %v8337_v33  ;;  %v4606_v35 = vadd.f32 %v4478_v17, %v4324_v25  ;;  %v4607_v9 = vadd.f32 %v4479_v1, %v4325_v51  ;;  %v15338_v51 = vpop.f32.mrf.mxu1  ;;  %v17592_v33 = vld [vmem:[#allocation18_spill] sm:$0xff] }
 0x54f   : > { %v4759_v10 = vmul.f32 %v17095_v22, %v17585_v47  ;;  %v8961_v57 = vcombine.low %v8338_v60, %v8339_v7  ;;  %v4760_v50 = vmul.f32 %v17000_v39, %v17586_v24  ;;  %v4761_v30 = vmul.f32 %v17002_v15, %v17587_v14  ;;  %v17589_v15 = vld [vmem:[#allocation106_spill] sm:$0xff] }
 0x550   : > { %v4886_v20 = vadd.f32 %v4758_v36, %v4604_v8  ;;  %v8968_v42 = vrot.slane %v8960_v62, %v17120_v40  ;;  %v5069_v48 = vmul.f32 %v17588_v41, %v17585_v47  ;;  %v5070_v59 = vmul.f32 %v16571_v45, %v17586_v24  ;;  %v17593_v62 = vld [vmem:[#allocation29_spill] sm:$0xff] }
 0x551   : > { %v4887_v31 = vadd.f32 %v4759_v10, %v4605_v32  ;;  %v8975_v22 = vrot.slane %v8961_v57, %v17120_v40  ;;  %v4888_v53 = vadd.f32 %v4760_v50, %v4606_v35  ;;  %v4889_v38 = vadd.f32 %v4761_v30, %v4607_v9  ;;  %v17594_v9 = vld [vmem:[#allocation159_spill] sm:$0xff]  ;;  %v15359_v10 = vpop.f32.mrf.mxu1 }
 0x552   : > { %v5071_v39 = vmul.f32 %v16572_v12, %v17587_v14  ;;  %v5072_v19 = vmul.f32 %v17590_v18, %v17589_v15  ;;  %v17591_v5 = vrot.slane %v15212_v61, 7  ;;  %v5590_v0 = vrot.slane %v5069_v48, 7 }
 0x553   : > { %v5593_v13 = vrot.slane %v5070_v59, 7  ;;  %v8976_v45 = vcombine.low %v8968_v42, %v8975_v22  ;;  %v6024_v17 = vmul.f32 %v17592_v33, %v17585_v47  ;;  %v6025_v34 = vmul.f32 %v16620_v23, %v17586_v24  ;;  %v15369_v41 = vpop.f32.mrf.mxu1 }
 0x554   : > { %v5589_v25 = vrot.slane %v17591_v5, 2  ;;  %v5596_v3 = vrot.slane %v5071_v39, 7  ;;  %v5592_v1 = vrot.slane %v5590_v0, 2  ;;  %v5599_v60 = vrot.slane %v5072_v19, 7 }
 0x555   : > { %v5595_v8 = vrot.slane %v5593_v13, 2  ;;  %9987 = vmatprep.mubr.msk.f32.mxu1 %vm9028_vm10, %v8976_v45  ;;  %v6026_v32 = vmul.f32 %v17124_v16, %v17587_v14  ;;  %v6027_v46 = vmul.f32 %v17125_v27, %v17589_v15  ;;  %v6306_v35 = vmul.f32 %v17593_v62, %v17571_v55  ;;  %v17595_v14 = vld [vmem:[#allocation98_spill] sm:$0xff]  ;;  %v17605_v62 = vld [vmem:[#allocation99_spill] sm:$0xff] }
 0x556   : > { %v5591_v12 = vsel %vm10597_vm9, %v5589_v25, %v5590_v0  ;;  %v5598_v61 = vrot.slane %v5596_v3, 2  ;;  %v5594_v36 = vsel %vm10597_vm9, %v5592_v1, %v5593_v13  ;;  %v6307_v47 = vmul.f32 %v17128_v56, %v17594_v9  ;;  %v15381_v0 = vpop.f32.mrf.mxu1 }
 0x557   : > { %v5870_v7 = vadd.f32 %v5591_v12, %v4886_v20  ;;  %v5597_v23 = vsel %vm10597_vm9, %v5595_v8, %v5596_v3  ;;  %v5871_v57 = vadd.f32 %v5594_v36, %v4887_v31  ;;  %v6308_v30 = vmul.f32 %v17130_v26, %v17595_v14  ;;  %v17596_v20 = vld [vmem:[#allocation161_spill] sm:$0xff]  ;;  %v17601_v8 = vld [vmem:[#allocation168_spill] sm:$0xff]  ;;  %v17603_v36 = vld [vmem:[#allocation170_spill] sm:$0xff] }
 0x558   : > { %v5600_v16 = vsel %vm10597_vm9, %v5598_v61, %v5599_v60  ;;  %v5872_v24 = vadd.f32 %v5597_v23, %v4888_v53  ;;  %v6309_v42 = vmul.f32 %v17184_v21, %v17596_v20  ;;  %v6617_v55 = vmul.f32 %v17185_v28, %v17594_v9  ;;  %v17597_v53 = vld [vmem:[#allocation35_spill] sm:$0xff]  ;;  %v17599_v12 = vld [vmem:[#allocation169_spill] sm:$0xff] }
 0x559   : > { %v6152_v27 = vadd.f32 %v6024_v17, %v5870_v7  ;;  %v5873_v50 = vadd.f32 %v5600_v16, %v4889_v38  ;;  %v6153_v56 = vadd.f32 %v6025_v34, %v5871_v57  ;;  %v6618_v31 = vmul.f32 %v17458_v43, %v17595_v14  ;;  %v17598_v17 = vld [vmem:[#allocation154_spill] sm:$0xff]  ;;  %v15397_v7 = vpop.f32.mrf.mxu1  ;;  %v17608_v57 = vld [vmem:[#allocation88_spill] sm:$0xff] }
 0x55a   : > { %v6154_v48 = vadd.f32 %v6026_v32, %v5872_v24  ;;  %v6619_v38 = vmul.f32 %v17597_v53, %v17596_v20  ;;  %v7137_v26 = vrot.slane %v7135_v6, 2  ;;  %v7138_v39 = vrot.slane %v6617_v55, 7 }
 0x55b   : > { %v6434_v59 = vadd.f32 %v6306_v35, %v6152_v27  ;;  %v6155_v22 = vadd.f32 %v6027_v46, %v5873_v50  ;;  %v6435_v21 = vadd.f32 %v6307_v47, %v6153_v56  ;;  %v7141_v18 = vrot.slane %v6618_v31, 7  ;;  %v17606_v35 = vld [vmem:[#allocation167_spill] sm:$0xff]  ;;  %v17609_v27 = vld [vmem:[#allocation100_spill] sm:$0xff]  ;;  %v17612_v31 = vld [vmem:[#allocation186_spill] sm:$0xff] }
 0x55c   : > { %v6436_v15 = vadd.f32 %v6308_v30, %v6154_v48  ;;  %v7572_v28 = vmul.f32 %v17546_v52, %v17594_v9  ;;  %v7139_v5 = vsel %vm10597_vm9, %v7137_v26, %v7138_v39  ;;  %v7140_v25 = vrot.slane %v7138_v39, 2  ;;  %v17611_v48 = vld [vmem:[#allocation165_spill] sm:$0xff]  ;;  %v15418_v39 = vpop.f32.mrf.mxu1 }
 0x55d   : > { %v6437_v19 = vadd.f32 %v6309_v42, %v6155_v22  ;;  %v7144_v43 = vrot.slane %v6619_v38, 7  ;;  %v7143_v13 = vrot.slane %v7141_v18, 2  ;;  %v7418_v45 = vadd.f32 %v7139_v5, %v6434_v59  ;;  %v17610_v42 = vld [vmem:[#allocation163_spill] sm:$0xff]  ;;  %v17613_v22 = vld [vmem:[#allocation182_spill] sm:$0xff] }
 0x55e   : > { %v7573_v29 = vmul.f32 %v17547_v44, %v17595_v14  ;;  %v7574_v6 = vmul.f32 %v17548_v2, %v17596_v20  ;;  %v7142_v3 = vsel %vm10597_vm9, %v7140_v25, %v7141_v18  ;;  %v6028_v34 = vmul.f32 %v17592_v33, %v17598_v17  ;;  %v17614_v38 = vld [vmem:[#allocation107_spill] sm:$0xff] }
 0x55f   : > { %v7146_v52 = vrot.slane %v7144_v43, 2  ;;  %v17600_v1 = vrot.slane %v17599_v12, 7  ;;  %v17602_v60 = vrot.slane %v17601_v8, 9  ;;  %v7145_v32 = vsel %vm10597_vm9, %v7143_v13, %v7144_v43  ;;  %v17617_v8 = vld [vmem:[#allocation187_spill] sm:$0xff] }
 0x560   : > { %v7419_v2 = vadd.f32 %v7142_v3, %v6435_v21  ;;  %v7700_v46 = vadd.f32 %v7572_v28, %v7418_v45  ;;  %v17604_v23 = vrot.slane %v17603_v36, 7  ;;  %v17607_v9 = vrot.slane %v17606_v35, 7  ;;  %v17615_v21 = vld [vmem:[#allocation171_spill] sm:$0xff]  ;;  %v15421_v45 = vpop.f32.mrf.mxu1 }
 0x561   : > { %v7152_v61 = vsel %vm10597_vm9, %v17602_v60, %v17600_v1  ;;  %v7420_v16 = vadd.f32 %v7145_v32, %v6436_v15  ;;  %v6156_v24 = vadd.f32 %v6028_v34, %v17608_v57  ;;  %v7577_v55 = vmul.f32 %v17547_v44, %v17610_v42  ;;  %v17616_v34 = vld [vmem:[#allocation172_spill] sm:$0xff] }
 0x562   : > { %v7155_v33 = vsel %vm10597_vm9, %v17605_v62, %v17604_v23  ;;  %v7148_v47 = vsel %vm10597_vm9, %v7146_v52, %v17607_v9  ;;  %v7701_v30 = vadd.f32 %v7573_v29, %v7419_v2  ;;  %v7828_v20 = vadd.f32 3.0, %v7700_v46  ;;  %v15425_v9 = vpop.f32.mrf.mxu1 }
 0x563   : > { %v7423_v50 = vadd.f32 %v7155_v33, %v17609_v27  ;;  %v7421_v14 = vadd.f32 %v7148_v47, %v6437_v19  ;;  %v7702_v56 = vadd.f32 %v7574_v6, %v7420_v16  ;;  %v6438_v59 = vadd.f32 %v17611_v48, %v6156_v24 }
 0x564   : > { %v7707_v53 = vadd.f32 %v17613_v22, %v17612_v31  ;;  %v7962_v26 = vmax.f32 %v17614_v38, 0.0  ;;  %v7829_v18 = vadd.f32 3.0, %v7701_v30  ;;  %v7956_v28 = vmax.f32 %v7828_v20, 0.0  ;;  %v17618_v20 = vld [vmem:[#allocation26_spill] sm:$0xff]  ;;  %v15432_v48 = vpop.f32.mrf.mxu1  ;;  %v17621_v38 = vld [vmem:[#allocation148_spill] sm:$0xff] }
 0x565   : > { %v7703_v15 = vadd.f32 %v17615_v21, %v7421_v14  ;;  %v7705_v19 = vadd.f32 %v7577_v55, %v7423_v50  ;;  %v7830_v5 = vadd.f32 3.0, %v7702_v56  ;;  %v7422_v25 = vadd.f32 %v7152_v61, %v6438_v59  ;;  %v17620_v55 = vld [vmem:[#allocation105_spill] sm:$0xff] }
 0x566   : > { %v7835_v43 = vadd.f32 3.0, %v7707_v53  ;;  %v8090_v13 = vmin.f32 %v7962_v26, 6.0  ;;  %v7957_v6 = vmax.f32 %v7829_v18, 0.0  ;;  %v8084_v3 = vmin.f32 %v7956_v28, 6.0  ;;  %v17623_v21 = vld [vmem:[#allocation181_spill] sm:$0xff]  ;;  %v17624_v28 = vld [vmem:[#allocation166_spill] sm:$0xff]  ;;  %v15444_v54 = vpop.f32.mrf.mxu1 }
 0x567   : > { %v7831_v29 = vadd.f32 3.0, %v7703_v15  ;;  %v7833_v52 = vadd.f32 3.0, %v7705_v19  ;;  %v7958_v17 = vmax.f32 %v7830_v5, 0.0  ;;  %v7704_v12 = vadd.f32 %v17616_v34, %v7422_v25 }
 0x568   : > { %v7963_v1 = vmax.f32 %v7835_v43, 0.0  ;;  %v8218_v60 = vmul.f32 %v8090_v13, %v17617_v8  ;;  %v8085_v2 = vmin.f32 %v7957_v6, 6.0  ;;  %v8212_v36 = vmul.f32 %v8084_v3, %v7700_v46 }
 0x569   : > { %v7959_v32 = vmax.f32 %v7831_v29, 0.0  ;;  %v7961_v23 = vmax.f32 %v7833_v52, 0.0  ;;  %v8086_v62 = vmin.f32 %v7958_v17, 6.0  ;;  %v7832_v61 = vadd.f32 3.0, %v7704_v12  ;;  %v17625_v29 = vld [vmem:[#allocation180_spill] sm:$0xff]  ;;  %v17627_v17 = vld [vmem:[#allocation183_spill] sm:$0xff] }
 0x56a   : > { %v8091_v33 = vmin.f32 %v7963_v1, 6.0  ;;  %v8346_v35 = vmul.f32 0.16666667, %v8218_v60  ;;  %v8213_v16 = vmul.f32 %v8085_v2, %v7701_v30  ;;  %v8340_v57 = vmul.f32 0.16666667, %v8212_v36  ;;  %v17628_v60 = vld [vmem:[#allocation113_spill] sm:$0xff] }
 0x56b   : > { %v8087_v47 = vmin.f32 %v7959_v32, 6.0  ;;  %v8089_v24 = vmin.f32 %v7961_v23, 6.0  ;;  %v8214_v27 = vmul.f32 %v8086_v62, %v7702_v56  ;;  %v7960_v50 = vmax.f32 %v7832_v61, 0.0  ;;  %v17629_v32 = vld [vmem:[#allocation120_spill] sm:$0xff]  ;;  %v17630_v36 = vld [vmem:[#allocation173_spill] sm:$0xff] }
 0x56c   : > { %v8219_v14 = vmul.f32 %v8091_v33, %v7707_v53  ;;  %v17619_v42 = vrot.slane %v17618_v20, 7  ;;  %v8341_v31 = vmul.f32 0.16666667, %v8213_v16  ;;  %v17622_v26 = vrot.slane %v17621_v38, 7 }
 0x56d   : > { %v8215_v59 = vmul.f32 %v8087_v47, %v7703_v15  ;;  %v8217_v22 = vmul.f32 %v8089_v24, %v7705_v19  ;;  %v8342_v56 = vmul.f32 0.16666667, %v8214_v27  ;;  %v8088_v18 = vmin.f32 %v7960_v50, 6.0  ;;  %v17626_v19 = vld [vmem:[#allocation179_spill] sm:$0xff] }
 0x56e   : > { %v7164_v46 = vsel %vm10597_vm9, %v17620_v55, %v17619_v42  ;;  %v7167_v30 = vsel %vm10597_vm9, %v17623_v21, %v17622_v26  ;;  %v8347_v53 = vmul.f32 0.16666667, %v8219_v14  ;;  %v8977_v43 = vcombine.low %v8340_v57, %v8341_v31  ;;  %v17631_v42 = vld [vmem:[#allocation57_spill] sm:$0xff] }
 0x56f   : > { %v7426_v5 = vadd.f32 %v7164_v46, %v17624_v28  ;;  %v8343_v25 = vmul.f32 0.16666667, %v8215_v59  ;;  %v8345_v13 = vmul.f32 0.16666667, %v8217_v22  ;;  %v7427_v6 = vadd.f32 %v7167_v30, %v17625_v29  ;;  %v10043_v46 = vld [vmem:[%s10168_s22 + $0x28] sm:$0x3] }
 0x570   : > { %v8216_v15 = vmul.f32 %v8088_v18, %v7704_v12  ;;  %v8995_v3 = vcombine.low %v8346_v35, %v8347_v53  ;;  %v7581_v52 = vmul.f32 %v17547_v44, %v17626_v19  ;;  %v8985_v8 = vrot.slane %v8977_v43, %v17120_v40  ;;  %v15452_v44 = vpop.f32.mrf.mxu1  ;;  %v10044_v43 = vld [vmem:[%s10168_s22 + $0x18] sm:$0xff]  ;;  %v10045_v29 = vld [vmem:[%s10168_s22 + $0x20] sm:$0xff] }
 0x571   : > { %v7708_v34 = vadd.f32 %v17627_v17, %v7426_v5  ;;  %v8978_v1 = vcombine.low %v8342_v56, %v8343_v25  ;;  %v7711_v2 = vadd.f32 %v17629_v32, %v17628_v60  ;;  %v7966_v23 = vmax.f32 %v17630_v36, 0.0  ;;  %v10047_v32 = vld [vmem:[%s10168_s22 + $0x30] sm:$0xff]  ;;  %v10048_v36 = vld [vmem:[%s10168_s22 + $0x58] sm:$0x3] }
 0x572   : > { %v8344_v62 = vmul.f32 0.16666667, %v8216_v15  ;;  %v9009_v12 = vrot.slane %v8995_v3, %v17120_v40  ;;  %v7709_v61 = vadd.f32 %v7581_v52, %v7427_v6  ;;  %v9351_v57 = vrot.slane %v15276_v49, 7  ;;  %v15465_v26 = vpop.f32.mrf.mxu1  ;;  %v10046_v15 = vld [vmem:[%s10168_s22 + $0x40] sm:$0x3] }
 0x573   : > { %v7836_v33 = vadd.f32 3.0, %v7708_v34  ;;  %v8992_v35 = vrot.slane %v8978_v1, %v17120_v40  ;;  %v7839_v47 = vadd.f32 3.0, %v7711_v2  ;;  %v8094_v16 = vmin.f32 %v7966_v23, 6.0 }
 0x574   : > { %v8994_v24 = vcombine.low %v8344_v62, %v8345_v13  ;;  %v7837_v27 = vadd.f32 3.0, %v7709_v61  ;;  %v9448_v59 = vadd.f32 %v10043_v46, %v9351_v57  ;;  %v9350_v38 = vrot.slane %v15290_v58, 7  ;;  %v15472_v58 = vpop.f32.mrf.mxu1 }
 0x575   : > { %v7964_v50 = vmax.f32 %v7836_v33, 0.0  ;;  %v8993_v14 = vcombine.low %v8985_v8, %v8992_v35  ;;  %v7967_v20 = vmax.f32 %v7839_v47, 0.0  ;;  %v8222_v55 = vmul.f32 %v8094_v16, %v17631_v42  ;;  %v10051_v47 = vld [vmem:[%s10168_s22 + $0x50] sm:$0xff] }
 0x576   : > { %v9002_v31 = vrot.slane %v8994_v24, %v17120_v40  ;;  %v7965_v22 = vmax.f32 %v7837_v27, 0.0  ;;  %9498 = vst.msk [vmem:[%s15459_s14 + $0xf] sm:$0x1] %vm9497_vm11, %v9448_v59  ;;  %v9354_v56 = vrot.slane %v15296_v11, 7  ;;  %v9352_v5 = vsel %vm3365_vm3, %v9350_v38, %v9351_v57  ;;  %v15492_v62 = vpop.f32.mrf.mxu1  ;;  %v10052_v57 = vld [vmem:[%s10168_s22 + $0x70] sm:$0x3] }
 0x577   : > { %v8092_v49 = vmin.f32 %v7964_v50, 6.0  ;;  %9988 = vmatmul.mubr.msk.f32.gmra.mxu1 %vm9028_vm10, %v8993_v14  ;;  %v8095_v21 = vmin.f32 %v7967_v20, 6.0  ;;  %v8350_v30 = vmul.f32 0.16666667, %v8222_v55  ;;  %v9446_v13 = vadd.f32 %v10044_v43, %v9350_v38  ;;  %v10053_v20 = vld [vmem:[%s10168_s22 + $0x60] sm:$0xff]  ;;  %v10054_v55 = vld [vmem:[%s10168_s22 + $0x68] sm:$0xff] }
 0x578   : > { %v9010_v18 = vcombine.low %v9002_v31, %v9009_v12  ;;  %v8093_v53 = vmin.f32 %v7965_v22, 6.0  ;;  %v9447_v6 = vadd.f32 %v10045_v29, %v9352_v5  ;;  %v9451_v3 = vadd.f32 %v10046_v15, %v9354_v56  ;;  %v15504_v50 = vpop.f32.mrf.mxu1 }
 0x579   : > { %v8220_v28 = vmul.f32 %v8092_v49, %v7708_v34  ;;  %v8223_v25 = vmul.f32 %v8095_v21, %v7711_v2  ;;  %v9353_v52 = vrot.slane %v15306_v4, 7  ;;  %v9357_v17 = vrot.slane %v15314_v37, 7  ;;  %9495 = vst.msk [vmem:[%s15459_s14 - $0x1] sm:$0xfe] %vm9494_vm12, %v9446_v13  ;;  %v10060_v13 = vld [vmem:[%s10168_s22 + $0xb8] sm:$0x3] }
 0x57a   : > { %9990 = vmatprep.mubr.msk.f32.mxu1 %vm9028_vm10, %v9010_v18  ;;  %v8221_v11 = vmul.f32 %v8093_v53, %v7709_v61  ;;  %9496 = vst.msk [vmem:[%s15459_s14 + $0x7] sm:$0xff] %vm1733_vm2, %v9447_v6  ;;  %v9356_v1 = vrot.slane %v15329_v63, 7  ;;  %v9360_v8 = vrot.slane %v15338_v51, 7  ;;  %v9359_v60 = vrot.slane %v15359_v10, 7  ;;  %v10049_v63 = vld [vmem:[%s10168_s22 + $0x38] sm:$0xff]  ;;  %v10050_v61 = vld [vmem:[%s10168_s22 + $0x48] sm:$0xff]  ;;  %v15533_v5 = vpop.f32.mrf.mxu1 }
 0x57b   : > { %v8348_v19 = vmul.f32 0.16666667, %v8220_v28  ;;  %v8351_v34 = vmul.f32 0.16666667, %v8223_v25  ;;  %9501 = vst.msk [vmem:[%s15459_s14 + $0x1f] sm:$0x1] %vm9497_vm11, %v9451_v3  ;;  %v9355_v37 = vsel %vm3365_vm3, %v9353_v52, %v9354_v56  ;;  %v9449_v2 = vadd.f32 %v10047_v32, %v9353_v52 }
 0x57c   : > { %v8349_v4 = vmul.f32 0.16666667, %v8221_v11  ;;  %v9454_v23 = vadd.f32 %v10048_v36, %v9357_v17  ;;  %v9450_v51 = vadd.f32 %v10049_v63, %v9355_v37  ;;  %v9358_v10 = vsel %vm3365_vm3, %v9356_v1, %v9357_v17  ;;  %v10057_v53 = vld [vmem:[%s10168_s22 + $0xa0] sm:$0x3]  ;;  %v10059_v25 = vld [vmem:[%s10168_s22 + $0x90] sm:$0xff]  ;;  %v10061_v6 = vld [vmem:[%s10168_s22 + $0x98] sm:$0xff] }
 0x57d   : > { %v9012_v12 = vcombine.low %v8350_v30, %v8351_v34  ;;  %v9452_v33 = vadd.f32 %v10050_v61, %v9356_v1  ;;  %9499 = vst.msk [vmem:[%s15459_s14 + $0xf] sm:$0xfe] %vm9494_vm12, %v9449_v2  ;;  %v9453_v16 = vadd.f32 %v10051_v47, %v9358_v10  ;;  %v9457_v24 = vadd.f32 %v10052_v57, %v9360_v8  ;;  %v10062_v11 = vld [vmem:[%s10168_s22 + $0xa8] sm:$0xff]  ;;  %v10063_v52 = vld [vmem:[%s10168_s22 + $0xd0] sm:$0x3]  ;;  %v9980_v34 = vpop.f32.mrf.mxu1  ;;  %v10065_v36 = vld [vmem:[%s10168_s22 + $0xc0] sm:$0xff] }
 0x57e   : > { %v9011_v35 = vcombine.low %v8348_v19, %v8349_v4  ;;  %9504 = vst.msk [vmem:[%s15459_s14 + $0x2f] sm:$0x1] %vm9497_vm11, %v9454_v23  ;;  %v9361_v27 = vsel %vm3365_vm3, %v9359_v60, %v9360_v8  ;;  %v9455_v42 = vadd.f32 %v10053_v20, %v9359_v60  ;;  %v9363_v59 = vrot.slane %v15369_v41, 7  ;;  %v10055_v41 = vld [vmem:[%s10168_s22 + $0x88] sm:$0x3]  ;;  %v10064_v1 = vld [vmem:[%s10168_s22 + $0xb0] sm:$0xff] }
 0x57f   : > { %v9026_v14 = vrot.slane %v9012_v12, %v17120_v40  ;;  %9500 = vst.msk [vmem:[%s15459_s14 + $0x17] sm:$0xff] %vm1733_vm2, %v9450_v51  ;;  %v9456_v46 = vadd.f32 %v10054_v55, %v9361_v27  ;;  %9503 = vst.msk [vmem:[%s15459_s14 + $0x27] sm:$0xff] %vm1733_vm2, %v9453_v16  ;;  %v9362_v22 = vrot.slane %v15381_v0, 7  ;;  %v9366_v49 = vrot.slane %v15397_v7, 7  ;;  %v10066_v12 = vld [vmem:[%s10168_s22 + $0xe8] sm:$0x3]  ;;  %v9269_v57 = vpop.f32.mrf.mxu1 }
 0x580   : > { %9502 = vst.msk [vmem:[%s15459_s14 + $0x1f] sm:$0xfe] %vm9494_vm12, %v9452_v33  ;;  %v9019_v31 = vrot.slane %v9011_v35, %v17120_v40  ;;  %v9365_v38 = vrot.slane %v15418_v39, 7  ;;  %9505 = vst.msk [vmem:[%s15459_s14 + $0x2f] sm:$0xfe] %vm9494_vm12, %v9455_v42  ;;  %v9460_v40 = vadd.f32 %v10055_v41, %v9363_v59  ;;  %v9369_v21 = vrot.slane %v15421_v45, 7 }
 0x581   : > { %9507 = vst.msk [vmem:[%s15459_s14 + $0x3f] sm:$0x1] %vm9497_vm11, %v9457_v24  ;;  %v9368_v30 = vrot.slane %v15425_v9, 7  ;;  %v9372_v0 = vrot.slane %v15432_v48, 7  ;;  %v9364_v7 = vsel %vm3365_vm3, %v9362_v22, %v9363_v59  ;;  %v10056_v39 = vld [vmem:[%s10168_s22 + $0x78] sm:$0xff]  ;;  %v9463_v28 = vadd.f32 %v10057_v53, %v9366_v49  ;;  %v10058_v45 = vld [vmem:[%s10168_s22 + $0x80] sm:$0xff] }
 0x582   : > { %9506 = vst.msk [vmem:[%s15459_s14 + $0x37] sm:$0xff] %vm1733_vm2, %v9456_v46  ;;  %v9027_v56 = vcombine.low %v9019_v31, %v9026_v14  ;;  %v9458_v18 = vadd.f32 %v10056_v39, %v9362_v22  ;;  %v9459_v9 = vadd.f32 %v10058_v45, %v9364_v7  ;;  %v9367_v48 = vsel %vm3365_vm3, %v9365_v38, %v9366_v49  ;;  %v10068_v10 = vld [vmem:[%s10168_s22 + $0xd8] sm:$0xff]  ;;  %v10069_v33 = vld [vmem:[%s10168_s22 + $0xe0] sm:$0xff]  ;;  %v10071_v27 = vld [vmem:[%s10168_s22 + $0xf0] sm:$0xff] }
 0x583   : > { %9510 = vst.msk [vmem:[%s15459_s14 + $0x4f] sm:$0x1] %vm9497_vm11, %v9460_v40  ;;  %v9461_v43 = vadd.f32 %v10059_v25, %v9365_v38  ;;  %v9466_v29 = vadd.f32 %v10060_v13, %v9369_v21  ;;  %9513 = vst.msk [vmem:[%s15459_s14 + $0x5f] sm:$0x1] %vm9497_vm11, %v9463_v28  ;;  %v9462_v15 = vadd.f32 %v10061_v6, %v9367_v48  ;;  %v9371_v60 = vrot.slane %v15444_v54, 7  ;;  %v10073_v55 = vld [vmem:[%s10168_s22 + $0xf8] sm:$0xff] }
 0x584   : > { %9991 = vmatmul.mubr.msk.f32.gmra.mxu1 %vm9028_vm10, %v9027_v56  ;;  %9508 = vst.msk [vmem:[%s15459_s14 + $0x3f] sm:$0xfe] %vm9494_vm12, %v9458_v18  ;;  %v9370_v3 = vsel %vm3365_vm3, %v9368_v30, %v9369_v21  ;;  %v9464_v19 = vadd.f32 %v10062_v11, %v9368_v30  ;;  %v9469_v17 = vadd.f32 %v10063_v52, %v9372_v0  ;;  %v9375_v4 = vrot.slane %v15452_v44, 7  ;;  %v10070_v47 = vld [vmem:[%s10168_s22 + $0x100] sm:$0x3]  ;;  %v10074_v59 = vld [vmem:[%s10168_s22 + $0x108] sm:$0xff] }
 0x585   : > { %9509 = vst.msk [vmem:[%s15459_s14 + $0x47] sm:$0xff] %vm1733_vm2, %v9459_v9  ;;  %v9465_v8 = vadd.f32 %v10064_v1, %v9370_v3  ;;  %v9374_v37 = vrot.slane %v15465_v26, 7  ;;  %9512 = vst.msk [vmem:[%s15459_s14 + $0x57] sm:$0xff] %vm1733_vm2, %v9462_v15  ;;  %v9378_v32 = vrot.slane %v15472_v58, 7  ;;  %v9377_v2 = vrot.slane %v15492_v62, 7  ;;  %v10067_v62 = vld [vmem:[%s10168_s22 + $0xc8] sm:$0xff] }
 0x586   : > { %9511 = vst.msk [vmem:[%s15459_s14 + $0x4f] sm:$0xfe] %vm9494_vm12, %v9461_v43  ;;  %9514 = vst.msk [vmem:[%s15459_s14 + $0x5f] sm:$0xfe] %vm9494_vm12, %v9464_v19  ;;  %v9381_v54 = vrot.slane %v15504_v50, 7  ;;  %v9380_v44 = vrot.slane %v15533_v5, 7  ;;  %v9373_v26 = vsel %vm3365_vm3, %v9371_v60, %v9372_v0  ;;  %v9467_v23 = vadd.f32 %v10065_v36, %v9371_v60 }
 0x587   : > { %9516 = vst.msk [vmem:[%s15459_s14 + $0x6f] sm:$0x1] %vm9497_vm11, %v9466_v29  ;;  %9519 = vst.msk [vmem:[%s15459_s14 + $0x7f] sm:$0x1] %vm9497_vm11, %v9469_v17  ;;  %v9472_v63 = vadd.f32 %v10066_v12, %v9375_v4  ;;  %v9376_v58 = vsel %vm3365_vm3, %v9374_v37, %v9375_v4  ;;  %v9468_v51 = vadd.f32 %v10067_v62, %v9373_v26  ;;  %v10072_v14 = vld [vmem:[%s10168_s22 + $0x118] sm:$0x3] }
 0x588   : > { %9515 = vst.msk [vmem:[%s15459_s14 + $0x67] sm:$0xff] %vm1733_vm2, %v9465_v8  ;;  %v9470_v61 = vadd.f32 %v10068_v10, %v9374_v37  ;;  %v9471_v35 = vadd.f32 %v10069_v33, %v9376_v58  ;;  %v9475_v16 = vadd.f32 %v10070_v47, %v9378_v32  ;;  %v9379_v24 = vsel %vm3365_vm3, %v9377_v2, %v9378_v32  ;;  %v10075_v22 = vld [vmem:[%s10168_s22 + $0x110] sm:$0xff]  ;;  %v10077_v0 = vld [vmem:[%s10168_s22 + $0x120] sm:$0xff]  ;;  %v10078_v7 = vld [vmem:[%s10168_s22 + $0x128] sm:$0xff] }
 0x589   : > { %9517 = vst.msk [vmem:[%s15459_s14 + $0x6f] sm:$0xfe] %vm9494_vm12, %v9467_v23  ;;  %v9473_v50 = vadd.f32 %v10071_v27, %v9377_v2  ;;  %v9478_v20 = vadd.f32 %v10072_v14, %v9381_v54  ;;  %v9382_v42 = vsel %vm3365_vm3, %v9380_v44, %v9381_v54  ;;  %v9474_v46 = vadd.f32 %v10073_v55, %v9379_v24  ;;  %v10076_v40 = vld [vmem:[%s10168_s22 + $0x130] sm:$0x3]  ;;  %v10079_v5 = vld [vmem:[%s10168_s22 + $0x148] sm:$0x3] }
 0x58a   : > { %9522 = vst.msk [vmem:[%s15459_s14 + $0x8f] sm:$0x1] %vm9497_vm11, %v9472_v63  ;;  %9525 = vst.msk [vmem:[%s15459_s14 + $0x9f] sm:$0x1] %vm9497_vm11, %v9475_v16  ;;  %v9476_v31 = vadd.f32 %v10074_v59, %v9380_v44  ;;  %v9477_v49 = vadd.f32 %v10075_v22, %v9382_v42  ;;  %v9384_v38 = vrot.slane %v9980_v34, 7  ;;  %v9383_v41 = vrot.slane %v9269_v57, 7 }
 0x58b   : > { %9518 = vst.msk [vmem:[%s15459_s14 + $0x77] sm:$0xff] %vm1733_vm2, %v9468_v51  ;;  %9521 = vst.msk [vmem:[%s15459_s14 + $0x87] sm:$0xff] %vm1733_vm2, %v9471_v35  ;;  %v10080_v25 = vld [vmem:[%s10168_s22 + $0x138] sm:$0xff]  ;;  %v10081_v13 = vld [vmem:[%s10168_s22 + $0x140] sm:$0xff] }
 0x58c   : > { %9520 = vst.msk [vmem:[%s15459_s14 + $0x7f] sm:$0xfe] %vm9494_vm12, %v9470_v61  ;;  %9523 = vst.msk [vmem:[%s15459_s14 + $0x8f] sm:$0xfe] %vm9494_vm12, %v9473_v50  ;;  %v9481_v21 = vadd.f32 %v10076_v40, %v9384_v38  ;;  %v9385_v30 = vsel %vm3365_vm3, %v9383_v41, %v9384_v38  ;;  %v9479_v56 = vadd.f32 %v10077_v0, %v9383_v41  ;;  %v10082_v11 = vld [vmem:[%s10168_s22 + $0x160] sm:$0x3] }
 0x58d   : > { %9528 = vst.msk [vmem:[%s15459_s14 + $0xaf] sm:$0x1] %vm9497_vm11, %v9478_v20  ;;  %v9480_v39 = vadd.f32 %v10078_v7, %v9385_v30  ;;  %v10083_v34 = vld [vmem:[%s10168_s22 + $0x150] sm:$0xff]  ;;  %v10084_v8 = vld [vmem:[%s10168_s22 + $0x158] sm:$0xff]  ;;  %v10086_v36 = vld [vmem:[%s10168_s22 + $0x168] sm:$0xff] }
 0x58e   : > { %9524 = vst.msk [vmem:[%s15459_s14 + $0x97] sm:$0xff] %vm1733_vm2, %v9474_v46  ;;  %9527 = vst.msk [vmem:[%s15459_s14 + $0xa7] sm:$0xff] %vm1733_vm2, %v9477_v49  ;;  %v10085_v2 = vld [vmem:[%s10168_s22 + $0x178] sm:$0x3]  ;;  %v10087_v12 = vld [vmem:[%s10168_s22 + $0x170] sm:$0xff] }
 0x58f   : > { %9526 = vst.msk [vmem:[%s15459_s14 + $0x9f] sm:$0xfe] %vm9494_vm12, %v9476_v31  ;;  %9529 = vst.msk [vmem:[%s15459_s14 + $0xaf] sm:$0xfe] %vm9494_vm12, %v9479_v56  ;;  %v10088_v10 = vld [vmem:[%s10168_s22 + $0x190] sm:$0x3] }
 0x590   : > { %9531 = vst.msk [vmem:[%s15459_s14 + $0xbf] sm:$0x1] %vm9497_vm11, %v9481_v21  ;;  %v10089_v47 = vld [vmem:[%s10168_s22 + $0x180] sm:$0xff]  ;;  %v10090_v57 = vld [vmem:[%s10168_s22 + $0x188] sm:$0xff] }
 0x591   : > { %9530 = vst.msk [vmem:[%s15459_s14 + $0xb7] sm:$0xff] %vm1733_vm2, %v9480_v39 }
 0x5b6   : > { %v9983_v18 = vpop.f32.mrf.mxu1 }
 0x5b7   : > { %v9387_v53 = vrot.slane %v9983_v18, 7 }
 0x5b8   : > { %v9279_v28 = vpop.f32.mrf.mxu1 }
 0x5b9   : > { %v9484_v45 = vadd.f32 %v10079_v5, %v9387_v53  ;;  %v9386_v9 = vrot.slane %v9279_v28, 7 }
 0x5bb   : > { %9534 = vst.msk [vmem:[%s15459_s14 + $0xcf] sm:$0x1] %vm9497_vm11, %v9484_v45  ;;  %v9388_v48 = vsel %vm3365_vm3, %v9386_v9, %v9387_v53  ;;  %v9482_v43 = vadd.f32 %v10080_v25, %v9386_v9 }
 0x5bc   : > { %v9483_v29 = vadd.f32 %v10081_v13, %v9388_v48 }
 0x5bd   : > { %9532 = vst.msk [vmem:[%s15459_s14 + $0xbf] sm:$0xfe] %vm9494_vm12, %v9482_v43 }
 0x5be   : > { %9533 = vst.msk [vmem:[%s15459_s14 + $0xc7] sm:$0xff] %vm1733_vm2, %v9483_v29 }
 0x5f8   : > { %v9986_v6 = vpop.f32.mrf.mxu1 }
 0x5f9   : > { %v9390_v15 = vrot.slane %v9986_v6, 7 }
 0x5fa   : > { %v9289_v3 = vpop.f32.mrf.mxu1 }
 0x5fb   : > { %v9487_v19 = vadd.f32 %v10082_v11, %v9390_v15  ;;  %v9389_v52 = vrot.slane %v9289_v3, 7 }
 0x5fd   : > { %9537 = vst.msk [vmem:[%s15459_s14 + $0xdf] sm:$0x1] %vm9497_vm11, %v9487_v19  ;;  %v9391_v17 = vsel %vm3365_vm3, %v9389_v52, %v9390_v15  ;;  %v9485_v1 = vadd.f32 %v10083_v34, %v9389_v52 }
 0x5fe   : > { %v9486_v60 = vadd.f32 %v10084_v8, %v9391_v17 }
 0x5ff   : > { %9535 = vst.msk [vmem:[%s15459_s14 + $0xcf] sm:$0xfe] %vm9494_vm12, %v9485_v1 }
 0x600   : > { %9536 = vst.msk [vmem:[%s15459_s14 + $0xd7] sm:$0xff] %vm1733_vm2, %v9486_v60 }
 0x637   : > { %v9989_v4 = vpop.f32.mrf.mxu1 }
 0x638   : > { %v9393_v37 = vrot.slane %v9989_v4, 7 }
 0x639   : > { %v9299_v32 = vpop.f32.mrf.mxu1 }
 0x63a   : > { %v9490_v54 = vadd.f32 %v10085_v2, %v9393_v37  ;;  %v9392_v44 = vrot.slane %v9299_v32, 7 }
 0x63c   : > { %9540 = vst.msk [vmem:[%s15459_s14 + $0xef] sm:$0x1] %vm9497_vm11, %v9490_v54  ;;  %v9394_v26 = vsel %vm3365_vm3, %v9392_v44, %v9393_v37  ;;  %v9488_v23 = vadd.f32 %v10086_v36, %v9392_v44 }
 0x63d   : > { %v9489_v63 = vadd.f32 %v10087_v12, %v9394_v26 }
 0x63e   : > { %9538 = vst.msk [vmem:[%s15459_s14 + $0xdf] sm:$0xfe] %vm9494_vm12, %v9488_v23 }
 0x63f   : > { %9539 = vst.msk [vmem:[%s15459_s14 + $0xe7] sm:$0xff] %vm1733_vm2, %v9489_v63 }
 0x644   : > { %v9992_v58 = vpop.f32.mrf.mxu1 }
 0x645   : > { %v9396_v62 = vrot.slane %v9992_v58, 7 }
 0x646   : > { %v9309_v51 = vpop.f32.mrf.mxu1 }
 0x647   : > { %v9493_v61 = vadd.f32 %v10088_v10, %v9396_v62  ;;  %v9395_v33 = vrot.slane %v9309_v51, 7 }
 0x649   : > { %9543 = vst.msk [vmem:[%s15459_s14 + $0xff] sm:$0x1] %vm9497_vm11, %v9493_v61  ;;  %v9397_v35 = vsel %vm3365_vm3, %v9395_v33, %v9396_v62  ;;  %v9491_v16 = vadd.f32 %v10089_v47, %v9395_v33 }
 0x64a   : > { %v9492_v24 = vadd.f32 %v10090_v57, %v9397_v35 }
 0x64b   : > { %9541 = vst.msk [vmem:[%s15459_s14 + $0xef] sm:$0xfe] %vm9494_vm12, %v9491_v16 }
 0x64c   : > { %9542 = vst.msk [vmem:[%s15459_s14 + $0xf7] sm:$0xff] %vm1733_vm2, %v9492_v24 }
 0x64d PF: > { %s14_s15 = sadd.s32 1, %s10113_s15  }
 0x64e   : > { %p11_p4 = scmp.ge.s32.totalorder %s14_s15, 4  }
 0x650   :  { %13 = sbr.rel (!%p11_p4) target bundleno = 1 (0x1), region = 66 }

</bundles_post_ra>
